<compile_context>
chip_gen: v7x
topology: tpu7x:2x2x1
jax: 0.10.0
libtpu: 0.0.40
codegen_flags: <defaults>
</compile_context>

<pallas_src>
import functools

import jax
import jax.numpy as jnp
from jax import lax
from jax.experimental import pallas as pl
from jax.experimental.pallas import tpu as pltpu


# ----------------------------------------------------------------------------
# Pallas flash-attention forward kernel (online softmax), returns O and LSE.
# ----------------------------------------------------------------------------
def _flash_fwd_kernel(q_ref, k_ref, v_ref, o_ref, lse_ref,
                      m_sc, l_sc, acc_sc, *, scale, causal, tq, tk):
    qi = pl.program_id(1)
    ki = pl.program_id(2)

    @pl.when(ki == 0)
    def _init():
        m_sc[...] = jnp.full_like(m_sc, -jnp.inf)
        l_sc[...] = jnp.zeros_like(l_sc)
        acc_sc[...] = jnp.zeros_like(acc_sc)

    def _compute_block():
        # Scale q once per (tq, D) tile (cheaper than scaling the (tq, tk) scores).
        q = q_ref[...] * scale          # bf16 (tq, D)
        k = k_ref[...]                  # bf16 (tk, D)
        v = v_ref[...]                  # bf16 (tk, Dv)

        # QK^T on the MXU: bf16 operands, f32 accumulation.
        s = lax.dot_general(q, k, (((1,), (1,)), ((), ())),
                            preferred_element_type=jnp.float32)   # (tq, tk)

        if causal:
            # Broadcast compare: (tq,1) >= (1,tk) -> (tq,tk); cheaper than two
            # full-size iotas. Fully-masked blocks never reach this point.
            q_pos = qi * tq + lax.broadcasted_iota(jnp.int32, (tq, 1), 0)
            k_pos = ki * tk + lax.broadcasted_iota(jnp.int32, (1, tk), 1)
            s = jnp.where(q_pos >= k_pos, s, -jnp.inf)

        m_prev = m_sc[...]                                         # (tq, 1)
        m_new = jnp.maximum(m_prev, s.max(axis=-1, keepdims=True))
        alpha = jnp.exp(m_prev - m_new)
        p = jnp.exp(s - m_new)                                     # (tq, tk) f32

        l_sc[...] = alpha * l_sc[...] + p.sum(axis=-1, keepdims=True)
        # P@V on the MXU: bf16 operands, f32 accumulation.
        acc_sc[...] = alpha * acc_sc[...] + jnp.dot(
            p.astype(jnp.bfloat16), v, preferred_element_type=jnp.float32)
        m_sc[...] = m_new

    if causal:
        # Skip K blocks that lie entirely above the diagonal (fully masked).
        # ki == 0 is always processed, so m_sc is finite before any alpha use.
        @pl.when(ki * tk <= qi * tq + (tq - 1))
        def _():
            _compute_block()
    else:
        _compute_block()

    @pl.when(ki == pl.num_programs(2) - 1)
    def _finalize():
        inv_l = pl.reciprocal(l_sc[...], approx=True)              # EUP slot
        o_ref[...] = (acc_sc[...] * inv_l).astype(o_ref.dtype)
        lse_ref[...] = (m_sc[...] + jnp.log(l_sc[...])).astype(lse_ref.dtype)


def _pick_tile(s, candidates):
    for t in candidates:
        if s % t == 0:
            return t
    return s


def flash_attention_pallas(q, k, v, scale, causal=False):
    """q, k: (BH, S, D); v: (BH, S, Dv). Returns (o (BH,S,Dv), lse (BH,S,1))."""
    BH, S, D = q.shape
    Dv = v.shape[-1]

    # Big q tiles amortize K/V HBM passes and per-grid-step overhead; tk=256
    # fills the 256-wide MXU on v6e/v7x (harmless two-pass on v5e's 128-wide MXU).
    tq = _pick_tile(S, (512, 256, 128))
    tk = _pick_tile(S, (256, 128))
    assert S % tq == 0 and S % tk == 0 and tq % 8 == 0, (
        "sequence length must be a multiple of 128 (or < 128 and a multiple of 8)")

    out_dtype = q.dtype
    # bf16 operands for the MXU; f32 accumulation stays inside the kernel.
    qf = q.astype(jnp.bfloat16)
    kf = k.astype(jnp.bfloat16)
    vf = v.astype(jnp.bfloat16)

    def q_map(b, i, j):
        return (b, i, 0)

    def kv_map(b, i, j):
        if causal:
            # Clamp so fully-masked (skipped) blocks reuse the previously
            # fetched K/V tile -> Pallas elides their HBM DMAs.
            j = jnp.minimum(j, ((i + 1) * tq - 1) // tk)
        return (b, j, 0)

    kernel = functools.partial(_flash_fwd_kernel, scale=scale, causal=causal,
                               tq=tq, tk=tk)
    grid = (BH, S // tq, S // tk)

    out, lse = pl.pallas_call(
        kernel,
        out_shape=(jax.ShapeDtypeStruct((BH, S, Dv), out_dtype),
                   jax.ShapeDtypeStruct((BH, S, 1), jnp.float32)),
        grid_spec=pltpu.PrefetchScalarGridSpec(
            num_scalar_prefetch=0,
            grid=grid,
            in_specs=[
                pl.BlockSpec((None, tq, D), q_map),     # q  (tq, D)
                pl.BlockSpec((None, tk, D), kv_map),    # k  (tk, D)
                pl.BlockSpec((None, tk, Dv), kv_map),   # v  (tk, Dv)
            ],
            out_specs=[
                pl.BlockSpec((None, tq, Dv), lambda b, i, j: (b, i, 0)),
                pl.BlockSpec((None, tq, 1), lambda b, i, j: (b, i, 0)),
            ],
            scratch_shapes=[
                pltpu.VMEM((tq, 1), jnp.float32),    # running max m
                pltpu.VMEM((tq, 1), jnp.float32),    # running sum l
                pltpu.VMEM((tq, Dv), jnp.float32),   # output accumulator
            ],
        ),
        compiler_params=pltpu.CompilerParams(
            dimension_semantics=("parallel", "parallel", "arbitrary"),
            vmem_limit_bytes=32 * 1024 * 1024),   # safe on v5e/v6e/v7x
    )(qf, kf, vf)
    return out, lse


# ----------------------------------------------------------------------------
# HyperAttention module (JAX / Pallas version)
# ----------------------------------------------------------------------------
class HyperAttentionPallas:
    def __init__(self, input_dim=64, lsh_num_projs=8, block_size=256,
                 sample_size=256, min_seq_len=2048, smooth_block=False):
        self.input_dim = input_dim
        self.lsh_num_projs = lsh_num_projs
        self.block_size = block_size
        self.sample_size = sample_size
        self.min_seq_len = min_seq_len
        self.smooth_block = smooth_block
        # AngularLSH projection directions, deterministic init.
        self.lsh_proj = jax.random.normal(
            jax.random.PRNGKey(42), (1, 1, input_dim, lsh_num_projs),
            dtype=jnp.float32)

    # --- AngularLSH hash (plain JAX glue; only needed for long-seq path) ---
    def lsh_hash(self, x):
        proj = jnp.einsum("bhnd,uvdp->bhnp", x.astype(jnp.float32),
                          self.lsh_proj)
        bits = (proj > 0).astype(jnp.int32)
        weights = (2 ** jnp.arange(self.lsh_num_projs, dtype=jnp.int32))
        return jnp.sum(bits * weights, axis=-1)

    # --- internal: fold (B,H) and call the Pallas kernel ---
    def _flash(self, q, k, v, scale, causal):
        B, H, N, D = q.shape
        Dv = v.shape[-1]
        qf = q.reshape(B * H, N, D)
        kf = k.reshape(B * H, N, D)
        vf = v.reshape(B * H, N, Dv)
        o, lse = flash_attention_pallas(qf, kf, vf, scale, causal=causal)
        return o.reshape(B, H, N, Dv), lse.reshape(B, H, N, 1)

    def forward_no_causal_mask(self, query, key, value, scale):
        B, H, N, D = query.shape
        if self.min_seq_len > N:
            attn, lse = self._flash(query, key, value, scale, causal=False)
        else:
            # TODO(synk): LSH hash + stable sort + block-diagonal & sampled
            # attention (hyper_attn_func) — data-dependent gather/sort pipeline.
            raise NotImplementedError("LSH-sorted hyper attention path")
        return attn, lse  # lse has trailing singleton dim (B,H,N,1)

    def __call__(self, query, key, value, scale=None, causal=False,
                 return_lse=False):
        n_query = query.shape[2]
        B, H, n_key, D = key.shape
        scale = scale if scale is not None else D ** (-0.5)
        assert n_query == n_key

        if causal is False:
            attn, lse = self.forward_no_causal_mask(query, key, value, scale)
        elif n_key <= self.min_seq_len:
            attn, lse = self._flash(query, key, value, scale, causal=True)
        else:
            # TODO(synk): recursive causal partitioning (block-diag halves +
            # unmasked cross term combined via add_self_attentions).
            raise NotImplementedError("long-sequence causal recursion")

        if not return_lse:
            return attn
        return attn, lse


# ----------------------------------------------------------------------------
# Reference (pure JAX) for correctness check
# ----------------------------------------------------------------------------
def _reference_attention(q, k, v, scale, causal=False):
    s = jnp.einsum("bhqd,bhkd->bhqk", q.astype(jnp.float32),
                   k.astype(jnp.float32)) * scale
    if causal:
        S = s.shape[-1]
        mask = jnp.tril(jnp.ones((S, S), dtype=bool))
        s = jnp.where(mask, s, -jnp.inf)
    lse = jax.nn.logsumexp(s, axis=-1, keepdims=True)
    p = jnp.exp(s - lse)
    o = jnp.einsum("bhqk,bhkd->bhqd", p, v.astype(jnp.float32))
    return o, lse


if __name__ == "__main__":
    B, H, S, D = 2, 2, 512, 64   # input_dim=64 (module default); S < min_seq_len

    key0 = jax.random.PRNGKey(0)
    kq, kk, kv = jax.random.split(key0, 3)
    q = jax.random.normal(kq, (B, H, S, D), dtype=jnp.float32)
    k = jax.random.normal(kk, (B, H, S, D), dtype=jnp.float32)
    v = jax.random.normal(kv, (B, H, S, D), dtype=jnp.float32)

    module = HyperAttentionPallas(input_dim=D)
    scale = D ** (-0.5)

    # --- non-causal (forward_no_causal_mask, exact flash path) ---
    attn, lse = module(q, k, v, scale=None, causal=False, return_lse=True)
    attn = jax.block_until_ready(attn)
    lse = jax.block_until_ready(lse)

    # Kernel uses bf16 MXU operands -> compare against a reference evaluated
    # on the same bf16-rounded inputs.
    qb = q.astype(jnp.bfloat16).astype(jnp.float32)
    kb = k.astype(jnp.bfloat16).astype(jnp.float32)
    vb = v.astype(jnp.bfloat16).astype(jnp.float32)

    attn_ref, lse_ref = _reference_attention(qb, kb, vb, scale, causal=False)
    assert attn.shape == (B, H, S, D) and lse.shape == (B, H, S, 1)
    assert jnp.allclose(attn, attn_ref, atol=2e-2, rtol=2e-2)
    assert jnp.allclose(lse, lse_ref, atol=2e-2, rtol=2e-2)

    # --- causal (n_key <= min_seq_len branch) ---
    attn_c, lse_c = module(q, k, v, causal=True, return_lse=True)
    attn_c = jax.block_until_ready(attn_c)
    lse_c = jax.block_until_ready(lse_c)
    attn_c_ref, lse_c_ref = _reference_attention(qb, kb, vb, scale, causal=True)
    assert jnp.allclose(attn_c, attn_c_ref, atol=2e-2, rtol=2e-2)
    assert jnp.allclose(lse_c, lse_c_ref, atol=2e-2, rtol=2e-2)

    print("KERNEL_OK")
</pallas_src>

<mosaic_0001>
module attributes {stable_mosaic.version = 11 : i64} {
  func.func @_flash_fwd_kernel(%arg0: i32, %arg1: i32, %arg2: i32, %arg3: memref<1x512x64xbf16, #tpu.memory_space<vmem>>, %arg4: memref<1x256x64xbf16, #tpu.memory_space<vmem>>, %arg5: memref<1x256x64xbf16, #tpu.memory_space<vmem>>, %arg6: memref<1x512x64xf32, #tpu.memory_space<vmem>>, %arg7: memref<1x512x1xf32, #tpu.memory_space<vmem>>, %arg8: memref<512x1xf32, #tpu.memory_space<vmem>>, %arg9: memref<512x1xf32, #tpu.memory_space<vmem>>, %arg10: memref<512x64xf32, #tpu.memory_space<vmem>>) attributes {dimension_semantics = [#tpu.dimension_semantics<parallel>, #tpu.dimension_semantics<parallel>, #tpu.dimension_semantics<arbitrary>], iteration_bounds = array<i64: 4, 1, 2>, scalar_prefetch = 0 : i64, scratch_operands = 3 : i64, tpu.core_type = #tpu.core_type<tc>, window_params = [{transform_indices = @transform_0, window_bounds = array<i64: 1, 512, 64>}, {transform_indices = @transform_1, window_bounds = array<i64: 1, 256, 64>}, {transform_indices = @transform_2, window_bounds = array<i64: 1, 256, 64>}, {transform_indices = @transform_3, window_bounds = array<i64: 1, 512, 64>}, {transform_indices = @transform_4, window_bounds = array<i64: 1, 512, 1>}]} {
    %c0_i32 = arith.constant 0 : i32
    %0 = arith.cmpi eq, %arg2, %c0_i32 : i32
    %1 = arith.extui %0 : i1 to i32
    %c0_i32_0 = arith.constant 0 : i32
    %2 = arith.cmpi ne, %1, %c0_i32_0 : i32
    scf.if %2 {
      %cst_26 = arith.constant 0xFF800000 : f32
      %38 = vector.broadcast %cst_26 : f32 to vector<512x1xf32>
      %c0_27 = arith.constant 0 : index
      %c0_28 = arith.constant 0 : index
      %39 = vector.load %arg8[%c0_27, %c0_28] : memref<512x1xf32, #tpu.memory_space<vmem>>, vector<512x1xf32>
      tpu.vector_store %arg8[%c0_27, %c0_28], %38 {strides = array<i32>} : memref<512x1xf32, #tpu.memory_space<vmem>>, vector<512x1xf32>,
      %cst_29 = arith.constant 0.000000e+00 : f32
      %40 = vector.broadcast %cst_29 : f32 to vector<512x1xf32>
      %c0_30 = arith.constant 0 : index
      %c0_31 = arith.constant 0 : index
      %41 = vector.load %arg9[%c0_30, %c0_31] : memref<512x1xf32, #tpu.memory_space<vmem>>, vector<512x1xf32>
      tpu.vector_store %arg9[%c0_30, %c0_31], %40 {strides = array<i32>} : memref<512x1xf32, #tpu.memory_space<vmem>>, vector<512x1xf32>,
      %cst_32 = arith.constant 0.000000e+00 : f32
      %42 = vector.broadcast %cst_32 : f32 to vector<512x64xf32>
      %c0_33 = arith.constant 0 : index
      %c0_34 = arith.constant 0 : index
      %43 = vector.load %arg10[%c0_33, %c0_34] : memref<512x64xf32, #tpu.memory_space<vmem>>, vector<512x64xf32>
      tpu.vector_store %arg10[%c0_33, %c0_34], %42 {strides = array<i32>} : memref<512x64xf32, #tpu.memory_space<vmem>>, vector<512x64xf32>,
    } else {
    }
    %c0 = arith.constant 0 : index
    %c0_1 = arith.constant 0 : index
    %c0_2 = arith.constant 0 : index
    %3 = vector.load %arg3[%c0, %c0_1, %c0_2] : memref<1x512x64xbf16, #tpu.memory_space<vmem>>, vector<1x512x64xbf16>
    %4 = vector.shape_cast %3 : vector<1x512x64xbf16> to vector<512x64xbf16>
    %cst = arith.constant 1.250000e-01 : bf16
    %5 = vector.broadcast %cst : bf16 to vector<512x64xbf16>
    %6 = arith.mulf %4, %5 : vector<512x64xbf16>
    %c0_3 = arith.constant 0 : index
    %c0_4 = arith.constant 0 : index
    %c0_5 = arith.constant 0 : index
    %7 = vector.load %arg4[%c0_3, %c0_4, %c0_5] : memref<1x256x64xbf16, #tpu.memory_space<vmem>>, vector<1x256x64xbf16>
    %8 = vector.shape_cast %7 : vector<1x256x64xbf16> to vector<256x64xbf16>
    %c0_6 = arith.constant 0 : index
    %c0_7 = arith.constant 0 : index
    %c0_8 = arith.constant 0 : index
    %9 = vector.load %arg5[%c0_6, %c0_7, %c0_8] : memref<1x256x64xbf16, #tpu.memory_space<vmem>>, vector<1x256x64xbf16>
    %10 = vector.shape_cast %9 : vector<1x256x64xbf16> to vector<256x64xbf16>
    %cst_9 = arith.constant dense<0.000000e+00> : vector<512x256xf32>
    %11 = tpu.matmul %6, %8, %cst_9 {dimension_numbers = #tpu.dot_dimension_numbers<[1], [1], [0], [0], [0, 0, 1, 0], [], []>} : vector<512x64xbf16>, vector<256x64xbf16>, vector<512x256xf32> -> vector<512x256xf32>
    %c0_10 = arith.constant 0 : index
    %c0_11 = arith.constant 0 : index
    %12 = vector.load %arg8[%c0_10, %c0_11] : memref<512x1xf32, #tpu.memory_space<vmem>>, vector<512x1xf32>
    %cst_12 = arith.constant dense<0xFF800000> : vector<512xf32>
    %13 = vector.multi_reduction <maximumf>, %11, %cst_12 [1] : vector<512x256xf32> to vector<512xf32>
    %14 = vector.shape_cast %13 : vector<512xf32> to vector<512x1xf32>
    %15 = arith.maximumf %12, %14 : vector<512x1xf32>
    %16 = arith.subf %12, %15 : vector<512x1xf32>
    %17 = math.exp %16 : vector<512x1xf32>
    %18 = vector.broadcast %15 : vector<512x1xf32> to vector<512x256xf32>
    %19 = arith.subf %11, %18 : vector<512x256xf32>
    %20 = math.exp %19 : vector<512x256xf32>
    %c0_13 = arith.constant 0 : index
    %c0_14 = arith.constant 0 : index
    %21 = vector.load %arg9[%c0_13, %c0_14] : memref<512x1xf32, #tpu.memory_space<vmem>>, vector<512x1xf32>
    %22 = arith.mulf %17, %21 : vector<512x1xf32>
    %cst_15 = arith.constant dense<0.000000e+00> : vector<512xf32>
    %23 = vector.multi_reduction <add>, %20, %cst_15 [1] : vector<512x256xf32> to vector<512xf32>
    %24 = vector.shape_cast %23 : vector<512xf32> to vector<512x1xf32>
    %25 = arith.addf %22, %24 : vector<512x1xf32>
    %c0_16 = arith.constant 0 : index
    %c0_17 = arith.constant 0 : index
    %26 = vector.load %arg9[%c0_16, %c0_17] : memref<512x1xf32, #tpu.memory_space<vmem>>, vector<512x1xf32>
    tpu.vector_store %arg9[%c0_16, %c0_17], %25 {strides = array<i32>} : memref<512x1xf32, #tpu.memory_space<vmem>>, vector<512x1xf32>,
    %c0_18 = arith.constant 0 : index
    %c0_19 = arith.constant 0 : index
    %27 = vector.load %arg10[%c0_18, %c0_19] : memref<512x64xf32, #tpu.memory_space<vmem>>, vector<512x64xf32>
    %28 = vector.broadcast %17 : vector<512x1xf32> to vector<512x64xf32>
    %29 = arith.mulf %28, %27 : vector<512x64xf32>
    %30 = arith.truncf %20 : vector<512x256xf32> to vector<512x256xbf16>
    %cst_20 = arith.constant dense<0.000000e+00> : vector<512x64xf32>
    %31 = tpu.matmul %30, %10, %cst_20 {dimension_numbers = #tpu.dot_dimension_numbers<[1], [0], [0], [1], [0, 0, 1, 1], [], []>} : vector<512x256xbf16>, vector<256x64xbf16>, vector<512x64xf32> -> vector<512x64xf32>
    %32 = arith.addf %29, %31 : vector<512x64xf32>
    %c0_21 = arith.constant 0 : index
    %c0_22 = arith.constant 0 : index
    %33 = vector.load %arg10[%c0_21, %c0_22] : memref<512x64xf32, #tpu.memory_space<vmem>>, vector<512x64xf32>
    tpu.vector_store %arg10[%c0_21, %c0_22], %32 {strides = array<i32>} : memref<512x64xf32, #tpu.memory_space<vmem>>, vector<512x64xf32>,
    %c0_23 = arith.constant 0 : index
    %c0_24 = arith.constant 0 : index
    %34 = vector.load %arg8[%c0_23, %c0_24] : memref<512x1xf32, #tpu.memory_space<vmem>>, vector<512x1xf32>
    tpu.vector_store %arg8[%c0_23, %c0_24], %15 {strides = array<i32>} : memref<512x1xf32, #tpu.memory_space<vmem>>, vector<512x1xf32>,
    %c1_i32 = arith.constant 1 : i32
    %35 = arith.cmpi eq, %arg2, %c1_i32 : i32
    %36 = arith.extui %35 : i1 to i32
    %c0_i32_25 = arith.constant 0 : i32
    %37 = arith.cmpi ne, %36, %c0_i32_25 : i32
    scf.if %37 {
      %c0_26 = arith.constant 0 : index
      %c0_27 = arith.constant 0 : index
      %38 = vector.load %arg9[%c0_26, %c0_27] : memref<512x1xf32, #tpu.memory_space<vmem>>, vector<512x1xf32>
      %39 = tpu.reciprocal %38 {approx = true} : vector<512x1xf32> -> vector<512x1xf32>
      %c0_28 = arith.constant 0 : index
      %c0_29 = arith.constant 0 : index
      %40 = vector.load %arg10[%c0_28, %c0_29] : memref<512x64xf32, #tpu.memory_space<vmem>>, vector<512x64xf32>
      %41 = vector.broadcast %39 : vector<512x1xf32> to vector<512x64xf32>
      %42 = arith.mulf %40, %41 : vector<512x64xf32>
      %c0_30 = arith.constant 0 : index
      %c0_31 = arith.constant 0 : index
      %c0_32 = arith.constant 0 : index
      %43 = vector.load %arg6[%c0_30, %c0_31, %c0_32] : memref<1x512x64xf32, #tpu.memory_space<vmem>>, vector<1x512x64xf32>
      %44 = vector.shape_cast %43 : vector<1x512x64xf32> to vector<512x64xf32>
      %45 = vector.shape_cast %42 : vector<512x64xf32> to vector<1x512x64xf32>
      tpu.vector_store %arg6[%c0_30, %c0_31, %c0_32], %45 {strides = array<i32>} : memref<1x512x64xf32, #tpu.memory_space<vmem>>, vector<1x512x64xf32>,
      %c0_33 = arith.constant 0 : index
      %c0_34 = arith.constant 0 : index
      %46 = vector.load %arg8[%c0_33, %c0_34] : memref<512x1xf32, #tpu.memory_space<vmem>>, vector<512x1xf32>
      %c0_35 = arith.constant 0 : index
      %c0_36 = arith.constant 0 : index
      %47 = vector.load %arg9[%c0_35, %c0_36] : memref<512x1xf32, #tpu.memory_space<vmem>>, vector<512x1xf32>
      %48 = math.log %47 : vector<512x1xf32>
      %49 = arith.addf %46, %48 : vector<512x1xf32>
      %c0_37 = arith.constant 0 : index
      %c0_38 = arith.constant 0 : index
      %c0_39 = arith.constant 0 : index
      %50 = vector.load %arg7[%c0_37, %c0_38, %c0_39] : memref<1x512x1xf32, #tpu.memory_space<vmem>>, vector<1x512x1xf32>
      %51 = vector.shape_cast %50 : vector<1x512x1xf32> to vector<512x1xf32>
      %52 = vector.shape_cast %49 : vector<512x1xf32> to vector<1x512x1xf32>
      tpu.vector_store %arg7[%c0_37, %c0_38, %c0_39], %52 {strides = array<i32>} : memref<1x512x1xf32, #tpu.memory_space<vmem>>, vector<1x512x1xf32>,
    } else {
    }
    return
  }
  func.func @transform_0(%arg0: i32, %arg1: i32, %arg2: i32) -> (i32, i32, i32) {
    %c0_i32 = arith.constant 0 : i32
    %c0_i32_0 = arith.constant 0 : i32
    return %arg0, %arg1, %c0_i32 : i32, i32, i32
  }
  func.func @transform_1(%arg0: i32, %arg1: i32, %arg2: i32) -> (i32, i32, i32) {
    %c0_i32 = arith.constant 0 : i32
    %c0_i32_0 = arith.constant 0 : i32
    return %arg0, %arg2, %c0_i32 : i32, i32, i32
  }
  func.func @transform_2(%arg0: i32, %arg1: i32, %arg2: i32) -> (i32, i32, i32) {
    %c0_i32 = arith.constant 0 : i32
    %c0_i32_0 = arith.constant 0 : i32
    return %arg0, %arg2, %c0_i32 : i32, i32, i32
  }
  func.func @transform_3(%arg0: i32, %arg1: i32, %arg2: i32) -> (i32, i32, i32) {
    %c0_i32 = arith.constant 0 : i32
    %c0_i32_0 = arith.constant 0 : i32
    return %arg0, %arg1, %c0_i32 : i32, i32, i32
  }
  func.func @transform_4(%arg0: i32, %arg1: i32, %arg2: i32) -> (i32, i32, i32) {
    %c0_i32 = arith.constant 0 : i32
    %c0_i32_0 = arith.constant 0 : i32
    return %arg0, %arg1, %c0_i32 : i32, i32, i32
  }
}

</mosaic_0001>

<bundles_post_ra>
// kernel: tpu_custom_call.1
= control target key start
LH: loop header
LB: loop body
LE: loop exit
PB: predicated region body
PF: predicated region fallthrough
CT: control target
= control target key end

     0   :  { %s6428_s15 = smov 0   ;;  %s6430_s16 = smov 0   ;;  %s9707_s0 = inlined_call_operand.vmem [shape: bf16[4,512,64], index: 0, kind: input, shape index: {}]   ;;  %s9708_s1 = inlined_call_operand.vmem [shape: bf16[4,512,64], index: 1, kind: input, shape index: {}]   ;;  %s9709_s2 = inlined_call_operand.vmem [shape: bf16[4,512,64], index: 2, kind: input, shape index: {}]   ;;  %s9710_s3 = inlined_call_operand.vmem [shape: f32[4,512,64], index: 3, kind: output, shape index: {0}]   ;;  %s9711_s4 = inlined_call_operand.vmem [shape: f32[4,512,1], index: 4, kind: output, shape index: {1}]  }
   0x1   :  { %s6432_s17 = smov 0   ;;  %s6434_s18 = smov 0  }
   0x2   :  { %s6436_s19 = smov 0  }
   0x3 LB: > { %s27_s20 = sadd.s32 1, %s6389_s17  ;;  %s34_s21 = sadd.s32 1, %s6393_s18  ;;  %s6397_s19 = sphi %s6436_s19, %s15_s19   ;;  %s6393_s18 = sphi %s6434_s18, %s10680_s18   ;;  %s6389_s17 = sphi %s6432_s17, %s10679_s17   ;;  %s6385_s16 = sphi %s6430_s16, %s10678_s16   ;;  %s6381_s15 = sphi %s6428_s15, %s10677_s15  }
   0x4   : > { %p28_p0 = scmp.ge.s32.totalorder %s27_s20, 2  ;;  %p5435_p1 = scmp.ge.s32.totalorder %s6397_s19, 1 }
   0x5   : > { %p229_p2 = scmp.lt.s32.totalorder %s6397_s19, 9 }
   0x6   : > { %s10682_s20 = smov (%p28_p0, %s27_s20), 0  ;;  %s10684_s21 = smov (!%p28_p0, %s34_s21), %s6393_s18 }
   0x7   : > { %p230_p3 = pnand %p5435_p1, %p229_p2  ;;  %p36_p4 = scmp.ge.s32.totalorder %s10684_s21, 4 }
   0x9   : > { %s10686_s21 = smov (%p36_p4, %s10684_s21), 0  ;;  %233 = sbr.rel (%p230_p3) target bundleno = 2666 (0xa6a), region = 32 }
  0x10   : > { %p291_p5 = scmp.lt.s32.totalorder %s6385_s16, 3  ;;  %s5438_s22 = sshll.u32 %s6381_s15, 5 }
  0x11   : > { %p303_p6 = scmp.lt.s32.totalorder %s5438_s22, 63  ;;  %p5448_p7 = scmp.ne.s32.totalorder %s6381_s15, 0 }
  0x12   : > { %s10688_s16 = smov (!%p291_p5, %s6385_s16), 3  ;;  %vm346_vm0 = vcmask (!%p5448_p7), 7168   ;;  %vm475_vm1 = vcmask (!%p5448_p7), 523264   ;;  %v6399_v0 = vmov (!%p5448_p7), -inf   ;;  %v6400_v1 = vmov (!%p5448_p7), 0.0  }
  0x13   : > { %s10690_s22 = smov (!%p303_p6, %s5438_s22), 63  ;;  %s5548_s23 = sshll.u32 %s10688_s16, 8  ;;  %347 = vst.msk [vmem:[#allocation2] sm:$0xff] (!%p5448_p7), %vm346_vm0, %v6399_v0  ;;  %348 = vst.msk [vmem:[#allocation2 + $0x8] sm:$0xff] (!%p5448_p7), %vm346_vm0, %v6399_v0 }
  0x14   : > { %s5439_s24 = sshll.u32 %s10688_s16, 6  ;;  %s6464_s27 = scalar_lea.vmem %s9707_s0, %s5548_s23  ;;  %349 = vst.msk [vmem:[#allocation2 + $0x10] sm:$0xff] (!%p5448_p7), %vm346_vm0, %v6399_v0  ;;  %350 = vst.msk [vmem:[#allocation2 + $0x18] sm:$0xff] (!%p5448_p7), %vm346_vm0, %v6399_v0 }
  0x15   : > { %s306_s28 = sadd.s32 %s5439_s24, %s10690_s22  ;;  %s5549_s30 = sshll.u32 %s10688_s16, 9  ;;  %351 = vst.msk [vmem:[#allocation2 + $0x20] sm:$0xff] (!%p5448_p7), %vm346_vm0, %v6399_v0  ;;  %352 = vst.msk [vmem:[#allocation2 + $0x28] sm:$0xff] (!%p5448_p7), %vm346_vm0, %v6399_v0 }
  0x16   : > { %s5440_s29 = sshll.u32 %s306_s28, 2  ;;  %s6479_s13 = scalar_lea.vmem %s9710_s3, %s5549_s30  ;;  %353 = vst.msk [vmem:[#allocation2 + $0x30] sm:$0xff] (!%p5448_p7), %vm346_vm0, %v6399_v0  ;;  %354 = vst.msk [vmem:[#allocation2 + $0x38] sm:$0xff] (!%p5448_p7), %vm346_vm0, %v6399_v0 }
  0x17   : > { %s6469_s7 = scalar_lea.vmem %s9708_s1, %s5440_s29  ;;  %s6474_s10 = scalar_lea.vmem %s9709_s2, %s5440_s29  ;;  %355 = vst.msk [vmem:[#allocation2 + $0x40] sm:$0xff] (!%p5448_p7), %vm346_vm0, %v6399_v0  ;;  %356 = vst.msk [vmem:[#allocation2 + $0x48] sm:$0xff] (!%p5448_p7), %vm346_vm0, %v6399_v0 }
  0x18   : > { %s6484_s22 = scalar_lea.vmem %s9711_s4, %s5549_s30  ;;  %345 = sbr.rel (%p5448_p7) target bundleno = 115 (0x73), region = 36  ;;  %357 = vst.msk [vmem:[#allocation2 + $0x50] sm:$0xff] (!%p5448_p7), %vm346_vm0, %v6399_v0  ;;  %358 = vst.msk [vmem:[#allocation2 + $0x58] sm:$0xff] (!%p5448_p7), %vm346_vm0, %v6399_v0 }
  0x19   : > { %359 = vst.msk [vmem:[#allocation2 + $0x60] sm:$0xff] (!%p5448_p7), %vm346_vm0, %v6399_v0  ;;  %360 = vst.msk [vmem:[#allocation2 + $0x68] sm:$0xff] (!%p5448_p7), %vm346_vm0, %v6399_v0 }
  0x1a   : > { %361 = vst.msk [vmem:[#allocation2 + $0x70] sm:$0xff] (!%p5448_p7), %vm346_vm0, %v6399_v0  ;;  %362 = vst.msk [vmem:[#allocation2 + $0x78] sm:$0xff] (!%p5448_p7), %vm346_vm0, %v6399_v0 }
  0x1b   : > { %363 = vst.msk [vmem:[#allocation2 + $0x80] sm:$0xff] (!%p5448_p7), %vm346_vm0, %v6399_v0  ;;  %364 = vst.msk [vmem:[#allocation2 + $0x88] sm:$0xff] (!%p5448_p7), %vm346_vm0, %v6399_v0 }
  0x1c   : > { %365 = vst.msk [vmem:[#allocation2 + $0x90] sm:$0xff] (!%p5448_p7), %vm346_vm0, %v6399_v0  ;;  %366 = vst.msk [vmem:[#allocation2 + $0x98] sm:$0xff] (!%p5448_p7), %vm346_vm0, %v6399_v0 }
  0x1d   : > { %367 = vst.msk [vmem:[#allocation2 + $0xa0] sm:$0xff] (!%p5448_p7), %vm346_vm0, %v6399_v0  ;;  %368 = vst.msk [vmem:[#allocation2 + $0xa8] sm:$0xff] (!%p5448_p7), %vm346_vm0, %v6399_v0 }
  0x1e   : > { %369 = vst.msk [vmem:[#allocation2 + $0xb0] sm:$0xff] (!%p5448_p7), %vm346_vm0, %v6399_v0  ;;  %370 = vst.msk [vmem:[#allocation2 + $0xb8] sm:$0xff] (!%p5448_p7), %vm346_vm0, %v6399_v0 }
  0x1f   : > { %371 = vst.msk [vmem:[#allocation2 + $0xc0] sm:$0xff] %vm346_vm0, %v6399_v0  ;;  %372 = vst.msk [vmem:[#allocation2 + $0xc8] sm:$0xff] %vm346_vm0, %v6399_v0 }
  0x20   : > { %373 = vst.msk [vmem:[#allocation2 + $0xd0] sm:$0xff] %vm346_vm0, %v6399_v0  ;;  %374 = vst.msk [vmem:[#allocation2 + $0xd8] sm:$0xff] %vm346_vm0, %v6399_v0 }
  0x21   : > { %375 = vst.msk [vmem:[#allocation2 + $0xe0] sm:$0xff] %vm346_vm0, %v6399_v0  ;;  %376 = vst.msk [vmem:[#allocation2 + $0xe8] sm:$0xff] %vm346_vm0, %v6399_v0 }
  0x22   : > { %377 = vst.msk [vmem:[#allocation2 + $0xf0] sm:$0xff] %vm346_vm0, %v6399_v0  ;;  %378 = vst.msk [vmem:[#allocation2 + $0xf8] sm:$0xff] %vm346_vm0, %v6399_v0 }
  0x23   : > { %379 = vst.msk [vmem:[#allocation2 + $0x100] sm:$0xff] %vm346_vm0, %v6399_v0  ;;  %380 = vst.msk [vmem:[#allocation2 + $0x108] sm:$0xff] %vm346_vm0, %v6399_v0 }
  0x24   : > { %381 = vst.msk [vmem:[#allocation2 + $0x110] sm:$0xff] %vm346_vm0, %v6399_v0  ;;  %382 = vst.msk [vmem:[#allocation2 + $0x118] sm:$0xff] %vm346_vm0, %v6399_v0 }
  0x25   : > { %383 = vst.msk [vmem:[#allocation2 + $0x120] sm:$0xff] %vm346_vm0, %v6399_v0  ;;  %384 = vst.msk [vmem:[#allocation2 + $0x128] sm:$0xff] %vm346_vm0, %v6399_v0 }
  0x26   : > { %385 = vst.msk [vmem:[#allocation2 + $0x130] sm:$0xff] %vm346_vm0, %v6399_v0  ;;  %386 = vst.msk [vmem:[#allocation2 + $0x138] sm:$0xff] %vm346_vm0, %v6399_v0 }
  0x27   : > { %387 = vst.msk [vmem:[#allocation2 + $0x140] sm:$0xff] %vm346_vm0, %v6399_v0  ;;  %388 = vst.msk [vmem:[#allocation2 + $0x148] sm:$0xff] %vm346_vm0, %v6399_v0 }
  0x28   : > { %389 = vst.msk [vmem:[#allocation2 + $0x150] sm:$0xff] %vm346_vm0, %v6399_v0  ;;  %390 = vst.msk [vmem:[#allocation2 + $0x158] sm:$0xff] %vm346_vm0, %v6399_v0 }
  0x29   : > { %391 = vst.msk [vmem:[#allocation2 + $0x160] sm:$0xff] %vm346_vm0, %v6399_v0  ;;  %392 = vst.msk [vmem:[#allocation2 + $0x168] sm:$0xff] %vm346_vm0, %v6399_v0 }
  0x2a   : > { %393 = vst.msk [vmem:[#allocation2 + $0x170] sm:$0xff] %vm346_vm0, %v6399_v0  ;;  %394 = vst.msk [vmem:[#allocation2 + $0x178] sm:$0xff] %vm346_vm0, %v6399_v0 }
  0x2b   : > { %395 = vst.msk [vmem:[#allocation2 + $0x180] sm:$0xff] %vm346_vm0, %v6399_v0  ;;  %396 = vst.msk [vmem:[#allocation2 + $0x188] sm:$0xff] %vm346_vm0, %v6399_v0 }
  0x2c   : > { %397 = vst.msk [vmem:[#allocation2 + $0x190] sm:$0xff] %vm346_vm0, %v6399_v0  ;;  %398 = vst.msk [vmem:[#allocation2 + $0x198] sm:$0xff] %vm346_vm0, %v6399_v0 }
  0x2d   : > { %399 = vst.msk [vmem:[#allocation2 + $0x1a0] sm:$0xff] %vm346_vm0, %v6399_v0  ;;  %400 = vst.msk [vmem:[#allocation2 + $0x1a8] sm:$0xff] %vm346_vm0, %v6399_v0 }
  0x2e   : > { %401 = vst.msk [vmem:[#allocation2 + $0x1b0] sm:$0xff] %vm346_vm0, %v6399_v0  ;;  %402 = vst.msk [vmem:[#allocation2 + $0x1b8] sm:$0xff] %vm346_vm0, %v6399_v0 }
  0x2f   : > { %403 = vst.msk [vmem:[#allocation2 + $0x1c0] sm:$0xff] %vm346_vm0, %v6399_v0  ;;  %404 = vst.msk [vmem:[#allocation2 + $0x1c8] sm:$0xff] %vm346_vm0, %v6399_v0 }
  0x30   : > { %405 = vst.msk [vmem:[#allocation2 + $0x1d0] sm:$0xff] %vm346_vm0, %v6399_v0  ;;  %406 = vst.msk [vmem:[#allocation2 + $0x1d8] sm:$0xff] %vm346_vm0, %v6399_v0 }
  0x31   : > { %407 = vst.msk [vmem:[#allocation2 + $0x1e0] sm:$0xff] %vm346_vm0, %v6399_v0  ;;  %408 = vst.msk [vmem:[#allocation2 + $0x1e8] sm:$0xff] %vm346_vm0, %v6399_v0 }
  0x32   : > { %409 = vst.msk [vmem:[#allocation2 + $0x1f0] sm:$0xff] %vm346_vm0, %v6399_v0  ;;  %410 = vst.msk [vmem:[#allocation2 + $0x1f8] sm:$0xff] %vm346_vm0, %v6399_v0 }
  0x33   : > { %411 = vst.msk [vmem:[#allocation3] sm:$0xff] %vm346_vm0, %v6400_v1  ;;  %412 = vst.msk [vmem:[#allocation3 + $0x8] sm:$0xff] %vm346_vm0, %v6400_v1 }
  0x34   : > { %413 = vst.msk [vmem:[#allocation3 + $0x10] sm:$0xff] %vm346_vm0, %v6400_v1  ;;  %414 = vst.msk [vmem:[#allocation3 + $0x18] sm:$0xff] %vm346_vm0, %v6400_v1 }
  0x35   : > { %415 = vst.msk [vmem:[#allocation3 + $0x20] sm:$0xff] %vm346_vm0, %v6400_v1  ;;  %416 = vst.msk [vmem:[#allocation3 + $0x28] sm:$0xff] %vm346_vm0, %v6400_v1 }
  0x36   : > { %417 = vst.msk [vmem:[#allocation3 + $0x30] sm:$0xff] %vm346_vm0, %v6400_v1  ;;  %418 = vst.msk [vmem:[#allocation3 + $0x38] sm:$0xff] %vm346_vm0, %v6400_v1 }
  0x37   : > { %419 = vst.msk [vmem:[#allocation3 + $0x40] sm:$0xff] %vm346_vm0, %v6400_v1  ;;  %420 = vst.msk [vmem:[#allocation3 + $0x48] sm:$0xff] %vm346_vm0, %v6400_v1 }
  0x38   : > { %421 = vst.msk [vmem:[#allocation3 + $0x50] sm:$0xff] %vm346_vm0, %v6400_v1  ;;  %422 = vst.msk [vmem:[#allocation3 + $0x58] sm:$0xff] %vm346_vm0, %v6400_v1 }
  0x39   : > { %423 = vst.msk [vmem:[#allocation3 + $0x60] sm:$0xff] %vm346_vm0, %v6400_v1  ;;  %424 = vst.msk [vmem:[#allocation3 + $0x68] sm:$0xff] %vm346_vm0, %v6400_v1 }
  0x3a   : > { %425 = vst.msk [vmem:[#allocation3 + $0x70] sm:$0xff] %vm346_vm0, %v6400_v1  ;;  %426 = vst.msk [vmem:[#allocation3 + $0x78] sm:$0xff] %vm346_vm0, %v6400_v1 }
  0x3b   : > { %427 = vst.msk [vmem:[#allocation3 + $0x80] sm:$0xff] %vm346_vm0, %v6400_v1  ;;  %428 = vst.msk [vmem:[#allocation3 + $0x88] sm:$0xff] %vm346_vm0, %v6400_v1 }
  0x3c   : > { %429 = vst.msk [vmem:[#allocation3 + $0x90] sm:$0xff] %vm346_vm0, %v6400_v1  ;;  %430 = vst.msk [vmem:[#allocation3 + $0x98] sm:$0xff] %vm346_vm0, %v6400_v1 }
  0x3d   : > { %431 = vst.msk [vmem:[#allocation3 + $0xa0] sm:$0xff] %vm346_vm0, %v6400_v1  ;;  %432 = vst.msk [vmem:[#allocation3 + $0xa8] sm:$0xff] %vm346_vm0, %v6400_v1 }
  0x3e   : > { %433 = vst.msk [vmem:[#allocation3 + $0xb0] sm:$0xff] %vm346_vm0, %v6400_v1  ;;  %434 = vst.msk [vmem:[#allocation3 + $0xb8] sm:$0xff] %vm346_vm0, %v6400_v1 }
  0x3f   : > { %435 = vst.msk [vmem:[#allocation3 + $0xc0] sm:$0xff] %vm346_vm0, %v6400_v1  ;;  %436 = vst.msk [vmem:[#allocation3 + $0xc8] sm:$0xff] %vm346_vm0, %v6400_v1 }
  0x40   : > { %437 = vst.msk [vmem:[#allocation3 + $0xd0] sm:$0xff] %vm346_vm0, %v6400_v1  ;;  %438 = vst.msk [vmem:[#allocation3 + $0xd8] sm:$0xff] %vm346_vm0, %v6400_v1 }
  0x41   : > { %439 = vst.msk [vmem:[#allocation3 + $0xe0] sm:$0xff] %vm346_vm0, %v6400_v1  ;;  %440 = vst.msk [vmem:[#allocation3 + $0xe8] sm:$0xff] %vm346_vm0, %v6400_v1 }
  0x42   : > { %441 = vst.msk [vmem:[#allocation3 + $0xf0] sm:$0xff] %vm346_vm0, %v6400_v1  ;;  %442 = vst.msk [vmem:[#allocation3 + $0xf8] sm:$0xff] %vm346_vm0, %v6400_v1 }
  0x43   : > { %443 = vst.msk [vmem:[#allocation3 + $0x100] sm:$0xff] %vm346_vm0, %v6400_v1  ;;  %444 = vst.msk [vmem:[#allocation3 + $0x108] sm:$0xff] %vm346_vm0, %v6400_v1 }
  0x44   : > { %445 = vst.msk [vmem:[#allocation3 + $0x110] sm:$0xff] %vm346_vm0, %v6400_v1  ;;  %446 = vst.msk [vmem:[#allocation3 + $0x118] sm:$0xff] %vm346_vm0, %v6400_v1 }
  0x45   : > { %447 = vst.msk [vmem:[#allocation3 + $0x120] sm:$0xff] %vm346_vm0, %v6400_v1  ;;  %448 = vst.msk [vmem:[#allocation3 + $0x128] sm:$0xff] %vm346_vm0, %v6400_v1 }
  0x46   : > { %449 = vst.msk [vmem:[#allocation3 + $0x130] sm:$0xff] %vm346_vm0, %v6400_v1  ;;  %450 = vst.msk [vmem:[#allocation3 + $0x138] sm:$0xff] %vm346_vm0, %v6400_v1 }
  0x47   : > { %451 = vst.msk [vmem:[#allocation3 + $0x140] sm:$0xff] %vm346_vm0, %v6400_v1  ;;  %452 = vst.msk [vmem:[#allocation3 + $0x148] sm:$0xff] %vm346_vm0, %v6400_v1 }
  0x48   : > { %453 = vst.msk [vmem:[#allocation3 + $0x150] sm:$0xff] %vm346_vm0, %v6400_v1  ;;  %454 = vst.msk [vmem:[#allocation3 + $0x158] sm:$0xff] %vm346_vm0, %v6400_v1 }
  0x49   : > { %455 = vst.msk [vmem:[#allocation3 + $0x160] sm:$0xff] %vm346_vm0, %v6400_v1  ;;  %456 = vst.msk [vmem:[#allocation3 + $0x168] sm:$0xff] %vm346_vm0, %v6400_v1 }
  0x4a   : > { %457 = vst.msk [vmem:[#allocation3 + $0x170] sm:$0xff] %vm346_vm0, %v6400_v1  ;;  %458 = vst.msk [vmem:[#allocation3 + $0x178] sm:$0xff] %vm346_vm0, %v6400_v1 }
  0x4b   : > { %459 = vst.msk [vmem:[#allocation3 + $0x180] sm:$0xff] %vm346_vm0, %v6400_v1  ;;  %460 = vst.msk [vmem:[#allocation3 + $0x188] sm:$0xff] %vm346_vm0, %v6400_v1 }
  0x4c   : > { %461 = vst.msk [vmem:[#allocation3 + $0x190] sm:$0xff] %vm346_vm0, %v6400_v1  ;;  %462 = vst.msk [vmem:[#allocation3 + $0x198] sm:$0xff] %vm346_vm0, %v6400_v1 }
  0x4d   : > { %463 = vst.msk [vmem:[#allocation3 + $0x1a0] sm:$0xff] %vm346_vm0, %v6400_v1  ;;  %464 = vst.msk [vmem:[#allocation3 + $0x1a8] sm:$0xff] %vm346_vm0, %v6400_v1 }
  0x4e   : > { %465 = vst.msk [vmem:[#allocation3 + $0x1b0] sm:$0xff] %vm346_vm0, %v6400_v1  ;;  %466 = vst.msk [vmem:[#allocation3 + $0x1b8] sm:$0xff] %vm346_vm0, %v6400_v1 }
  0x4f   : > { %467 = vst.msk [vmem:[#allocation3 + $0x1c0] sm:$0xff] %vm346_vm0, %v6400_v1  ;;  %468 = vst.msk [vmem:[#allocation3 + $0x1c8] sm:$0xff] %vm346_vm0, %v6400_v1 }
  0x50   : > { %469 = vst.msk [vmem:[#allocation3 + $0x1d0] sm:$0xff] %vm346_vm0, %v6400_v1  ;;  %470 = vst.msk [vmem:[#allocation3 + $0x1d8] sm:$0xff] %vm346_vm0, %v6400_v1 }
  0x51   : > { %471 = vst.msk [vmem:[#allocation3 + $0x1e0] sm:$0xff] %vm346_vm0, %v6400_v1  ;;  %472 = vst.msk [vmem:[#allocation3 + $0x1e8] sm:$0xff] %vm346_vm0, %v6400_v1 }
  0x52   : > { %473 = vst.msk [vmem:[#allocation3 + $0x1f0] sm:$0xff] %vm346_vm0, %v6400_v1  ;;  %474 = vst.msk [vmem:[#allocation3 + $0x1f8] sm:$0xff] %vm346_vm0, %v6400_v1 }
  0x53   : > { %476 = vst.msk [vmem:[#allocation4] sm:$0xff] %vm475_vm1, %v6400_v1  ;;  %477 = vst.msk [vmem:[#allocation4 + $0x8] sm:$0xff] %vm475_vm1, %v6400_v1 }
  0x54   : > { %478 = vst.msk [vmem:[#allocation4 + $0x10] sm:$0xff] %vm475_vm1, %v6400_v1  ;;  %479 = vst.msk [vmem:[#allocation4 + $0x18] sm:$0xff] %vm475_vm1, %v6400_v1 }
  0x55   : > { %480 = vst.msk [vmem:[#allocation4 + $0x20] sm:$0xff] %vm475_vm1, %v6400_v1  ;;  %481 = vst.msk [vmem:[#allocation4 + $0x28] sm:$0xff] %vm475_vm1, %v6400_v1 }
  0x56   : > { %482 = vst.msk [vmem:[#allocation4 + $0x30] sm:$0xff] %vm475_vm1, %v6400_v1  ;;  %483 = vst.msk [vmem:[#allocation4 + $0x38] sm:$0xff] %vm475_vm1, %v6400_v1 }
  0x57   : > { %484 = vst.msk [vmem:[#allocation4 + $0x40] sm:$0xff] %vm475_vm1, %v6400_v1  ;;  %485 = vst.msk [vmem:[#allocation4 + $0x48] sm:$0xff] %vm475_vm1, %v6400_v1 }
  0x58   : > { %486 = vst.msk [vmem:[#allocation4 + $0x50] sm:$0xff] %vm475_vm1, %v6400_v1  ;;  %487 = vst.msk [vmem:[#allocation4 + $0x58] sm:$0xff] %vm475_vm1, %v6400_v1 }
  0x59   : > { %488 = vst.msk [vmem:[#allocation4 + $0x60] sm:$0xff] %vm475_vm1, %v6400_v1  ;;  %489 = vst.msk [vmem:[#allocation4 + $0x68] sm:$0xff] %vm475_vm1, %v6400_v1 }
  0x5a   : > { %490 = vst.msk [vmem:[#allocation4 + $0x70] sm:$0xff] %vm475_vm1, %v6400_v1  ;;  %491 = vst.msk [vmem:[#allocation4 + $0x78] sm:$0xff] %vm475_vm1, %v6400_v1 }
  0x5b   : > { %492 = vst.msk [vmem:[#allocation4 + $0x80] sm:$0xff] %vm475_vm1, %v6400_v1  ;;  %493 = vst.msk [vmem:[#allocation4 + $0x88] sm:$0xff] %vm475_vm1, %v6400_v1 }
  0x5c   : > { %494 = vst.msk [vmem:[#allocation4 + $0x90] sm:$0xff] %vm475_vm1, %v6400_v1  ;;  %495 = vst.msk [vmem:[#allocation4 + $0x98] sm:$0xff] %vm475_vm1, %v6400_v1 }
  0x5d   : > { %496 = vst.msk [vmem:[#allocation4 + $0xa0] sm:$0xff] %vm475_vm1, %v6400_v1  ;;  %497 = vst.msk [vmem:[#allocation4 + $0xa8] sm:$0xff] %vm475_vm1, %v6400_v1 }
  0x5e   : > { %498 = vst.msk [vmem:[#allocation4 + $0xb0] sm:$0xff] %vm475_vm1, %v6400_v1  ;;  %499 = vst.msk [vmem:[#allocation4 + $0xb8] sm:$0xff] %vm475_vm1, %v6400_v1 }
  0x5f   : > { %500 = vst.msk [vmem:[#allocation4 + $0xc0] sm:$0xff] %vm475_vm1, %v6400_v1  ;;  %501 = vst.msk [vmem:[#allocation4 + $0xc8] sm:$0xff] %vm475_vm1, %v6400_v1 }
  0x60   : > { %502 = vst.msk [vmem:[#allocation4 + $0xd0] sm:$0xff] %vm475_vm1, %v6400_v1  ;;  %503 = vst.msk [vmem:[#allocation4 + $0xd8] sm:$0xff] %vm475_vm1, %v6400_v1 }
  0x61   : > { %504 = vst.msk [vmem:[#allocation4 + $0xe0] sm:$0xff] %vm475_vm1, %v6400_v1  ;;  %505 = vst.msk [vmem:[#allocation4 + $0xe8] sm:$0xff] %vm475_vm1, %v6400_v1 }
  0x62   : > { %506 = vst.msk [vmem:[#allocation4 + $0xf0] sm:$0xff] %vm475_vm1, %v6400_v1  ;;  %507 = vst.msk [vmem:[#allocation4 + $0xf8] sm:$0xff] %vm475_vm1, %v6400_v1 }
  0x63   : > { %508 = vst.msk [vmem:[#allocation4 + $0x100] sm:$0xff] %vm475_vm1, %v6400_v1  ;;  %509 = vst.msk [vmem:[#allocation4 + $0x108] sm:$0xff] %vm475_vm1, %v6400_v1 }
  0x64   : > { %510 = vst.msk [vmem:[#allocation4 + $0x110] sm:$0xff] %vm475_vm1, %v6400_v1  ;;  %511 = vst.msk [vmem:[#allocation4 + $0x118] sm:$0xff] %vm475_vm1, %v6400_v1 }
  0x65   : > { %512 = vst.msk [vmem:[#allocation4 + $0x120] sm:$0xff] %vm475_vm1, %v6400_v1  ;;  %513 = vst.msk [vmem:[#allocation4 + $0x128] sm:$0xff] %vm475_vm1, %v6400_v1 }
  0x66   : > { %514 = vst.msk [vmem:[#allocation4 + $0x130] sm:$0xff] %vm475_vm1, %v6400_v1  ;;  %515 = vst.msk [vmem:[#allocation4 + $0x138] sm:$0xff] %vm475_vm1, %v6400_v1 }
  0x67   : > { %516 = vst.msk [vmem:[#allocation4 + $0x140] sm:$0xff] %vm475_vm1, %v6400_v1  ;;  %517 = vst.msk [vmem:[#allocation4 + $0x148] sm:$0xff] %vm475_vm1, %v6400_v1 }
  0x68   : > { %518 = vst.msk [vmem:[#allocation4 + $0x150] sm:$0xff] %vm475_vm1, %v6400_v1  ;;  %519 = vst.msk [vmem:[#allocation4 + $0x158] sm:$0xff] %vm475_vm1, %v6400_v1 }
  0x69   : > { %520 = vst.msk [vmem:[#allocation4 + $0x160] sm:$0xff] %vm475_vm1, %v6400_v1  ;;  %521 = vst.msk [vmem:[#allocation4 + $0x168] sm:$0xff] %vm475_vm1, %v6400_v1 }
  0x6a   : > { %522 = vst.msk [vmem:[#allocation4 + $0x170] sm:$0xff] %vm475_vm1, %v6400_v1  ;;  %523 = vst.msk [vmem:[#allocation4 + $0x178] sm:$0xff] %vm475_vm1, %v6400_v1 }
  0x6b   : > { %524 = vst.msk [vmem:[#allocation4 + $0x180] sm:$0xff] %vm475_vm1, %v6400_v1  ;;  %525 = vst.msk [vmem:[#allocation4 + $0x188] sm:$0xff] %vm475_vm1, %v6400_v1 }
  0x6c   : > { %526 = vst.msk [vmem:[#allocation4 + $0x190] sm:$0xff] %vm475_vm1, %v6400_v1  ;;  %527 = vst.msk [vmem:[#allocation4 + $0x198] sm:$0xff] %vm475_vm1, %v6400_v1 }
  0x6d   : > { %528 = vst.msk [vmem:[#allocation4 + $0x1a0] sm:$0xff] %vm475_vm1, %v6400_v1  ;;  %529 = vst.msk [vmem:[#allocation4 + $0x1a8] sm:$0xff] %vm475_vm1, %v6400_v1 }
  0x6e   : > { %530 = vst.msk [vmem:[#allocation4 + $0x1b0] sm:$0xff] %vm475_vm1, %v6400_v1  ;;  %531 = vst.msk [vmem:[#allocation4 + $0x1b8] sm:$0xff] %vm475_vm1, %v6400_v1 }
  0x6f   : > { %532 = vst.msk [vmem:[#allocation4 + $0x1c0] sm:$0xff] %vm475_vm1, %v6400_v1  ;;  %533 = vst.msk [vmem:[#allocation4 + $0x1c8] sm:$0xff] %vm475_vm1, %v6400_v1 }
  0x70   : > { %534 = vst.msk [vmem:[#allocation4 + $0x1d0] sm:$0xff] %vm475_vm1, %v6400_v1  ;;  %535 = vst.msk [vmem:[#allocation4 + $0x1d8] sm:$0xff] %vm475_vm1, %v6400_v1 }
  0x71   : > { %536 = vst.msk [vmem:[#allocation4 + $0x1e0] sm:$0xff] %vm475_vm1, %v6400_v1  ;;  %537 = vst.msk [vmem:[#allocation4 + $0x1e8] sm:$0xff] %vm475_vm1, %v6400_v1 }
  0x72   : > { %538 = vst.msk [vmem:[#allocation4 + $0x1f0] sm:$0xff] %vm475_vm1, %v6400_v1  ;;  %539 = vst.msk [vmem:[#allocation4 + $0x1f8] sm:$0xff] %vm475_vm1, %v6400_v1 }
  0x73 PF: > { %v5685_v2 = vld [vmem:[%s6469_s7 + $0x40] sm:$0xff]   ;;  %vm972_vm2 = vcmask 523264   ;;  %v5687_v4 = vld [vmem:[%s6469_s7 + $0x48] sm:$0xff]   ;;  %v5689_v8 = vld [vmem:[%s6469_s7 + $0x50] sm:$0xff]   ;;  %vm3070_vm3 = vcmask 7168   ;;  %p5545_p8 = scmp.ne.s32.totalorder %s6381_s15, 1 }
  0x74   : > { %v5686_v3 = vld [vmem:[%s6469_s7] sm:$0xff]   ;;  %5631 = vmatprep.subr.msk.bf16.mxu0 %vm972_vm2, %v5685_v2  ;;  %v5688_v6 = vld [vmem:[%s6469_s7 + $0x8] sm:$0xff]   ;;  %v5690_v9 = vld [vmem:[%s6469_s7 + $0x10] sm:$0xff]  }
  0x75   : > { %v1070_v5 = vsel %vm972_vm2, %v5686_v3, 0  ;;  %v1073_v7 = vsel %vm972_vm2, %v5688_v6, 0  ;;  %v540_v10 = vld [vmem:[%s6464_s27] sm:$0xf]  ;;  %v541_v11 = vld [vmem:[%s6464_s27 + $0x4] sm:$0xf] }
  0x76   : > { %5552 = vmatpush3.bf16.xpose.msra.mxu0 %v1070_v5  ;;  %v1076_v12 = vsel %vm972_vm2, %v5690_v9, 0  ;;  %v5691_v13 = vld [vmem:[%s6469_s7 + $0x58] sm:$0xff]   ;;  %v604_v14 = vmul.bf16 1040203264, %v540_v10  ;;  %v605_v15 = vmul.bf16 1040203264, %v541_v11 }
  0x77   : > { %5632 = vmatprep.subr.msk.bf16.mxu0 %vm972_vm2, %v5687_v4  ;;  %v5692_v17 = vld [vmem:[%s6469_s7 + $0x18] sm:$0xff]   ;;  %v5693_v19 = vld [vmem:[%s6469_s7 + $0x60] sm:$0xff]   ;;  %v5696_v21 = vld [vmem:[%s6469_s7 + $0x28] sm:$0xff]  }
  0x78   : > { %v5449_v16 = vcombine.low %v604_v14, %v605_v15  ;;  %v1079_v18 = vsel %vm972_vm2, %v5692_v17, 0  ;;  %v5694_v20 = vld [vmem:[%s6469_s7 + $0x20] sm:$0xff]   ;;  %v5695_v23 = vld [vmem:[%s6469_s7 + $0x68] sm:$0xff]   ;;  %v1085_v24 = vsel %vm972_vm2, %v5696_v21, 0  ;;  %v5697_v25 = vld [vmem:[%s6469_s7 + $0x70] sm:$0xff]  }
  0x79   : > { %v1082_v22 = vsel %vm972_vm2, %v5694_v20, 0  ;;  %v5698_v26 = vld [vmem:[%s6469_s7 + $0x30] sm:$0xff]   ;;  %v5699_v28 = vld [vmem:[%s6469_s7 + $0x78] sm:$0xff]   ;;  %v542_v31 = vld [vmem:[%s6464_s27 + $0x8] sm:$0xf] }
  0x7a   : > { %5567 = vmatprep.mubr.msk.bf16.mxu0 %vm972_vm2, %v5449_v16  ;;  %v1088_v27 = vsel %vm972_vm2, %v5698_v26, 0  ;;  %v5700_v29 = vld [vmem:[%s6469_s7 + $0x38] sm:$0xff]   ;;  %v543_v32 = vld [vmem:[%s6464_s27 + $0xc] sm:$0xf]  ;;  %v606_v33 = vmul.bf16 1040203264, %v542_v31 }
  0x7b   : > { %v1091_v30 = vsel %vm972_vm2, %v5700_v29, 0  ;;  %v607_v34 = vmul.bf16 1040203264, %v543_v32  ;;  %v544_v36 = vld [vmem:[%s6464_s27 + $0x10] sm:$0xf] }
  0x7c   : > { %v545_v37 = vld [vmem:[%s6464_s27 + $0x14] sm:$0xf]  ;;  %v608_v38 = vmul.bf16 1040203264, %v544_v36  ;;  %v546_v41 = vld [vmem:[%s6464_s27 + $0x18] sm:$0xf] }
  0x7d   : > { %v5450_v35 = vcombine.low %v606_v33, %v607_v34  ;;  %v609_v39 = vmul.bf16 1040203264, %v545_v37  ;;  %v547_v42 = vld [vmem:[%s6464_s27 + $0x1c] sm:$0xf]  ;;  %v610_v43 = vmul.bf16 1040203264, %v546_v41 }
  0x7e   : > { %5554 = vmatpush3.bf16.xpose.msra.mxu0 %v1073_v7  ;;  %v611_v44 = vmul.bf16 1040203264, %v547_v42  ;;  %v548_v46 = vld [vmem:[%s6464_s27 + $0x20] sm:$0xf]  ;;  %v549_v47 = vld [vmem:[%s6464_s27 + $0x24] sm:$0xf] }
  0x7f   : > { %5633 = vmatprep.subr.msk.bf16.mxu0 %vm972_vm2, %v5689_v8  ;;  %v5451_v40 = vcombine.low %v608_v38, %v609_v39  ;;  %v612_v48 = vmul.bf16 1040203264, %v548_v46  ;;  %v613_v49 = vmul.bf16 1040203264, %v549_v47  ;;  %v550_v51 = vld [vmem:[%s6464_s27 + $0x28] sm:$0xf] }
  0x80   : > { %v5452_v45 = vcombine.low %v610_v43, %v611_v44  ;;  %v551_v52 = vld [vmem:[%s6464_s27 + $0x2c] sm:$0xf]  ;;  %v614_v53 = vmul.bf16 1040203264, %v550_v51  ;;  %v552_v56 = vld [vmem:[%s6464_s27 + $0x30] sm:$0xf] }
  0x81   : > { %v5453_v50 = vcombine.low %v612_v48, %v613_v49  ;;  %v615_v54 = vmul.bf16 1040203264, %v551_v52  ;;  %v553_v57 = vld [vmem:[%s6464_s27 + $0x34] sm:$0xf]  ;;  %v616_v58 = vmul.bf16 1040203264, %v552_v56 }
  0x82   : > { %v617_v59 = vmul.bf16 1040203264, %v553_v57  ;;  %v554_v61 = vld [vmem:[%s6464_s27 + $0x38] sm:$0xf]  ;;  %v555_v62 = vld [vmem:[%s6464_s27 + $0x3c] sm:$0xf] }
  0x83   : > { %v5454_v55 = vcombine.low %v614_v53, %v615_v54  ;;  %v618_v63 = vmul.bf16 1040203264, %v554_v61  ;;  %v619_v0 = vmul.bf16 1040203264, %v555_v62  ;;  %v556_v2 = vld [vmem:[%s6464_s27 + $0x40] sm:$0xf] }
  0x84   : > { %v5455_v60 = vcombine.low %v616_v58, %v617_v59  ;;  %v557_v3 = vld [vmem:[%s6464_s27 + $0x44] sm:$0xf]  ;;  %v620_v4 = vmul.bf16 1040203264, %v556_v2  ;;  %v558_v7 = vld [vmem:[%s6464_s27 + $0x48] sm:$0xf] }
  0x85   : > { %v5456_v1 = vcombine.low %v618_v63, %v619_v0  ;;  %v621_v5 = vmul.bf16 1040203264, %v557_v3  ;;  %v559_v8 = vld [vmem:[%s6464_s27 + $0x4c] sm:$0xf]  ;;  %v622_v9 = vmul.bf16 1040203264, %v558_v7 }
  0x86   : > { %5556 = vmatpush3.bf16.xpose.msra.mxu0 %v1076_v12  ;;  %v623_v10 = vmul.bf16 1040203264, %v559_v8  ;;  %v560_v12 = vld [vmem:[%s6464_s27 + $0x50] sm:$0xf]  ;;  %v562_v17 = vld [vmem:[%s6464_s27 + $0x58] sm:$0xf] }
  0x87   : > { %5634 = vmatprep.subr.msk.bf16.mxu0 %vm972_vm2, %v5691_v13  ;;  %v5457_v6 = vcombine.low %v620_v4, %v621_v5  ;;  %v561_v13 = vld [vmem:[%s6464_s27 + $0x54] sm:$0xf]  ;;  %v624_v14 = vmul.bf16 1040203264, %v560_v12  ;;  %v568_v32 = vld [vmem:[%s6464_s27 + $0x70] sm:$0xf] }
  0x88   : > { %v5458_v11 = vcombine.low %v622_v9, %v623_v10  ;;  %v625_v15 = vmul.bf16 1040203264, %v561_v13  ;;  %v569_v33 = vld [vmem:[%s6464_s27 + $0x74] sm:$0xf]  ;;  %v632_v34 = vmul.bf16 1040203264, %v568_v32 }
  0x89   : > { %v570_v37 = vld [vmem:[%s6464_s27 + $0x78] sm:$0xf]  ;;  %v571_v38 = vld [vmem:[%s6464_s27 + $0x7c] sm:$0xf]  ;;  %v572_v42 = vld [vmem:[%s6464_s27 + $0x80] sm:$0xf] }
  0x8a   : > { %v634_v39 = vmul.bf16 1040203264, %v570_v37  ;;  %v573_v43 = vld [vmem:[%s6464_s27 + $0x84] sm:$0xf]  ;;  %v636_v44 = vmul.bf16 1040203264, %v572_v42 }
  0x8b   : > { %v574_v47 = vld [vmem:[%s6464_s27 + $0x88] sm:$0xf]  ;;  %v575_v48 = vld [vmem:[%s6464_s27 + $0x8c] sm:$0xf]  ;;  %v576_v52 = vld [vmem:[%s6464_s27 + $0x90] sm:$0xf] }
  0x8c   : > { %v638_v49 = vmul.bf16 1040203264, %v574_v47  ;;  %v577_v53 = vld [vmem:[%s6464_s27 + $0x94] sm:$0xf]  ;;  %v640_v54 = vmul.bf16 1040203264, %v576_v52 }
  0x8d   : > { %v578_v57 = vld [vmem:[%s6464_s27 + $0x98] sm:$0xf]  ;;  %v579_v58 = vld [vmem:[%s6464_s27 + $0x9c] sm:$0xf]  ;;  %v580_v62 = vld [vmem:[%s6464_s27 + $0xa0] sm:$0xf] }
  0x8e   : > { %5558 = vmatpush3.bf16.xpose.msra.mxu0 %v1079_v18  ;;  %v563_v18 = vld [vmem:[%s6464_s27 + $0x5c] sm:$0xf]  ;;  %v642_v59 = vmul.bf16 1040203264, %v578_v57  ;;  %v581_v63 = vld [vmem:[%s6464_s27 + $0xa4] sm:$0xf] }
  0x8f   : > { %5635 = vmatprep.subr.msk.bf16.mxu0 %vm972_vm2, %v5693_v19  ;;  %v626_v19 = vmul.bf16 1040203264, %v562_v17  ;;  %v627_v20 = vmul.bf16 1040203264, %v563_v18  ;;  %v644_v0 = vmul.bf16 1040203264, %v580_v62 }
  0x90   : > { %v582_v3 = vld [vmem:[%s6464_s27 + $0xa8] sm:$0xf]  ;;  %v583_v4 = vld [vmem:[%s6464_s27 + $0xac] sm:$0xf]  ;;  %v584_v8 = vld [vmem:[%s6464_s27 + $0xb0] sm:$0xf] }
  0x91   : > { %v5460_v21 = vcombine.low %v626_v19, %v627_v20  ;;  %v646_v5 = vmul.bf16 1040203264, %v582_v3  ;;  %v585_v9 = vld [vmem:[%s6464_s27 + $0xb4] sm:$0xf]  ;;  %v648_v10 = vmul.bf16 1040203264, %v584_v8 }
  0x96   : > { %5560 = vmatpush3.bf16.xpose.msra.mxu0 %v1082_v22  ;;  %v564_v22 = vld [vmem:[%s6464_s27 + $0x60] sm:$0xf] }
  0x97   : > { %5636 = vmatprep.subr.msk.bf16.mxu0 %vm972_vm2, %v5695_v23  ;;  %v565_v23 = vld [vmem:[%s6464_s27 + $0x64] sm:$0xf] }
  0x9e   : > { %5562 = vmatpush3.bf16.xpose.msra.mxu0 %v1085_v24  ;;  %v628_v24 = vmul.bf16 1040203264, %v564_v22 }
  0x9f   : > { %5637 = vmatprep.subr.msk.bf16.mxu0 %vm972_vm2, %v5697_v25  ;;  %v629_v25 = vmul.bf16 1040203264, %v565_v23 }
  0xa1   : > { %v5461_v26 = vcombine.low %v628_v24, %v629_v25 }
  0xa6   : > { %5564 = vmatpush3.bf16.xpose.msra.mxu0 %v1088_v27  ;;  %v566_v27 = vld [vmem:[%s6464_s27 + $0x68] sm:$0xf] }
  0xa7   : > { %5638 = vmatprep.subr.msk.bf16.mxu0 %vm972_vm2, %v5699_v28  ;;  %v567_v28 = vld [vmem:[%s6464_s27 + $0x6c] sm:$0xf]  ;;  %v630_v29 = vmul.bf16 1040203264, %v566_v27 }
  0xae   : > { %5566 = vmatpush3.bf16.xpose.msra.mxu0 %v1091_v30  ;;  %v631_v30 = vmul.bf16 1040203264, %v567_v28 }
  0xb0   : > { %v5462_v31 = vcombine.low %v630_v29, %v631_v30  ;;  %v586_v30 = vld [vmem:[%s6464_s27 + $0xb8] sm:$0xf] }
  0xb5   : > { %5568 = vmatmul.mubr.msk.bf16.vlgmr.msra.gmra.mrb[0].mxu0 %vm972_vm2, %v5449_v16  ;;  %v5459_v16 = vcombine.low %v624_v14, %v625_v15 }
  0xb6   : > { %5569 = vmatprep.mubr.msk.bf16.mxu0 %vm972_vm2, %v5450_v35 }
  0xbd   : > { %5570 = vmatmul.mubr.msk.bf16.gmra.mrb[4].mxu0 %vm972_vm2, %v5450_v35  ;;  %v633_v35 = vmul.bf16 1040203264, %v569_v33  ;;  %v650_v33 = vmul.bf16 1040203264, %v586_v30 }
  0xbe   : > { %5571 = vmatprep.mubr.msk.bf16.mxu0 %vm972_vm2, %v5451_v40 }
  0xbf   : > { %v5463_v36 = vcombine.low %v632_v34, %v633_v35 }
  0xc5   : > { %5572 = vmatmul.mubr.msk.bf16.gmra.mrb[8].mxu0 %vm972_vm2, %v5451_v40  ;;  %v635_v40 = vmul.bf16 1040203264, %v571_v38 }
  0xc6   : > { %5573 = vmatprep.mubr.msk.bf16.mxu0 %vm972_vm2, %v5452_v45 }
  0xc7   : > { %v5464_v41 = vcombine.low %v634_v39, %v635_v40 }
  0xcd   : > { %5574 = vmatmul.mubr.msk.bf16.gmra.mrb[12].mxu0 %vm972_vm2, %v5452_v45  ;;  %v637_v45 = vmul.bf16 1040203264, %v573_v43 }
  0xce   : > { %5575 = vmatprep.mubr.msk.bf16.mxu0 %vm972_vm2, %v5453_v50 }
  0xcf   : > { %v5465_v46 = vcombine.low %v636_v44, %v637_v45 }
  0xd5   : > { %5576 = vmatmul.mubr.msk.bf16.gmra.mrb[16].mxu0 %vm972_vm2, %v5453_v50  ;;  %v639_v50 = vmul.bf16 1040203264, %v575_v48  ;;  %v9712_v48 = vmov 0  }
  0xd6   : > { %5577 = vmatprep.mubr.msk.bf16.mxu0 %vm972_vm2, %v5454_v55  ;;  %5683 = vset.pattern.permute.xlu0 %v9712_v48 }
  0xd7   : > { %v5466_v51 = vcombine.low %v638_v49, %v639_v50  ;;  %5684 = vset.pattern.permute.xlu1 %v9712_v48  ;;  %3743 = vmatprep.subr.bf16.mxu1 %v9712_v48 }
  0xdd   : > { %5578 = vmatmul.mubr.msk.bf16.gmra.mrb[20].mxu0 %vm972_vm2, %v5454_v55  ;;  %v641_v55 = vmul.bf16 1040203264, %v577_v53 }
  0xde   : > { %5579 = vmatprep.mubr.msk.bf16.mxu0 %vm972_vm2, %v5455_v60 }
  0xdf   : > { %v5467_v56 = vcombine.low %v640_v54, %v641_v55 }
  0xe5   : > { %5580 = vmatmul.mubr.msk.bf16.gmra.mrb[24].mxu0 %vm972_vm2, %v5455_v60  ;;  %v643_v60 = vmul.bf16 1040203264, %v579_v58 }
  0xe6   : > { %5581 = vmatprep.mubr.msk.bf16.mxu0 %vm972_vm2, %v5456_v1 }
  0xe7   : > { %v5468_v61 = vcombine.low %v642_v59, %v643_v60 }
  0xed   : > { %5582 = vmatmul.mubr.msk.bf16.gmra.mrb[28].mxu0 %vm972_vm2, %v5456_v1  ;;  %v645_v1 = vmul.bf16 1040203264, %v581_v63 }
  0xee   : > { %5583 = vmatprep.mubr.msk.bf16.mxu0 %vm972_vm2, %v5457_v6 }
  0xef   : > { %v5469_v2 = vcombine.low %v644_v0, %v645_v1 }
  0xf5   : > { %5584 = vmatmul.mubr.msk.bf16.gmra.mrb[32].mxu0 %vm972_vm2, %v5457_v6  ;;  %v647_v6 = vmul.bf16 1040203264, %v583_v4 }
  0xf6   : > { %5585 = vmatprep.mubr.msk.bf16.mxu0 %vm972_vm2, %v5458_v11 }
  0xf7   : > { %v5470_v7 = vcombine.low %v646_v5, %v647_v6 }
  0xfd   : > { %5586 = vmatmul.mubr.msk.bf16.gmra.mrb[36].mxu0 %vm972_vm2, %v5458_v11  ;;  %v649_v11 = vmul.bf16 1040203264, %v585_v9 }
  0xfe   : > { %5587 = vmatprep.mubr.msk.bf16.mxu0 %vm972_vm2, %v5459_v16 }
  0xff   : > { %v5471_v12 = vcombine.low %v648_v10, %v649_v11 }
 0x105   : > { %5588 = vmatmul.mubr.msk.bf16.gmra.mrb[40].mxu0 %vm972_vm2, %v5459_v16 }
 0x106   : > { %5589 = vmatprep.mubr.msk.bf16.mxu0 %vm972_vm2, %v5460_v21 }
 0x10d   : > { %5590 = vmatmul.mubr.msk.bf16.gmra.mrb[44].mxu0 %vm972_vm2, %v5460_v21 }
 0x10e   : > { %5591 = vmatprep.mubr.msk.bf16.mxu0 %vm972_vm2, %v5461_v26 }
 0x115   : > { %5592 = vmatmul.mubr.msk.bf16.gmra.mrb[48].mxu0 %vm972_vm2, %v5461_v26 }
 0x116   : > { %5593 = vmatprep.mubr.msk.bf16.mxu0 %vm972_vm2, %v5462_v31 }
 0x11d   : > { %5594 = vmatmul.mubr.msk.bf16.gmra.mrb[52].mxu0 %vm972_vm2, %v5462_v31  ;;  %v587_v31 = vld [vmem:[%s6464_s27 + $0xbc] sm:$0xf] }
 0x11e   : > { %5595 = vmatprep.mubr.msk.bf16.mxu0 %vm972_vm2, %v5463_v36  ;;  %v651_v34 = vmul.bf16 1040203264, %v587_v31 }
 0x120   : > { %v5472_v35 = vcombine.low %v650_v33, %v651_v34 }
 0x125   : > { %5596 = vmatmul.mubr.msk.bf16.gmra.mrb[56].mxu0 %vm972_vm2, %v5463_v36 }
 0x126   : > { %5597 = vmatprep.mubr.msk.bf16.mxu0 %vm972_vm2, %v5464_v41 }
 0x12d   : > { %5598 = vmatmul.mubr.msk.bf16.gmra.mrb[60].mxu0 %vm972_vm2, %v5464_v41 }
 0x12e   : > { %5599 = vmatprep.mubr.msk.bf16.mxu0 %vm972_vm2, %v5465_v46 }
 0x135   : > { %5600 = vmatmul.mubr.msk.bf16.gmra.mrb[64].mxu0 %vm972_vm2, %v5465_v46 }
 0x136   : > { %5601 = vmatprep.mubr.msk.bf16.mxu0 %vm972_vm2, %v5466_v51 }
 0x13d   : > { %5602 = vmatmul.mubr.msk.bf16.gmra.mrb[68].mxu0 %vm972_vm2, %v5466_v51 }
 0x13e   : > { %5603 = vmatprep.mubr.msk.bf16.mxu0 %vm972_vm2, %v5467_v56 }
 0x145   : > { %5604 = vmatmul.mubr.msk.bf16.gmra.mrb[72].mxu0 %vm972_vm2, %v5467_v56 }
 0x146   : > { %5605 = vmatprep.mubr.msk.bf16.mxu0 %vm972_vm2, %v5468_v61 }
 0x14d   : > { %5606 = vmatmul.mubr.msk.bf16.gmra.mrb[76].mxu0 %vm972_vm2, %v5468_v61 }
 0x14e   : > { %5607 = vmatprep.mubr.msk.bf16.mxu0 %vm972_vm2, %v5469_v2 }
 0x155   : > { %5608 = vmatmul.mubr.msk.bf16.gmra.mrb[80].mxu0 %vm972_vm2, %v5469_v2 }
 0x156   : > { %5609 = vmatprep.mubr.msk.bf16.mxu0 %vm972_vm2, %v5470_v7 }
 0x15d   : > { %5610 = vmatmul.mubr.msk.bf16.gmra.mrb[84].mxu0 %vm972_vm2, %v5470_v7 }
 0x15e   : > { %5611 = vmatprep.mubr.msk.bf16.mxu0 %vm972_vm2, %v5471_v12 }
 0x165   : > { %5612 = vmatmul.mubr.msk.bf16.gmra.mrb[88].mxu0 %vm972_vm2, %v5471_v12 }
 0x166   : > { %5613 = vmatprep.mubr.msk.bf16.mxu0 %vm972_vm2, %v5472_v35 }
 0x16d   : > { %5614 = vmatmul.mubr.msk.bf16.gmra.mrb[92].mxu0 %vm972_vm2, %v5472_v35 }
 0x188   : > { %v6995_v13 = vpop.f32.mrb[0].mxu0 }
 0x189   : > { %v6997_v14 = vpop.f32.mrb[1].mxu0 }
 0x18a   : > { %v6999_v15 = vpop.f32.mrb[2].mxu0  ;;  %v1534_v16 = vmax.f32 %v6995_v13, %v6997_v14 }
 0x18b   : > { %v7003_v17 = vpop.f32.mrb[3].mxu0 }
 0x18c   : > { %1535 = vmax.xlane.f32.xlu0 %v1534_v16  ;;  %v1537_v18 = vmax.f32 %v6999_v15, %v7003_v17 }
 0x190   : > { %1538 = vmax.xlane.f32.xlu0 %v1537_v18  ;;  %v7007_v19 = vpop.f32.mrb[4].mxu0 }
 0x191   : > { %v7009_v20 = vpop.f32.mrb[5].mxu0 }
 0x192   : > { %v7011_v21 = vpop.f32.mrb[6].mxu0  ;;  %v1540_v22 = vmax.f32 %v7007_v19, %v7009_v20 }
 0x193   : > { %v7015_v23 = vpop.f32.mrb[7].mxu0 }
 0x194   : > { %1541 = vmax.xlane.f32.xlu1 %v1540_v22  ;;  %v1543_v24 = vmax.f32 %v7011_v21, %v7015_v23  ;;  %v588_v22 = vld [vmem:[%s6464_s27 + $0xc0] sm:$0xf] }
 0x198   : > { %1544 = vmax.xlane.f32.xlu1 %v1543_v24  ;;  %v7019_v25 = vpop.f32.mrb[8].mxu0  ;;  %v589_v24 = vld [vmem:[%s6464_s27 + $0xc4] sm:$0xf] }
 0x199   : > { %v7021_v26 = vpop.f32.mrb[9].mxu0  ;;  %v653_v30 = vmul.bf16 1040203264, %v589_v24 }
 0x19a   : > { %v7023_v27 = vpop.f32.mrb[10].mxu0  ;;  %v1546_v28 = vmax.f32 %v7019_v25, %v7021_v26 }
 0x19b   : > { %v7027_v29 = vpop.f32.mrb[11].mxu0 }
 0x19c   : > { %1547 = vmax.xlane.f32.xlu0 %v1546_v28  ;;  %v1549_v32 = vmax.f32 %v7023_v27, %v7027_v29  ;;  %v652_v28 = vmul.bf16 1040203264, %v588_v22 }
 0x19e   : > { %1550 = vmax.xlane.f32.xlu1 %v1549_v32  ;;  %v5473_v31 = vcombine.low %v652_v28, %v653_v30 }
 0x1a0   : > { %v7033_v36 = vpop.f32.mrb[12].mxu0  ;;  %5615 = vmatprep.mubr.msk.bf16.mxu0 %vm972_vm2, %v5473_v31 }
 0x1a1   : > { %v7036_v37 = vpop.f32.mrb[13].mxu0  ;;  %5616 = vmatmul.mubr.msk.bf16.gmra.mrb[96].mxu0 %vm972_vm2, %v5473_v31 }
 0x1a2   : > { %v7039_v38 = vpop.f32.mrb[14].mxu0  ;;  %v1552_v39 = vmax.f32 %v7033_v36, %v7036_v37 }
 0x1a3   : > { %10031 = vst [vmem:[#allocation5_spill] sm:$0xff] %v7039_v38  ;;  %v7043_v40 = vpop.f32.mrb[15].mxu0 }
 0x1a4   : > { %10032 = vst [vmem:[#allocation6_spill] sm:$0xff] %v7043_v40  ;;  %1553 = vmax.xlane.f32.xlu0 %v1552_v39  ;;  %v1555_v41 = vmax.f32 %v7039_v38, %v7043_v40  ;;  %v7410_v40 = vld [vmem:[#allocation2 + $0x68] sm:$0xff] }
 0x1a5   : > { %10108 = vst [vmem:[#allocation81_spill] sm:$0xff] %v7410_v40 }
 0x1a6   : > { %1556 = vmax.xlane.f32.xlu1 %v1555_v41 }
 0x1a8   : > { %v7047_v42 = vpop.f32.mrb[16].mxu0 }
 0x1a9   : > { %10033 = vst [vmem:[#allocation7_spill] sm:$0xff] %v7047_v42  ;;  %v7049_v43 = vpop.f32.mrb[17].mxu0 }
 0x1aa   : > { %10034 = vst [vmem:[#allocation8_spill] sm:$0xff] %v7049_v43  ;;  %v7051_v44 = vpop.f32.mrb[18].mxu0  ;;  %v1558_v45 = vmax.f32 %v7047_v42, %v7049_v43 }
 0x1ab   : > { %v7055_v46 = vpop.f32.mrb[19].mxu0 }
 0x1ac   : > { %1559 = vmax.xlane.f32.xlu0 %v1558_v45  ;;  %v1561_v47 = vmax.f32 %v7051_v44, %v7055_v46 }
 0x1ae   : > { %1562 = vmax.xlane.f32.xlu1 %v1561_v47 }
 0x1b0   : > { %v7062_v49 = vpop.f32.mrb[20].mxu0 }
 0x1b1   : > { %10035 = vst [vmem:[#allocation9_spill] sm:$0xff] %v7062_v49  ;;  %v7064_v50 = vpop.f32.mrb[21].mxu0 }
 0x1b2   : > { %10036 = vst [vmem:[#allocation10_spill] sm:$0xff] %v7064_v50  ;;  %v7066_v51 = vpop.f32.mrb[22].mxu0  ;;  %v1564_v52 = vmax.f32 %v7062_v49, %v7064_v50  ;;  %v7392_v49 = vld [vmem:[#allocation2 + $0x58] sm:$0xff] }
 0x1b3   : > { %10037 = vst [vmem:[#allocation11_spill] sm:$0xff] %v7066_v51  ;;  %v7070_v53 = vpop.f32.mrb[23].mxu0 }
 0x1b4   : > { %10038 = vst [vmem:[#allocation12_spill] sm:$0xff] %v7070_v53  ;;  %1565 = vmax.xlane.f32.xlu0 %v1564_v52  ;;  %v1567_v54 = vmax.f32 %v7066_v51, %v7070_v53  ;;  %v593_v51 = vld [vmem:[%s6464_s27 + $0xd4] sm:$0xf] }
 0x1b5   : > { %v657_v42 = vmul.bf16 1040203264, %v593_v51 }
 0x1b6   : > { %1568 = vmax.xlane.f32.xlu1 %v1567_v54 }
 0x1b8   : > { %v7074_v55 = vpop.f32.mrb[24].mxu0 }
 0x1b9   : > { %10039 = vst [vmem:[#allocation13_spill] sm:$0xff] %v7074_v55  ;;  %v7076_v56 = vpop.f32.mrb[25].mxu0 }
 0x1ba   : > { %10040 = vst [vmem:[#allocation14_spill] sm:$0xff] %v7076_v56  ;;  %v7078_v57 = vpop.f32.mrb[26].mxu0  ;;  %v1570_v58 = vmax.f32 %v7074_v55, %v7076_v56 }
 0x1bb   : > { %10041 = vst [vmem:[#allocation15_spill] sm:$0xff] %v7078_v57  ;;  %v7082_v59 = vpop.f32.mrb[27].mxu0 }
 0x1bc   : > { %10042 = vst [vmem:[#allocation16_spill] sm:$0xff] %v7082_v59  ;;  %1571 = vmax.xlane.f32.xlu0 %v1570_v58  ;;  %v1573_v60 = vmax.f32 %v7078_v57, %v7082_v59  ;;  %v5716_v57 = vld [vmem:[%s6474_s10 + $0x78] sm:$0xff]  }
 0x1be   : > { %1574 = vmax.xlane.f32.xlu1 %v1573_v60 }
 0x1c0   : > { %v7086_v61 = vpop.f32.mrb[28].mxu0 }
 0x1c1   : > { %10043 = vst [vmem:[#allocation17_spill] sm:$0xff] %v7086_v61  ;;  %v7088_v62 = vpop.f32.mrb[29].mxu0 }
 0x1c2   : > { %10044 = vst [vmem:[#allocation18_spill] sm:$0xff] %v7088_v62  ;;  %v7090_v63 = vpop.f32.mrb[30].mxu0  ;;  %v1576_v0 = vmax.f32 %v7086_v61, %v7088_v62  ;;  %v7364_v62 = vld [vmem:[#allocation2 + $0x48] sm:$0xff] }
 0x1c3   : > { %10045 = vst [vmem:[#allocation19_spill] sm:$0xff] %v7090_v63  ;;  %v7094_v1 = vpop.f32.mrb[31].mxu0 }
 0x1c4   : > { %10046 = vst [vmem:[#allocation20_spill] sm:$0xff] %v7094_v1  ;;  %1577 = vmax.xlane.f32.xlu0 %v1576_v0  ;;  %v1579_v2 = vmax.f32 %v7090_v63, %v7094_v1  ;;  %v5715_v63 = vld [vmem:[%s6474_s10 + $0x70] sm:$0xff]  }
 0x1c6   : > { %1580 = vmax.xlane.f32.xlu1 %v1579_v2 }
 0x1c8   : > { %v7098_v3 = vpop.f32.mrb[32].mxu0 }
 0x1c9   : > { %10047 = vst [vmem:[#allocation21_spill] sm:$0xff] %v7098_v3  ;;  %v7100_v4 = vpop.f32.mrb[33].mxu0 }
 0x1ca   : > { %10048 = vst [vmem:[#allocation22_spill] sm:$0xff] %v7100_v4  ;;  %v7102_v5 = vpop.f32.mrb[34].mxu0  ;;  %v1582_v6 = vmax.f32 %v7098_v3, %v7100_v4 }
 0x1cb   : > { %10049 = vst [vmem:[#allocation23_spill] sm:$0xff] %v7102_v5  ;;  %v7106_v7 = vpop.f32.mrb[35].mxu0 }
 0x1cc   : > { %10050 = vst [vmem:[#allocation24_spill] sm:$0xff] %v7106_v7  ;;  %1583 = vmax.xlane.f32.xlu0 %v1582_v6  ;;  %v1585_v8 = vmax.f32 %v7102_v5, %v7106_v7  ;;  %v7360_v5 = vld [vmem:[#allocation2 + $0x40] sm:$0xff] }
 0x1ce   : > { %1586 = vmax.xlane.f32.xlu1 %v1585_v8 }
 0x1d0   : > { %v7110_v9 = vpop.f32.mrb[36].mxu0 }
 0x1d1   : > { %10051 = vst [vmem:[#allocation25_spill] sm:$0xff] %v7110_v9  ;;  %v7112_v10 = vpop.f32.mrb[37].mxu0 }
 0x1d2   : > { %10052 = vst [vmem:[#allocation26_spill] sm:$0xff] %v7112_v10  ;;  %v7114_v11 = vpop.f32.mrb[38].mxu0  ;;  %v1588_v12 = vmax.f32 %v7110_v9, %v7112_v10  ;;  %v5711_v10 = vld [vmem:[%s6474_s10 + $0x50] sm:$0xff]  }
 0x1d3   : > { %10053 = vst [vmem:[#allocation27_spill] sm:$0xff] %v7114_v11  ;;  %v7118_v16 = vpop.f32.mrb[39].mxu0 }
 0x1d4   : > { %10054 = vst [vmem:[#allocation28_spill] sm:$0xff] %v7118_v16  ;;  %1589 = vmax.xlane.f32.xlu0 %v1588_v12  ;;  %v1591_v18 = vmax.f32 %v7114_v11, %v7118_v16  ;;  %v5712_v16 = vld [vmem:[%s6474_s10 + $0x58] sm:$0xff]  }
 0x1d6   : > { %1592 = vmax.xlane.f32.xlu1 %v1591_v18 }
 0x1d8   : > { %v7124_v32 = vpop.f32.mrb[40].mxu0 }
 0x1d9   : > { %10055 = vst [vmem:[#allocation29_spill] sm:$0xff] %v7124_v32  ;;  %v7126_v33 = vpop.f32.mrb[41].mxu0 }
 0x1da   : > { %10056 = vst [vmem:[#allocation30_spill] sm:$0xff] %v7126_v33  ;;  %v7129_v34 = vpop.f32.mrb[42].mxu0  ;;  %v1594_v35 = vmax.f32 %v7124_v32, %v7126_v33  ;;  %v7307_v33 = vld [vmem:[#allocation2 + $0x28] sm:$0xff] }
 0x1db   : > { %10057 = vst [vmem:[#allocation31_spill] sm:$0xff] %v7129_v34  ;;  %v7134_v39 = vpop.f32.mrb[43].mxu0 }
 0x1dc   : > { %10058 = vst [vmem:[#allocation32_spill] sm:$0xff] %v7134_v39  ;;  %1595 = vmax.xlane.f32.xlu0 %v1594_v35  ;;  %v1597_v41 = vmax.f32 %v7129_v34, %v7134_v39 }
 0x1de   : > { %1598 = vmax.xlane.f32.xlu1 %v1597_v41 }
 0x1e0   : > { %v7138_v45 = vpop.f32.mrb[44].mxu0 }
 0x1e1   : > { %10059 = vst [vmem:[#allocation33_spill] sm:$0xff] %v7138_v45  ;;  %v7140_v47 = vpop.f32.mrb[45].mxu0 }
 0x1e2   : > { %10060 = vst [vmem:[#allocation34_spill] sm:$0xff] %v7140_v47  ;;  %v7142_v52 = vpop.f32.mrb[46].mxu0  ;;  %v1600_v54 = vmax.f32 %v7138_v45, %v7140_v47  ;;  %v7298_v45 = vld [vmem:[#allocation2 + $0x20] sm:$0xff]  ;;  %v7335_v47 = vld [vmem:[#allocation2 + $0x30] sm:$0xff] }
 0x1e3   : > { %10061 = vst [vmem:[#allocation35_spill] sm:$0xff] %v7142_v52  ;;  %v7146_v58 = vpop.f32.mrb[47].mxu0 }
 0x1e4   : > { %10062 = vst [vmem:[#allocation36_spill] sm:$0xff] %v7146_v58  ;;  %1601 = vmax.xlane.f32.xlu0 %v1600_v54  ;;  %v1603_v60 = vmax.f32 %v7142_v52, %v7146_v58  ;;  %v5710_v58 = vld [vmem:[%s6474_s10 + $0x48] sm:$0xff]  }
 0x1e6   : > { %1604 = vmax.xlane.f32.xlu1 %v1603_v60 }
 0x1e8   : > { %v7150_v0 = vpop.f32.mrb[48].mxu0 }
 0x1e9   : > { %10063 = vst [vmem:[#allocation37_spill] sm:$0xff] %v7150_v0  ;;  %v7152_v2 = vpop.f32.mrb[49].mxu0 }
 0x1ea   : > { %10064 = vst [vmem:[#allocation38_spill] sm:$0xff] %v7152_v2  ;;  %v7154_v6 = vpop.f32.mrb[50].mxu0  ;;  %v1606_v8 = vmax.f32 %v7150_v0, %v7152_v2  ;;  %v5704_v2 = vld [vmem:[%s6474_s10 + $0x18] sm:$0xff]  }
 0x1eb   : > { %10065 = vst [vmem:[#allocation39_spill] sm:$0xff] %v7154_v6  ;;  %v7158_v12 = vpop.f32.mrb[51].mxu0 }
 0x1ec   : > { %10066 = vst [vmem:[#allocation40_spill] sm:$0xff] %v7158_v12  ;;  %1607 = vmax.xlane.f32.xlu0 %v1606_v8  ;;  %v1609_v18 = vmax.f32 %v7154_v6, %v7158_v12  ;;  %v5709_v6 = vld [vmem:[%s6474_s10 + $0x40] sm:$0xff]  }
 0x1ee   : > { %1610 = vmax.xlane.f32.xlu1 %v1609_v18 }
 0x1f0   : > { %v7162_v22 = vpop.f32.mrb[52].mxu0 }
 0x1f1   : > { %10067 = vst [vmem:[#allocation41_spill] sm:$0xff] %v7162_v22  ;;  %v7164_v24 = vpop.f32.mrb[53].mxu0 }
 0x1f2   : > { %10068 = vst [vmem:[#allocation42_spill] sm:$0xff] %v7164_v24  ;;  %v7166_v28 = vpop.f32.mrb[54].mxu0  ;;  %v1612_v30 = vmax.f32 %v7162_v22, %v7164_v24 }
 0x1f3   : > { %10069 = vst [vmem:[#allocation43_spill] sm:$0xff] %v7166_v28  ;;  %v7170_v31 = vpop.f32.mrb[55].mxu0 }
 0x1f4   : > { %10070 = vst [vmem:[#allocation44_spill] sm:$0xff] %v7170_v31  ;;  %1613 = vmax.xlane.f32.xlu0 %v1612_v30  ;;  %v1615_v35 = vmax.f32 %v7166_v28, %v7170_v31 }
 0x1f6   : > { %1616 = vmax.xlane.f32.xlu1 %v1615_v35 }
 0x1f8   : > { %v7174_v41 = vpop.f32.mrb[56].mxu0 }
 0x1f9   : > { %10071 = vst [vmem:[#allocation45_spill] sm:$0xff] %v7174_v41  ;;  %v7176_v54 = vpop.f32.mrb[57].mxu0 }
 0x1fa   : > { %10072 = vst [vmem:[#allocation46_spill] sm:$0xff] %v7176_v54  ;;  %v7178_v60 = vpop.f32.mrb[58].mxu0  ;;  %v1618_v8 = vmax.f32 %v7174_v41, %v7176_v54  ;;  %v5701_v54 = vld [vmem:[%s6474_s10] sm:$0xff]   ;;  %v5702_v41 = vld [vmem:[%s6474_s10 + $0x8] sm:$0xff]  }
 0x1fb   : > { %10073 = vst [vmem:[#allocation47_spill] sm:$0xff] %v7178_v60  ;;  %v7182_v18 = vpop.f32.mrb[59].mxu0  ;;  %3744 = vmatpush1.bf16.msra.mxu1 %v5701_v54  ;;  %v5703_v54 = vld [vmem:[%s6474_s10 + $0x10] sm:$0xff]  }
 0x1fc   : > { %10074 = vst [vmem:[#allocation48_spill] sm:$0xff] %v7182_v18  ;;  %1619 = vmax.xlane.f32.xlu0 %v1618_v8  ;;  %v1621_v30 = vmax.f32 %v7178_v60, %v7182_v18 }
 0x1fe   : > { %1622 = vmax.xlane.f32.xlu1 %v1621_v30  ;;  %v10079_v30 = vmov 0  }
 0x1ff   : > { %3745 = vmatprep.subr.bf16.mxu1 %v10079_v30 }
 0x200   : > { %v7186_v48 = vpop.f32.mrb[60].mxu0  ;;  %3746 = vmatpush1.bf16.msra.mxu1 %v5702_v41 }
 0x201   : > { %10075 = vst [vmem:[#allocation49_spill] sm:$0xff] %v7186_v48  ;;  %v7188_v35 = vpop.f32.mrb[61].mxu0  ;;  %3747 = vmatprep.subr.bf16.mxu1 %v10079_v30 }
 0x202   : > { %10076 = vst [vmem:[#allocation50_spill] sm:$0xff] %v7188_v35  ;;  %v7190_v24 = vpop.f32.mrb[62].mxu0  ;;  %v1624_v22 = vmax.f32 %v7186_v48, %v7188_v35 }
 0x203   : > { %10077 = vst [vmem:[#allocation51_spill] sm:$0xff] %v7190_v24  ;;  %v7194_v31 = vpop.f32.mrb[63].mxu0 }
 0x204   : > { %10078 = vst [vmem:[#allocation52_spill] sm:$0xff] %v7194_v31  ;;  %1625 = vmax.xlane.f32.xlu0 %v1624_v22  ;;  %v1627_v8 = vmax.f32 %v7190_v24, %v7194_v31  ;;  %3748 = vmatpush1.bf16.msra.mxu1 %v5703_v54  ;;  %v590_v31 = vld [vmem:[%s6464_s27 + $0xc8] sm:$0xf]  ;;  %v591_v24 = vld [vmem:[%s6464_s27 + $0xcc] sm:$0xf] }
 0x205   : > { %3749 = vmatprep.subr.bf16.mxu1 %v10079_v30  ;;  %v654_v41 = vmul.bf16 1040203264, %v590_v31  ;;  %v655_v28 = vmul.bf16 1040203264, %v591_v24  ;;  %v5705_v24 = vld [vmem:[%s6474_s10 + $0x20] sm:$0xff]   ;;  %v5706_v31 = vld [vmem:[%s6474_s10 + $0x28] sm:$0xff]  }
 0x206   : > { %1628 = vmax.xlane.f32.xlu1 %v1627_v8 }
 0x208   : > { %v7201_v18 = vpop.f32.mrb[64].mxu0  ;;  %3750 = vmatpush1.bf16.msra.mxu1 %v5704_v2  ;;  %v7236_v2 = vld [vmem:[#allocation2] sm:$0xff] }
 0x209   : > { %10080 = vst [vmem:[#allocation53_spill] sm:$0xff] %v7201_v18  ;;  %v7203_v60 = vpop.f32.mrb[65].mxu0  ;;  %3751 = vmatprep.subr.bf16.mxu1 %v10079_v30 }
 0x20a   : > { %10081 = vst [vmem:[#allocation54_spill] sm:$0xff] %v7203_v60  ;;  %v7205_v35 = vpop.f32.mrb[66].mxu0  ;;  %v1630_v22 = vmax.f32 %v7201_v18, %v7203_v60  ;;  %v5474_v18 = vcombine.low %v654_v41, %v655_v28 }
 0x20b   : > { %10082 = vst [vmem:[#allocation55_spill] sm:$0xff] %v7205_v35  ;;  %v7210_v48 = vpop.f32.mrb[67].mxu0 }
 0x20c   : > { %10083 = vst [vmem:[#allocation56_spill] sm:$0xff] %v7210_v48  ;;  %1631 = vmax.xlane.f32.xlu0 %v1630_v22  ;;  %v1633_v8 = vmax.f32 %v7205_v35, %v7210_v48  ;;  %5617 = vmatprep.mubr.msk.bf16.mxu0 %vm972_vm2, %v5474_v18  ;;  %v7283_v35 = vld [vmem:[#allocation2 + $0x18] sm:$0xff] }
 0x20d   : > { %5618 = vmatmul.mubr.msk.bf16.gmra.mrb[100].mxu0 %vm972_vm2, %v5474_v18  ;;  %3752 = vmatpush1.bf16.msra.mxu1 %v5705_v24 }
 0x20e   : > { %1634 = vmax.xlane.f32.xlu1 %v1633_v8  ;;  %3753 = vmatprep.subr.bf16.mxu1 %v10079_v30 }
 0x210   : > { %v7219_v60 = vpop.f32.mrb[68].mxu0 }
 0x211   : > { %10084 = vst [vmem:[#allocation57_spill] sm:$0xff] %v7219_v60  ;;  %v7221_v0 = vpop.f32.mrb[69].mxu0  ;;  %3754 = vmatpush1.bf16.msra.mxu1 %v5706_v31 }
 0x212   : > { %10085 = vst [vmem:[#allocation58_spill] sm:$0xff] %v7221_v0  ;;  %v7223_v22 = vpop.f32.mrb[70].mxu0  ;;  %v1636_v54 = vmax.f32 %v7219_v60, %v7221_v0  ;;  %3755 = vmatprep.subr.bf16.mxu1 %v10079_v30 }
 0x213   : > { %10086 = vst [vmem:[#allocation59_spill] sm:$0xff] %v7223_v22  ;;  %v7229_v8 = vpop.f32.mrb[71].mxu0 }
 0x214   : > { %10087 = vst [vmem:[#allocation60_spill] sm:$0xff] %v7229_v8  ;;  %1637 = vmax.xlane.f32.xlu0 %v1636_v54  ;;  %v1639_v28 = vmax.f32 %v7223_v22, %v7229_v8  ;;  %v7253_v8 = vld [vmem:[#allocation2 + $0x8] sm:$0xff]  ;;  %v5707_v22 = vld [vmem:[%s6474_s10 + $0x30] sm:$0xff]  }
 0x215   : > { %3756 = vmatpush1.bf16.msra.mxu1 %v5707_v22 }
 0x216   : > { %1640 = vmax.xlane.f32.xlu1 %v1639_v28  ;;  %3757 = vmatprep.subr.bf16.mxu1 %v10079_v30 }
 0x218   : > { %v7239_v41 = vpop.f32.mrb[72].mxu0 }
 0x219   : > { %10088 = vst [vmem:[#allocation61_spill] sm:$0xff] %v7239_v41  ;;  %v1536_v0 = vpop.xlane.xlu0 %1535  ;;  %v7241_v60 = vpop.f32.mrb[73].mxu0 }
 0x21a   : > { %10089 = vst [vmem:[#allocation62_spill] sm:$0xff] %v7241_v60  ;;  %v7244_v18 = vmax.f32 %v7236_v2, %v1536_v0  ;;  %v7246_v54 = vpop.f32.mrb[74].mxu0  ;;  %v1642_v24 = vmax.f32 %v7239_v41, %v7241_v60  ;;  %v7264_v60 = vld [vmem:[#allocation2 + $0x10] sm:$0xff]  ;;  %v5708_v41 = vld [vmem:[%s6474_s10 + $0x38] sm:$0xff]  }
 0x21b   : > { %10090 = vst [vmem:[#allocation63_spill] sm:$0xff] %v7246_v54  ;;  %v7251_v28 = vpop.f32.mrb[75].mxu0  ;;  %3758 = vmatpush1.bf16.msra.mxu1 %v5708_v41 }
 0x21c   : > { %10091 = vst [vmem:[#allocation64_spill] sm:$0xff] %v7251_v28  ;;  %4160 = vst.msk [vmem:[#allocation2] sm:$0xff] %vm3070_vm3, %v7244_v18  ;;  %1643 = vmax.xlane.f32.xlu0 %v1642_v24  ;;  %v1645_v0 = vmax.f32 %v7246_v54, %v7251_v28  ;;  %3759 = vmatprep.subr.bf16.mxu1 %v10079_v30 }
 0x21d   : > { %v1539_v31 = vpop.xlane.xlu0 %1538 }
 0x21e   : > { %v7261_v48 = vmax.f32 %v7253_v8, %v1539_v31  ;;  %1646 = vmax.xlane.f32.xlu1 %v1645_v0 }
 0x21f   : > { %3760 = vmatpush1.bf16.msra.mxu1 %v5709_v6 }
 0x220   : > { %4161 = vst.msk [vmem:[#allocation2 + $0x8] sm:$0xff] %vm3070_vm3, %v7261_v48  ;;  %v7271_v24 = vpop.f32.mrb[76].mxu0  ;;  %3761 = vmatprep.subr.bf16.mxu1 %v10079_v30 }
 0x221   : > { %10092 = vst [vmem:[#allocation65_spill] sm:$0xff] %v7271_v24  ;;  %v1542_v54 = vpop.xlane.xlu1 %1541  ;;  %v7273_v22 = vpop.f32.mrb[77].mxu0 }
 0x222   : > { %10093 = vst [vmem:[#allocation66_spill] sm:$0xff] %v7273_v22  ;;  %v7276_v0 = vmax.f32 %v7264_v60, %v1542_v54  ;;  %v7278_v31 = vpop.f32.mrb[78].mxu0  ;;  %v10110_v51 = vmax.f32 %v7271_v24, %v7273_v22  ;;  %v7446_v22 = vld [vmem:[#allocation2 + $0x80] sm:$0xff] }
 0x223   : > { %10094 = vst [vmem:[#allocation67_spill] sm:$0xff] %v7278_v31  ;;  %v7285_v12 = vpop.f32.mrb[79].mxu0  ;;  %3762 = vmatpush1.bf16.msra.mxu1 %v5710_v58  ;;  %10115 = vst [vmem:[#allocation86_spill] sm:$0xff] %v7446_v22 }
 0x224   : > { %10095 = vst [vmem:[#allocation68_spill] sm:$0xff] %v7285_v12  ;;  %4162 = vst.msk [vmem:[#allocation2 + $0x10] sm:$0xff] %vm3070_vm3, %v7276_v0  ;;  %3763 = vmatprep.subr.bf16.mxu1 %v10079_v30 }
 0x225   : > { %v1545_v54 = vpop.xlane.xlu1 %1544 }
 0x226   : > { %v7295_v28 = vmax.f32 %v7283_v35, %v1545_v54 }
 0x227   : > { %3764 = vmatpush1.bf16.msra.mxu1 %v5711_v10 }
 0x228   : > { %4163 = vst.msk [vmem:[#allocation2 + $0x18] sm:$0xff] %vm3070_vm3, %v7295_v28  ;;  %v7305_v52 = vpop.f32.mrb[80].mxu0  ;;  %3765 = vmatprep.subr.bf16.mxu1 %v10079_v30 }
 0x229   : > { %10096 = vst [vmem:[#allocation69_spill] sm:$0xff] %v7305_v52  ;;  %v1548_v41 = vpop.xlane.xlu0 %1547  ;;  %v7309_v6 = vpop.f32.mrb[81].mxu0 }
 0x22a   : > { %10097 = vst [vmem:[#allocation70_spill] sm:$0xff] %v7309_v6  ;;  %v7312_v54 = vmax.f32 %v7298_v45, %v1548_v41  ;;  %v7314_v32 = vpop.f32.mrb[82].mxu0 }
 0x22b   : > { %10098 = vst [vmem:[#allocation71_spill] sm:$0xff] %v7314_v32  ;;  %v1551_v39 = vpop.xlane.xlu1 %1550  ;;  %v7319_v34 = vpop.f32.mrb[83].mxu0  ;;  %3766 = vmatpush1.bf16.msra.mxu1 %v5712_v16  ;;  %v5714_v16 = vld [vmem:[%s6474_s10 + $0x68] sm:$0xff]  }
 0x22c   : > { %10099 = vst [vmem:[#allocation72_spill] sm:$0xff] %v7319_v34  ;;  %4164 = vst.msk [vmem:[#allocation2 + $0x20] sm:$0xff] %vm3070_vm3, %v7312_v54  ;;  %v7327_v58 = vmax.f32 %v7307_v33, %v1551_v39  ;;  %v7340_v39 = vld [vmem:[#allocation2 + $0x38] sm:$0xff]  ;;  %3767 = vmatprep.subr.bf16.mxu1 %v10079_v30 }
 0x22e   : > { %4165 = vst.msk [vmem:[#allocation2 + $0x28] sm:$0xff] %vm3070_vm3, %v7327_v58 }
 0x22f   : > { %1989 = vperm.xlu1 %5684, %v7261_v48  }
 0x230   : > { %v7337_v9 = vpop.f32.mrb[84].mxu0 }
 0x231   : > { %10100 = vst [vmem:[#allocation73_spill] sm:$0xff] %v7337_v9  ;;  %v1554_v11 = vpop.xlane.xlu0 %1553  ;;  %v7342_v4 = vpop.f32.mrb[85].mxu0 }
 0x232   : > { %10101 = vst [vmem:[#allocation74_spill] sm:$0xff] %v7342_v4  ;;  %v7345_v10 = vmax.f32 %v7335_v47, %v1554_v11  ;;  %1984 = vperm.xlu0 %5683, %v7244_v18   ;;  %v5713_v11 = vld [vmem:[%s6474_s10 + $0x60] sm:$0xff]   ;;  %v7366_v61 = vpop.f32.mrb[86].mxu0 }
 0x233   : > { %v1557_v3 = vpop.xlane.xlu1 %1556  ;;  %1994 = vperm.xlu1 %5684, %v7276_v0   ;;  %3768 = vmatpush1.bf16.msra.mxu1 %v5713_v11  ;;  %10102 = vst [vmem:[#allocation75_spill] sm:$0xff] %v7366_v61 }
 0x234   : > { %4166 = vst.msk [vmem:[#allocation2 + $0x30] sm:$0xff] %vm3070_vm3, %v7345_v10  ;;  %v7355_v7 = vmax.f32 %v7340_v39, %v1557_v3  ;;  %3769 = vmatprep.subr.bf16.mxu1 %v10079_v30  ;;  %v7371_v3 = vpop.f32.mrb[87].mxu0 }
 0x235   : > { %10103 = vst [vmem:[#allocation76_spill] sm:$0xff] %v7371_v3 }
 0x236   : > { %4167 = vst.msk [vmem:[#allocation2 + $0x38] sm:$0xff] %vm3070_vm3, %v7355_v7 }
 0x237   : > { %3770 = vmatpush1.bf16.msra.mxu1 %v5714_v16  ;;  %v7388_v16 = vld [vmem:[#allocation2 + $0x50] sm:$0xff] }
 0x238   : > { %v7374_v11 = vpop.f32.mrb[88].mxu0  ;;  %3771 = vmatprep.subr.bf16.mxu1 %v10079_v30  ;;  %10106 = vst [vmem:[#allocation79_spill] sm:$0xff] %v7388_v16 }
 0x239   : > { %v1560_v41 = vpop.xlane.xlu0 %1559  ;;  %10104 = vst [vmem:[#allocation77_spill] sm:$0xff] %v7374_v11  ;;  %v7382_v59 = vpop.f32.mrb[89].mxu0 }
 0x23a   : > { %v7369_v1 = vmax.f32 %v7360_v5, %v1560_v41  ;;  %10105 = vst [vmem:[#allocation78_spill] sm:$0xff] %v7382_v59 }
 0x23b   : > { %v1563_v56 = vpop.xlane.xlu1 %1562  ;;  %3772 = vmatpush1.bf16.msra.mxu1 %v5715_v63  ;;  %v592_v63 = vld [vmem:[%s6464_s27 + $0xd0] sm:$0xf] }
 0x23c   : > { %4168 = vst.msk [vmem:[#allocation2 + $0x40] sm:$0xff] %vm3070_vm3, %v7369_v1  ;;  %v7380_v55 = vmax.f32 %v7364_v62, %v1563_v56  ;;  %3773 = vmatprep.subr.bf16.mxu1 %v10079_v30  ;;  %v656_v43 = vmul.bf16 1040203264, %v592_v63 }
 0x23e   : > { %4169 = vst.msk [vmem:[#allocation2 + $0x48] sm:$0xff] %vm3070_vm3, %v7380_v55 }
 0x23f   : > { %3774 = vmatpush1.bf16.msra.mxu1 %v5716_v57  ;;  %v5475_v57 = vcombine.low %v656_v43, %v657_v42  ;;  %v7424_v42 = vld [vmem:[#allocation2 + $0x70] sm:$0xff] }
 0x240   : > { %10109 = vst [vmem:[#allocation82_spill] sm:$0xff] %v7424_v42 }
 0x241   : > { %v1566_v50 = vpop.xlane.xlu0 %1565  ;;  %5619 = vmatprep.mubr.msk.bf16.mxu0 %vm972_vm2, %v5475_v57 }
 0x242   : > { %v7395_v56 = vmax.f32 %v7388_v16, %v1566_v50  ;;  %v7408_v50 = vld [vmem:[#allocation2 + $0x60] sm:$0xff]  ;;  %5620 = vmatmul.mubr.msk.bf16.gmra.mrb[104].mxu0 %vm972_vm2, %v5475_v57 }
 0x243   : > { %v1569_v53 = vpop.xlane.xlu1 %1568  ;;  %10107 = vst [vmem:[#allocation80_spill] sm:$0xff] %v7408_v50 }
 0x244   : > { %4170 = vst.msk [vmem:[#allocation2 + $0x50] sm:$0xff] %vm3070_vm3, %v7395_v56  ;;  %v7400_v41 = vmax.f32 %v7392_v49, %v1569_v53 }
 0x246   : > { %4171 = vst.msk [vmem:[#allocation2 + $0x58] sm:$0xff] %vm3070_vm3, %v7400_v41 }
 0x249   : > { %v1572_v16 = vpop.xlane.xlu0 %1571 }
 0x24a   : > { %v7413_v38 = vmax.f32 %v7408_v50, %v1572_v16  ;;  %v7429_v16 = vld [vmem:[#allocation2 + $0x78] sm:$0xff] }
 0x24b   : > { %v1575_v53 = vpop.xlane.xlu1 %1574  ;;  %10111 = vst [vmem:[#allocation83_spill] sm:$0xff] %v7429_v16 }
 0x24c   : > { %4172 = vst.msk [vmem:[#allocation2 + $0x60] sm:$0xff] %vm3070_vm3, %v7413_v38  ;;  %v7420_v63 = vmax.f32 %v7410_v40, %v1575_v53  ;;  %v1790_v53 = vsub.f32 %v7236_v2, %v7244_v18 }
 0x24e   : > { %4173 = vst.msk [vmem:[#allocation2 + $0x68] sm:$0xff] %vm3070_vm3, %v7420_v63 }
 0x251   : > { %v1578_v43 = vpop.xlane.xlu0 %1577  ;;  %1649 = vmax.xlane.f32.xlu0 %v10110_v51  ;;  %v10114_v51 = vmax.f32 %v7278_v31, %v7285_v12 }
 0x252   : > { %v7432_v57 = vmax.f32 %v7424_v42, %v1578_v43  ;;  %v1854_v43 = vmul.f32 1.442695, %v1790_v53  ;;  %v7448_v42 = vld [vmem:[#allocation2 + $0x88] sm:$0xff]  ;;  %v10120_v53 = vsub.f32 %v7253_v8, %v7261_v48  ;;  %v7480_v48 = vld [vmem:[#allocation2 + $0xa0] sm:$0xff] }
 0x253   : > { %v1581_v30 = vpop.xlane.xlu1 %1580  ;;  %10116 = vst [vmem:[#allocation87_spill] sm:$0xff] %v7448_v42  ;;  %10125 = vst [vmem:[#allocation95_spill] sm:$0xff] %v7480_v48 }
 0x254   : > { %10112 = vst [vmem:[#allocation84_spill] sm:$0xff] %v7432_v57  ;;  %4174 = vst.msk [vmem:[#allocation2 + $0x70] sm:$0xff] %vm3070_vm3, %v7432_v57  ;;  %v7439_v50 = vmax.f32 %v7429_v16, %v1581_v30  ;;  %5717 = vpow2.f32 %v1854_v43  ;;  %v1856_v12 = vmul.f32 1.442695, %v10120_v53  ;;  %v7525_v16 = vld [vmem:[#allocation2 + $0xc8] sm:$0xff]  ;;  %v7541_v57 = vld [vmem:[#allocation2 + $0xd0] sm:$0xff] }
 0x255   : > { %10139 = vst [vmem:[#allocation109_spill] sm:$0xff] %v7525_v16  ;;  %10140 = vst [vmem:[#allocation110_spill] sm:$0xff] %v7541_v57 }
 0x256   : > { %10113 = vst [vmem:[#allocation85_spill] sm:$0xff] %v7439_v50  ;;  %4175 = vst.msk [vmem:[#allocation2 + $0x78] sm:$0xff] %vm3070_vm3, %v7439_v50  ;;  %5719 = vpow2.f32 %v1856_v12  ;;  %v7543_v50 = vld [vmem:[#allocation2 + $0xd8] sm:$0xff] }
 0x257   : > { %1652 = vmax.xlane.f32.xlu1 %v10114_v51  ;;  %v7460_v51 = vld [vmem:[#allocation2 + $0x90] sm:$0xff] }
 0x258   : > { %10119 = vst [vmem:[#allocation90_spill] sm:$0xff] %v7460_v51 }
 0x259   : > { %v1584_v24 = vpop.xlane.xlu0 %1583 }
 0x25a   : > { %v7451_v2 = vmax.f32 %v7446_v22, %v1584_v24  ;;  %v7465_v24 = vld [vmem:[#allocation2 + $0x98] sm:$0xff] }
 0x25b   : > { %v1587_v18 = vpop.xlane.xlu1 %1586  ;;  %10121 = vst [vmem:[#allocation91_spill] sm:$0xff] %v7465_v24 }
 0x25c   : > { %10117 = vst [vmem:[#allocation88_spill] sm:$0xff] %v7451_v2  ;;  %4176 = vst.msk [vmem:[#allocation2 + $0x80] sm:$0xff] %vm3070_vm3, %v7451_v2  ;;  %v7456_v30 = vmax.f32 %v7448_v42, %v1587_v18  ;;  %v594_v2 = vld [vmem:[%s6464_s27 + $0xd8] sm:$0xf] }
 0x25e   : > { %10118 = vst [vmem:[#allocation89_spill] sm:$0xff] %v7456_v30  ;;  %4177 = vst.msk [vmem:[#allocation2 + $0x88] sm:$0xff] %vm3070_vm3, %v7456_v30  ;;  %v7475_v42 = vpop.eup %5717  ;;  %v658_v30 = vmul.bf16 1040203264, %v594_v2 }
 0x25f   : > { %10124 = vst [vmem:[#allocation94_spill] sm:$0xff] %v7475_v42 }
 0x261   : > { %v1590_v31 = vpop.xlane.xlu0 %1589 }
 0x262   : > { %v7468_v43 = vmax.f32 %v7460_v51, %v1590_v31  ;;  %v7483_v31 = vld [vmem:[#allocation2 + $0xa8] sm:$0xff]  ;;  %v7498_v51 = vld [vmem:[#allocation2 + $0xb0] sm:$0xff] }
 0x263   : > { %v1593_v22 = vpop.xlane.xlu1 %1592  ;;  %10126 = vst [vmem:[#allocation96_spill] sm:$0xff] %v7483_v31  ;;  %10130 = vst [vmem:[#allocation100_spill] sm:$0xff] %v7498_v51 }
 0x264   : > { %10122 = vst [vmem:[#allocation92_spill] sm:$0xff] %v7468_v43  ;;  %4178 = vst.msk [vmem:[#allocation2 + $0x90] sm:$0xff] %vm3070_vm3, %v7468_v43  ;;  %v7473_v18 = vmax.f32 %v7465_v24, %v1593_v22 }
 0x266   : > { %10123 = vst [vmem:[#allocation93_spill] sm:$0xff] %v7473_v18  ;;  %4179 = vst.msk [vmem:[#allocation2 + $0x98] sm:$0xff] %vm3070_vm3, %v7473_v18 }
 0x267   : > { %3201 = vperm.xlu0 %5683, %v7475_v42   ;;  %v7496_v42 = vpop.eup %5719 }
 0x268   : > { %1999 = vperm.xlu1 %5684, %v7295_v28   ;;  %10129 = vst [vmem:[#allocation99_spill] sm:$0xff] %v7496_v42 }
 0x269   : > { %v1596_v8 = vpop.xlane.xlu0 %1595 }
 0x26a   : > { %v7486_v53 = vmax.f32 %v7480_v48, %v1596_v8  ;;  %v7501_v48 = vld [vmem:[#allocation2 + $0xb8] sm:$0xff] }
 0x26b   : > { %v1599_v22 = vpop.xlane.xlu1 %1598  ;;  %10131 = vst [vmem:[#allocation101_spill] sm:$0xff] %v7501_v48 }
 0x26c   : > { %10127 = vst [vmem:[#allocation97_spill] sm:$0xff] %v7486_v53  ;;  %4180 = vst.msk [vmem:[#allocation2 + $0xa0] sm:$0xff] %vm3070_vm3, %v7486_v53  ;;  %v7491_v12 = vmax.f32 %v7483_v31, %v1599_v22  ;;  %2004 = vperm.xlu1 %5684, %v7312_v54   ;;  %v7506_v53 = vpop.f32.mrb[90].mxu0 }
 0x26d   : > { %10133 = vst [vmem:[#allocation103_spill] sm:$0xff] %v7506_v53  ;;  %v7508_v31 = vpop.f32.mrb[91].mxu0 }
 0x26e   : > { %10128 = vst [vmem:[#allocation98_spill] sm:$0xff] %v7491_v12  ;;  %4181 = vst.msk [vmem:[#allocation2 + $0xa8] sm:$0xff] %vm3070_vm3, %v7491_v12 }
 0x26f   : > { %10134 = vst [vmem:[#allocation104_spill] sm:$0xff] %v7508_v31 }
 0x270   : > { %3206 = vperm.xlu1 %5684, %v7496_v42   ;;  %v7515_v42 = vpop.f32.mrb[92].mxu0 }
 0x271   : > { %v1602_v8 = vpop.xlane.xlu0 %1601  ;;  %10136 = vst [vmem:[#allocation106_spill] sm:$0xff] %v7515_v42  ;;  %v7517_v43 = vpop.f32.mrb[93].mxu0 }
 0x272   : > { %v7504_v24 = vmax.f32 %v7498_v51, %v1602_v8  ;;  %10137 = vst [vmem:[#allocation107_spill] sm:$0xff] %v7517_v43  ;;  %v7523_v51 = vld [vmem:[#allocation2 + $0xc0] sm:$0xff]  ;;  %v10145_v8 = vmax.f32 %v7337_v9, %v7342_v4  ;;  %v10150_v9 = vmax.f32 %v7314_v32, %v7319_v34  ;;  %v7616_v34 = vld [vmem:[#allocation2 + $0x110] sm:$0xff] }
 0x273   : > { %v1605_v22 = vpop.xlane.xlu1 %1604  ;;  %10138 = vst [vmem:[#allocation108_spill] sm:$0xff] %v7523_v51  ;;  %10157 = vst [vmem:[#allocation122_spill] sm:$0xff] %v7616_v34 }
 0x274   : > { %10132 = vst [vmem:[#allocation102_spill] sm:$0xff] %v7504_v24  ;;  %4182 = vst.msk [vmem:[#allocation2 + $0xb0] sm:$0xff] %vm3070_vm3, %v7504_v24  ;;  %v7513_v12 = vmax.f32 %v7501_v48, %v1605_v22 }
 0x276   : > { %10135 = vst [vmem:[#allocation105_spill] sm:$0xff] %v7513_v12  ;;  %4183 = vst.msk [vmem:[#allocation2 + $0xb8] sm:$0xff] %vm3070_vm3, %v7513_v12  ;;  %v595_v12 = vld [vmem:[%s6464_s27 + $0xdc] sm:$0xf] }
 0x277   : > { %v659_v40 = vmul.bf16 1040203264, %v595_v12  ;;  %v7562_v12 = vld [vmem:[#allocation2 + $0xe8] sm:$0xff] }
 0x279   : > { %v1608_v18 = vpop.xlane.xlu0 %1607 }
 0x27a   : > { %v7528_v24 = vmax.f32 %v7523_v51, %v1608_v18  ;;  %v5476_v18 = vcombine.low %v658_v30, %v659_v40  ;;  %v10142_v40 = vmax.f32 %v7305_v52, %v7309_v6  ;;  %v7560_v30 = vld [vmem:[#allocation2 + $0xe0] sm:$0xff] }
 0x27b   : > { %v1611_v22 = vpop.xlane.xlu1 %1610  ;;  %10143 = vst [vmem:[#allocation112_spill] sm:$0xff] %v7560_v30 }
 0x27c   : > { %4184 = vst.msk [vmem:[#allocation2 + $0xc0] sm:$0xff] %vm3070_vm3, %v7528_v24  ;;  %v7533_v48 = vmax.f32 %v7525_v16, %v1611_v22  ;;  %5621 = vmatprep.mubr.msk.bf16.mxu0 %vm972_vm2, %v5476_v18 }
 0x27d   : > { %5622 = vmatmul.mubr.msk.bf16.gmra.mrb[108].mxu0 %vm972_vm2, %v5476_v18 }
 0x27e   : > { %4185 = vst.msk [vmem:[#allocation2 + $0xc8] sm:$0xff] %vm3070_vm3, %v7533_v48 }
 0x281   : > { %v1614_v51 = vpop.xlane.xlu0 %1613 }
 0x282   : > { %v7547_v22 = vmax.f32 %v7541_v57, %v1614_v51 }
 0x283   : > { %v1617_v16 = vpop.xlane.xlu1 %1616 }
 0x284   : > { %10141 = vst [vmem:[#allocation111_spill] sm:$0xff] %v7547_v22  ;;  %4186 = vst.msk [vmem:[#allocation2 + $0xd0] sm:$0xff] %vm3070_vm3, %v7547_v22  ;;  %v7553_v2 = vmax.f32 %v7543_v50, %v1617_v16 }
 0x286   : > { %4187 = vst.msk [vmem:[#allocation2 + $0xd8] sm:$0xff] %vm3070_vm3, %v7553_v2  ;;  %1655 = vmax.xlane.f32.xlu0 %v10142_v40  ;;  %v7577_v40 = vld [vmem:[#allocation2 + $0xf0] sm:$0xff] }
 0x287   : > { %10146 = vst [vmem:[#allocation114_spill] sm:$0xff] %v7577_v40 }
 0x289   : > { %v1620_v51 = vpop.xlane.xlu0 %1619 }
 0x28a   : > { %v7565_v18 = vmax.f32 %v7560_v30, %v1620_v51  ;;  %1661 = vmax.xlane.f32.xlu0 %v10145_v8  ;;  %v10147_v51 = vsub.f32 %v7283_v35, %v7295_v28  ;;  %v7582_v30 = vld [vmem:[#allocation2 + $0xf8] sm:$0xff]  ;;  %v7597_v35 = vld [vmem:[#allocation2 + $0x100] sm:$0xff] }
 0x28b   : > { %v1623_v16 = vpop.xlane.xlu1 %1622  ;;  %10148 = vst [vmem:[#allocation115_spill] sm:$0xff] %v7582_v30  ;;  %10151 = vst [vmem:[#allocation117_spill] sm:$0xff] %v7597_v35 }
 0x28c   : > { %10144 = vst [vmem:[#allocation113_spill] sm:$0xff] %v7565_v18  ;;  %4188 = vst.msk [vmem:[#allocation2 + $0xe0] sm:$0xff] %vm3070_vm3, %v7565_v18  ;;  %v7573_v57 = vmax.f32 %v7562_v12, %v1623_v16  ;;  %v1860_v6 = vmul.f32 1.442695, %v10147_v51  ;;  %v10153_v51 = vsub.f32 %v7264_v60, %v7276_v0  ;;  %v7619_v0 = vld [vmem:[#allocation2 + $0x118] sm:$0xff] }
 0x28d   : > { %10158 = vst [vmem:[#allocation123_spill] sm:$0xff] %v7619_v0 }
 0x28e   : > { %4189 = vst.msk [vmem:[#allocation2 + $0xe8] sm:$0xff] %vm3070_vm3, %v7573_v57  ;;  %5721 = vpow2.f32 %v1860_v6 }
 0x291   : > { %v1626_v52 = vpop.xlane.xlu0 %1625 }
 0x292   : > { %v7585_v8 = vmax.f32 %v7577_v40, %v1626_v52  ;;  %v7599_v52 = vld [vmem:[#allocation2 + $0x108] sm:$0xff]  ;;  %v1858_v40 = vmul.f32 1.442695, %v10153_v51 }
 0x293   : > { %v1629_v4 = vpop.xlane.xlu1 %1628  ;;  %10152 = vst [vmem:[#allocation118_spill] sm:$0xff] %v7599_v52 }
 0x294   : > { %10149 = vst [vmem:[#allocation116_spill] sm:$0xff] %v7585_v8  ;;  %4190 = vst.msk [vmem:[#allocation2 + $0xf0] sm:$0xff] %vm3070_vm3, %v7585_v8  ;;  %v7590_v16 = vmax.f32 %v7582_v30, %v1629_v4  ;;  %1658 = vmax.xlane.f32.xlu1 %v10150_v9  ;;  %5723 = vpow2.f32 %v1858_v40  ;;  %v7632_v40 = vld [vmem:[#allocation2 + $0x120] sm:$0xff] }
 0x295   : > { %10161 = vst [vmem:[#allocation126_spill] sm:$0xff] %v7632_v40 }
 0x296   : > { %4191 = vst.msk [vmem:[#allocation2 + $0xf8] sm:$0xff] %vm3070_vm3, %v7590_v16 }
 0x298   : > { %v7614_v6 = vpop.eup %5721 }
 0x299   : > { %v1632_v28 = vpop.xlane.xlu0 %1631  ;;  %10156 = vst [vmem:[#allocation121_spill] sm:$0xff] %v7614_v6 }
 0x29a   : > { %v7605_v4 = vmax.f32 %v7597_v35, %v1632_v28 }
 0x29b   : > { %v1635_v30 = vpop.xlane.xlu1 %1634 }
 0x29c   : > { %10154 = vst [vmem:[#allocation119_spill] sm:$0xff] %v7605_v4  ;;  %4192 = vst.msk [vmem:[#allocation2 + $0x100] sm:$0xff] %vm3070_vm3, %v7605_v4  ;;  %v7610_v9 = vmax.f32 %v7599_v52, %v1635_v30 }
 0x29e   : > { %10155 = vst [vmem:[#allocation120_spill] sm:$0xff] %v7610_v9  ;;  %4193 = vst.msk [vmem:[#allocation2 + $0x108] sm:$0xff] %vm3070_vm3, %v7610_v9  ;;  %v7634_v35 = vpop.eup %5723 }
 0x29f   : > { %10162 = vst [vmem:[#allocation127_spill] sm:$0xff] %v7634_v35 }
 0x2a0   : > { %3216 = vperm.xlu0 %5683, %v7614_v6  }
 0x2a1   : > { %v1638_v60 = vpop.xlane.xlu0 %1637 }
 0x2a2   : > { %v7622_v28 = vmax.f32 %v7616_v34, %v1638_v60  ;;  %v7637_v60 = vld [vmem:[#allocation2 + $0x128] sm:$0xff] }
 0x2a3   : > { %v1641_v51 = vpop.xlane.xlu1 %1640  ;;  %10163 = vst [vmem:[#allocation128_spill] sm:$0xff] %v7637_v60 }
 0x2a4   : > { %10159 = vst [vmem:[#allocation124_spill] sm:$0xff] %v7622_v28  ;;  %4194 = vst.msk [vmem:[#allocation2 + $0x110] sm:$0xff] %vm3070_vm3, %v7622_v28  ;;  %v7627_v30 = vmax.f32 %v7619_v0, %v1641_v51  ;;  %v7642_v51 = vpop.f32.mrb[94].mxu0 }
 0x2a5   : > { %2009 = vperm.xlu1 %5684, %v7327_v58   ;;  %10165 = vst [vmem:[#allocation130_spill] sm:$0xff] %v7642_v51  ;;  %v7649_v32 = vpop.f32.mrb[95].mxu0 }
 0x2a6   : > { %10160 = vst [vmem:[#allocation125_spill] sm:$0xff] %v7627_v30  ;;  %4195 = vst.msk [vmem:[#allocation2 + $0x118] sm:$0xff] %vm3070_vm3, %v7627_v30 }
 0x2a7   : > { %10167 = vst [vmem:[#allocation132_spill] sm:$0xff] %v7649_v32 }
 0x2a9   : > { %v1644_v52 = vpop.xlane.xlu0 %1643  ;;  %3211 = vperm.xlu1 %5684, %v7634_v35   ;;  %v7654_v35 = vpop.f32.mrb[96].mxu0 }
 0x2aa   : > { %v7640_v34 = vmax.f32 %v7632_v40, %v1644_v52  ;;  %10168 = vst [vmem:[#allocation133_spill] sm:$0xff] %v7654_v35  ;;  %v7656_v40 = vpop.f32.mrb[97].mxu0 }
 0x2ab   : > { %v1647_v6 = vpop.xlane.xlu1 %1646  ;;  %10169 = vst [vmem:[#allocation134_spill] sm:$0xff] %v7656_v40 }
 0x2ac   : > { %10164 = vst [vmem:[#allocation129_spill] sm:$0xff] %v7640_v34  ;;  %4196 = vst.msk [vmem:[#allocation2 + $0x120] sm:$0xff] %vm3070_vm3, %v7640_v34  ;;  %v7647_v0 = vmax.f32 %v7637_v60, %v1647_v6 }
 0x2ad   : > { %2014 = vperm.xlu1 %5684, %v7345_v10  }
 0x2ae   : > { %10166 = vst [vmem:[#allocation131_spill] sm:$0xff] %v7647_v0  ;;  %4197 = vst.msk [vmem:[#allocation2 + $0x128] sm:$0xff] %vm3070_vm3, %v7647_v0 }
 0x2af   : > { %v1990_v52 = vpop.permute.xlu1 %1989 }
 0x2b0   : > { %v2304_v28 = vsub.f32 %v6999_v15, %v1990_v52  ;;  %v2305_v4 = vsub.f32 %v7003_v17, %v1990_v52 }
 0x2b1   : > { %v1985_v34 = vpop.permute.xlu0 %1984 }
 0x2b2   : > { %v2434_v60 = vmul.f32 1.442695, %v2304_v28  ;;  %v2436_v8 = vmul.f32 1.442695, %v2305_v4  ;;  %v2302_v18 = vsub.f32 %v6995_v13, %v1985_v34  ;;  %v2303_v0 = vsub.f32 %v6997_v14, %v1985_v34  ;;  %v596_v4 = vld [vmem:[%s6464_s27 + $0xe0] sm:$0xf] }
 0x2b3   : > { %v1995_v30 = vpop.permute.xlu1 %1994  ;;  %v597_v13 = vld [vmem:[%s6464_s27 + $0xe4] sm:$0xf]  ;;  %v660_v34 = vmul.bf16 1040203264, %v596_v4 }
 0x2b4   : > { %5725 = vpow2.f32 %v2434_v60  ;;  %v2430_v9 = vmul.f32 1.442695, %v2302_v18  ;;  %v2306_v22 = vsub.f32 %v7007_v19, %v1995_v30  ;;  %v2307_v15 = vsub.f32 %v7009_v20, %v1995_v30 }
 0x2b5   : > { %5727 = vpow2.f32 %v2436_v8  ;;  %v2432_v17 = vmul.f32 1.442695, %v2303_v0  ;;  %v661_v28 = vmul.bf16 1040203264, %v597_v13  ;;  %v10170_v20 = vmax.f32 %v7374_v11, %v7382_v59 }
 0x2b6   : > { %5729 = vpow2.f32 %v2430_v9  ;;  %v2438_v52 = vmul.f32 1.442695, %v2306_v22  ;;  %v2440_v6 = vmul.f32 1.442695, %v2307_v15 }
 0x2b7   : > { %5731 = vpow2.f32 %v2432_v17  ;;  %v5477_v18 = vcombine.low %v660_v34, %v661_v28  ;;  %v10171_v34 = vmax.f32 %v7366_v61, %v7371_v3 }
 0x2b8   : > { %5733 = vpow2.f32 %v2438_v52 }
 0x2b9   : > { %5735 = vpow2.f32 %v2440_v6  ;;  %5623 = vmatprep.mubr.msk.bf16.mxu0 %vm972_vm2, %v5477_v18  ;;  %v1795_v6 = vsub.f32 %v7307_v33, %v7327_v58  ;;  %v10173_v33 = vsub.f32 %v7298_v45, %v7312_v54  ;;  %v7711_v54 = vpop.f32.mrb[98].mxu0 }
 0x2ba   : > { %5624 = vmatmul.mubr.msk.bf16.gmra.mrb[112].mxu0 %vm972_vm2, %v5477_v18  ;;  %v7696_v18 = vld [vmem:[#allocation2 + $0x130] sm:$0xff]  ;;  %10178 = vst [vmem:[#allocation140_spill] sm:$0xff] %v7711_v54 }
 0x2bb   : > { %v1864_v13 = vmul.f32 1.442695, %v1795_v6  ;;  %v1862_v58 = vmul.f32 1.442695, %v10173_v33  ;;  %10174 = vst [vmem:[#allocation136_spill] sm:$0xff] %v7696_v18 }
 0x2bd   : > { %5737 = vpow2.f32 %v1864_v13 }
 0x2be   : > { %v5726_v60 = vpop.eup %5725  ;;  %5739 = vpow2.f32 %v1862_v58 }
 0x2bf   : > { %v5728_v19 = vpop.eup %5727  ;;  %1667 = vmax.xlane.f32.xlu0 %v10170_v20  ;;  %v7704_v20 = vld [vmem:[#allocation2 + $0x138] sm:$0xff] }
 0x2c0   : > { %v5730_v22 = vpop.eup %5729  ;;  %v7675_v8 = vadd.f32 %v5728_v19, %v5726_v60  ;;  %10176 = vst [vmem:[#allocation138_spill] sm:$0xff] %v7704_v20 }
 0x2c1   : > { %v5732_v9 = vpop.eup %5731  ;;  %v3583_v0 = vpack.c.bf16 %v5726_v60, %v5730_v22 }
 0x2c2   : > { %v7677_v30 = vpop.eup %5733  ;;  %v3584_v15 = vpack.c.bf16 %v5728_v19, %v5732_v9  ;;  %v7681_v17 = vadd.f32 %v5732_v9, %v5730_v22 }
 0x2c3   : > { %v5736_v52 = vpop.eup %5735 }
 0x2c4   : > { %3775 = vmatprep.mubr.bf16.mxu1 %v3584_v15  ;;  %v7684_v4 = vadd.f32 %v5736_v52, %v7677_v30 }
 0x2c5   : > { %3776 = vmatmul.mubr.bf16.vlgmr.msra.gmra.mrb[0].mxu1 %v3583_v0  ;;  %v7714_v0 = vpop.f32.mrb[99].mxu0 }
 0x2c6   : > { %10179 = vst [vmem:[#allocation141_spill] sm:$0xff] %v7714_v0 }
 0x2c7   : > { %v7689_v28 = vpop.eup %5737 }
 0x2c8   : > { %10172 = vst [vmem:[#allocation135_spill] sm:$0xff] %v7689_v28  ;;  %v7706_v9 = vpop.eup %5739 }
 0x2d1   : > { %1664 = vmax.xlane.f32.xlu1 %v10171_v34 }
 0x2d5   : > { %3226 = vperm.xlu0 %5683, %v7689_v28  }
 0x2d9   : > { %2029 = vperm.xlu0 %5683, %v7380_v55  }
 0x2de   : > { %v1650_v60 = vpop.xlane.xlu0 %1649 }
 0x2df   : > { %v7699_v19 = vmax.f32 %v7696_v18, %v1650_v60 }
 0x2e0   : > { %v7718_v6 = vpop.f32.mrb[100].mxu0 }
 0x2e1   : > { %10175 = vst [vmem:[#allocation137_spill] sm:$0xff] %v7699_v19  ;;  %4198 = vst.msk [vmem:[#allocation2 + $0x130] sm:$0xff] %vm3070_vm3, %v7699_v19  ;;  %v7720_v13 = vpop.f32.mrb[101].mxu0 }
 0x2e2   : > { %2019 = vperm.xlu1 %5684, %v7355_v7   ;;  %10180 = vst [vmem:[#allocation142_spill] sm:$0xff] %v7718_v6  ;;  %10181 = vst [vmem:[#allocation143_spill] sm:$0xff] %v7720_v13 }
 0x2e4   : > { %v1653_v22 = vpop.xlane.xlu1 %1652 }
 0x2e5   : > { %v7709_v45 = vmax.f32 %v7704_v20, %v1653_v22 }
 0x2e6   : > { %3221 = vperm.xlu1 %5684, %v7706_v9  }
 0x2e7   : > { %10177 = vst [vmem:[#allocation139_spill] sm:$0xff] %v7709_v45  ;;  %4199 = vst.msk [vmem:[#allocation2 + $0x138] sm:$0xff] %vm3070_vm3, %v7709_v45 }
 0x2e8   : > { %v2000_v15 = vpop.permute.xlu1 %1999 }
 0x2e9   : > { %v2308_v34 = vsub.f32 %v7011_v21, %v2000_v15  ;;  %v2309_v33 = vsub.f32 %v7015_v23, %v2000_v15  ;;  %v598_v21 = vld [vmem:[%s6464_s27 + $0xe8] sm:$0xf]  ;;  %v599_v23 = vld [vmem:[%s6464_s27 + $0xec] sm:$0xf] }
 0x2ea   : > { %2024 = vperm.xlu1 %5684, %v7369_v1   ;;  %v662_v58 = vmul.bf16 1040203264, %v598_v21  ;;  %v663_v3 = vmul.bf16 1040203264, %v599_v23  ;;  %v7761_v21 = vld [vmem:[#allocation2 + $0x140] sm:$0xff] }
 0x2eb   : > { %v2442_v60 = vmul.f32 1.442695, %v2308_v34  ;;  %v2444_v22 = vmul.f32 1.442695, %v2309_v33  ;;  %10185 = vst [vmem:[#allocation145_spill] sm:$0xff] %v7761_v21 }
 0x2ec   : > { %v2005_v14 = vpop.permute.xlu1 %2004  ;;  %v5478_v34 = vcombine.low %v662_v58, %v663_v3  ;;  %v1797_v3 = vsub.f32 %v7340_v39, %v7355_v7  ;;  %v7759_v7 = vpop.permute.xlu0 %3201 }
 0x2ed   : > { %5741 = vpow2.f32 %v2442_v60  ;;  %v2310_v18 = vsub.f32 %v7019_v25, %v2005_v14  ;;  %v2311_v20 = vsub.f32 %v7021_v26, %v2005_v14  ;;  %v10182_v25 = vmax.f32 %v7515_v42, %v7517_v43 }
 0x2ee   : > { %5743 = vpow2.f32 %v2444_v22  ;;  %5625 = vmatprep.mubr.msk.bf16.mxu0 %vm972_vm2, %v5478_v34  ;;  %v1868_v58 = vmul.f32 1.442695, %v1797_v3  ;;  %v10184_v22 = vmax.f32 %v7506_v53, %v7508_v31  ;;  %v600_v31 = vld [vmem:[%s6464_s27 + $0xf0] sm:$0xf] }
 0x2ef   : > { %v2446_v59 = vmul.f32 1.442695, %v2310_v18  ;;  %v2448_v11 = vmul.f32 1.442695, %v2311_v20  ;;  %5626 = vmatmul.mubr.msk.bf16.gmra.mrb[116].mxu0 %vm972_vm2, %v5478_v34 }
 0x2f1   : > { %5745 = vpow2.f32 %v2446_v59 }
 0x2f2   : > { %5747 = vpow2.f32 %v2448_v11 }
 0x2f3   : > { %5749 = vpow2.f32 %v1868_v58 }
 0x2f7   : > { %v5742_v33 = vpop.eup %5741 }
 0x2f8   : > { %v5744_v60 = vpop.eup %5743  ;;  %1673 = vmax.xlane.f32.xlu0 %v10182_v25  ;;  %v3585_v26 = vpack.c.bf16 %v5742_v33, %v7677_v30  ;;  %v1796_v30 = vsub.f32 %v7335_v47, %v7345_v10  ;;  %v7767_v47 = vld [vmem:[#allocation2 + $0x150] sm:$0xff] }
 0x2f9   : > { %v3586_v59 = vpack.c.bf16 %v5744_v60, %v5736_v52  ;;  %v7739_v11 = vadd.f32 %v5744_v60, %v5742_v33  ;;  %10186 = vst [vmem:[#allocation146_spill] sm:$0xff] %v7767_v47  ;;  %v7776_v60 = vpop.permute.xlu1 %3206 }
 0x2fa   : > { %v1866_v39 = vmul.f32 1.442695, %v1796_v30 }
 0x2fb   : > { %v7741_v14 = vpop.eup %5745  ;;  %3783 = vmatprep.mubr.bf16.mxu1 %v3586_v59  ;;  %v7783_v59 = vld [vmem:[#allocation2 + $0x148] sm:$0xff] }
 0x2fc   : > { %v7745_v18 = vpop.eup %5747  ;;  %3784 = vmatmul.mubr.bf16.gmra.mrb[4].mxu1 %v3585_v26  ;;  %5751 = vpow2.f32 %v1866_v39  ;;  %v7780_v26 = vpop.f32.mrb[102].mxu0  ;;  %10189 = vst [vmem:[#allocation149_spill] sm:$0xff] %v7783_v59 }
 0x2fd   : > { %v7749_v20 = vadd.f32 %v7745_v18, %v7741_v14  ;;  %v7753_v52 = vpop.eup %5749  ;;  %10188 = vst [vmem:[#allocation148_spill] sm:$0xff] %v7780_v26  ;;  %v7785_v3 = vpop.f32.mrb[103].mxu0 }
 0x2fe   : > { %10183 = vst [vmem:[#allocation144_spill] sm:$0xff] %v7753_v52  ;;  %10190 = vst [vmem:[#allocation150_spill] sm:$0xff] %v7785_v3 }
 0x306   : > { %v7778_v25 = vpop.eup %5751 }
 0x307   : > { %10187 = vst [vmem:[#allocation147_spill] sm:$0xff] %v7778_v25 }
 0x30e   : > { %1670 = vmax.xlane.f32.xlu1 %v10184_v22  ;;  %3236 = vperm.xlu0 %5683, %v7753_v52  }
 0x312   : > { %2039 = vperm.xlu0 %5683, %v7400_v41  }
 0x313   : > { %v1656_v23 = vpop.xlane.xlu0 %1655 }
 0x314   : > { %v7765_v34 = vmax.f32 %v7761_v21, %v1656_v23 }
 0x315   : > { %v7787_v58 = vpop.f32.mrb[104].mxu0 }
 0x316   : > { %4200 = vst.msk [vmem:[#allocation2 + $0x140] sm:$0xff] %vm3070_vm3, %v7765_v34  ;;  %10191 = vst [vmem:[#allocation151_spill] sm:$0xff] %v7787_v58  ;;  %v7789_v22 = vpop.f32.mrb[105].mxu0 }
 0x317   : > { %v1662_v10 = vpop.xlane.xlu0 %1661  ;;  %10192 = vst [vmem:[#allocation152_spill] sm:$0xff] %v7789_v22 }
 0x318   : > { %v7772_v33 = vmax.f32 %v7767_v47, %v1662_v10 }
 0x31a   : > { %4202 = vst.msk [vmem:[#allocation2 + $0x150] sm:$0xff] %vm3070_vm3, %v7772_v33 }
 0x31f   : > { %3231 = vperm.xlu1 %5684, %v7778_v25  }
 0x321   : > { %v1659_v30 = vpop.xlane.xlu1 %1658 }
 0x322   : > { %v7792_v39 = vmax.f32 %v7783_v59, %v1659_v30  ;;  %v601_v30 = vld [vmem:[%s6464_s27 + $0xf4] sm:$0xf]  ;;  %v664_v59 = vmul.bf16 1040203264, %v600_v31  ;;  %v10194_v31 = vmax.f32 %v7654_v35, %v7656_v40 }
 0x323   : > { %2034 = vperm.xlu1 %5684, %v7395_v56   ;;  %v665_v52 = vmul.bf16 1040203264, %v601_v30  ;;  %v7838_v30 = vld [vmem:[#allocation2 + $0x160] sm:$0xff] }
 0x324   : > { %10193 = vst [vmem:[#allocation153_spill] sm:$0xff] %v7792_v39  ;;  %4201 = vst.msk [vmem:[#allocation2 + $0x148] sm:$0xff] %vm3070_vm3, %v7792_v39 }
 0x325   : > { %v2010_v10 = vpop.permute.xlu1 %2009  ;;  %v5479_v53 = vcombine.low %v664_v59, %v665_v52  ;;  %v1799_v52 = vsub.f32 %v7364_v62, %v7380_v55  ;;  %v1798_v55 = vsub.f32 %v7360_v5, %v7369_v1  ;;  %10197 = vst [vmem:[#allocation155_spill] sm:$0xff] %v7838_v30 }
 0x326   : > { %v2312_v15 = vsub.f32 %v7023_v27, %v2010_v10  ;;  %v2313_v47 = vsub.f32 %v7027_v29, %v2010_v10 }
 0x327   : > { %5627 = vmatprep.mubr.msk.bf16.mxu0 %vm972_vm2, %v5479_v53  ;;  %v1870_v10 = vmul.f32 1.442695, %v1798_v55 }
 0x328   : > { %v2450_v21 = vmul.f32 1.442695, %v2312_v15  ;;  %v2452_v43 = vmul.f32 1.442695, %v2313_v47  ;;  %5628 = vmatmul.mubr.msk.bf16.gmra.mrb[120].mxu0 %vm972_vm2, %v5479_v53  ;;  %v1872_v53 = vmul.f32 1.442695, %v1799_v52 }
 0x329   : > { %v7801_v42 = vpop.permute.xlu1 %3211 }
 0x32a   : > { %5753 = vpow2.f32 %v2450_v21 }
 0x32b   : > { %5755 = vpow2.f32 %v2452_v43 }
 0x32d   : > { %v2015_v28 = vpop.permute.xlu1 %2014 }
 0x32e   : > { %v2314_v61 = vsub.f32 %v7033_v36, %v2015_v28  ;;  %v2315_v27 = vsub.f32 %v7036_v37, %v2015_v28 }
 0x330   : > { %v2454_v29 = vmul.f32 1.442695, %v2314_v61  ;;  %v2456_v15 = vmul.f32 1.442695, %v2315_v27 }
 0x331   : > { %1679 = vmax.xlane.f32.xlu0 %v10194_v31 }
 0x332   : > { %5757 = vpow2.f32 %v2454_v29 }
 0x333   : > { %5759 = vpow2.f32 %v2456_v15  ;;  %v7850_v15 = vpop.f32.mrb[106].mxu0 }
 0x334   : > { %v5754_v43 = vpop.eup %5753  ;;  %5761 = vpow2.f32 %v1872_v53  ;;  %10200 = vst [vmem:[#allocation158_spill] sm:$0xff] %v7850_v15 }
 0x335   : > { %v5756_v21 = vpop.eup %5755  ;;  %v3587_v36 = vpack.c.bf16 %v5754_v43, %v7741_v14  ;;  %v10196_v14 = vmax.f32 %v7642_v51, %v7649_v32  ;;  %5763 = vpow2.f32 %v1870_v10  ;;  %v7864_v10 = vld [vmem:[#allocation2 + $0x158] sm:$0xff] }
 0x336   : > { %v3588_v37 = vpack.c.bf16 %v5756_v21, %v7745_v18  ;;  %v7818_v28 = vadd.f32 %v5756_v21, %v5754_v43  ;;  %v7836_v18 = vpop.permute.xlu0 %3216  ;;  %v7853_v43 = vpop.f32.mrb[107].mxu0  ;;  %10204 = vst [vmem:[#allocation162_spill] sm:$0xff] %v7864_v10 }
 0x337   : > { %10201 = vst [vmem:[#allocation159_spill] sm:$0xff] %v7853_v43 }
 0x338   : > { %3791 = vmatprep.mubr.bf16.mxu1 %v3588_v37 }
 0x339   : > { %3792 = vmatmul.mubr.bf16.gmra.mrb[8].mxu1 %v3587_v36 }
 0x33c   : > { %v7820_v61 = vpop.eup %5757 }
 0x33d   : > { %v7822_v47 = vpop.eup %5759 }
 0x33e   : > { %v7826_v59 = vadd.f32 %v7822_v47, %v7820_v61  ;;  %v7830_v62 = vpop.eup %5761 }
 0x33f   : > { %10195 = vst [vmem:[#allocation154_spill] sm:$0xff] %v7830_v62  ;;  %v7848_v5 = vpop.eup %5763 }
 0x340   : > { %10199 = vst [vmem:[#allocation157_spill] sm:$0xff] %v7848_v5 }
 0x347   : > { %1676 = vmax.xlane.f32.xlu1 %v10196_v14  ;;  %3246 = vperm.xlu0 %5683, %v7830_v62  }
 0x34b   : > { %2049 = vperm.xlu0 %5683, %v7420_v63  }
 0x34c   : > { %v1668_v27 = vpop.xlane.xlu0 %1667 }
 0x34d   : > { %v7842_v29 = vmax.f32 %v7838_v30, %v1668_v27  ;;  %v10207_v30 = vld [vmem:[#allocation6_spill] sm:$0xff] }
 0x34f   : > { %10198 = vst [vmem:[#allocation156_spill] sm:$0xff] %v7842_v29  ;;  %4204 = vst.msk [vmem:[#allocation2 + $0x160] sm:$0xff] %vm3070_vm3, %v7842_v29 }
 0x350   : > { %v7857_v36 = vpop.f32.mrb[108].mxu0 }
 0x351   : > { %10202 = vst [vmem:[#allocation160_spill] sm:$0xff] %v7857_v36  ;;  %v7859_v37 = vpop.f32.mrb[109].mxu0 }
 0x352   : > { %10203 = vst [vmem:[#allocation161_spill] sm:$0xff] %v7859_v37 }
 0x354   : > { %v7846_v1 = vpop.permute.xlu0 %3226 }
 0x358   : > { %v2030_v31 = vpop.permute.xlu0 %2029  ;;  %3241 = vperm.xlu1 %5684, %v7848_v5  }
 0x359   : > { %v2320_v52 = vsub.f32 %v7051_v44, %v2030_v31  ;;  %v2321_v21 = vsub.f32 %v7055_v46, %v2030_v31  ;;  %v602_v31 = vld [vmem:[%s6464_s27 + $0xf8] sm:$0xf] }
 0x35a   : > { %v666_v40 = vmul.bf16 1040203264, %v602_v31  ;;  %v10211_v31 = vld [vmem:[#allocation8_spill] sm:$0xff] }
 0x35b   : > { %v2466_v53 = vmul.f32 1.442695, %v2320_v52  ;;  %v2468_v55 = vmul.f32 1.442695, %v2321_v21  ;;  %v603_v52 = vld [vmem:[%s6464_s27 + $0xfc] sm:$0xf] }
 0x35c   : > { %2044 = vperm.xlu1 %5684, %v7413_v38   ;;  %v10206_v21 = vld [vmem:[#allocation5_spill] sm:$0xff]  ;;  %v667_v35 = vmul.bf16 1040203264, %v603_v52 }
 0x35d   : > { %5765 = vpow2.f32 %v2466_v53 }
 0x35e   : > { %5767 = vpow2.f32 %v2468_v55  ;;  %v1665_v27 = vpop.xlane.xlu1 %1664 }
 0x35f   : > { %v7867_v44 = vmax.f32 %v7864_v10, %v1665_v27  ;;  %v5480_v27 = vcombine.low %v666_v40, %v667_v35  ;;  %v1801_v35 = vsub.f32 %v7392_v49, %v7400_v41 }
 0x361   : > { %10205 = vst [vmem:[#allocation163_spill] sm:$0xff] %v7867_v44  ;;  %4203 = vst.msk [vmem:[#allocation2 + $0x158] sm:$0xff] %vm3070_vm3, %v7867_v44  ;;  %5629 = vmatprep.mubr.msk.bf16.mxu0 %vm972_vm2, %v5480_v27 }
 0x362   : > { %v2020_v46 = vpop.permute.xlu1 %2019  ;;  %5630 = vmatmul.mubr.msk.bf16.gmra.mrb[124].mxu0 %vm972_vm2, %v5480_v27  ;;  %v1876_v27 = vmul.f32 1.442695, %v1801_v35  ;;  %v7916_v35 = vpop.f32.mrb[110].mxu0 }
 0x363   : > { %v2316_v23 = vsub.f32 %v10206_v21, %v2020_v46  ;;  %v2317_v14 = vsub.f32 %v10207_v30, %v2020_v46  ;;  %v10209_v46 = vmax.f32 %v7718_v6, %v7720_v13  ;;  %10220 = vst [vmem:[#allocation164_spill] sm:$0xff] %v7916_v35 }
 0x365   : > { %v2458_v55 = vmul.f32 1.442695, %v2316_v23  ;;  %v2460_v32 = vmul.f32 1.442695, %v2317_v14  ;;  %v10210_v23 = vld [vmem:[#allocation7_spill] sm:$0xff] }
 0x366   : > { %v7877_v62 = vpop.permute.xlu1 %3221 }
 0x367   : > { %v5766_v10 = vpop.eup %5765  ;;  %5769 = vpow2.f32 %v2458_v55 }
 0x368   : > { %v5768_v51 = vpop.eup %5767  ;;  %5771 = vpow2.f32 %v2460_v32 }
 0x369   : > { %v7881_v21 = vadd.f32 %v5768_v51, %v5766_v10 }
 0x36a   : > { %v2025_v30 = vpop.permute.xlu1 %2024  ;;  %1685 = vmax.xlane.f32.xlu0 %v10209_v46 }
 0x36b   : > { %10208 = vst [vmem:[#allocation5_spill] sm:$0xff] %v7881_v21  ;;  %v2318_v14 = vsub.f32 %v10210_v23, %v2025_v30  ;;  %v2319_v52 = vsub.f32 %v10211_v31, %v2025_v30 }
 0x36d   : > { %v2462_v40 = vmul.f32 1.442695, %v2318_v14  ;;  %v2464_v32 = vmul.f32 1.442695, %v2319_v52  ;;  %v10213_v14 = vld [vmem:[#allocation79_spill] sm:$0xff] }
 0x36e   : > { %v1800_v31 = vsub.f32 %v10213_v14, %v7395_v56  ;;  %v3135_v14 = vld [vmem:[#allocation4] sm:$0xff] }
 0x36f   : > { %5773 = vpow2.f32 %v2462_v40  ;;  %v3519_v6 = vmul.f32 %v7759_v7, %v3135_v14  ;;  %v10229_v14 = vmax.f32 %v7787_v58, %v7789_v22 }
 0x370   : > { %5775 = vpow2.f32 %v2464_v32  ;;  %v7919_v32 = vpop.f32.mrb[111].mxu0 }
 0x371   : > { %v5770_v55 = vpop.eup %5769  ;;  %5777 = vpow2.f32 %v1876_v27  ;;  %10221 = vst [vmem:[#allocation165_spill] sm:$0xff] %v7919_v32 }
 0x372   : > { %v5772_v53 = vpop.eup %5771  ;;  %v3589_v5 = vpack.c.bf16 %v5770_v55, %v7820_v61  ;;  %v10215_v61 = vmax.f32 %v7711_v54, %v7714_v0 }
 0x373   : > { %v3590_v21 = vpack.c.bf16 %v5772_v53, %v7822_v47  ;;  %v7892_v13 = vadd.f32 %v5772_v53, %v5770_v55  ;;  %v1874_v47 = vmul.f32 1.442695, %v1800_v31  ;;  %v10222_v55 = vld [vmem:[#allocation11_spill] sm:$0xff] }
 0x375   : > { %10212 = vst [vmem:[#allocation6_spill] sm:$0xff] %v7892_v13  ;;  %3799 = vmatprep.mubr.bf16.mxu1 %v3590_v21  ;;  %5779 = vpow2.f32 %v1874_v47 }
 0x376   : > { %3800 = vmatmul.mubr.bf16.gmra.mrb[12].mxu1 %v3589_v5  ;;  %v7904_v5 = vld [vmem:[#allocation2 + $0x170] sm:$0xff] }
 0x377   : > { %10216 = vst [vmem:[#allocation8_spill] sm:$0xff] %v7904_v5 }
 0x379   : > { %v5774_v30 = vpop.eup %5773 }
 0x37a   : > { %v5776_v46 = vpop.eup %5775  ;;  %v3591_v23 = vpack.c.bf16 %v5766_v10, %v5774_v30  ;;  %v10217_v10 = vld [vmem:[#allocation85_spill] sm:$0xff] }
 0x37b   : > { %v3592_v49 = vpack.c.bf16 %v5768_v51, %v5776_v46  ;;  %v7894_v41 = vadd.f32 %v5776_v46, %v5774_v30  ;;  %v7898_v52 = vpop.eup %5777  ;;  %v10223_v30 = vld [vmem:[#allocation12_spill] sm:$0xff] }
 0x37c   : > { %10214 = vst [vmem:[#allocation7_spill] sm:$0xff] %v7898_v52 }
 0x37d   : > { %3807 = vmatprep.mubr.bf16.mxu1 %v3592_v49 }
 0x37e   : > { %3808 = vmatmul.mubr.bf16.gmra.mrb[16].mxu1 %v3591_v23 }
 0x37f   : > { %v7914_v21 = vpop.eup %5779 }
 0x380   : > { %1682 = vmax.xlane.f32.xlu1 %v10215_v61  ;;  %3256 = vperm.xlu0 %5683, %v7898_v52   ;;  %10219 = vst [vmem:[#allocation85_spill] sm:$0xff] %v7914_v21  ;;  %v7932_v52 = vld [vmem:[#allocation2 + $0x168] sm:$0xff] }
 0x384   : > { %2059 = vperm.xlu0 %5683, %v10217_v10  }
 0x385   : > { %v1674_v51 = vpop.xlane.xlu0 %1673 }
 0x386   : > { %v7908_v53 = vmax.f32 %v7904_v5, %v1674_v51  ;;  %v10226_v51 = vld [vmem:[#allocation84_spill] sm:$0xff]  ;;  %v3136_v5 = vld [vmem:[#allocation4 + $0x8] sm:$0xff] }
 0x387   : > { %10227 = vst [vmem:[#allocation84_spill] sm:$0xff] %v7932_v52 }
 0x388   : > { %10218 = vst [vmem:[#allocation79_spill] sm:$0xff] %v7908_v53  ;;  %4206 = vst.msk [vmem:[#allocation2 + $0x170] sm:$0xff] %vm3070_vm3, %v7908_v53 }
 0x38d   : > { %v7912_v56 = vpop.permute.xlu0 %3236  ;;  %v7923_v23 = vpop.f32.mrb[112].mxu0 }
 0x38e   : > { %10224 = vst [vmem:[#allocation11_spill] sm:$0xff] %v7923_v23  ;;  %v7925_v49 = vpop.f32.mrb[113].mxu0 }
 0x38f   : > { %10225 = vst [vmem:[#allocation12_spill] sm:$0xff] %v7925_v49 }
 0x391   : > { %v2040_v40 = vpop.permute.xlu0 %2039  ;;  %3251 = vperm.xlu1 %5684, %v7914_v21  }
 0x392   : > { %v2324_v27 = vsub.f32 %v10222_v55, %v2040_v40  ;;  %v2325_v46 = vsub.f32 %v10223_v30, %v2040_v40  ;;  %v3520_v40 = vmul.f32 %v7776_v60, %v3136_v5 }
 0x394   : > { %v2474_v31 = vmul.f32 1.442695, %v2324_v27  ;;  %v2476_v61 = vmul.f32 1.442695, %v2325_v46 }
 0x395   : > { %2054 = vperm.xlu1 %5684, %v10226_v51  }
 0x396   : > { %5781 = vpow2.f32 %v2474_v31  ;;  %v10230_v31 = vld [vmem:[#allocation9_spill] sm:$0xff] }
 0x397   : > { %5783 = vpow2.f32 %v2476_v61 }
 0x398   : > { %v3777_v55 = vpop.f32.mrb[0].mxu1 }
 0x399   : > { %v4032_v30 = vadd.f32 %v3777_v55, %v3519_v6  ;;  %v3779_v0 = vpop.f32.mrb[1].mxu1 }
 0x39a   : > { %v3780_v54 = vpop.f32.mrb[2].mxu1 }
 0x39b   : > { %4096 = vst.msk [vmem:[#allocation4] sm:$0xff] %vm972_vm2, %v4032_v30  ;;  %v4033_v27 = vadd.f32 %v3780_v54, %v3520_v40  ;;  %v3782_v46 = vpop.f32.mrb[3].mxu1  ;;  %v1671_v47 = vpop.xlane.xlu1 %1670  ;;  %v10232_v40 = vld [vmem:[#allocation81_spill] sm:$0xff] }
 0x39c   : > { %v7936_v21 = vmax.f32 %v7932_v52, %v1671_v47  ;;  %v10231_v47 = vld [vmem:[#allocation10_spill] sm:$0xff]  ;;  %v1803_v30 = vsub.f32 %v10232_v40, %v7420_v63  ;;  %v10236_v63 = vmax.f32 %v7780_v26, %v7785_v3  ;;  %v10243_v40 = vld [vmem:[#allocation15_spill] sm:$0xff]  ;;  %v10247_v3 = vld [vmem:[#allocation88_spill] sm:$0xff] }
 0x39d   : > { %4097 = vst.msk [vmem:[#allocation4 + $0x8] sm:$0xff] %vm972_vm2, %v4033_v27 }
 0x39e   : > { %4205 = vst.msk [vmem:[#allocation2 + $0x168] sm:$0xff] %vm3070_vm3, %v7936_v21  ;;  %v1880_v7 = vmul.f32 1.442695, %v1803_v30 }
 0x39f   : > { %v7943_v0 = vpop.permute.xlu1 %3231 }
 0x3a0   : > { %v5782_v6 = vpop.eup %5781 }
 0x3a1   : > { %v5784_v60 = vpop.eup %5783 }
 0x3a2   : > { %v7945_v5 = vadd.f32 %v5784_v60, %v5782_v6 }
 0x3a3   : > { %v2035_v54 = vpop.permute.xlu1 %2034  ;;  %1691 = vmax.xlane.f32.xlu0 %v10229_v14  ;;  %v10234_v14 = vld [vmem:[#allocation80_spill] sm:$0xff] }
 0x3a4   : > { %10228 = vst [vmem:[#allocation166_spill] sm:$0xff] %v7945_v5  ;;  %v2322_v61 = vsub.f32 %v10230_v31, %v2035_v54  ;;  %v2323_v55 = vsub.f32 %v10231_v47, %v2035_v54  ;;  %v1802_v31 = vsub.f32 %v10234_v14, %v7413_v38 }
 0x3a6   : > { %v2470_v27 = vmul.f32 1.442695, %v2322_v61  ;;  %v2472_v46 = vmul.f32 1.442695, %v2323_v55  ;;  %v7964_v61 = vld [vmem:[#allocation2 + $0x180] sm:$0xff]  ;;  %v3137_v55 = vld [vmem:[#allocation4 + $0x10] sm:$0xff] }
 0x3a7   : > { %10237 = vst [vmem:[#allocation81_spill] sm:$0xff] %v7964_v61  ;;  %v3521_v58 = vmul.f32 %v7801_v42, %v3137_v55 }
 0x3a8   : > { %5785 = vpow2.f32 %v2470_v27  ;;  %v10244_v27 = vld [vmem:[#allocation16_spill] sm:$0xff] }
 0x3a9   : > { %5787 = vpow2.f32 %v2472_v46 }
 0x3aa   : > { %5789 = vpow2.f32 %v1880_v7  ;;  %v1878_v7 = vmul.f32 1.442695, %v1802_v31 }
 0x3ac   : > { %5791 = vpow2.f32 %v1878_v7 }
 0x3b2   : > { %v5786_v52 = vpop.eup %5785 }
 0x3b3   : > { %v5788_v5 = vpop.eup %5787  ;;  %v3593_v53 = vpack.c.bf16 %v5782_v6, %v5786_v52  ;;  %v10238_v6 = vld [vmem:[#allocation89_spill] sm:$0xff] }
 0x3b4   : > { %v3594_v29 = vpack.c.bf16 %v5784_v60, %v5788_v5  ;;  %v7954_v25 = vadd.f32 %v5788_v5, %v5786_v52  ;;  %v7958_v54 = vpop.eup %5789  ;;  %v7976_v60 = vpop.f32.mrb[114].mxu0 }
 0x3b5   : > { %10235 = vst [vmem:[#allocation10_spill] sm:$0xff] %v7958_v54  ;;  %10241 = vst [vmem:[#allocation167_spill] sm:$0xff] %v7976_v60  ;;  %v7979_v47 = vpop.f32.mrb[115].mxu0 }
 0x3b6   : > { %10233 = vst [vmem:[#allocation9_spill] sm:$0xff] %v7954_v25  ;;  %3815 = vmatprep.mubr.bf16.mxu1 %v3594_v29  ;;  %10242 = vst [vmem:[#allocation168_spill] sm:$0xff] %v7979_v47 }
 0x3b7   : > { %3816 = vmatmul.mubr.bf16.gmra.mrb[20].mxu1 %v3593_v53  ;;  %v7974_v53 = vpop.eup %5791 }
 0x3b8   : > { %10240 = vst [vmem:[#allocation89_spill] sm:$0xff] %v7974_v53 }
 0x3b9   : > { %1688 = vmax.xlane.f32.xlu1 %v10236_v63  ;;  %3266 = vperm.xlu0 %5683, %v7958_v54   ;;  %v3138_v63 = vld [vmem:[#allocation4 + $0x18] sm:$0xff] }
 0x3bd   : > { %2069 = vperm.xlu0 %5683, %v10238_v6  }
 0x3be   : > { %v1680_v52 = vpop.xlane.xlu0 %1679 }
 0x3bf   : > { %v7968_v29 = vmax.f32 %v7964_v61, %v1680_v52  ;;  %v7995_v61 = vld [vmem:[#allocation2 + $0x178] sm:$0xff] }
 0x3c0   : > { %10248 = vst [vmem:[#allocation88_spill] sm:$0xff] %v7995_v61 }
 0x3c1   : > { %10239 = vst [vmem:[#allocation80_spill] sm:$0xff] %v7968_v29  ;;  %4208 = vst.msk [vmem:[#allocation2 + $0x180] sm:$0xff] %vm3070_vm3, %v7968_v29 }
 0x3c2   : > { %v7983_v14 = vpop.f32.mrb[116].mxu0 }
 0x3c3   : > { %10245 = vst [vmem:[#allocation15_spill] sm:$0xff] %v7983_v14  ;;  %v7985_v31 = vpop.f32.mrb[117].mxu0 }
 0x3c4   : > { %10246 = vst [vmem:[#allocation16_spill] sm:$0xff] %v7985_v31 }
 0x3c6   : > { %v7972_v38 = vpop.permute.xlu0 %3246 }
 0x3ca   : > { %v2050_v5 = vpop.permute.xlu0 %2049  ;;  %3261 = vperm.xlu1 %5684, %v7974_v53  }
 0x3cb   : > { %v2328_v30 = vsub.f32 %v10243_v40, %v2050_v5  ;;  %v2329_v46 = vsub.f32 %v10244_v27, %v2050_v5  ;;  %v3522_v5 = vmul.f32 %v7836_v18, %v3138_v63 }
 0x3cd   : > { %v2482_v7 = vmul.f32 1.442695, %v2328_v30  ;;  %v2484_v52 = vmul.f32 1.442695, %v2329_v46 }
 0x3ce   : > { %2064 = vperm.xlu1 %5684, %v10247_v3  }
 0x3cf   : > { %5793 = vpow2.f32 %v2482_v7  ;;  %v3785_v40 = vpop.f32.mrb[4].mxu1  ;;  %v10252_v7 = vld [vmem:[#allocation13_spill] sm:$0xff] }
 0x3d0   : > { %5795 = vpow2.f32 %v2484_v52  ;;  %v4034_v27 = vadd.f32 %v3785_v40, %v3521_v58  ;;  %v3787_v54 = vpop.f32.mrb[5].mxu1  ;;  %v10253_v40 = vld [vmem:[#allocation14_spill] sm:$0xff] }
 0x3d1   : > { %v3788_v26 = vpop.f32.mrb[6].mxu1 }
 0x3d2   : > { %4098 = vst.msk [vmem:[#allocation4 + $0x10] sm:$0xff] %vm972_vm2, %v4034_v27  ;;  %v4035_v30 = vadd.f32 %v3788_v26, %v3522_v5  ;;  %v3790_v46 = vpop.f32.mrb[7].mxu1  ;;  %v10251_v26 = vmax.f32 %v7857_v36, %v7859_v37  ;;  %v3139_v37 = vld [vmem:[#allocation4 + $0x20] sm:$0xff] }
 0x3d4   : > { %4099 = vst.msk [vmem:[#allocation4 + $0x18] sm:$0xff] %vm972_vm2, %v4035_v30  ;;  %v1677_v22 = vpop.xlane.xlu1 %1676 }
 0x3d5   : > { %v7999_v42 = vmax.f32 %v7995_v61, %v1677_v22  ;;  %v10254_v22 = vld [vmem:[#allocation83_spill] sm:$0xff] }
 0x3d6   : > { %v1805_v27 = vsub.f32 %v10254_v22, %v10217_v10  ;;  %v10258_v10 = vmax.f32 %v7850_v15, %v7853_v43 }
 0x3d7   : > { %10249 = vst [vmem:[#allocation169_spill] sm:$0xff] %v7999_v42  ;;  %4207 = vst.msk [vmem:[#allocation2 + $0x178] sm:$0xff] %vm3070_vm3, %v7999_v42 }
 0x3d8   : > { %v8003_v18 = vpop.permute.xlu1 %3241  ;;  %v1884_v61 = vmul.f32 1.442695, %v1805_v27  ;;  %v10266_v27 = vld [vmem:[#allocation20_spill] sm:$0xff] }
 0x3d9   : > { %v5794_v58 = vpop.eup %5793 }
 0x3da   : > { %v5796_v54 = vpop.eup %5795 }
 0x3db   : > { %v8005_v55 = vadd.f32 %v5796_v54, %v5794_v58 }
 0x3dc   : > { %v2045_v63 = vpop.permute.xlu1 %2044  ;;  %1697 = vmax.xlane.f32.xlu0 %v10251_v26  ;;  %v10256_v26 = vld [vmem:[#allocation82_spill] sm:$0xff] }
 0x3dd   : > { %10250 = vst [vmem:[#allocation170_spill] sm:$0xff] %v8005_v55  ;;  %v2326_v52 = vsub.f32 %v10252_v7, %v2045_v63  ;;  %v2327_v5 = vsub.f32 %v10253_v40, %v2045_v63  ;;  %v1804_v7 = vsub.f32 %v10256_v26, %v10226_v51 }
 0x3df   : > { %v2478_v30 = vmul.f32 1.442695, %v2326_v52  ;;  %v2480_v46 = vmul.f32 1.442695, %v2327_v5  ;;  %v8024_v52 = vld [vmem:[#allocation2 + $0x190] sm:$0xff] }
 0x3e0   : > { %10259 = vst [vmem:[#allocation83_spill] sm:$0xff] %v8024_v52  ;;  %v10265_v5 = vld [vmem:[#allocation19_spill] sm:$0xff] }
 0x3e1   : > { %5797 = vpow2.f32 %v2478_v30 }
 0x3e2   : > { %5799 = vpow2.f32 %v2480_v46 }
 0x3e3   : > { %5801 = vpow2.f32 %v1884_v61  ;;  %v1882_v61 = vmul.f32 1.442695, %v1804_v7 }
 0x3e5   : > { %5803 = vpow2.f32 %v1882_v61 }
 0x3eb   : > { %v5798_v53 = vpop.eup %5797 }
 0x3ec   : > { %v5800_v55 = vpop.eup %5799  ;;  %v3595_v29 = vpack.c.bf16 %v5794_v58, %v5798_v53  ;;  %v10260_v58 = vld [vmem:[#allocation93_spill] sm:$0xff] }
 0x3ed   : > { %v3596_v42 = vpack.c.bf16 %v5796_v54, %v5800_v55  ;;  %v8014_v13 = vadd.f32 %v5800_v55, %v5798_v53  ;;  %v8018_v63 = vpop.eup %5801  ;;  %v8036_v54 = vpop.f32.mrb[118].mxu0 }
 0x3ee   : > { %10257 = vst [vmem:[#allocation14_spill] sm:$0xff] %v8018_v63  ;;  %10263 = vst [vmem:[#allocation171_spill] sm:$0xff] %v8036_v54  ;;  %v8039_v40 = vpop.f32.mrb[119].mxu0 }
 0x3ef   : > { %10255 = vst [vmem:[#allocation13_spill] sm:$0xff] %v8014_v13  ;;  %3823 = vmatprep.mubr.bf16.mxu1 %v3596_v42  ;;  %10264 = vst [vmem:[#allocation172_spill] sm:$0xff] %v8039_v40 }
 0x3f0   : > { %3824 = vmatmul.mubr.bf16.gmra.mrb[24].mxu1 %v3595_v29  ;;  %v8034_v29 = vpop.eup %5803 }
 0x3f1   : > { %10262 = vst [vmem:[#allocation93_spill] sm:$0xff] %v8034_v29 }
 0x3f2   : > { %1694 = vmax.xlane.f32.xlu1 %v10258_v10  ;;  %3276 = vperm.xlu0 %5683, %v8018_v63  }
 0x3f6   : > { %2079 = vperm.xlu0 %5683, %v10260_v58  }
 0x3f7   : > { %v1686_v53 = vpop.xlane.xlu0 %1685 }
 0x3f8   : > { %v8028_v42 = vmax.f32 %v8024_v52, %v1686_v53  ;;  %v10269_v52 = vld [vmem:[#allocation92_spill] sm:$0xff] }
 0x3fa   : > { %10261 = vst [vmem:[#allocation82_spill] sm:$0xff] %v8028_v42  ;;  %4210 = vst.msk [vmem:[#allocation2 + $0x190] sm:$0xff] %vm3070_vm3, %v8028_v42 }
 0x3fb   : > { %v8043_v46 = vpop.f32.mrb[120].mxu0 }
 0x3fc   : > { %10267 = vst [vmem:[#allocation19_spill] sm:$0xff] %v8043_v46  ;;  %v8045_v26 = vpop.f32.mrb[121].mxu0 }
 0x3fd   : > { %10268 = vst [vmem:[#allocation20_spill] sm:$0xff] %v8045_v26 }
 0x3ff   : > { %v8032_v51 = vpop.permute.xlu0 %3256 }
 0x403   : > { %v2060_v55 = vpop.permute.xlu0 %2059  ;;  %3271 = vperm.xlu1 %5684, %v8034_v29  }
 0x404   : > { %v2332_v22 = vsub.f32 %v10265_v5, %v2060_v55  ;;  %v2333_v30 = vsub.f32 %v10266_v27, %v2060_v55  ;;  %v3140_v5 = vld [vmem:[#allocation4 + $0x28] sm:$0xff]  ;;  %v3523_v55 = vmul.f32 %v7877_v62, %v3139_v37 }
 0x405   : > { %v8053_v27 = vld [vmem:[#allocation2 + $0x188] sm:$0xff] }
 0x406   : > { %v2490_v7 = vmul.f32 1.442695, %v2332_v22  ;;  %v2492_v10 = vmul.f32 1.442695, %v2333_v30  ;;  %10270 = vst [vmem:[#allocation92_spill] sm:$0xff] %v8053_v27  ;;  %v3524_v22 = vmul.f32 %v7846_v1, %v3140_v5 }
 0x407   : > { %2074 = vperm.xlu1 %5684, %v10269_v52  }
 0x408   : > { %5805 = vpow2.f32 %v2490_v7 }
 0x409   : > { %5807 = vpow2.f32 %v2492_v10  ;;  %v10274_v10 = vld [vmem:[#allocation17_spill] sm:$0xff] }
 0x40c   : > { %v3793_v36 = vpop.f32.mrb[8].mxu1 }
 0x40d   : > { %v4036_v30 = vadd.f32 %v3793_v36, %v3523_v55  ;;  %v3795_v43 = vpop.f32.mrb[9].mxu1  ;;  %v1683_v63 = vpop.xlane.xlu1 %1682 }
 0x40e   : > { %v3796_v61 = vpop.f32.mrb[10].mxu1  ;;  %v8057_v15 = vmax.f32 %v8053_v27, %v1683_v63  ;;  %v10273_v63 = vmax.f32 %v7923_v23, %v7925_v49  ;;  %v8112_v49 = vld [vmem:[#allocation2 + $0x198] sm:$0xff] }
 0x40f   : > { %4100 = vst.msk [vmem:[#allocation4 + $0x20] sm:$0xff] %vm972_vm2, %v4036_v30  ;;  %v4037_v53 = vadd.f32 %v3796_v61, %v3524_v22  ;;  %v3798_v7 = vpop.f32.mrb[11].mxu1  ;;  %v10275_v61 = vld [vmem:[#allocation18_spill] sm:$0xff]  ;;  %v10276_v22 = vld [vmem:[#allocation87_spill] sm:$0xff] }
 0x410   : > { %10271 = vst [vmem:[#allocation173_spill] sm:$0xff] %v8057_v15  ;;  %4209 = vst.msk [vmem:[#allocation2 + $0x188] sm:$0xff] %vm3070_vm3, %v8057_v15  ;;  %v1807_v30 = vsub.f32 %v10276_v22, %v10238_v6  ;;  %v10280_v6 = vmax.f32 %v7916_v35, %v7919_v32 }
 0x411   : > { %4101 = vst.msk [vmem:[#allocation4 + $0x28] sm:$0xff] %vm972_vm2, %v4037_v53  ;;  %v8063_v62 = vpop.permute.xlu1 %3251 }
 0x412   : > { %v5806_v37 = vpop.eup %5805  ;;  %v1888_v27 = vmul.f32 1.442695, %v1807_v30  ;;  %v10288_v30 = vld [vmem:[#allocation24_spill] sm:$0xff] }
 0x413   : > { %v5808_v1 = vpop.eup %5807 }
 0x414   : > { %v8065_v36 = vadd.f32 %v5808_v1, %v5806_v37 }
 0x415   : > { %v2055_v43 = vpop.permute.xlu1 %2054  ;;  %1703 = vmax.xlane.f32.xlu0 %v10273_v63  ;;  %v10278_v63 = vld [vmem:[#allocation86_spill] sm:$0xff] }
 0x416   : > { %10272 = vst [vmem:[#allocation174_spill] sm:$0xff] %v8065_v36  ;;  %v2330_v5 = vsub.f32 %v10274_v10, %v2055_v43  ;;  %v2331_v55 = vsub.f32 %v10275_v61, %v2055_v43  ;;  %v1806_v10 = vsub.f32 %v10278_v63, %v10247_v3 }
 0x418   : > { %v2486_v7 = vmul.f32 1.442695, %v2330_v5  ;;  %v2488_v53 = vmul.f32 1.442695, %v2331_v55  ;;  %v8084_v5 = vld [vmem:[#allocation2 + $0x1a0] sm:$0xff]  ;;  %v10287_v55 = vld [vmem:[#allocation23_spill] sm:$0xff] }
 0x419   : > { %10281 = vst [vmem:[#allocation87_spill] sm:$0xff] %v8084_v5 }
 0x41a   : > { %5809 = vpow2.f32 %v2486_v7 }
 0x41b   : > { %5811 = vpow2.f32 %v2488_v53 }
 0x41c   : > { %5813 = vpow2.f32 %v1888_v27  ;;  %v1886_v27 = vmul.f32 1.442695, %v1806_v10 }
 0x41e   : > { %5815 = vpow2.f32 %v1886_v27 }
 0x424   : > { %v5810_v29 = vpop.eup %5809 }
 0x425   : > { %v5812_v36 = vpop.eup %5811  ;;  %v3597_v42 = vpack.c.bf16 %v5806_v37, %v5810_v29  ;;  %v10282_v37 = vld [vmem:[#allocation98_spill] sm:$0xff] }
 0x426   : > { %v3598_v15 = vpack.c.bf16 %v5808_v1, %v5812_v36  ;;  %v8074_v13 = vadd.f32 %v5812_v36, %v5810_v29  ;;  %v8078_v43 = vpop.eup %5813  ;;  %v8096_v1 = vpop.f32.mrb[122].mxu0 }
 0x427   : > { %10279 = vst [vmem:[#allocation18_spill] sm:$0xff] %v8078_v43  ;;  %10285 = vst [vmem:[#allocation175_spill] sm:$0xff] %v8096_v1  ;;  %v8099_v61 = vpop.f32.mrb[123].mxu0 }
 0x428   : > { %10277 = vst [vmem:[#allocation17_spill] sm:$0xff] %v8074_v13  ;;  %3831 = vmatprep.mubr.bf16.mxu1 %v3598_v15  ;;  %10286 = vst [vmem:[#allocation176_spill] sm:$0xff] %v8099_v61 }
 0x429   : > { %3832 = vmatmul.mubr.bf16.gmra.mrb[28].mxu1 %v3597_v42  ;;  %v8094_v42 = vpop.eup %5815 }
 0x42a   : > { %10284 = vst [vmem:[#allocation98_spill] sm:$0xff] %v8094_v42 }
 0x42b   : > { %1700 = vmax.xlane.f32.xlu1 %v10280_v6  ;;  %3286 = vperm.xlu0 %5683, %v8078_v43  }
 0x42f   : > { %2089 = vperm.xlu0 %5683, %v10282_v37  }
 0x430   : > { %v1692_v29 = vpop.xlane.xlu0 %1691 }
 0x431   : > { %v8088_v15 = vmax.f32 %v8084_v5, %v1692_v29  ;;  %v10291_v5 = vld [vmem:[#allocation97_spill] sm:$0xff] }
 0x432   : > { %10292 = vst [vmem:[#allocation97_spill] sm:$0xff] %v8112_v49 }
 0x433   : > { %10283 = vst [vmem:[#allocation86_spill] sm:$0xff] %v8088_v15  ;;  %4212 = vst.msk [vmem:[#allocation2 + $0x1a0] sm:$0xff] %vm3070_vm3, %v8088_v15 }
 0x435   : > { %v8103_v53 = vpop.f32.mrb[124].mxu0 }
 0x436   : > { %10289 = vst [vmem:[#allocation23_spill] sm:$0xff] %v8103_v53  ;;  %v8105_v63 = vpop.f32.mrb[125].mxu0 }
 0x437   : > { %10290 = vst [vmem:[#allocation24_spill] sm:$0xff] %v8105_v63 }
 0x438   : > { %v8092_v3 = vpop.permute.xlu0 %3266 }
 0x43c   : > { %v2070_v36 = vpop.permute.xlu0 %2069  ;;  %3281 = vperm.xlu1 %5684, %v8094_v42  }
 0x43d   : > { %v2336_v22 = vsub.f32 %v10287_v55, %v2070_v36  ;;  %v2337_v7 = vsub.f32 %v10288_v30, %v2070_v36  ;;  %v3141_v55 = vld [vmem:[#allocation4 + $0x30] sm:$0xff]  ;;  %v3142_v30 = vld [vmem:[#allocation4 + $0x38] sm:$0xff] }
 0x43e   : > { %v3526_v27 = vmul.f32 %v7912_v56, %v3142_v30  ;;  %v10295_v56 = vmax.f32 %v7983_v14, %v7985_v31  ;;  %v10316_v14 = vld [vmem:[#allocation96_spill] sm:$0xff] }
 0x43f   : > { %v2498_v10 = vmul.f32 1.442695, %v2336_v22  ;;  %v2500_v6 = vmul.f32 1.442695, %v2337_v7  ;;  %v3525_v22 = vmul.f32 %v7943_v0, %v3141_v55  ;;  %v10296_v55 = vld [vmem:[#allocation21_spill] sm:$0xff] }
 0x440   : > { %2084 = vperm.xlu1 %5684, %v10291_v5  }
 0x441   : > { %5817 = vpow2.f32 %v2498_v10 }
 0x442   : > { %5819 = vpow2.f32 %v2500_v6 }
 0x446   : > { %v1689_v36 = vpop.xlane.xlu1 %1688 }
 0x447   : > { %v8115_v23 = vmax.f32 %v8112_v49, %v1689_v36  ;;  %v3143_v49 = vld [vmem:[#allocation4 + $0x40] sm:$0xff] }
 0x449   : > { %10293 = vst [vmem:[#allocation177_spill] sm:$0xff] %v8115_v23  ;;  %4211 = vst.msk [vmem:[#allocation2 + $0x198] sm:$0xff] %vm3070_vm3, %v8115_v23  ;;  %v3801_v7 = vpop.f32.mrb[12].mxu1  ;;  %v3527_v23 = vmul.f32 %v8003_v18, %v3143_v49 }
 0x44a   : > { %v4038_v29 = vadd.f32 %v3801_v7, %v3525_v22  ;;  %v3803_v32 = vpop.f32.mrb[13].mxu1  ;;  %v8121_v10 = vpop.permute.xlu1 %3261  ;;  %v10297_v22 = vld [vmem:[#allocation22_spill] sm:$0xff] }
 0x44b   : > { %v5818_v6 = vpop.eup %5817  ;;  %v3804_v43 = vpop.f32.mrb[14].mxu1  ;;  %v3144_v32 = vld [vmem:[#allocation4 + $0x48] sm:$0xff] }
 0x44c   : > { %v5820_v35 = vpop.eup %5819  ;;  %4102 = vst.msk [vmem:[#allocation4 + $0x30] sm:$0xff] %vm972_vm2, %v4038_v29  ;;  %v4039_v42 = vadd.f32 %v3804_v43, %v3526_v27  ;;  %v3806_v36 = vpop.f32.mrb[15].mxu1  ;;  %v10298_v43 = vld [vmem:[#allocation91_spill] sm:$0xff] }
 0x44d   : > { %v8124_v15 = vadd.f32 %v5820_v35, %v5818_v6  ;;  %v1809_v27 = vsub.f32 %v10298_v43, %v10260_v58 }
 0x44e   : > { %4103 = vst.msk [vmem:[#allocation4 + $0x38] sm:$0xff] %vm972_vm2, %v4039_v42  ;;  %v2065_v0 = vpop.permute.xlu1 %2064  ;;  %1709 = vmax.xlane.f32.xlu0 %v10295_v56  ;;  %v3528_v42 = vmul.f32 %v7972_v38, %v3144_v32 }
 0x44f   : > { %10294 = vst [vmem:[#allocation178_spill] sm:$0xff] %v8124_v15  ;;  %v2334_v30 = vsub.f32 %v10296_v55, %v2065_v0  ;;  %v2335_v7 = vsub.f32 %v10297_v22, %v2065_v0  ;;  %v1892_v0 = vmul.f32 1.442695, %v1809_v27  ;;  %v10306_v27 = vld [vmem:[#allocation27_spill] sm:$0xff] }
 0x451   : > { %v2494_v29 = vmul.f32 1.442695, %v2334_v30  ;;  %v2496_v36 = vmul.f32 1.442695, %v2335_v7  ;;  %v3809_v15 = vpop.f32.mrb[16].mxu1 }
 0x452   : > { %v4040_v13 = vadd.f32 %v3809_v15, %v3527_v23  ;;  %v3811_v25 = vpop.f32.mrb[17].mxu1  ;;  %v8148_v15 = vld [vmem:[#allocation2 + $0x1b0] sm:$0xff] }
 0x453   : > { %5821 = vpow2.f32 %v2494_v29  ;;  %v3812_v31 = vpop.f32.mrb[18].mxu1  ;;  %v10299_v25 = vld [vmem:[#allocation90_spill] sm:$0xff]  ;;  %10302 = vst [vmem:[#allocation22_spill] sm:$0xff] %v8148_v15 }
 0x454   : > { %5823 = vpow2.f32 %v2496_v36  ;;  %4104 = vst.msk [vmem:[#allocation4 + $0x40] sm:$0xff] %vm972_vm2, %v4040_v13  ;;  %v4041_v56 = vadd.f32 %v3812_v31, %v3528_v42  ;;  %v3814_v55 = vpop.f32.mrb[19].mxu1  ;;  %v1808_v23 = vsub.f32 %v10299_v25, %v10269_v52  ;;  %v10301_v13 = vmax.f32 %v7976_v60, %v7979_v47  ;;  %v10307_v36 = vld [vmem:[#allocation28_spill] sm:$0xff] }
 0x455   : > { %5825 = vpow2.f32 %v1892_v0  ;;  %v10308_v0 = vld [vmem:[#allocation102_spill] sm:$0xff]  ;;  %v1811_v47 = vsub.f32 %v10316_v14, %v10282_v37 }
 0x456   : > { %4105 = vst.msk [vmem:[#allocation4 + $0x48] sm:$0xff] %vm972_vm2, %v4041_v56  ;;  %v1890_v31 = vmul.f32 1.442695, %v1808_v23 }
 0x458   : > { %5827 = vpow2.f32 %v1890_v31 }
 0x45d   : > { %v5822_v49 = vpop.eup %5821 }
 0x45e   : > { %v5824_v18 = vpop.eup %5823  ;;  %v3599_v58 = vpack.c.bf16 %v5818_v6, %v5822_v49  ;;  %v10303_v6 = vld [vmem:[#allocation105_spill] sm:$0xff] }
 0x45f   : > { %v3600_v30 = vpack.c.bf16 %v5820_v35, %v5824_v18  ;;  %v8138_v22 = vadd.f32 %v5824_v18, %v5822_v49  ;;  %v8142_v38 = vpop.eup %5825  ;;  %v8164_v49 = vld [vmem:[#allocation2 + $0x1a8] sm:$0xff] }
 0x460   : > { %10300 = vst [vmem:[#allocation21_spill] sm:$0xff] %v8142_v38  ;;  %10309 = vst [vmem:[#allocation105_spill] sm:$0xff] %v8164_v49 }
 0x461   : > { %3839 = vmatprep.mubr.bf16.mxu1 %v3600_v30 }
 0x462   : > { %3840 = vmatmul.mubr.bf16.gmra.mrb[32].mxu1 %v3599_v58  ;;  %v8158_v7 = vpop.eup %5827  ;;  %v8166_v58 = vpop.f32.mrb[126].mxu0 }
 0x463   : > { %10305 = vst [vmem:[#allocation90_spill] sm:$0xff] %v8158_v7  ;;  %10310 = vst [vmem:[#allocation27_spill] sm:$0xff] %v8166_v58  ;;  %v8171_v25 = vpop.f32.mrb[127].mxu0 }
 0x464   : > { %1706 = vmax.xlane.f32.xlu1 %v10301_v13  ;;  %3296 = vperm.xlu0 %5683, %v8142_v38   ;;  %10311 = vst [vmem:[#allocation28_spill] sm:$0xff] %v8171_v25 }
 0x468   : > { %2099 = vperm.xlu0 %5683, %v10303_v6  }
 0x469   : > { %v1698_v35 = vpop.xlane.xlu0 %1697 }
 0x46a   : > { %v8152_v32 = vmax.f32 %v8148_v15, %v1698_v35 }
 0x46c   : > { %10304 = vst [vmem:[#allocation91_spill] sm:$0xff] %v8152_v32  ;;  %4214 = vst.msk [vmem:[#allocation2 + $0x1b0] sm:$0xff] %vm3070_vm3, %v8152_v32 }
 0x471   : > { %v8156_v52 = vpop.permute.xlu0 %3276 }
 0x475   : > { %v2080_v43 = vpop.permute.xlu0 %2079  ;;  %3291 = vperm.xlu1 %5684, %v8158_v7  }
 0x476   : > { %v2340_v29 = vsub.f32 %v10306_v27, %v2080_v43  ;;  %v2341_v42 = vsub.f32 %v10307_v36, %v2080_v43  ;;  %v3145_v43 = vld [vmem:[#allocation4 + $0x50] sm:$0xff]  ;;  %v10313_v36 = vmax.f32 %v8043_v46, %v8045_v26 }
 0x477   : > { %v3529_v15 = vmul.f32 %v8063_v62, %v3145_v43 }
 0x478   : > { %v2506_v56 = vmul.f32 1.442695, %v2340_v29  ;;  %v2508_v55 = vmul.f32 1.442695, %v2341_v42  ;;  %v3146_v42 = vld [vmem:[#allocation4 + $0x58] sm:$0xff] }
 0x479   : > { %2094 = vperm.xlu1 %5684, %v10308_v0   ;;  %v3530_v7 = vmul.f32 %v8032_v51, %v3146_v42  ;;  %v10317_v51 = vld [vmem:[#allocation95_spill] sm:$0xff]  ;;  %v10322_v42 = vld [vmem:[#allocation32_spill] sm:$0xff] }
 0x47a   : > { %5829 = vpow2.f32 %v2506_v56  ;;  %v10314_v56 = vld [vmem:[#allocation25_spill] sm:$0xff] }
 0x47b   : > { %5831 = vpow2.f32 %v2508_v55 }
 0x47f   : > { %v1695_v18 = vpop.xlane.xlu1 %1694 }
 0x480   : > { %v8169_v30 = vmax.f32 %v8164_v49, %v1695_v18  ;;  %v10315_v18 = vld [vmem:[#allocation26_spill] sm:$0xff] }
 0x482   : > { %4213 = vst.msk [vmem:[#allocation2 + $0x1a8] sm:$0xff] %vm3070_vm3, %v8169_v30 }
 0x483   : > { %v8177_v13 = vpop.permute.xlu1 %3271 }
 0x484   : > { %v5830_v31 = vpop.eup %5829 }
 0x485   : > { %v5832_v35 = vpop.eup %5831 }
 0x486   : > { %v8179_v27 = vadd.f32 %v5832_v35, %v5830_v31 }
 0x487   : > { %v2075_v29 = vpop.permute.xlu1 %2074  ;;  %1715 = vmax.xlane.f32.xlu0 %v10313_v36 }
 0x488   : > { %10312 = vst [vmem:[#allocation102_spill] sm:$0xff] %v8179_v27  ;;  %v2338_v55 = vsub.f32 %v10314_v56, %v2075_v29  ;;  %v2339_v23 = vsub.f32 %v10315_v18, %v2075_v29  ;;  %v1896_v29 = vmul.f32 1.442695, %v1811_v47 }
 0x48a   : > { %v2502_v38 = vmul.f32 1.442695, %v2338_v55  ;;  %v2504_v60 = vmul.f32 1.442695, %v2339_v23  ;;  %v3817_v49 = vpop.f32.mrb[20].mxu1 }
 0x48b   : > { %v4042_v27 = vadd.f32 %v3817_v49, %v3529_v15  ;;  %v3819_v32 = vpop.f32.mrb[21].mxu1  ;;  %v8202_v15 = vld [vmem:[#allocation2 + $0x1c0] sm:$0xff] }
 0x48c   : > { %5833 = vpow2.f32 %v2502_v38  ;;  %v3820_v26 = vpop.f32.mrb[22].mxu1  ;;  %v1810_v38 = vsub.f32 %v10317_v51, %v10291_v5  ;;  %10320 = vst [vmem:[#allocation26_spill] sm:$0xff] %v8202_v15  ;;  %v3147_v51 = vld [vmem:[#allocation4 + $0x60] sm:$0xff] }
 0x48d   : > { %5835 = vpow2.f32 %v2504_v60  ;;  %4106 = vst.msk [vmem:[#allocation4 + $0x50] sm:$0xff] %vm972_vm2, %v4042_v27  ;;  %v4043_v36 = vadd.f32 %v3820_v26, %v3530_v7  ;;  %v3822_v56 = vpop.f32.mrb[23].mxu1  ;;  %v10319_v26 = vmax.f32 %v8036_v54, %v8039_v40 }
 0x48e   : > { %5837 = vpow2.f32 %v1896_v29  ;;  %v1894_v47 = vmul.f32 1.442695, %v1810_v38  ;;  %v8218_v56 = vld [vmem:[#allocation2 + $0x1b8] sm:$0xff] }
 0x48f   : > { %4107 = vst.msk [vmem:[#allocation4 + $0x58] sm:$0xff] %vm972_vm2, %v4043_v36  ;;  %10323 = vst [vmem:[#allocation96_spill] sm:$0xff] %v8218_v56 }
 0x490   : > { %5839 = vpow2.f32 %v1894_v47  ;;  %v10324_v47 = vmax.f32 %v8103_v53, %v8105_v63 }
 0x496   : > { %v5834_v62 = vpop.eup %5833 }
 0x497   : > { %v5836_v14 = vpop.eup %5835  ;;  %v3601_v37 = vpack.c.bf16 %v5830_v31, %v5834_v62 }
 0x498   : > { %v3602_v23 = vpack.c.bf16 %v5832_v35, %v5836_v14  ;;  %v8192_v43 = vadd.f32 %v5836_v14, %v5834_v62  ;;  %v8196_v60 = vpop.eup %5837  ;;  %v10321_v35 = vld [vmem:[#allocation31_spill] sm:$0xff] }
 0x499   : > { %10318 = vst [vmem:[#allocation25_spill] sm:$0xff] %v8196_v60 }
 0x49a   : > { %3847 = vmatprep.mubr.bf16.mxu1 %v3602_v23  ;;  %v8212_v49 = vpop.eup %5839 }
 0x49b   : > { %3848 = vmatmul.mubr.bf16.gmra.mrb[36].mxu1 %v3601_v37 }
 0x49d   : > { %1712 = vmax.xlane.f32.xlu1 %v10319_v26  ;;  %3306 = vperm.xlu0 %5683, %v8196_v60  }
 0x4a1   : > { %2109 = vperm.xlu0 %5683, %v7533_v48  }
 0x4a2   : > { %v1704_v32 = vpop.xlane.xlu0 %1703 }
 0x4a3   : > { %v8206_v7 = vmax.f32 %v8202_v15, %v1704_v32  ;;  %v3148_v32 = vld [vmem:[#allocation4 + $0x68] sm:$0xff] }
 0x4a4   : > { %v3532_v40 = vmul.f32 %v8092_v3, %v3148_v32  ;;  %v8254_v32 = vld [vmem:[#allocation2 + $0x1d0] sm:$0xff] }
 0x4a5   : > { %4216 = vst.msk [vmem:[#allocation2 + $0x1c0] sm:$0xff] %vm3070_vm3, %v8206_v7  ;;  %10332 = vst [vmem:[#allocation31_spill] sm:$0xff] %v8254_v32 }
 0x4aa   : > { %v8210_v5 = vpop.permute.xlu0 %3286 }
 0x4ae   : > { %v2090_v31 = vpop.permute.xlu0 %2089  ;;  %3301 = vperm.xlu1 %5684, %v8212_v49  }
 0x4af   : > { %v2344_v27 = vsub.f32 %v10321_v35, %v2090_v31  ;;  %v2345_v55 = vsub.f32 %v10322_v42, %v2090_v31  ;;  %v10325_v31 = vld [vmem:[#allocation29_spill] sm:$0xff] }
 0x4b1   : > { %v2514_v18 = vmul.f32 1.442695, %v2344_v27  ;;  %v2516_v36 = vmul.f32 1.442695, %v2345_v55  ;;  %v10326_v27 = vld [vmem:[#allocation30_spill] sm:$0xff]  ;;  %v3531_v55 = vmul.f32 %v8121_v10, %v3147_v51  ;;  %v10328_v10 = vld [vmem:[#allocation109_spill] sm:$0xff] }
 0x4b2   : > { %2104 = vperm.xlu1 %5684, %v7528_v24  }
 0x4b3   : > { %5841 = vpow2.f32 %v2514_v18  ;;  %v10327_v18 = vld [vmem:[#allocation101_spill] sm:$0xff] }
 0x4b4   : > { %5843 = vpow2.f32 %v2516_v36  ;;  %v1813_v36 = vsub.f32 %v10327_v18, %v10303_v6  ;;  %v1815_v6 = vsub.f32 %v10328_v10, %v7533_v48  ;;  %v10331_v48 = vmax.f32 %v8096_v1, %v8099_v61 }
 0x4b8   : > { %v1701_v29 = vpop.xlane.xlu1 %1700 }
 0x4b9   : > { %v8221_v62 = vmax.f32 %v8218_v56, %v1701_v29  ;;  %v10382_v56 = vld [vmem:[#allocation51_spill] sm:$0xff] }
 0x4bb   : > { %4215 = vst.msk [vmem:[#allocation2 + $0x1b8] sm:$0xff] %vm3070_vm3, %v8221_v62 }
 0x4bc   : > { %v8225_v14 = vpop.permute.xlu1 %3281 }
 0x4bd   : > { %v5842_v37 = vpop.eup %5841 }
 0x4be   : > { %v5844_v23 = vpop.eup %5843 }
 0x4bf   : > { %v8227_v38 = vadd.f32 %v5844_v23, %v5842_v37 }
 0x4c0   : > { %v2085_v26 = vpop.permute.xlu1 %2084  ;;  %1721 = vmax.xlane.f32.xlu0 %v10324_v47 }
 0x4c1   : > { %v2342_v35 = vsub.f32 %v10325_v31, %v2085_v26  ;;  %v2343_v42 = vsub.f32 %v10326_v27, %v2085_v26  ;;  %v1900_v26 = vmul.f32 1.442695, %v1813_v36 }
 0x4c3   : > { %v2510_v29 = vmul.f32 1.442695, %v2342_v35  ;;  %v2512_v46 = vmul.f32 1.442695, %v2343_v42  ;;  %v3825_v15 = vpop.f32.mrb[24].mxu1 }
 0x4c4   : > { %v4044_v60 = vadd.f32 %v3825_v15, %v3531_v55  ;;  %v3827_v54 = vpop.f32.mrb[25].mxu1  ;;  %v1904_v35 = vmul.f32 1.442695, %v1815_v6 }
 0x4c5   : > { %5845 = vpow2.f32 %v2510_v29  ;;  %v3828_v63 = vpop.f32.mrb[26].mxu1 }
 0x4c6   : > { %5847 = vpow2.f32 %v2512_v46  ;;  %4108 = vst.msk [vmem:[#allocation4 + $0x60] sm:$0xff] %vm972_vm2, %v4044_v60  ;;  %v4045_v47 = vadd.f32 %v3828_v63, %v3532_v40  ;;  %v3830_v31 = vpop.f32.mrb[27].mxu1  ;;  %v1817_v46 = vsub.f32 %v7543_v50, %v7553_v2  ;;  %v10329_v40 = vld [vmem:[#allocation100_spill] sm:$0xff]  ;;  %v1819_v50 = vsub.f32 %v7562_v12, %v7573_v57 }
 0x4c7   : > { %5849 = vpow2.f32 %v1900_v26  ;;  %v1812_v63 = vsub.f32 %v10329_v40, %v10308_v0  ;;  %v10337_v26 = vld [vmem:[#allocation36_spill] sm:$0xff] }
 0x4c8   : > { %4109 = vst.msk [vmem:[#allocation4 + $0x68] sm:$0xff] %vm972_vm2, %v4045_v47  ;;  %5851 = vpow2.f32 %v1904_v35  ;;  %v1912_v18 = vmul.f32 1.442695, %v1819_v50  ;;  %v10336_v47 = vld [vmem:[#allocation35_spill] sm:$0xff] }
 0x4cf   : > { %v5846_v51 = vpop.eup %5845 }
 0x4d0   : > { %v5848_v27 = vpop.eup %5847  ;;  %v3603_v3 = vpack.c.bf16 %v5842_v37, %v5846_v51  ;;  %v1908_v37 = vmul.f32 1.442695, %v1817_v46  ;;  %v10341_v46 = vld [vmem:[#allocation120_spill] sm:$0xff] }
 0x4d1   : > { %v3604_v15 = vpack.c.bf16 %v5844_v23, %v5848_v27  ;;  %v8242_v54 = vadd.f32 %v5848_v27, %v5846_v51  ;;  %v8248_v60 = vpop.eup %5849  ;;  %v1898_v23 = vmul.f32 1.442695, %v1812_v63  ;;  %v8283_v27 = vld [vmem:[#allocation2 + $0x1c8] sm:$0xff] }
 0x4d2   : > { %10330 = vst [vmem:[#allocation95_spill] sm:$0xff] %v8248_v60  ;;  %5853 = vpow2.f32 %v1908_v37  ;;  %v8262_v55 = vpop.eup %5851  ;;  %10340 = vst [vmem:[#allocation109_spill] sm:$0xff] %v8283_v27 }
 0x4d3   : > { %3855 = vmatprep.mubr.bf16.mxu1 %v3604_v15  ;;  %5855 = vpow2.f32 %v1898_v23  ;;  %10333 = vst [vmem:[#allocation32_spill] sm:$0xff] %v8262_v55  ;;  %v3149_v23 = vld [vmem:[#allocation4 + $0x70] sm:$0xff] }
 0x4d4   : > { %3856 = vmatmul.mubr.bf16.gmra.mrb[40].mxu1 %v3603_v3  ;;  %5857 = vpow2.f32 %v1912_v18  ;;  %v3150_v18 = vld [vmem:[#allocation4 + $0x78] sm:$0xff] }
 0x4d6   : > { %1718 = vmax.xlane.f32.xlu1 %v10331_v48  ;;  %3316 = vperm.xlu0 %5683, %v8248_v60   ;;  %v10342_v48 = vld [vmem:[#allocation125_spill] sm:$0xff] }
 0x4da   : > { %2119 = vperm.xlu0 %5683, %v7553_v2  }
 0x4db   : > { %v1710_v0 = vpop.xlane.xlu0 %1709 }
 0x4dc   : > { %v8260_v42 = vmax.f32 %v8254_v32, %v1710_v0  ;;  %v8270_v36 = vpop.eup %5853 }
 0x4dd   : > { %10334 = vst [vmem:[#allocation29_spill] sm:$0xff] %v8270_v36  ;;  %v8272_v12 = vpop.eup %5855 }
 0x4de   : > { %3326 = vperm.xlu0 %5683, %v8262_v55   ;;  %4218 = vst.msk [vmem:[#allocation2 + $0x1d0] sm:$0xff] %vm3070_vm3, %v8260_v42  ;;  %10335 = vst [vmem:[#allocation30_spill] sm:$0xff] %v8272_v12  ;;  %v8280_v35 = vpop.eup %5857 }
 0x4df   : > { %10339 = vst [vmem:[#allocation101_spill] sm:$0xff] %v8280_v35 }
 0x4e2   : > { %2129 = vperm.xlu0 %5683, %v7573_v57   ;;  %v10338_v57 = vld [vmem:[#allocation111_spill] sm:$0xff] }
 0x4e3   : > { %v8268_v2 = vpop.permute.xlu0 %3296 }
 0x4e6   : > { %3336 = vperm.xlu0 %5683, %v8270_v36   ;;  %v3534_v36 = vmul.f32 %v8156_v52, %v3150_v18  ;;  %v10346_v52 = vld [vmem:[#allocation108_spill] sm:$0xff] }
 0x4e7   : > { %v2100_v29 = vpop.permute.xlu0 %2099  ;;  %3311 = vperm.xlu1 %5684, %v8272_v12   ;;  %v10352_v18 = vld [vmem:[#allocation112_spill] sm:$0xff] }
 0x4e8   : > { %v2348_v31 = vsub.f32 %v10336_v47, %v2100_v29  ;;  %v2349_v10 = vsub.f32 %v10337_v26, %v2100_v29  ;;  %v10343_v29 = vld [vmem:[#allocation33_spill] sm:$0xff] }
 0x4ea   : > { %v2522_v6 = vmul.f32 1.442695, %v2348_v31  ;;  %v2524_v51 = vmul.f32 1.442695, %v2349_v10  ;;  %2139 = vperm.xlu0 %5683, %v7590_v16   ;;  %v10344_v31 = vld [vmem:[#allocation34_spill] sm:$0xff]  ;;  %v10345_v10 = vld [vmem:[#allocation131_spill] sm:$0xff] }
 0x4eb   : > { %2114 = vperm.xlu1 %5684, %v10338_v57  }
 0x4ec   : > { %5859 = vpow2.f32 %v2522_v6  ;;  %v3533_v6 = vmul.f32 %v8177_v13, %v3149_v23 }
 0x4ed   : > { %5861 = vpow2.f32 %v2524_v51 }
 0x4ee   : > { %3346 = vperm.xlu0 %5683, %v8280_v35  }
 0x4f1   : > { %v1707_v3 = vpop.xlane.xlu1 %1706 }
 0x4f2   : > { %v8286_v15 = vmax.f32 %v8283_v27, %v1707_v3  ;;  %2149 = vperm.xlu0 %5683, %v10341_v46   ;;  %v2688_v27 = vld [vmem:[#allocation3 + $0x10] sm:$0xff] }
 0x4f4   : > { %4217 = vst.msk [vmem:[#allocation2 + $0x1c8] sm:$0xff] %vm3070_vm3, %v8286_v15 }
 0x4f5   : > { %v8291_v40 = vpop.permute.xlu1 %3291 }
 0x4f6   : > { %v5860_v63 = vpop.eup %5859  ;;  %2159 = vperm.xlu0 %5683, %v10342_v48  }
 0x4f7   : > { %v5862_v37 = vpop.eup %5861 }
 0x4f8   : > { %v8294_v50 = vadd.f32 %v5862_v37, %v5860_v63 }
 0x4f9   : > { %v2095_v0 = vpop.permute.xlu1 %2094 }
 0x4fa   : > { %v2346_v47 = vsub.f32 %v10343_v29, %v2095_v0  ;;  %v2347_v26 = vsub.f32 %v10344_v31, %v2095_v0  ;;  %2169 = vperm.xlu0 %5683, %v10345_v10  }
 0x4fc   : > { %v2518_v51 = vmul.f32 1.442695, %v2346_v47  ;;  %v2520_v3 = vmul.f32 1.442695, %v2347_v26  ;;  %v3833_v35 = vpop.f32.mrb[28].mxu1 }
 0x4fd   : > { %v4046_v53 = vadd.f32 %v3833_v35, %v3533_v6  ;;  %v3835_v55 = vpop.f32.mrb[29].mxu1  ;;  %v1814_v35 = vsub.f32 %v10346_v52, %v7528_v24  ;;  %v10356_v52 = vld [vmem:[#allocation116_spill] sm:$0xff] }
 0x4fe   : > { %5863 = vpow2.f32 %v2518_v51  ;;  %v3836_v61 = vpop.f32.mrb[30].mxu1  ;;  %v10347_v55 = vmax.f32 %v8166_v58, %v8171_v25 }
 0x4ff   : > { %5865 = vpow2.f32 %v2520_v3  ;;  %4110 = vst.msk [vmem:[#allocation4 + $0x70] sm:$0xff] %vm972_vm2, %v4046_v53  ;;  %v4047_v60 = vadd.f32 %v3836_v61, %v3534_v36  ;;  %v3838_v29 = vpop.f32.mrb[31].mxu1  ;;  %v1902_v53 = vmul.f32 1.442695, %v1814_v35  ;;  %v8310_v61 = vld [vmem:[#allocation2 + $0x1e0] sm:$0xff]  ;;  %v10354_v3 = vld [vmem:[#allocation39_spill] sm:$0xff] }
 0x500   : > { %10348 = vst [vmem:[#allocation100_spill] sm:$0xff] %v8310_v61  ;;  %v10357_v35 = vld [vmem:[#allocation114_spill] sm:$0xff] }
 0x501   : > { %4111 = vst.msk [vmem:[#allocation4 + $0x78] sm:$0xff] %vm972_vm2, %v4047_v60  ;;  %5867 = vpow2.f32 %v1902_v53  ;;  %v10349_v60 = vld [vmem:[#allocation110_spill] sm:$0xff]  ;;  %v8336_v53 = vld [vmem:[#allocation2 + $0x1d8] sm:$0xff] }
 0x502   : > { %10359 = vst [vmem:[#allocation120_spill] sm:$0xff] %v8336_v53 }
 0x508   : > { %v5864_v0 = vpop.eup %5863 }
 0x509   : > { %v5866_v31 = vpop.eup %5865  ;;  %v3605_v1 = vpack.c.bf16 %v5860_v63, %v5864_v0  ;;  %v1816_v63 = vsub.f32 %v10349_v60, %v10338_v57 }
 0x50a   : > { %v3606_v13 = vpack.c.bf16 %v5862_v37, %v5866_v31  ;;  %v8303_v23 = vadd.f32 %v5866_v31, %v5864_v0  ;;  %v10355_v0 = vld [vmem:[#allocation40_spill] sm:$0xff] }
 0x50b   : > { %v1906_v24 = vmul.f32 1.442695, %v1816_v63  ;;  %v8325_v6 = vpop.eup %5867 }
 0x50c   : > { %3863 = vmatprep.mubr.bf16.mxu1 %v3606_v13  ;;  %10353 = vst [vmem:[#allocation36_spill] sm:$0xff] %v8325_v6 }
 0x50d   : > { %3864 = vmatmul.mubr.bf16.gmra.mrb[44].mxu1 %v3605_v1  ;;  %v10351_v1 = vld [vmem:[#allocation113_spill] sm:$0xff]  ;;  %5869 = vpow2.f32 %v1906_v24 }
 0x50e   : > { %v1818_v47 = vsub.f32 %v10352_v18, %v10351_v1 }
 0x50f   : > { %1724 = vmax.xlane.f32.xlu1 %v10347_v55  ;;  %v1820_v55 = vsub.f32 %v10357_v35, %v10356_v52  ;;  %v10364_v35 = vld [vmem:[#allocation119_spill] sm:$0xff] }
 0x510   : > { %v1910_v57 = vmul.f32 1.442695, %v1818_v47 }
 0x512   : > { %5871 = vpow2.f32 %v1910_v57  ;;  %v3151_v57 = vld [vmem:[#allocation4 + $0x80] sm:$0xff] }
 0x514   : > { %v1716_v36 = vpop.xlane.xlu0 %1715 }
 0x515   : > { %v8315_v37 = vmax.f32 %v8310_v61, %v1716_v36  ;;  %v1914_v36 = vmul.f32 1.442695, %v1820_v55 }
 0x517   : > { %10350 = vst [vmem:[#allocation35_spill] sm:$0xff] %v8315_v37  ;;  %4220 = vst.msk [vmem:[#allocation2 + $0x1e0] sm:$0xff] %vm3070_vm3, %v8315_v37 }
 0x519   : > { %2818 = vadd.xlane.f32.xlu0 %v7675_v8 }
 0x51c   : > { %v8322_v26 = vpop.permute.xlu0 %3306 }
 0x51d   : > { %2821 = vadd.xlane.f32.xlu0 %v7684_v4  ;;  %v8333_v4 = vpop.eup %5869 }
 0x51e   : > { %10358 = vst [vmem:[#allocation111_spill] sm:$0xff] %v8333_v4  ;;  %v8344_v24 = vpop.eup %5871 }
 0x51f   : > { %10360 = vst [vmem:[#allocation125_spill] sm:$0xff] %v8344_v24 }
 0x520   : > { %v2110_v51 = vpop.permute.xlu0 %2109  ;;  %3321 = vperm.xlu1 %5684, %v8325_v6  }
 0x521   : > { %v2352_v29 = vsub.f32 %v10354_v3, %v2110_v51  ;;  %v2353_v31 = vsub.f32 %v10355_v0, %v2110_v51  ;;  %v10362_v0 = vld [vmem:[#allocation37_spill] sm:$0xff] }
 0x523   : > { %v2530_v13 = vmul.f32 1.442695, %v2352_v29  ;;  %v2532_v8 = vmul.f32 1.442695, %v2353_v31  ;;  %v3152_v29 = vld [vmem:[#allocation4 + $0x88] sm:$0xff] }
 0x524   : > { %2124 = vperm.xlu1 %5684, %v10351_v1  }
 0x525   : > { %5873 = vpow2.f32 %v2530_v13  ;;  %v10363_v13 = vld [vmem:[#allocation38_spill] sm:$0xff] }
 0x526   : > { %5875 = vpow2.f32 %v2532_v8 }
 0x527   : > { %5877 = vpow2.f32 %v1914_v36 }
 0x528   : > { %3331 = vperm.xlu1 %5684, %v8333_v4  }
 0x52a   : > { %v1713_v60 = vpop.xlane.xlu1 %1712 }
 0x52b   : > { %v8339_v63 = vmax.f32 %v8336_v53, %v1713_v60 }
 0x52c   : > { %2134 = vperm.xlu1 %5684, %v10356_v52   ;;  %v3535_v52 = vmul.f32 %v8225_v14, %v3151_v57  ;;  %v10366_v14 = vld [vmem:[#allocation124_spill] sm:$0xff]  ;;  %v10367_v57 = vld [vmem:[#allocation129_spill] sm:$0xff] }
 0x52d   : > { %4219 = vst.msk [vmem:[#allocation2 + $0x1d8] sm:$0xff] %vm3070_vm3, %v8339_v63 }
 0x52e   : > { %v8346_v1 = vpop.permute.xlu1 %3301 }
 0x52f   : > { %v5874_v18 = vpop.eup %5873 }
 0x530   : > { %v5876_v47 = vpop.eup %5875  ;;  %3341 = vperm.xlu1 %5684, %v8344_v24   ;;  %v3536_v24 = vmul.f32 %v8210_v5, %v3152_v29 }
 0x531   : > { %v8349_v51 = vadd.f32 %v5876_v47, %v5874_v18  ;;  %v8357_v58 = vpop.eup %5877 }
 0x532   : > { %v2105_v3 = vpop.permute.xlu1 %2104  ;;  %10365 = vst [vmem:[#allocation34_spill] sm:$0xff] %v8357_v58 }
 0x533   : > { %10361 = vst [vmem:[#allocation33_spill] sm:$0xff] %v8349_v51  ;;  %v2350_v31 = vsub.f32 %v10362_v0, %v2105_v3  ;;  %v2351_v8 = vsub.f32 %v10363_v13, %v2105_v3  ;;  %2179 = vperm.xlu0 %5683, %v7709_v45  }
 0x534   : > { %2144 = vperm.xlu1 %5684, %v10364_v35  }
 0x535   : > { %v2526_v55 = vmul.f32 1.442695, %v2350_v31  ;;  %v2528_v36 = vmul.f32 1.442695, %v2351_v8  ;;  %v3841_v60 = vpop.f32.mrb[32].mxu1  ;;  %v8366_v8 = vld [vmem:[#allocation2 + $0x1f0] sm:$0xff] }
 0x536   : > { %v4048_v61 = vadd.f32 %v3841_v60, %v3535_v52  ;;  %v3843_v25 = vpop.f32.mrb[33].mxu1  ;;  %10368 = vst [vmem:[#allocation131_spill] sm:$0xff] %v8366_v8 }
 0x537   : > { %5879 = vpow2.f32 %v2526_v55  ;;  %v3844_v4 = vpop.f32.mrb[34].mxu1  ;;  %v10371_v55 = vld [vmem:[#allocation44_spill] sm:$0xff] }
 0x538   : > { %5881 = vpow2.f32 %v2528_v36  ;;  %4112 = vst.msk [vmem:[#allocation4 + $0x80] sm:$0xff] %vm972_vm2, %v4048_v61  ;;  %v4049_v3 = vadd.f32 %v3844_v4, %v3536_v24  ;;  %v3846_v0 = vpop.f32.mrb[35].mxu1  ;;  %3351 = vperm.xlu1 %5684, %v8357_v58  }
 0x539   : > { %v8378_v0 = vld [vmem:[#allocation2 + $0x1e8] sm:$0xff] }
 0x53a   : > { %4113 = vst.msk [vmem:[#allocation4 + $0x88] sm:$0xff] %vm972_vm2, %v4049_v3  ;;  %10372 = vst [vmem:[#allocation110_spill] sm:$0xff] %v8378_v0 }
 0x53c   : > { %2154 = vperm.xlu1 %5684, %v10366_v14   ;;  %v10381_v14 = vld [vmem:[#allocation99_spill] sm:$0xff] }
 0x540   : > { %2164 = vperm.xlu1 %5684, %v10367_v57  }
 0x541   : > { %v5880_v5 = vpop.eup %5879 }
 0x542   : > { %v5882_v29 = vpop.eup %5881  ;;  %v3607_v25 = vpack.c.bf16 %v5874_v18, %v5880_v5  ;;  %v10370_v18 = vld [vmem:[#allocation43_spill] sm:$0xff] }
 0x543   : > { %v3608_v31 = vpack.c.bf16 %v5876_v47, %v5882_v29  ;;  %v8364_v13 = vadd.f32 %v5882_v29, %v5880_v5 }
 0x545   : > { %3871 = vmatprep.mubr.bf16.mxu1 %v3608_v31 }
 0x546   : > { %3872 = vmatmul.mubr.bf16.gmra.mrb[48].mxu1 %v3607_v25 }
 0x54d   : > { %v1722_v61 = vpop.xlane.xlu0 %1721 }
 0x54e   : > { %v8369_v4 = vmax.f32 %v8366_v8, %v1722_v61  ;;  %v3153_v61 = vld [vmem:[#allocation4 + $0x90] sm:$0xff] }
 0x550   : > { %10369 = vst [vmem:[#allocation108_spill] sm:$0xff] %v8369_v4  ;;  %4222 = vst.msk [vmem:[#allocation2 + $0x1f0] sm:$0xff] %vm3070_vm3, %v8369_v4 }
 0x552   : > { %2827 = vadd.xlane.f32.xlu0 %v7749_v20 }
 0x555   : > { %v8374_v24 = vpop.permute.xlu0 %3316 }
 0x559   : > { %v2120_v52 = vpop.permute.xlu0 %2119 }
 0x55a   : > { %v2356_v47 = vsub.f32 %v10370_v18, %v2120_v52  ;;  %v2357_v36 = vsub.f32 %v10371_v55, %v2120_v52  ;;  %v10374_v55 = vld [vmem:[#allocation41_spill] sm:$0xff] }
 0x55c   : > { %v2538_v60 = vmul.f32 1.442695, %v2356_v47  ;;  %v2540_v3 = vmul.f32 1.442695, %v2357_v36  ;;  %v3154_v47 = vld [vmem:[#allocation4 + $0x98] sm:$0xff] }
 0x55d   : > { %v3538_v32 = vmul.f32 %v8268_v2, %v3154_v47 }
 0x55e   : > { %5883 = vpow2.f32 %v2538_v60  ;;  %v10375_v60 = vld [vmem:[#allocation42_spill] sm:$0xff] }
 0x55f   : > { %5885 = vpow2.f32 %v2540_v3 }
 0x563   : > { %v1719_v5 = vpop.xlane.xlu1 %1718 }
 0x564   : > { %v8381_v29 = vmax.f32 %v8378_v0, %v1719_v5  ;;  %2815 = vadd.xlane.f32.xlu1 %v7681_v17  ;;  %v3537_v17 = vmul.f32 %v8291_v40, %v3153_v61 }
 0x566   : > { %4221 = vst.msk [vmem:[#allocation2 + $0x1e8] sm:$0xff] %vm3070_vm3, %v8381_v29 }
 0x567   : > { %v8386_v20 = vpop.permute.xlu1 %3311 }
 0x568   : > { %v5884_v25 = vpop.eup %5883  ;;  %2189 = vperm.xlu0 %5683, %v7792_v39   ;;  %v10383_v39 = vld [vmem:[#allocation52_spill] sm:$0xff] }
 0x569   : > { %v5886_v31 = vpop.eup %5885 }
 0x56a   : > { %v8389_v52 = vadd.f32 %v5886_v31, %v5884_v25 }
 0x56b   : > { %v2115_v18 = vpop.permute.xlu1 %2114 }
 0x56c   : > { %10373 = vst [vmem:[#allocation113_spill] sm:$0xff] %v8389_v52  ;;  %v2354_v36 = vsub.f32 %v10374_v55, %v2115_v18  ;;  %v2355_v3 = vsub.f32 %v10375_v60, %v2115_v18  ;;  %v8398_v18 = vpop.permute.xlu0 %3326  ;;  %v10378_v60 = vld [vmem:[#allocation48_spill] sm:$0xff] }
 0x56e   : > { %v2534_v5 = vmul.f32 1.442695, %v2354_v36  ;;  %v2536_v58 = vmul.f32 1.442695, %v2355_v3  ;;  %v3849_v8 = vpop.f32.mrb[36].mxu1 }
 0x56f   : > { %v4050_v0 = vadd.f32 %v3849_v8, %v3537_v17  ;;  %v3851_v4 = vpop.f32.mrb[37].mxu1  ;;  %v2687_v17 = vld [vmem:[#allocation3 + $0x8] sm:$0xff] }
 0x570   : > { %5887 = vpow2.f32 %v2534_v5  ;;  %v3852_v6 = vpop.f32.mrb[38].mxu1  ;;  %v2130_v8 = vpop.permute.xlu0 %2129  ;;  %v8410_v4 = vld [vmem:[#allocation2 + $0x1f8] sm:$0xff]  ;;  %v3155_v5 = vld [vmem:[#allocation4 + $0xa0] sm:$0xff]  ;;  %v2751_v35 = vmul.f32 %v10381_v14, %v2687_v17  ;;  %v10384_v14 = vld [vmem:[#allocation127_spill] sm:$0xff] }
 0x571   : > { %5889 = vpow2.f32 %v2536_v58  ;;  %4114 = vst.msk [vmem:[#allocation4 + $0x90] sm:$0xff] %vm972_vm2, %v4050_v0  ;;  %v4051_v52 = vadd.f32 %v3852_v6, %v3538_v32  ;;  %v3854_v57 = vpop.f32.mrb[39].mxu1  ;;  %10376 = vst [vmem:[#allocation112_spill] sm:$0xff] %v8410_v4  ;;  %v2361_v3 = vsub.f32 %v10378_v60, %v2130_v8  ;;  %v3539_v51 = vmul.f32 %v8346_v1, %v3155_v5 }
 0x573   : > { %4115 = vst.msk [vmem:[#allocation4 + $0x98] sm:$0xff] %vm972_vm2, %v4051_v52 }
 0x574   : > { %v8402_v58 = vpop.permute.xlu0 %3336 }
 0x575   : > { %2174 = vperm.xlu1 %5684, %v7699_v19  }
 0x578   : > { %v2140_v32 = vpop.permute.xlu0 %2139 }
 0x57a   : > { %v5888_v40 = vpop.eup %5887 }
 0x57b   : > { %v5890_v61 = vpop.eup %5889  ;;  %v3609_v55 = vpack.c.bf16 %v5884_v25, %v5888_v40 }
 0x57c   : > { %v3610_v36 = vpack.c.bf16 %v5886_v31, %v5890_v61  ;;  %v8400_v2 = vadd.f32 %v5890_v61, %v5888_v40  ;;  %v8405_v6 = vpop.permute.xlu0 %3346 }
 0x57e   : > { %3879 = vmatprep.mubr.bf16.mxu1 %v3610_v36  ;;  %v10379_v36 = vld [vmem:[#allocation45_spill] sm:$0xff] }
 0x57f   : > { %3880 = vmatmul.mubr.bf16.gmra.mrb[52].mxu1 %v3609_v55  ;;  %v3156_v55 = vld [vmem:[#allocation4 + $0xa8] sm:$0xff] }
 0x580   : > { %v8407_v57 = vpop.permute.xlu0 %2149 }
 0x584   : > { %v8412_v0 = vpop.permute.xlu0 %2159 }
 0x587   : > { %2833 = vadd.xlane.f32.xlu0 %v7826_v59  ;;  %v10377_v59 = vld [vmem:[#allocation47_spill] sm:$0xff] }
 0x588   : > { %v2360_v52 = vsub.f32 %v10377_v59, %v2130_v8  ;;  %v2548_v59 = vmul.f32 1.442695, %v2361_v3  ;;  %v2364_v8 = vsub.f32 %v10382_v56, %v2140_v32  ;;  %v2752_v3 = vmul.f32 %v10384_v14, %v2688_v27  ;;  %v10386_v27 = vld [vmem:[#allocation50_spill] sm:$0xff]  ;;  %v10391_v14 = vld [vmem:[#allocation53_spill] sm:$0xff] }
 0x58a   : > { %v2546_v40 = vmul.f32 1.442695, %v2360_v52  ;;  %v3540_v52 = vmul.f32 %v8322_v26, %v3156_v55 }
 0x58c   : > { %5891 = vpow2.f32 %v2546_v40  ;;  %v10388_v40 = vld [vmem:[#allocation56_spill] sm:$0xff] }
 0x58d   : > { %v2369_v55 = vsub.f32 %v10388_v40, %v8407_v57 }
 0x599   : > { %2824 = vadd.xlane.f32.xlu1 %v7739_v11  ;;  %v8424_v11 = vpop.permute.xlu0 %2169 }
 0x59c   : > { %v1725_v25 = vpop.xlane.xlu1 %1724 }
 0x59d   : > { %v8415_v31 = vmax.f32 %v8410_v4, %v1725_v25  ;;  %2199 = vperm.xlu0 %5683, %v7867_v44   ;;  %v10380_v4 = vld [vmem:[#allocation46_spill] sm:$0xff] }
 0x59f   : > { %4223 = vst.msk [vmem:[#allocation2 + $0x1f8] sm:$0xff] %vm3070_vm3, %v8415_v31 }
 0x5a0   : > { %v8421_v47 = vpop.permute.xlu1 %3321 }
 0x5a4   : > { %v2125_v61 = vpop.permute.xlu1 %2124 }
 0x5a5   : > { %v2358_v25 = vsub.f32 %v10379_v36, %v2125_v61  ;;  %v2359_v19 = vsub.f32 %v10380_v4, %v2125_v61  ;;  %v2365_v36 = vsub.f32 %v10383_v39, %v2140_v32  ;;  %v2554_v39 = vmul.f32 1.442695, %v2364_v8 }
 0x5a6   : > { %v2819_v53 = vpop.xlane.xlu0 %2818 }
 0x5a7   : > { %v2542_v60 = vmul.f32 1.442695, %v2358_v25  ;;  %v2544_v37 = vmul.f32 1.442695, %v2359_v19  ;;  %v3857_v12 = vpop.f32.mrb[40].mxu1  ;;  %v3007_v44 = vadd.f32 %v2819_v53, %v2751_v35 }
 0x5a8   : > { %v4052_v45 = vadd.f32 %v3857_v12, %v3539_v51  ;;  %v3859_v4 = vpop.f32.mrb[41].mxu1  ;;  %v8433_v61 = vpop.permute.xlu1 %3331  ;;  %v2556_v26 = vmul.f32 1.442695, %v2365_v36  ;;  %v2564_v36 = vmul.f32 1.442695, %v2369_v55 }
 0x5a9   : > { %5893 = vpow2.f32 %v2542_v60  ;;  %3072 = vst.msk [vmem:[#allocation3 + $0x8] sm:$0xff] %vm3070_vm3, %v3007_v44  ;;  %v3860_v1 = vpop.f32.mrb[42].mxu1  ;;  %v10385_v44 = vld [vmem:[#allocation49_spill] sm:$0xff] }
 0x5aa   : > { %5895 = vpow2.f32 %v2544_v37  ;;  %4116 = vst.msk [vmem:[#allocation4 + $0xa0] sm:$0xff] %vm972_vm2, %v4052_v45  ;;  %v4053_v19 = vadd.f32 %v3860_v1, %v3540_v52  ;;  %v3862_v56 = vpop.f32.mrb[43].mxu1  ;;  %v2822_v53 = vpop.xlane.xlu0 %2821  ;;  %2184 = vperm.xlu1 %5684, %v7765_v34   ;;  %v10387_v45 = vld [vmem:[#allocation55_spill] sm:$0xff] }
 0x5ab   : > { %5897 = vpow2.f32 %v2548_v59  ;;  %v3008_v12 = vadd.f32 %v2822_v53, %v2752_v3  ;;  %v2368_v32 = vsub.f32 %v10387_v45, %v8407_v57  ;;  %v8449_v59 = vpop.eup %5891 }
 0x5ac   : > { %4117 = vst.msk [vmem:[#allocation4 + $0xa8] sm:$0xff] %vm972_vm2, %v4053_v19  ;;  %v2135_v51 = vpop.permute.xlu1 %2134  ;;  %5899 = vpow2.f32 %v2554_v39  ;;  %10389 = vst [vmem:[#allocation39_spill] sm:$0xff] %v8449_v59  ;;  %v10392_v19 = vld [vmem:[#allocation54_spill] sm:$0xff] }
 0x5ad   : > { %3073 = vst.msk [vmem:[#allocation3 + $0x10] sm:$0xff] %vm3070_vm3, %v3008_v12  ;;  %v2362_v35 = vsub.f32 %v10385_v44, %v2135_v51  ;;  %v2363_v37 = vsub.f32 %v10386_v27, %v2135_v51  ;;  %5901 = vpow2.f32 %v2556_v26  ;;  %v2562_v60 = vmul.f32 1.442695, %v2368_v32  ;;  %v10393_v12 = vld [vmem:[#allocation59_spill] sm:$0xff] }
 0x5ae   : > { %v2372_v26 = vsub.f32 %v10393_v12, %v8412_v0 }
 0x5af   : > { %v2550_v17 = vmul.f32 1.442695, %v2362_v35  ;;  %v2552_v5 = vmul.f32 1.442695, %v2363_v37  ;;  %v10394_v35 = vld [vmem:[#allocation60_spill] sm:$0xff] }
 0x5b0   : > { %v8447_v25 = vpop.permute.xlu1 %3341  ;;  %v2373_v27 = vsub.f32 %v10394_v35, %v8412_v0  ;;  %v10402_v35 = vld [vmem:[#allocation62_spill] sm:$0xff] }
 0x5b1   : > { %5903 = vpow2.f32 %v2550_v17 }
 0x5b2   : > { %5905 = vpow2.f32 %v2552_v5  ;;  %v2570_v5 = vmul.f32 1.442695, %v2372_v26  ;;  %v2572_v55 = vmul.f32 1.442695, %v2373_v27 }
 0x5b3   : > { %v5894_v8 = vpop.eup %5893  ;;  %5907 = vpow2.f32 %v2562_v60 }
 0x5b4   : > { %v5896_v52 = vpop.eup %5895  ;;  %v2145_v4 = vpop.permute.xlu1 %2144  ;;  %v3611_v53 = vpack.c.bf16 %v8449_v59, %v5894_v8  ;;  %5909 = vpow2.f32 %v2564_v36  ;;  %v10398_v36 = vld [vmem:[#allocation57_spill] sm:$0xff] }
 0x5b5   : > { %v8451_v1 = vpop.eup %5897  ;;  %v2366_v3 = vsub.f32 %v10391_v14, %v2145_v4  ;;  %v2367_v56 = vsub.f32 %v10392_v19, %v2145_v4  ;;  %v8457_v39 = vadd.f32 %v5896_v52, %v5894_v8  ;;  %v10397_v8 = vld [vmem:[#allocation64_spill] sm:$0xff]  ;;  %v10399_v14 = vld [vmem:[#allocation58_spill] sm:$0xff] }
 0x5b6   : > { %10390 = vst [vmem:[#allocation40_spill] sm:$0xff] %v8451_v1  ;;  %v3612_v57 = vpack.c.bf16 %v8451_v1, %v5896_v52  ;;  %v8465_v45 = vpop.eup %5899  ;;  %v2377_v60 = vsub.f32 %v10397_v8, %v8424_v11  ;;  %v10461_v1 = vld [vmem:[#allocation106_spill] sm:$0xff] }
 0x5b7   : > { %v2558_v51 = vmul.f32 1.442695, %v2366_v3  ;;  %v2560_v44 = vmul.f32 1.442695, %v2367_v56  ;;  %10395 = vst [vmem:[#allocation116_spill] sm:$0xff] %v8465_v45  ;;  %v8467_v32 = vpop.eup %5901 }
 0x5b8   : > { %3887 = vmatprep.mubr.bf16.mxu1 %v3612_v57  ;;  %v8463_v37 = vpop.permute.xlu1 %3351  ;;  %10396 = vst [vmem:[#allocation114_spill] sm:$0xff] %v8467_v32  ;;  %v2580_v12 = vmul.f32 1.442695, %v2377_v60 }
 0x5b9   : > { %5911 = vpow2.f32 %v2558_v51  ;;  %3888 = vmatmul.mubr.bf16.gmra.mrb[56].mxu1 %v3611_v53 }
 0x5ba   : > { %5913 = vpow2.f32 %v2560_v44 }
 0x5bb   : > { %v5904_v17 = vpop.eup %5903  ;;  %5915 = vpow2.f32 %v2570_v5 }
 0x5bc   : > { %v5906_v40 = vpop.eup %5905  ;;  %2839 = vadd.xlane.f32.xlu0 %v7894_v41  ;;  %v2155_v0 = vpop.permute.xlu1 %2154  ;;  %v3613_v52 = vpack.c.bf16 %v8465_v45, %v5904_v17  ;;  %5917 = vpow2.f32 %v2572_v55  ;;  %v10401_v41 = vld [vmem:[#allocation61_spill] sm:$0xff] }
 0x5bd   : > { %v2370_v4 = vsub.f32 %v10398_v36, %v2155_v0  ;;  %v2371_v3 = vsub.f32 %v10399_v14, %v2155_v0  ;;  %v3614_v19 = vpack.c.bf16 %v8467_v32, %v5906_v40  ;;  %v8476_v56 = vadd.f32 %v5906_v40, %v5904_v17  ;;  %v8478_v51 = vpop.eup %5907  ;;  %v10404_v36 = vld [vmem:[#allocation63_spill] sm:$0xff] }
 0x5be   : > { %10400 = vst [vmem:[#allocation37_spill] sm:$0xff] %v8478_v51  ;;  %v8482_v8 = vpop.eup %5909  ;;  %v2376_v55 = vsub.f32 %v10404_v36, %v8424_v11  ;;  %v2690_v36 = vld [vmem:[#allocation3 + $0x20] sm:$0xff] }
 0x5bf   : > { %v2566_v53 = vmul.f32 1.442695, %v2370_v4  ;;  %v2568_v57 = vmul.f32 1.442695, %v2371_v3  ;;  %3895 = vmatprep.mubr.bf16.mxu1 %v3614_v19  ;;  %10403 = vst [vmem:[#allocation38_spill] sm:$0xff] %v8482_v8 }
 0x5c0   : > { %v2165_v26 = vpop.permute.xlu1 %2164  ;;  %v2578_v14 = vmul.f32 1.442695, %v2376_v55  ;;  %v3157_v55 = vld [vmem:[#allocation4 + $0xb0] sm:$0xff] }
 0x5c1   : > { %5919 = vpow2.f32 %v2566_v53  ;;  %3896 = vmatmul.mubr.bf16.gmra.mrb[60].mxu1 %v3613_v52  ;;  %v2374_v44 = vsub.f32 %v10401_v41, %v2165_v26  ;;  %v2375_v27 = vsub.f32 %v10402_v35, %v2165_v26 }
 0x5c2   : > { %5921 = vpow2.f32 %v2568_v57 }
 0x5c3   : > { %v5912_v17 = vpop.eup %5911  ;;  %v2574_v40 = vmul.f32 1.442695, %v2374_v44  ;;  %v2576_v5 = vmul.f32 1.442695, %v2375_v27  ;;  %5923 = vpow2.f32 %v2580_v12 }
 0x5c4   : > { %v5914_v0 = vpop.eup %5913  ;;  %v3615_v52 = vpack.c.bf16 %v8478_v51, %v5912_v17 }
 0x5c5   : > { %5925 = vpow2.f32 %v2574_v40  ;;  %v3616_v60 = vpack.c.bf16 %v8482_v8, %v5914_v0  ;;  %v8488_v4 = vadd.f32 %v5914_v0, %v5912_v17  ;;  %v8490_v3 = vpop.eup %5915  ;;  %v2180_v0 = vpop.permute.xlu0 %2179  ;;  %v10447_v8 = vld [vmem:[#allocation104_spill] sm:$0xff] }
 0x5c6   : > { %5927 = vpow2.f32 %v2576_v5  ;;  %10405 = vst [vmem:[#allocation43_spill] sm:$0xff] %v8490_v3  ;;  %v8492_v19 = vpop.eup %5917 }
 0x5c7   : > { %3903 = vmatprep.mubr.bf16.mxu1 %v3616_v60  ;;  %10406 = vst [vmem:[#allocation44_spill] sm:$0xff] %v8492_v19  ;;  %5929 = vpow2.f32 %v2578_v14  ;;  %v2754_v60 = vmul.f32 %v7706_v9, %v2690_v36  ;;  %v2686_v9 = vld [vmem:[#allocation3] sm:$0xff] }
 0x5c9   : > { %3904 = vmatmul.mubr.bf16.gmra.mrb[64].mxu1 %v3615_v52  ;;  %v3541_v52 = vmul.f32 %v8386_v20, %v3157_v55  ;;  %v10409_v20 = vld [vmem:[#allocation67_spill] sm:$0xff]  ;;  %v10410_v55 = vld [vmem:[#allocation94_spill] sm:$0xff] }
 0x5ca   : > { %v2380_v36 = vsub.f32 %v10409_v20, %v2180_v0 }
 0x5cb   : > { %v5920_v53 = vpop.eup %5919 }
 0x5cc   : > { %v5922_v57 = vpop.eup %5921  ;;  %v3617_v12 = vpack.c.bf16 %v8490_v3, %v5920_v53 }
 0x5cd   : > { %v3618_v11 = vpack.c.bf16 %v8492_v19, %v5922_v57  ;;  %v8496_v26 = vadd.f32 %v5922_v57, %v5920_v53  ;;  %v8498_v41 = vpop.eup %5923 }
 0x5ce   : > { %10407 = vst [vmem:[#allocation41_spill] sm:$0xff] %v8498_v41  ;;  %2830 = vadd.xlane.f32.xlu1 %v7818_v28  ;;  %v3158_v28 = vld [vmem:[#allocation4 + $0xb8] sm:$0xff] }
 0x5cf   : > { %v5926_v44 = vpop.eup %5925  ;;  %3911 = vmatprep.mubr.bf16.mxu1 %v3618_v11  ;;  %v3542_v11 = vmul.f32 %v8374_v24, %v3158_v28 }
 0x5d0   : > { %v5928_v35 = vpop.eup %5927 }
 0x5d1   : > { %3912 = vmatmul.mubr.bf16.gmra.mrb[68].mxu1 %v3617_v12  ;;  %v3620_v27 = vpack.c.bf16 %v8498_v41, %v5928_v35  ;;  %v8502_v17 = vadd.f32 %v5928_v35, %v5926_v44  ;;  %v8505_v40 = vpop.eup %5929  ;;  %v10411_v41 = vld [vmem:[#allocation68_spill] sm:$0xff] }
 0x5d2   : > { %2209 = vperm.xlu0 %5683, %v7936_v21   ;;  %10408 = vst [vmem:[#allocation42_spill] sm:$0xff] %v8505_v40  ;;  %v3619_v5 = vpack.c.bf16 %v8505_v40, %v5926_v44  ;;  %v2750_v40 = vmul.f32 %v10410_v55, %v2686_v9 }
 0x5d3   : > { %3919 = vmatprep.mubr.bf16.mxu1 %v3620_v27 }
 0x5d9   : > { %3920 = vmatmul.mubr.bf16.gmra.mrb[72].mxu1 %v3619_v5 }
 0x5df   : > { %v2828_v14 = vpop.xlane.xlu0 %2827  ;;  %2194 = vperm.xlu1 %5684, %v7772_v33  }
 0x5e0   : > { %v3865_v53 = vpop.f32.mrb[44].mxu1  ;;  %v3010_v57 = vadd.f32 %v2828_v14, %v2754_v60  ;;  %v2381_v60 = vsub.f32 %v10411_v41, %v2180_v0  ;;  %v10412_v14 = vld [vmem:[#allocation9_spill] sm:$0xff] }
 0x5e1   : > { %v4054_v12 = vadd.f32 %v3865_v53, %v3541_v52  ;;  %v3867_v35 = vpop.f32.mrb[45].mxu1  ;;  %v2586_v52 = vmul.f32 1.442695, %v2380_v36 }
 0x5e2   : > { %3075 = vst.msk [vmem:[#allocation3 + $0x20] sm:$0xff] %vm3070_vm3, %v3010_v57  ;;  %v3868_v44 = vpop.f32.mrb[46].mxu1  ;;  %v2588_v53 = vmul.f32 1.442695, %v2381_v60  ;;  %v10414_v35 = vld [vmem:[#allocation66_spill] sm:$0xff] }
 0x5e3   : > { %4118 = vst.msk [vmem:[#allocation4 + $0xb0] sm:$0xff] %vm972_vm2, %v4054_v12  ;;  %v4055_v27 = vadd.f32 %v3868_v44, %v3542_v11  ;;  %v3870_v5 = vpop.f32.mrb[47].mxu1  ;;  %v10413_v11 = vld [vmem:[#allocation65_spill] sm:$0xff]  ;;  %5931 = vpow2.f32 %v2586_v52  ;;  %v10419_v52 = vld [vmem:[#allocation147_spill] sm:$0xff] }
 0x5e4   : > { %5933 = vpow2.f32 %v2588_v53 }
 0x5e5   : > { %4119 = vst.msk [vmem:[#allocation4 + $0xb8] sm:$0xff] %vm972_vm2, %v4055_v27 }
 0x5ed   : > { %v8522_v41 = vpop.eup %5931 }
 0x5ee   : > { %10415 = vst [vmem:[#allocation47_spill] sm:$0xff] %v8522_v41  ;;  %v8524_v0 = vpop.eup %5933 }
 0x5ef   : > { %10416 = vst [vmem:[#allocation48_spill] sm:$0xff] %v8524_v0 }
 0x5f1   : > { %2845 = vadd.xlane.f32.xlu0 %v10412_v14  ;;  %v2816_v24 = vpop.xlane.xlu1 %2815  ;;  %v10418_v14 = vld [vmem:[#allocation169_spill] sm:$0xff] }
 0x5f2   : > { %v3006_v28 = vadd.f32 %v2816_v24, %v2750_v40  ;;  %v10417_v40 = vld [vmem:[#allocation6_spill] sm:$0xff]  ;;  %v2190_v24 = vpop.permute.xlu0 %2189 }
 0x5f4   : > { %3071 = vst.msk [vmem:[#allocation3] sm:$0xff] %vm3070_vm3, %v3006_v28  ;;  %v2692_v28 = vld [vmem:[#allocation3 + $0x30] sm:$0xff] }
 0x5f5   : > { %v2175_v57 = vpop.permute.xlu1 %2174  ;;  %v2756_v53 = vmul.f32 %v10419_v52, %v2692_v28  ;;  %v2689_v52 = vld [vmem:[#allocation3 + $0x18] sm:$0xff] }
 0x5f6   : > { %v2378_v12 = vsub.f32 %v10413_v11, %v2175_v57  ;;  %v2379_v44 = vsub.f32 %v10414_v35, %v2175_v57  ;;  %v10420_v11 = vld [vmem:[#allocation156_spill] sm:$0xff] }
 0x5f8   : > { %v2582_v27 = vmul.f32 1.442695, %v2378_v12  ;;  %v2584_v5 = vmul.f32 1.442695, %v2379_v44  ;;  %v3159_v12 = vld [vmem:[#allocation4 + $0xc0] sm:$0xff]  ;;  %v3160_v44 = vld [vmem:[#allocation4 + $0xc8] sm:$0xff] }
 0x5fa   : > { %5935 = vpow2.f32 %v2582_v27  ;;  %v3543_v27 = vmul.f32 %v8421_v47, %v3159_v12  ;;  %v10424_v47 = vld [vmem:[#allocation13_spill] sm:$0xff] }
 0x5fb   : > { %5937 = vpow2.f32 %v2584_v5 }
 0x603   : > { %2836 = vadd.xlane.f32.xlu1 %v10417_v40  ;;  %v3544_v40 = vmul.f32 %v8398_v18, %v3160_v44 }
 0x604   : > { %v5936_v9 = vpop.eup %5935 }
 0x605   : > { %v5938_v20 = vpop.eup %5937  ;;  %v3621_v36 = vpack.c.bf16 %v8522_v41, %v5936_v9 }
 0x606   : > { %v3622_v55 = vpack.c.bf16 %v8524_v0, %v5938_v20  ;;  %v8529_v60 = vadd.f32 %v5938_v20, %v5936_v9  ;;  %v10421_v0 = vld [vmem:[#allocation71_spill] sm:$0xff] }
 0x607   : > { %2219 = vperm.xlu0 %5683, %v10418_v14  }
 0x608   : > { %3927 = vmatprep.mubr.bf16.mxu1 %v3622_v55 }
 0x609   : > { %3928 = vmatmul.mubr.bf16.gmra.mrb[76].mxu1 %v3621_v36 }
 0x614   : > { %v2834_v57 = vpop.xlane.xlu0 %2833  ;;  %2204 = vperm.xlu1 %5684, %v10420_v11  }
 0x615   : > { %v3012_v35 = vadd.f32 %v2834_v57, %v2756_v53  ;;  %v2384_v53 = vsub.f32 %v10421_v0, %v2190_v24  ;;  %v10422_v57 = vld [vmem:[#allocation121_spill] sm:$0xff] }
 0x616   : > { %v2753_v41 = vmul.f32 %v10422_v57, %v2689_v52 }
 0x617   : > { %3077 = vst.msk [vmem:[#allocation3 + $0x30] sm:$0xff] %vm3070_vm3, %v3012_v35  ;;  %v10423_v35 = vld [vmem:[#allocation72_spill] sm:$0xff]  ;;  %v2594_v44 = vmul.f32 1.442695, %v2384_v53 }
 0x618   : > { %v2385_v19 = vsub.f32 %v10423_v35, %v2190_v24 }
 0x619   : > { %v3873_v5 = vpop.f32.mrb[48].mxu1  ;;  %5939 = vpow2.f32 %v2594_v44  ;;  %v10431_v44 = vld [vmem:[#allocation157_spill] sm:$0xff] }
 0x61a   : > { %v4056_v9 = vadd.f32 %v3873_v5, %v3543_v27  ;;  %v3875_v20 = vpop.f32.mrb[49].mxu1  ;;  %v2596_v27 = vmul.f32 1.442695, %v2385_v19 }
 0x61b   : > { %v3876_v36 = vpop.f32.mrb[50].mxu1  ;;  %v10426_v20 = vld [vmem:[#allocation70_spill] sm:$0xff] }
 0x61c   : > { %4120 = vst.msk [vmem:[#allocation4 + $0xc0] sm:$0xff] %vm972_vm2, %v4056_v9  ;;  %v4057_v55 = vadd.f32 %v3876_v36, %v3544_v40  ;;  %v3878_v28 = vpop.f32.mrb[51].mxu1  ;;  %v10425_v40 = vld [vmem:[#allocation69_spill] sm:$0xff]  ;;  %5941 = vpow2.f32 %v2596_v27 }
 0x61e   : > { %4121 = vst.msk [vmem:[#allocation4 + $0xc8] sm:$0xff] %vm972_vm2, %v4057_v55 }
 0x623   : > { %v8546_v24 = vpop.eup %5939 }
 0x624   : > { %10427 = vst [vmem:[#allocation45_spill] sm:$0xff] %v8546_v24 }
 0x626   : > { %2851 = vadd.xlane.f32.xlu0 %v10424_v47  ;;  %v2825_v12 = vpop.xlane.xlu1 %2824  ;;  %v8548_v28 = vpop.eup %5941  ;;  %v10430_v47 = vld [vmem:[#allocation173_spill] sm:$0xff] }
 0x627   : > { %v3009_v18 = vadd.f32 %v2825_v12, %v2753_v41  ;;  %10428 = vst [vmem:[#allocation46_spill] sm:$0xff] %v8548_v28  ;;  %v10429_v41 = vld [vmem:[#allocation5_spill] sm:$0xff]  ;;  %v2200_v12 = vpop.permute.xlu0 %2199 }
 0x629   : > { %3074 = vst.msk [vmem:[#allocation3 + $0x18] sm:$0xff] %vm3070_vm3, %v3009_v18  ;;  %v2694_v18 = vld [vmem:[#allocation3 + $0x40] sm:$0xff] }
 0x62a   : > { %v2185_v5 = vpop.permute.xlu1 %2184  ;;  %v2758_v27 = vmul.f32 %v10431_v44, %v2694_v18  ;;  %v2691_v44 = vld [vmem:[#allocation3 + $0x28] sm:$0xff] }
 0x62b   : > { %v2382_v9 = vsub.f32 %v10425_v40, %v2185_v5  ;;  %v2383_v36 = vsub.f32 %v10426_v20, %v2185_v5  ;;  %v10432_v40 = vld [vmem:[#allocation79_spill] sm:$0xff] }
 0x62c   : > { %v3161_v20 = vld [vmem:[#allocation4 + $0xd0] sm:$0xff] }
 0x62d   : > { %v2590_v55 = vmul.f32 1.442695, %v2382_v9  ;;  %v2592_v0 = vmul.f32 1.442695, %v2383_v36  ;;  %v3162_v36 = vld [vmem:[#allocation4 + $0xd8] sm:$0xff] }
 0x62f   : > { %5943 = vpow2.f32 %v2590_v55  ;;  %v3545_v55 = vmul.f32 %v8433_v61, %v3161_v20  ;;  %v10436_v61 = vld [vmem:[#allocation17_spill] sm:$0xff] }
 0x630   : > { %5945 = vpow2.f32 %v2592_v0 }
 0x638   : > { %2842 = vadd.xlane.f32.xlu1 %v10429_v41  ;;  %v3546_v41 = vmul.f32 %v8402_v58, %v3162_v36 }
 0x639   : > { %v5944_v52 = vpop.eup %5943 }
 0x63a   : > { %v5946_v53 = vpop.eup %5945  ;;  %v3623_v19 = vpack.c.bf16 %v8546_v24, %v5944_v52  ;;  %v10435_v24 = vld [vmem:[#allocation76_spill] sm:$0xff] }
 0x63b   : > { %v3624_v57 = vpack.c.bf16 %v8548_v28, %v5946_v53  ;;  %v8553_v35 = vadd.f32 %v5946_v53, %v5944_v52  ;;  %v2389_v3 = vsub.f32 %v10435_v24, %v2200_v12 }
 0x63c   : > { %2229 = vperm.xlu0 %5683, %v10430_v47  }
 0x63d   : > { %3935 = vmatprep.mubr.bf16.mxu1 %v3624_v57 }
 0x63e   : > { %3936 = vmatmul.mubr.bf16.gmra.mrb[80].mxu1 %v3623_v19 }
 0x649   : > { %v2840_v5 = vpop.xlane.xlu0 %2839  ;;  %2214 = vperm.xlu1 %5684, %v10432_v40  }
 0x64a   : > { %v3014_v9 = vadd.f32 %v2840_v5, %v2758_v27  ;;  %v10433_v27 = vld [vmem:[#allocation75_spill] sm:$0xff] }
 0x64b   : > { %v2388_v5 = vsub.f32 %v10433_v27, %v2200_v12 }
 0x64c   : > { %3079 = vst.msk [vmem:[#allocation3 + $0x40] sm:$0xff] %vm3070_vm3, %v3014_v9  ;;  %v10434_v9 = vld [vmem:[#allocation135_spill] sm:$0xff] }
 0x64d   : > { %v2755_v28 = vmul.f32 %v10434_v9, %v2691_v44  ;;  %v2602_v36 = vmul.f32 1.442695, %v2388_v5 }
 0x64f   : > { %5947 = vpow2.f32 %v2602_v36  ;;  %v10443_v36 = vld [vmem:[#allocation85_spill] sm:$0xff] }
 0x652   : > { %v3881_v0 = vpop.f32.mrb[52].mxu1 }
 0x653   : > { %v4058_v52 = vadd.f32 %v3881_v0, %v3545_v55  ;;  %v3883_v53 = vpop.f32.mrb[53].mxu1  ;;  %v2604_v55 = vmul.f32 1.442695, %v2389_v3 }
 0x654   : > { %v3884_v19 = vpop.f32.mrb[54].mxu1  ;;  %v10438_v53 = vld [vmem:[#allocation74_spill] sm:$0xff] }
 0x655   : > { %4122 = vst.msk [vmem:[#allocation4 + $0xd0] sm:$0xff] %vm972_vm2, %v4058_v52  ;;  %v4059_v57 = vadd.f32 %v3884_v19, %v3546_v41  ;;  %v3886_v18 = vpop.f32.mrb[55].mxu1  ;;  %v10437_v41 = vld [vmem:[#allocation73_spill] sm:$0xff]  ;;  %5949 = vpow2.f32 %v2604_v55 }
 0x657   : > { %4123 = vst.msk [vmem:[#allocation4 + $0xd8] sm:$0xff] %vm972_vm2, %v4059_v57 }
 0x659   : > { %v8570_v24 = vpop.eup %5947 }
 0x65a   : > { %10439 = vst [vmem:[#allocation99_spill] sm:$0xff] %v8570_v24 }
 0x65b   : > { %2857 = vadd.xlane.f32.xlu0 %v10436_v61  ;;  %v2831_v20 = vpop.xlane.xlu1 %2830  ;;  %v10442_v61 = vld [vmem:[#allocation177_spill] sm:$0xff] }
 0x65c   : > { %v3011_v58 = vadd.f32 %v2831_v20, %v2755_v28  ;;  %v10441_v28 = vld [vmem:[#allocation166_spill] sm:$0xff]  ;;  %v2210_v20 = vpop.permute.xlu0 %2209 }
 0x65d   : > { %v2393_v51 = vsub.f32 %v10447_v8, %v2210_v20 }
 0x65e   : > { %3076 = vst.msk [vmem:[#allocation3 + $0x28] sm:$0xff] %vm3070_vm3, %v3011_v58  ;;  %v2696_v58 = vld [vmem:[#allocation3 + $0x50] sm:$0xff] }
 0x65f   : > { %v2195_v0 = vpop.permute.xlu1 %2194  ;;  %v8572_v12 = vpop.eup %5949  ;;  %v2760_v55 = vmul.f32 %v10443_v36, %v2696_v58 }
 0x660   : > { %v2386_v52 = vsub.f32 %v10437_v41, %v2195_v0  ;;  %v2387_v19 = vsub.f32 %v10438_v53, %v2195_v0  ;;  %10440 = vst [vmem:[#allocation51_spill] sm:$0xff] %v8572_v12  ;;  %v10444_v41 = vld [vmem:[#allocation80_spill] sm:$0xff]  ;;  %v3163_v53 = vld [vmem:[#allocation4 + $0xe0] sm:$0xff] }
 0x662   : > { %v2598_v57 = vmul.f32 1.442695, %v2386_v52  ;;  %v2600_v18 = vmul.f32 1.442695, %v2387_v19  ;;  %v3164_v19 = vld [vmem:[#allocation4 + $0xe8] sm:$0xff] }
 0x664   : > { %5951 = vpow2.f32 %v2598_v57  ;;  %v3547_v57 = vmul.f32 %v8447_v25, %v3163_v53 }
 0x665   : > { %5953 = vpow2.f32 %v2600_v18 }
 0x66d   : > { %2848 = vadd.xlane.f32.xlu1 %v10441_v28  ;;  %v2693_v28 = vld [vmem:[#allocation3 + $0x38] sm:$0xff] }
 0x66e   : > { %v5952_v44 = vpop.eup %5951 }
 0x66f   : > { %v5954_v27 = vpop.eup %5953  ;;  %v3625_v3 = vpack.c.bf16 %v8570_v24, %v5952_v44 }
 0x670   : > { %v3626_v5 = vpack.c.bf16 %v8572_v12, %v5954_v27  ;;  %v8577_v9 = vadd.f32 %v5954_v27, %v5952_v44  ;;  %v3548_v44 = vmul.f32 %v8405_v6, %v3164_v19  ;;  %v10445_v12 = vld [vmem:[#allocation103_spill] sm:$0xff] }
 0x671   : > { %2239 = vperm.xlu0 %5683, %v10442_v61   ;;  %v2392_v24 = vsub.f32 %v10445_v12, %v2210_v20  ;;  %v2612_v12 = vmul.f32 1.442695, %v2393_v51 }
 0x672   : > { %3943 = vmatprep.mubr.bf16.mxu1 %v3626_v5 }
 0x673   : > { %3944 = vmatmul.mubr.bf16.gmra.mrb[84].mxu1 %v3625_v3  ;;  %v2610_v19 = vmul.f32 1.442695, %v2392_v24 }
 0x675   : > { %5955 = vpow2.f32 %v2610_v19 }
 0x676   : > { %5957 = vpow2.f32 %v2612_v12 }
 0x67e   : > { %v2846_v0 = vpop.xlane.xlu0 %2845  ;;  %2224 = vperm.xlu1 %5684, %v10444_v41  }
 0x67f   : > { %v3016_v52 = vadd.f32 %v2846_v0, %v2760_v55  ;;  %v10446_v55 = vld [vmem:[#allocation144_spill] sm:$0xff] }
 0x680   : > { %v2757_v0 = vmul.f32 %v10446_v55, %v2693_v28  ;;  %v10448_v28 = vld [vmem:[#allocation77_spill] sm:$0xff] }
 0x681   : > { %3081 = vst.msk [vmem:[#allocation3 + $0x50] sm:$0xff] %vm3070_vm3, %v3016_v52  ;;  %v3165_v52 = vld [vmem:[#allocation4 + $0xf0] sm:$0xff] }
 0x682   : > { %v3549_v53 = vmul.f32 %v8463_v37, %v3165_v52 }
 0x68c   : > { %v3889_v18 = vpop.f32.mrb[56].mxu1 }
 0x68d   : > { %v4060_v27 = vadd.f32 %v3889_v18, %v3547_v57  ;;  %v3891_v3 = vpop.f32.mrb[57].mxu1 }
 0x68e   : > { %v3892_v5 = vpop.f32.mrb[58].mxu1 }
 0x68f   : > { %4124 = vst.msk [vmem:[#allocation4 + $0xe0] sm:$0xff] %vm972_vm2, %v4060_v27  ;;  %v4061_v58 = vadd.f32 %v3892_v5, %v3548_v44  ;;  %v3894_v36 = vpop.f32.mrb[59].mxu1  ;;  %v10449_v5 = vld [vmem:[#allocation78_spill] sm:$0xff] }
 0x690   : > { %2863 = vadd.xlane.f32.xlu0 %v8138_v22  ;;  %v2837_v25 = vpop.xlane.xlu1 %2836 }
 0x691   : > { %4125 = vst.msk [vmem:[#allocation4 + $0xe8] sm:$0xff] %vm972_vm2, %v4061_v58  ;;  %v3013_v6 = vadd.f32 %v2837_v25, %v2757_v0  ;;  %v8602_v0 = vpop.eup %5955  ;;  %v10453_v25 = vld [vmem:[#allocation170_spill] sm:$0xff] }
 0x692   : > { %10451 = vst [vmem:[#allocation127_spill] sm:$0xff] %v8602_v0  ;;  %v8604_v52 = vpop.eup %5957 }
 0x693   : > { %3078 = vst.msk [vmem:[#allocation3 + $0x38] sm:$0xff] %vm3070_vm3, %v3013_v6  ;;  %10452 = vst [vmem:[#allocation49_spill] sm:$0xff] %v8604_v52 }
 0x694   : > { %v3897_v57 = vpop.f32.mrb[60].mxu1  ;;  %v2205_v18 = vpop.permute.xlu1 %2204 }
 0x695   : > { %v4062_v44 = vadd.f32 %v3897_v57, %v3549_v53  ;;  %v3899_v27 = vpop.f32.mrb[61].mxu1  ;;  %v2390_v3 = vsub.f32 %v10448_v28, %v2205_v18  ;;  %v2391_v8 = vsub.f32 %v10449_v5, %v2205_v18 }
 0x696   : > { %v8595_v20 = vpop.f32.mrb[62].mxu1 }
 0x697   : > { %4126 = vst.msk [vmem:[#allocation4 + $0xf0] sm:$0xff] %vm972_vm2, %v4062_v44  ;;  %v2606_v22 = vmul.f32 1.442695, %v2390_v3  ;;  %v2608_v58 = vmul.f32 1.442695, %v2391_v8  ;;  %v3902_v37 = vpop.f32.mrb[63].mxu1 }
 0x698   : > { %v2698_v37 = vld [vmem:[#allocation3 + $0x60] sm:$0xff] }
 0x699   : > { %5959 = vpow2.f32 %v2606_v22  ;;  %v2220_v22 = vpop.permute.xlu0 %2219 }
 0x69a   : > { %5961 = vpow2.f32 %v2608_v58 }
 0x69c   : > { %v8598_v51 = vpop.f32.mrb[64].mxu1 }
 0x69d   : > { %10450 = vst [vmem:[#allocation52_spill] sm:$0xff] %v8598_v51  ;;  %v3907_v24 = vpop.f32.mrb[65].mxu1  ;;  %v10484_v51 = vld [vmem:[#allocation142_spill] sm:$0xff] }
 0x69e   : > { %v8600_v36 = vpop.f32.mrb[66].mxu1  ;;  %v10456_v24 = vld [vmem:[#allocation89_spill] sm:$0xff] }
 0x69f   : > { %v3910_v55 = vpop.f32.mrb[67].mxu1 }
 0x6a0   : > { %v2762_v55 = vmul.f32 %v10456_v24, %v2698_v37 }
 0x6a2   : > { %2854 = vadd.xlane.f32.xlu1 %v10453_v25 }
 0x6a3   : > { %v5960_v6 = vpop.eup %5959 }
 0x6a4   : > { %v5962_v53 = vpop.eup %5961  ;;  %v8607_v19 = vpop.f32.mrb[68].mxu1  ;;  %v3627_v12 = vpack.c.bf16 %v8602_v0, %v5960_v6  ;;  %v10460_v0 = vld [vmem:[#allocation132_spill] sm:$0xff] }
 0x6a5   : > { %10454 = vst [vmem:[#allocation50_spill] sm:$0xff] %v8607_v19  ;;  %v3915_v57 = vpop.f32.mrb[69].mxu1  ;;  %v3628_v18 = vpack.c.bf16 %v8604_v52, %v5962_v53  ;;  %v8611_v44 = vadd.f32 %v5962_v53, %v5960_v6  ;;  %v10457_v6 = vld [vmem:[#allocation82_spill] sm:$0xff] }
 0x6a6   : > { %v8613_v27 = vpop.f32.mrb[70].mxu1  ;;  %2249 = vperm.xlu0 %5683, %v8169_v30   ;;  %v2695_v57 = vld [vmem:[#allocation3 + $0x48] sm:$0xff] }
 0x6a7   : > { %v3918_v28 = vpop.f32.mrb[71].mxu1  ;;  %3951 = vmatprep.mubr.bf16.mxu1 %v3628_v18 }
 0x6a8   : > { %3952 = vmatmul.mubr.bf16.gmra.mrb[88].mxu1 %v3627_v12  ;;  %v10458_v28 = vld [vmem:[#allocation130_spill] sm:$0xff] }
 0x6a9   : > { %v2396_v18 = vsub.f32 %v10458_v28, %v2220_v22  ;;  %v10459_v12 = vld [vmem:[#allocation154_spill] sm:$0xff] }
 0x6aa   : > { %v2759_v52 = vmul.f32 %v10459_v12, %v2695_v57 }
 0x6ab   : > { %v2618_v45 = vmul.f32 1.442695, %v2396_v18 }
 0x6ac   : > { %v8616_v3 = vpop.f32.mrb[72].mxu1 }
 0x6ad   : > { %10455 = vst [vmem:[#allocation55_spill] sm:$0xff] %v8616_v3  ;;  %v3923_v5 = vpop.f32.mrb[73].mxu1  ;;  %5963 = vpow2.f32 %v2618_v45  ;;  %v10472_v3 = vld [vmem:[#allocation133_spill] sm:$0xff] }
 0x6ae   : > { %v8618_v8 = vpop.f32.mrb[74].mxu1  ;;  %v2397_v5 = vsub.f32 %v10460_v0, %v2220_v22 }
 0x6af   : > { %v3926_v58 = vpop.f32.mrb[75].mxu1 }
 0x6b0   : > { %v2620_v37 = vmul.f32 1.442695, %v2397_v5 }
 0x6b2   : > { %5965 = vpow2.f32 %v2620_v37  ;;  %v2700_v37 = vld [vmem:[#allocation3 + $0x70] sm:$0xff] }
 0x6b3   : > { %v2852_v25 = vpop.xlane.xlu0 %2851  ;;  %2234 = vperm.xlu1 %5684, %v10457_v6  }
 0x6b4   : > { %v3018_v53 = vadd.f32 %v2852_v25, %v2762_v55  ;;  %v10462_v25 = vld [vmem:[#allocation107_spill] sm:$0xff] }
 0x6b6   : > { %3083 = vst.msk [vmem:[#allocation3 + $0x60] sm:$0xff] %vm3070_vm3, %v3018_v53 }
 0x6b7   : > { %v8630_v0 = vpop.eup %5963 }
 0x6b8   : > { %10463 = vst [vmem:[#allocation56_spill] sm:$0xff] %v8630_v0 }
 0x6c5   : > { %2869 = vadd.xlane.f32.xlu0 %v8192_v43  ;;  %v2843_v32 = vpop.xlane.xlu1 %2842  ;;  %v8632_v43 = vpop.eup %5965 }
 0x6c6   : > { %v3015_v58 = vadd.f32 %v2843_v32, %v2759_v52  ;;  %10464 = vst [vmem:[#allocation53_spill] sm:$0xff] %v8632_v43  ;;  %v10465_v32 = vld [vmem:[#allocation174_spill] sm:$0xff] }
 0x6c8   : > { %3080 = vst.msk [vmem:[#allocation3 + $0x48] sm:$0xff] %vm3070_vm3, %v3015_v58  ;;  %v2230_v58 = vpop.permute.xlu0 %2229 }
 0x6c9   : > { %v2215_v24 = vpop.permute.xlu1 %2214 }
 0x6ca   : > { %v2394_v55 = vsub.f32 %v10461_v1, %v2215_v24  ;;  %v2395_v53 = vsub.f32 %v10462_v25, %v2215_v24  ;;  %v10467_v24 = vld [vmem:[#allocation93_spill] sm:$0xff] }
 0x6cc   : > { %v2614_v59 = vmul.f32 1.442695, %v2394_v55  ;;  %v2616_v28 = vmul.f32 1.442695, %v2395_v53  ;;  %v2764_v55 = vmul.f32 %v10467_v24, %v2700_v37  ;;  %v10468_v53 = vld [vmem:[#allocation86_spill] sm:$0xff] }
 0x6ce   : > { %5967 = vpow2.f32 %v2614_v59 }
 0x6cf   : > { %5969 = vpow2.f32 %v2616_v28 }
 0x6d7   : > { %2860 = vadd.xlane.f32.xlu1 %v10465_v32  ;;  %v2697_v32 = vld [vmem:[#allocation3 + $0x58] sm:$0xff] }
 0x6d8   : > { %v5968_v52 = vpop.eup %5967 }
 0x6d9   : > { %v5970_v22 = vpop.eup %5969  ;;  %v3629_v57 = vpack.c.bf16 %v8630_v0, %v5968_v52 }
 0x6da   : > { %v3630_v1 = vpack.c.bf16 %v8632_v43, %v5970_v22  ;;  %v8637_v18 = vadd.f32 %v5970_v22, %v5968_v52  ;;  %v10469_v52 = vld [vmem:[#allocation140_spill] sm:$0xff]  ;;  %v10470_v43 = vld [vmem:[#allocation7_spill] sm:$0xff] }
 0x6db   : > { %2259 = vperm.xlu0 %5683, %v8221_v62   ;;  %v2400_v22 = vsub.f32 %v10469_v52, %v2230_v58 }
 0x6dc   : > { %v8640_v45 = vpop.f32.mrb[76].mxu1  ;;  %3959 = vmatprep.mubr.bf16.mxu1 %v3630_v1  ;;  %v2761_v1 = vmul.f32 %v10470_v43, %v2697_v32 }
 0x6dd   : > { %10466 = vst [vmem:[#allocation54_spill] sm:$0xff] %v8640_v45  ;;  %v3931_v59 = vpop.f32.mrb[77].mxu1  ;;  %3960 = vmatmul.mubr.bf16.gmra.mrb[92].mxu1 %v3629_v57  ;;  %v2626_v45 = vmul.f32 1.442695, %v2400_v22 }
 0x6de   : > { %v8642_v12 = vpop.f32.mrb[78].mxu1  ;;  %v10471_v59 = vld [vmem:[#allocation141_spill] sm:$0xff] }
 0x6df   : > { %v3934_v5 = vpop.f32.mrb[79].mxu1  ;;  %v2401_v57 = vsub.f32 %v10471_v59, %v2230_v58  ;;  %5971 = vpow2.f32 %v2626_v45  ;;  %v10476_v58 = vld [vmem:[#allocation178_spill] sm:$0xff] }
 0x6e1   : > { %v2628_v37 = vmul.f32 1.442695, %v2401_v57 }
 0x6e3   : > { %5973 = vpow2.f32 %v2628_v37  ;;  %v2702_v37 = vld [vmem:[#allocation3 + $0x80] sm:$0xff] }
 0x6e8   : > { %v2858_v25 = vpop.xlane.xlu0 %2857  ;;  %2244 = vperm.xlu1 %5684, %v10468_v53  }
 0x6e9   : > { %v3020_v28 = vadd.f32 %v2858_v25, %v2764_v55  ;;  %v10473_v25 = vld [vmem:[#allocation134_spill] sm:$0xff]  ;;  %v8654_v43 = vpop.eup %5971 }
 0x6ea   : > { %10474 = vst [vmem:[#allocation59_spill] sm:$0xff] %v8654_v43 }
 0x6eb   : > { %3085 = vst.msk [vmem:[#allocation3 + $0x70] sm:$0xff] %vm3070_vm3, %v3020_v28 }
 0x6fa   : > { %2875 = vadd.xlane.f32.xlu0 %v8242_v54  ;;  %v2849_v5 = vpop.xlane.xlu1 %2848  ;;  %v8656_v54 = vpop.eup %5973 }
 0x6fb   : > { %v3017_v0 = vadd.f32 %v2849_v5, %v2761_v1  ;;  %10475 = vst [vmem:[#allocation60_spill] sm:$0xff] %v8656_v54  ;;  %v2240_v5 = vpop.permute.xlu0 %2239 }
 0x6fd   : > { %3082 = vst.msk [vmem:[#allocation3 + $0x58] sm:$0xff] %vm3070_vm3, %v3017_v0 }
 0x6fe   : > { %v2225_v24 = vpop.permute.xlu1 %2224 }
 0x6ff   : > { %v2398_v55 = vsub.f32 %v10472_v3, %v2225_v24  ;;  %v2399_v28 = vsub.f32 %v10473_v25, %v2225_v24  ;;  %v10479_v24 = vld [vmem:[#allocation98_spill] sm:$0xff] }
 0x701   : > { %v2622_v19 = vmul.f32 1.442695, %v2398_v55  ;;  %v2624_v52 = vmul.f32 1.442695, %v2399_v28  ;;  %v2766_v55 = vmul.f32 %v10479_v24, %v2702_v37  ;;  %v10480_v28 = vld [vmem:[#allocation91_spill] sm:$0xff] }
 0x703   : > { %5975 = vpow2.f32 %v2622_v19 }
 0x704   : > { %5977 = vpow2.f32 %v2624_v52 }
 0x70c   : > { %2866 = vadd.xlane.f32.xlu1 %v10476_v58  ;;  %v2699_v58 = vld [vmem:[#allocation3 + $0x68] sm:$0xff] }
 0x70d   : > { %v5976_v32 = vpop.eup %5975 }
 0x70e   : > { %v5978_v0 = vpop.eup %5977  ;;  %v3631_v22 = vpack.c.bf16 %v8654_v43, %v5976_v32 }
 0x70f   : > { %v3632_v3 = vpack.c.bf16 %v8656_v54, %v5978_v0  ;;  %v8661_v1 = vadd.f32 %v5978_v0, %v5976_v32  ;;  %v10481_v32 = vld [vmem:[#allocation148_spill] sm:$0xff]  ;;  %v10482_v54 = vld [vmem:[#allocation10_spill] sm:$0xff] }
 0x710   : > { %2269 = vperm.xlu0 %5683, %v8286_v15   ;;  %v2404_v0 = vsub.f32 %v10481_v32, %v2240_v5 }
 0x711   : > { %10477 = vst [vmem:[#allocation64_spill] sm:$0xff] %v8661_v1  ;;  %v8664_v45 = vpop.f32.mrb[80].mxu1  ;;  %3967 = vmatprep.mubr.bf16.mxu1 %v3632_v3  ;;  %v2763_v3 = vmul.f32 %v10482_v54, %v2699_v58 }
 0x712   : > { %10478 = vst [vmem:[#allocation57_spill] sm:$0xff] %v8664_v45  ;;  %v3939_v19 = vpop.f32.mrb[81].mxu1  ;;  %3968 = vmatmul.mubr.bf16.gmra.mrb[96].mxu1 %v3631_v22  ;;  %v2634_v45 = vmul.f32 1.442695, %v2404_v0 }
 0x713   : > { %v8666_v59 = vpop.f32.mrb[82].mxu1  ;;  %v10483_v19 = vld [vmem:[#allocation150_spill] sm:$0xff] }
 0x714   : > { %v3942_v57 = vpop.f32.mrb[83].mxu1  ;;  %v2405_v22 = vsub.f32 %v10483_v19, %v2240_v5  ;;  %5979 = vpow2.f32 %v2634_v45  ;;  %v10488_v5 = vld [vmem:[#allocation102_spill] sm:$0xff] }
 0x716   : > { %v2636_v37 = vmul.f32 1.442695, %v2405_v22 }
 0x718   : > { %5981 = vpow2.f32 %v2636_v37  ;;  %v2704_v37 = vld [vmem:[#allocation3 + $0x90] sm:$0xff] }
 0x71d   : > { %v2864_v25 = vpop.xlane.xlu0 %2863  ;;  %2254 = vperm.xlu1 %5684, %v10480_v28  }
 0x71e   : > { %v3022_v52 = vadd.f32 %v2864_v25, %v2766_v55  ;;  %v10485_v25 = vld [vmem:[#allocation143_spill] sm:$0xff]  ;;  %v8678_v54 = vpop.eup %5979 }
 0x71f   : > { %10486 = vst [vmem:[#allocation58_spill] sm:$0xff] %v8678_v54 }
 0x720   : > { %3087 = vst.msk [vmem:[#allocation3 + $0x80] sm:$0xff] %vm3070_vm3, %v3022_v52 }
 0x72f   : > { %2881 = vadd.xlane.f32.xlu0 %v8303_v23  ;;  %v2855_v57 = vpop.xlane.xlu1 %2854  ;;  %v8680_v23 = vpop.eup %5981 }
 0x730   : > { %v3019_v43 = vadd.f32 %v2855_v57, %v2763_v3  ;;  %10487 = vst [vmem:[#allocation61_spill] sm:$0xff] %v8680_v23  ;;  %v2250_v57 = vpop.permute.xlu0 %2249 }
 0x732   : > { %3084 = vst.msk [vmem:[#allocation3 + $0x68] sm:$0xff] %vm3070_vm3, %v3019_v43 }
 0x733   : > { %v2235_v24 = vpop.permute.xlu1 %2234 }
 0x734   : > { %v2402_v55 = vsub.f32 %v10484_v51, %v2235_v24  ;;  %v2403_v52 = vsub.f32 %v10485_v25, %v2235_v24  ;;  %v10491_v24 = vld [vmem:[#allocation90_spill] sm:$0xff] }
 0x736   : > { %v2630_v1 = vmul.f32 1.442695, %v2402_v55  ;;  %v2632_v32 = vmul.f32 1.442695, %v2403_v52  ;;  %v2768_v55 = vmul.f32 %v10491_v24, %v2704_v37 }
 0x738   : > { %5983 = vpow2.f32 %v2630_v1 }
 0x739   : > { %5985 = vpow2.f32 %v2632_v32  ;;  %v2701_v32 = vld [vmem:[#allocation3 + $0x78] sm:$0xff] }
 0x741   : > { %2872 = vadd.xlane.f32.xlu1 %v10488_v5  ;;  %v10492_v5 = vld [vmem:[#allocation158_spill] sm:$0xff] }
 0x742   : > { %v5984_v58 = vpop.eup %5983 }
 0x743   : > { %v5986_v43 = vpop.eup %5985  ;;  %v3633_v0 = vpack.c.bf16 %v8678_v54, %v5984_v58 }
 0x744   : > { %v3634_v51 = vpack.c.bf16 %v8680_v23, %v5986_v43  ;;  %v8685_v3 = vadd.f32 %v5986_v43, %v5984_v58  ;;  %v2408_v58 = vsub.f32 %v10492_v5, %v2250_v57  ;;  %v10493_v43 = vld [vmem:[#allocation14_spill] sm:$0xff] }
 0x745   : > { %2279 = vperm.xlu0 %5683, %v8339_v63  }
 0x746   : > { %10489 = vst [vmem:[#allocation62_spill] sm:$0xff] %v8685_v3  ;;  %v8688_v45 = vpop.f32.mrb[84].mxu1  ;;  %3975 = vmatprep.mubr.bf16.mxu1 %v3634_v51  ;;  %v2765_v51 = vmul.f32 %v10493_v43, %v2701_v32  ;;  %v2642_v54 = vmul.f32 1.442695, %v2408_v58 }
 0x747   : > { %10490 = vst [vmem:[#allocation63_spill] sm:$0xff] %v8688_v45  ;;  %v3947_v1 = vpop.f32.mrb[85].mxu1  ;;  %3976 = vmatmul.mubr.bf16.gmra.mrb[100].mxu1 %v3633_v0  ;;  %v10495_v45 = vld [vmem:[#allocation151_spill] sm:$0xff] }
 0x748   : > { %v8690_v19 = vpop.f32.mrb[86].mxu1  ;;  %v10494_v1 = vld [vmem:[#allocation159_spill] sm:$0xff]  ;;  %5987 = vpow2.f32 %v2642_v54 }
 0x749   : > { %v3950_v22 = vpop.f32.mrb[87].mxu1  ;;  %v2409_v0 = vsub.f32 %v10494_v1, %v2250_v57 }
 0x74b   : > { %v2644_v37 = vmul.f32 1.442695, %v2409_v0 }
 0x74d   : > { %5989 = vpow2.f32 %v2644_v37 }
 0x752   : > { %v2870_v25 = vpop.xlane.xlu0 %2869  ;;  %2264 = vperm.xlu1 %5684, %v8206_v7   ;;  %v8702_v57 = vpop.eup %5987 }
 0x753   : > { %v3024_v52 = vadd.f32 %v2870_v25, %v2768_v55  ;;  %v10496_v25 = vld [vmem:[#allocation152_spill] sm:$0xff]  ;;  %10497 = vst [vmem:[#allocation67_spill] sm:$0xff] %v8702_v57 }
 0x755   : > { %3089 = vst.msk [vmem:[#allocation3 + $0x90] sm:$0xff] %vm3070_vm3, %v3024_v52 }
 0x75a   : > { %v2260_v0 = vpop.permute.xlu0 %2259 }
 0x764   : > { %2887 = vadd.xlane.f32.xlu0 %v8364_v13  ;;  %v2861_v22 = vpop.xlane.xlu1 %2860  ;;  %v8704_v13 = vpop.eup %5989 }
 0x765   : > { %v3021_v23 = vadd.f32 %v2861_v22, %v2765_v51  ;;  %10498 = vst [vmem:[#allocation94_spill] sm:$0xff] %v8704_v13 }
 0x767   : > { %3086 = vst.msk [vmem:[#allocation3 + $0x78] sm:$0xff] %vm3070_vm3, %v3021_v23 }
 0x768   : > { %v2245_v24 = vpop.permute.xlu1 %2244 }
 0x769   : > { %v2406_v55 = vsub.f32 %v10495_v45, %v2245_v24  ;;  %v2407_v52 = vsub.f32 %v10496_v25, %v2245_v24  ;;  %v10499_v25 = vld [vmem:[#allocation164_spill] sm:$0xff] }
 0x76b   : > { %v2638_v3 = vmul.f32 1.442695, %v2406_v55  ;;  %v2640_v5 = vmul.f32 1.442695, %v2407_v52  ;;  %v2703_v55 = vld [vmem:[#allocation3 + $0x88] sm:$0xff]  ;;  %v2412_v52 = vsub.f32 %v10499_v25, %v2260_v0 }
 0x76d   : > { %5991 = vpow2.f32 %v2638_v3 }
 0x76e   : > { %5993 = vpow2.f32 %v2640_v5  ;;  %v10500_v5 = vld [vmem:[#allocation18_spill] sm:$0xff] }
 0x776   : > { %2878 = vadd.xlane.f32.xlu1 %v8227_v38  ;;  %v2706_v38 = vld [vmem:[#allocation3 + $0xa0] sm:$0xff] }
 0x777   : > { %v5992_v32 = vpop.eup %5991  ;;  %v2770_v22 = vmul.f32 %v8212_v49, %v2706_v38 }
 0x778   : > { %v5994_v23 = vpop.eup %5993  ;;  %v3635_v58 = vpack.c.bf16 %v8702_v57, %v5992_v32  ;;  %v10504_v57 = vld [vmem:[#allocation115_spill] sm:$0xff] }
 0x779   : > { %v3636_v45 = vpack.c.bf16 %v8704_v13, %v5994_v23  ;;  %v8709_v43 = vadd.f32 %v5994_v23, %v5992_v32  ;;  %v2767_v32 = vmul.f32 %v10500_v5, %v2703_v55  ;;  %v10501_v23 = vld [vmem:[#allocation165_spill] sm:$0xff]  ;;  %v10502_v13 = vld [vmem:[#allocation160_spill] sm:$0xff]  ;;  %v1821_v25 = vsub.f32 %v10504_v57, %v7590_v16 }
 0x77a   : > { %2289 = vperm.xlu0 %5683, %v8381_v29  }
 0x77b   : > { %v8712_v54 = vpop.f32.mrb[88].mxu1  ;;  %3983 = vmatprep.mubr.bf16.mxu1 %v3636_v45 }
 0x77c   : > { %v3955_v3 = vpop.f32.mrb[89].mxu1  ;;  %3984 = vmatmul.mubr.bf16.gmra.mrb[104].mxu1 %v3635_v58  ;;  %v2413_v58 = vsub.f32 %v10501_v23, %v2260_v0  ;;  %v10505_v0 = vld [vmem:[#allocation118_spill] sm:$0xff]  ;;  %v10506_v23 = vld [vmem:[#allocation123_spill] sm:$0xff] }
 0x77d   : > { %v8714_v51 = vpop.f32.mrb[90].mxu1 }
 0x77e   : > { %v3958_v1 = vpop.f32.mrb[91].mxu1  ;;  %v2652_v49 = vmul.f32 1.442695, %v2413_v58 }
 0x77f   : > { %v2650_v1 = vmul.f32 1.442695, %v2412_v52  ;;  %v1823_v52 = vsub.f32 %v10505_v0, %v10341_v46 }
 0x781   : > { %5995 = vpow2.f32 %v2650_v1 }
 0x782   : > { %5997 = vpow2.f32 %v2652_v49 }
 0x787   : > { %v2876_v37 = vpop.xlane.xlu0 %2875  ;;  %2274 = vperm.xlu1 %5684, %v8260_v42  }
 0x788   : > { %v3026_v24 = vadd.f32 %v2876_v37, %v2770_v22  ;;  %v10503_v37 = vld [vmem:[#allocation161_spill] sm:$0xff] }
 0x78a   : > { %3091 = vst.msk [vmem:[#allocation3 + $0xa0] sm:$0xff] %vm3070_vm3, %v3026_v24 }
 0x78b   : > { %v8732_v58 = vpop.eup %5995 }
 0x799   : > { %2893 = vadd.xlane.f32.xlu0 %v8400_v2  ;;  %v2867_v45 = vpop.xlane.xlu1 %2866  ;;  %v1916_v2 = vmul.f32 1.442695, %v1821_v25 }
 0x79a   : > { %v3023_v3 = vadd.f32 %v2867_v45, %v2767_v32  ;;  %v1920_v32 = vmul.f32 1.442695, %v1823_v52  ;;  %v8734_v45 = vpop.eup %5997  ;;  %v10511_v52 = vld [vmem:[#allocation153_spill] sm:$0xff] }
 0x79c   : > { %3088 = vst.msk [vmem:[#allocation3 + $0x88] sm:$0xff] %vm3070_vm3, %v3023_v3  ;;  %v10507_v3 = vld [vmem:[#allocation128_spill] sm:$0xff] }
 0x79d   : > { %v2255_v38 = vpop.permute.xlu1 %2254  ;;  %v1827_v1 = vsub.f32 %v10507_v3, %v10345_v10  ;;  %v10515_v3 = vld [vmem:[#allocation162_spill] sm:$0xff] }
 0x79e   : > { %v2410_v22 = vsub.f32 %v10502_v13, %v2255_v38  ;;  %v2411_v24 = vsub.f32 %v10503_v37, %v2255_v38  ;;  %v1825_v13 = vsub.f32 %v10506_v23, %v10342_v48  ;;  %v10508_v37 = vld [vmem:[#allocation139_spill] sm:$0xff] }
 0x79f   : > { %v1928_v48 = vmul.f32 1.442695, %v1827_v1 }
 0x7a0   : > { %v2646_v55 = vmul.f32 1.442695, %v2410_v22  ;;  %v2648_v5 = vmul.f32 1.442695, %v2411_v24  ;;  %v1924_v57 = vmul.f32 1.442695, %v1825_v13 }
 0x7a1   : > { %v10509_v24 = vld [vmem:[#allocation138_spill] sm:$0xff] }
 0x7a2   : > { %5999 = vpow2.f32 %v2646_v55 }
 0x7a3   : > { %6001 = vpow2.f32 %v2648_v5 }
 0x7a4   : > { %6003 = vpow2.f32 %v1916_v2 }
 0x7a5   : > { %6005 = vpow2.f32 %v1920_v32  ;;  %v10512_v32 = vld [vmem:[#allocation149_spill] sm:$0xff] }
 0x7a6   : > { %6007 = vpow2.f32 %v1924_v57  ;;  %v1831_v23 = vsub.f32 %v10512_v32, %v10511_v52  ;;  %v10514_v57 = vld [vmem:[#allocation163_spill] sm:$0xff] }
 0x7a7   : > { %6009 = vpow2.f32 %v1928_v48  ;;  %v1833_v1 = vsub.f32 %v10515_v3, %v10514_v57  ;;  %v10517_v48 = vld [vmem:[#allocation30_spill] sm:$0xff]  ;;  %v10519_v52 = vld [vmem:[#allocation35_spill] sm:$0xff]  ;;  %v10521_v57 = vld [vmem:[#allocation88_spill] sm:$0xff] }
 0x7a8   : > { %v1837_v3 = vsub.f32 %v10521_v57, %v10418_v14  ;;  %v2705_v14 = vld [vmem:[#allocation3 + $0x98] sm:$0xff] }
 0x7ab   : > { %2884 = vadd.xlane.f32.xlu1 %v8294_v50  ;;  %v1829_v50 = vsub.f32 %v10509_v24, %v10508_v37  ;;  %v1940_v24 = vmul.f32 1.442695, %v1833_v1  ;;  %v10523_v1 = vld [vmem:[#allocation92_spill] sm:$0xff] }
 0x7ac   : > { %v6000_v16 = vpop.eup %5999 }
 0x7ad   : > { %v6002_v49 = vpop.eup %6001  ;;  %v3637_v46 = vpack.c.bf16 %v8732_v58, %v6000_v16  ;;  %v1932_v0 = vmul.f32 1.442695, %v1829_v50  ;;  %v10518_v50 = vld [vmem:[#allocation84_spill] sm:$0xff] }
 0x7ae   : > { %v3638_v38 = vpack.c.bf16 %v8734_v45, %v6002_v49  ;;  %v8741_v22 = vadd.f32 %v6002_v49, %v6000_v16  ;;  %v8748_v10 = vpop.eup %6003  ;;  %v1936_v16 = vmul.f32 1.442695, %v1831_v23  ;;  %v2270_v49 = vpop.permute.xlu0 %2269 }
 0x7af   : > { %2299 = vperm.xlu0 %5683, %v8415_v31   ;;  %10510 = vst [vmem:[#allocation68_spill] sm:$0xff] %v8748_v10  ;;  %v8755_v13 = vpop.eup %6005  ;;  %6011 = vpow2.f32 %v1932_v0 }
 0x7b0   : > { %v8746_v25 = vpop.f32.mrb[92].mxu1  ;;  %3991 = vmatprep.mubr.bf16.mxu1 %v3638_v38  ;;  %10513 = vst [vmem:[#allocation9_spill] sm:$0xff] %v8755_v13  ;;  %v8760_v38 = vpop.eup %6007  ;;  %6013 = vpow2.f32 %v1936_v16 }
 0x7b1   : > { %v3963_v55 = vpop.f32.mrb[93].mxu1  ;;  %3992 = vmatmul.mubr.bf16.gmra.mrb[108].mxu1 %v3637_v46  ;;  %v2708_v46 = vld [vmem:[#allocation3 + $0xb0] sm:$0xff]  ;;  %10516 = vst [vmem:[#allocation65_spill] sm:$0xff] %v8760_v38  ;;  %v8767_v32 = vpop.eup %6009  ;;  %6015 = vpow2.f32 %v1940_v24  ;;  %v10525_v24 = vld [vmem:[#allocation97_spill] sm:$0xff] }
 0x7b2   : > { %v8750_v5 = vpop.f32.mrb[94].mxu1  ;;  %v2772_v37 = vmul.f32 %v10517_v48, %v2708_v46  ;;  %v1835_v55 = vsub.f32 %v10518_v50, %v7936_v21  ;;  %10520 = vst [vmem:[#allocation66_spill] sm:$0xff] %v8767_v32  ;;  %v1948_v21 = vmul.f32 1.442695, %v1837_v3  ;;  %v1839_v46 = vsub.f32 %v10523_v1, %v10430_v47  ;;  %v10528_v47 = vld [vmem:[#allocation96_spill] sm:$0xff]  ;;  %v10529_v3 = vld [vmem:[#allocation167_spill] sm:$0xff] }
 0x7b3   : > { %v3966_v2 = vpop.f32.mrb[95].mxu1  ;;  %3356 = vperm.xlu0 %5683, %v8748_v10   ;;  %v1841_v50 = vsub.f32 %v10525_v24, %v10442_v61  ;;  %v1845_v57 = vsub.f32 %v10528_v47, %v8221_v62  ;;  %v2416_v1 = vsub.f32 %v10529_v3, %v2270_v49  ;;  %v10532_v61 = vld [vmem:[#allocation168_spill] sm:$0xff] }
 0x7b4   : > { %v1944_v23 = vmul.f32 1.442695, %v1835_v55  ;;  %v2417_v24 = vsub.f32 %v10532_v61, %v2270_v49  ;;  %v10535_v3 = vld [vmem:[#allocation12_spill] sm:$0xff]  ;;  %v10536_v49 = vld [vmem:[#allocation109_spill] sm:$0xff] }
 0x7b6   : > { %6017 = vpow2.f32 %v1944_v23  ;;  %v1956_v23 = vmul.f32 1.442695, %v1841_v50  ;;  %v2660_v62 = vmul.f32 1.442695, %v2417_v24 }
 0x7b7   : > { %3366 = vperm.xlu0 %5683, %v8755_v13   ;;  %6019 = vpow2.f32 %v1948_v21  ;;  %v10530_v21 = vld [vmem:[#allocation21_spill] sm:$0xff] }
 0x7b9   : > { %v8773_v16 = vpop.eup %6011 }
 0x7ba   : > { %10522 = vst [vmem:[#allocation6_spill] sm:$0xff] %v8773_v16  ;;  %v8778_v48 = vpop.eup %6013 }
 0x7bb   : > { %3376 = vperm.xlu0 %5683, %v8760_v38   ;;  %10524 = vst [vmem:[#allocation169_spill] sm:$0xff] %v8778_v48  ;;  %v8783_v55 = vpop.eup %6015 }
 0x7bc   : > { %v2882_v2 = vpop.xlane.xlu0 %2881  ;;  %2284 = vperm.xlu1 %5684, %v10519_v52   ;;  %10526 = vst [vmem:[#allocation147_spill] sm:$0xff] %v8783_v55 }
 0x7bd   : > { %v3028_v0 = vadd.f32 %v2882_v2, %v2772_v37  ;;  %v1952_v37 = vmul.f32 1.442695, %v1839_v46  ;;  %v10527_v2 = vld [vmem:[#allocation105_spill] sm:$0xff]  ;;  %v2769_v46 = vmul.f32 %v10530_v21, %v2705_v14  ;;  %v10534_v14 = vld [vmem:[#allocation11_spill] sm:$0xff] }
 0x7bf   : > { %3093 = vst.msk [vmem:[#allocation3 + $0xb0] sm:$0xff] %vm3070_vm3, %v3028_v0  ;;  %3386 = vperm.xlu0 %5683, %v8767_v32   ;;  %v1843_v0 = vsub.f32 %v10527_v2, %v8169_v30  ;;  %6021 = vpow2.f32 %v1952_v37  ;;  %v1964_v30 = vmul.f32 1.442695, %v1845_v57  ;;  %v2658_v37 = vmul.f32 1.442695, %v2416_v1 }
 0x7c0   : > { %6023 = vpow2.f32 %v1956_v23 }
 0x7c1   : > { %v1960_v32 = vmul.f32 1.442695, %v1843_v0 }
 0x7c3   : > { %3396 = vperm.xlu0 %5683, %v8773_v16   ;;  %6025 = vpow2.f32 %v1960_v32  ;;  %v10538_v32 = vld [vmem:[#allocation120_spill] sm:$0xff] }
 0x7c4   : > { %6027 = vpow2.f32 %v1964_v30  ;;  %v1849_v1 = vsub.f32 %v10538_v32, %v8339_v63  ;;  %v10546_v32 = vld [vmem:[#allocation124_spill] sm:$0xff] }
 0x7c5   : > { %6029 = vpow2.f32 %v2658_v37 }
 0x7c6   : > { %6031 = vpow2.f32 %v2660_v62  ;;  %v10542_v62 = vld [vmem:[#allocation33_spill] sm:$0xff] }
 0x7c7   : > { %3406 = vperm.xlu0 %5683, %v8778_v48   ;;  %v8792_v48 = vpop.eup %6017 }
 0x7c8   : > { %10531 = vst [vmem:[#allocation156_spill] sm:$0xff] %v8792_v48  ;;  %v8797_v50 = vpop.eup %6019 }
 0x7c9   : > { %10533 = vst [vmem:[#allocation71_spill] sm:$0xff] %v8797_v50  ;;  %v8804_v57 = vpop.eup %6021 }
 0x7ca   : > { %10537 = vst [vmem:[#allocation121_spill] sm:$0xff] %v8804_v57 }
 0x7cb   : > { %3416 = vperm.xlu0 %5683, %v8783_v55   ;;  %v10563_v55 = vld [vmem:[#allocation83_spill] sm:$0xff] }
 0x7cc   : > { %v1840_v13 = vsub.f32 %v10563_v55, %v10457_v6  ;;  %v10567_v6 = vld [vmem:[#allocation87_spill] sm:$0xff] }
 0x7cd   : > { %v1842_v55 = vsub.f32 %v10567_v6, %v10468_v53 }
 0x7ce   : > { %v2873_v16 = vpop.xlane.xlu1 %2872 }
 0x7cf   : > { %v3025_v38 = vadd.f32 %v2873_v16, %v2769_v46  ;;  %3426 = vperm.xlu0 %5683, %v8792_v48   ;;  %v1847_v16 = vsub.f32 %v10536_v49, %v8286_v15  ;;  %v8809_v46 = vpop.eup %6023  ;;  %v1972_v15 = vmul.f32 1.442695, %v1849_v1  ;;  %v10547_v1 = vld [vmem:[#allocation122_spill] sm:$0xff] }
 0x7d0   : > { %10539 = vst [vmem:[#allocation72_spill] sm:$0xff] %v8809_v46  ;;  %v8812_v61 = vpop.eup %6025 }
 0x7d1   : > { %3090 = vst.msk [vmem:[#allocation3 + $0x98] sm:$0xff] %vm3070_vm3, %v3025_v38  ;;  %v1968_v38 = vmul.f32 1.442695, %v1847_v16  ;;  %10540 = vst [vmem:[#allocation13_spill] sm:$0xff] %v8812_v61  ;;  %v8814_v24 = vpop.eup %6027 }
 0x7d2   : > { %v2265_v2 = vpop.permute.xlu1 %2264  ;;  %10541 = vst [vmem:[#allocation69_spill] sm:$0xff] %v8814_v24  ;;  %v8816_v30 = vpop.eup %6029 }
 0x7d3   : > { %v2414_v47 = vsub.f32 %v10534_v14, %v2265_v2  ;;  %v2415_v21 = vsub.f32 %v10535_v3, %v2265_v2  ;;  %3436 = vperm.xlu0 %5683, %v8797_v50   ;;  %v8819_v37 = vpop.eup %6031  ;;  %v10543_v14 = vld [vmem:[#allocation119_spill] sm:$0xff] }
 0x7d5   : > { %v2654_v0 = vmul.f32 1.442695, %v2414_v47  ;;  %v2656_v23 = vmul.f32 1.442695, %v2415_v21  ;;  %v10544_v47 = vld [vmem:[#allocation117_spill] sm:$0xff] }
 0x7d6   : > { %v1822_v3 = vsub.f32 %v10544_v47, %v10543_v14 }
 0x7d7   : > { %6033 = vpow2.f32 %v2654_v0  ;;  %3446 = vperm.xlu0 %5683, %v8804_v57   ;;  %v10553_v57 = vld [vmem:[#allocation36_spill] sm:$0xff] }
 0x7d8   : > { %6035 = vpow2.f32 %v2656_v23 }
 0x7d9   : > { %6037 = vpow2.f32 %v1968_v38  ;;  %v1918_v38 = vmul.f32 1.442695, %v1822_v3  ;;  %v2280_v3 = vpop.permute.xlu0 %2279 }
 0x7da   : > { %6039 = vpow2.f32 %v1972_v15  ;;  %v1824_v15 = vsub.f32 %v10547_v1, %v10546_v32  ;;  %v10551_v1 = vld [vmem:[#allocation137_spill] sm:$0xff] }
 0x7db   : > { %3456 = vperm.xlu0 %5683, %v8809_v46   ;;  %6041 = vpow2.f32 %v1918_v38  ;;  %v2710_v46 = vld [vmem:[#allocation3 + $0xc0] sm:$0xff] }
 0x7dc   : > { %v2774_v50 = vmul.f32 %v10553_v57, %v2710_v46 }
 0x7df   : > { %3466 = vperm.xlu0 %5683, %v8812_v61   ;;  %v10550_v61 = vld [vmem:[#allocation126_spill] sm:$0xff] }
 0x7e0   : > { %2890 = vadd.xlane.f32.xlu1 %v10542_v62 }
 0x7e1   : > { %v6034_v63 = vpop.eup %6033 }
 0x7e2   : > { %v6036_v2 = vpop.eup %6035  ;;  %v3639_v21 = vpack.c.bf16 %v8816_v30, %v6034_v63 }
 0x7e3   : > { %3476 = vperm.xlu0 %5683, %v8814_v24   ;;  %v3640_v49 = vpack.c.bf16 %v8819_v37, %v6036_v2  ;;  %v8827_v16 = vadd.f32 %v6036_v2, %v6034_v63  ;;  %v8831_v23 = vpop.eup %6037  ;;  %v1922_v63 = vmul.f32 1.442695, %v1824_v15  ;;  %v10549_v2 = vld [vmem:[#allocation129_spill] sm:$0xff] }
 0x7e4   : > { %10545 = vst [vmem:[#allocation70_spill] sm:$0xff] %v8831_v23  ;;  %v8838_v24 = vpop.eup %6039  ;;  %v10555_v15 = vld [vmem:[#allocation145_spill] sm:$0xff] }
 0x7e5   : > { %v8829_v0 = vpop.f32.mrb[96].mxu1  ;;  %3999 = vmatprep.mubr.bf16.mxu1 %v3640_v49  ;;  %10548 = vst [vmem:[#allocation5_spill] sm:$0xff] %v8838_v24  ;;  %v1826_v49 = vsub.f32 %v10550_v61, %v10549_v2  ;;  %6043 = vpow2.f32 %v1922_v63  ;;  %v1830_v48 = vsub.f32 %v10555_v15, %v7765_v34  ;;  %v8849_v2 = vpop.eup %6041  ;;  %v10557_v34 = vld [vmem:[#allocation155_spill] sm:$0xff] }
 0x7e6   : > { %v3971_v62 = vpop.f32.mrb[97].mxu1  ;;  %4000 = vmatmul.mubr.bf16.gmra.mrb[112].mxu1 %v3639_v21  ;;  %v10552_v21 = vld [vmem:[#allocation136_spill] sm:$0xff] }
 0x7e7   : > { %v8835_v14 = vpop.f32.mrb[98].mxu1  ;;  %3486 = vperm.xlu0 %5683, %v8831_v23   ;;  %v1926_v32 = vmul.f32 1.442695, %v1826_v49  ;;  %v1828_v62 = vsub.f32 %v10552_v21, %v10551_v1  ;;  %v1934_v63 = vmul.f32 1.442695, %v1830_v48  ;;  %v10556_v49 = vld [vmem:[#allocation146_spill] sm:$0xff] }
 0x7e8   : > { %v3974_v47 = vpop.f32.mrb[99].mxu1  ;;  %v1832_v57 = vsub.f32 %v10556_v49, %v7772_v33  ;;  %v10558_v48 = vld [vmem:[#allocation8_spill] sm:$0xff]  ;;  %v10561_v49 = vld [vmem:[#allocation25_spill] sm:$0xff] }
 0x7e9   : > { %v10554_v47 = vld [vmem:[#allocation108_spill] sm:$0xff]  ;;  %6045 = vpow2.f32 %v1926_v32  ;;  %v1930_v38 = vmul.f32 1.442695, %v1828_v62  ;;  %v1836_v21 = vsub.f32 %v10558_v48, %v10432_v40  ;;  %v2707_v62 = vld [vmem:[#allocation3 + $0xa8] sm:$0xff] }
 0x7ea   : > { %v1938_v32 = vmul.f32 1.442695, %v1832_v57  ;;  %v2771_v57 = vmul.f32 %v10561_v49, %v2707_v62  ;;  %v10565_v62 = vld [vmem:[#allocation15_spill] sm:$0xff] }
 0x7eb   : > { %3496 = vperm.xlu0 %5683, %v8838_v24   ;;  %6047 = vpow2.f32 %v1930_v38  ;;  %v10559_v38 = vld [vmem:[#allocation81_spill] sm:$0xff] }
 0x7ec   : > { %6049 = vpow2.f32 %v1934_v63  ;;  %v1838_v15 = vsub.f32 %v10559_v38, %v10444_v41 }
 0x7ed   : > { %6051 = vpow2.f32 %v1938_v32 }
 0x7ee   : > { %v1950_v48 = vmul.f32 1.442695, %v1838_v15 }
 0x7ef   : > { %v8855_v46 = vpop.eup %6043 }
 0x7f1   : > { %v2888_v23 = vpop.xlane.xlu0 %2887  ;;  %2294 = vperm.xlu1 %5684, %v10554_v47  }
 0x7f2   : > { %v3030_v61 = vadd.f32 %v2888_v23, %v2774_v50  ;;  %v1834_v50 = vsub.f32 %v10557_v34, %v10420_v11  ;;  %v10560_v11 = vld [vmem:[#allocation171_spill] sm:$0xff]  ;;  %v10562_v34 = vld [vmem:[#allocation172_spill] sm:$0xff] }
 0x7f3   : > { %v8860_v23 = vpop.eup %6045  ;;  %v2420_v63 = vsub.f32 %v10560_v11, %v2280_v3  ;;  %v2421_v32 = vsub.f32 %v10562_v34, %v2280_v3  ;;  %v10566_v11 = vld [vmem:[#allocation16_spill] sm:$0xff]  ;;  %v10569_v34 = vld [vmem:[#allocation110_spill] sm:$0xff] }
 0x7f4   : > { %3095 = vst.msk [vmem:[#allocation3 + $0xc0] sm:$0xff] %vm3070_vm3, %v3030_v61  ;;  %v1942_v1 = vmul.f32 1.442695, %v1834_v50  ;;  %v1946_v61 = vmul.f32 1.442695, %v1836_v21 }
 0x7f5   : > { %3361 = vperm.xlu1 %5684, %v8849_v2   ;;  %v8865_v33 = vpop.eup %6047  ;;  %v2666_v41 = vmul.f32 1.442695, %v2420_v63 }
 0x7f6   : > { %6053 = vpow2.f32 %v1942_v1  ;;  %v8873_v24 = vpop.eup %6049  ;;  %v2668_v1 = vmul.f32 1.442695, %v2421_v32  ;;  %v1851_v32 = vsub.f32 %v10569_v34, %v8381_v29 }
 0x7f7   : > { %6055 = vpow2.f32 %v1946_v61  ;;  %v8879_v38 = vpop.eup %6051 }
 0x7f8   : > { %10564 = vst [vmem:[#allocation173_spill] sm:$0xff] %v8879_v38  ;;  %6057 = vpow2.f32 %v1950_v48  ;;  %v1976_v48 = vmul.f32 1.442695, %v1851_v32 }
 0x7f9   : > { %3371 = vperm.xlu1 %5684, %v8855_v46   ;;  %6059 = vpow2.f32 %v2666_v41  ;;  %v10572_v41 = vld [vmem:[#allocation26_spill] sm:$0xff] }
 0x7fa   : > { %6061 = vpow2.f32 %v2668_v1  ;;  %v1846_v1 = vsub.f32 %v10572_v41, %v8206_v7  ;;  %v2712_v41 = vld [vmem:[#allocation3 + $0xd0] sm:$0xff] }
 0x7fd   : > { %3381 = vperm.xlu1 %5684, %v8860_v23  }
 0x800   : > { %v8887_v63 = vpop.eup %6053 }
 0x801   : > { %3391 = vperm.xlu1 %5684, %v8865_v33   ;;  %10568 = vst [vmem:[#allocation157_spill] sm:$0xff] %v8887_v63 }
 0x803   : > { %v2879_v50 = vpop.xlane.xlu1 %2878 }
 0x804   : > { %v3027_v40 = vadd.f32 %v2879_v50, %v2771_v57  ;;  %v1954_v57 = vmul.f32 1.442695, %v1840_v13  ;;  %v1958_v13 = vmul.f32 1.442695, %v1842_v55  ;;  %v10570_v50 = vld [vmem:[#allocation22_spill] sm:$0xff] }
 0x805   : > { %3401 = vperm.xlu1 %5684, %v8873_v24   ;;  %v1844_v53 = vsub.f32 %v10570_v50, %v10480_v28 }
 0x806   : > { %3092 = vst.msk [vmem:[#allocation3 + $0xa8] sm:$0xff] %vm3070_vm3, %v3027_v40  ;;  %v8894_v40 = vpop.eup %6055 }
 0x807   : > { %v2275_v21 = vpop.permute.xlu1 %2274  ;;  %10571 = vst [vmem:[#allocation79_spill] sm:$0xff] %v8894_v40 }
 0x808   : > { %v2418_v3 = vsub.f32 %v10565_v62, %v2275_v21  ;;  %v2419_v49 = vsub.f32 %v10566_v11, %v2275_v21  ;;  %v8899_v21 = vpop.eup %6057  ;;  %v10574_v11 = vld [vmem:[#allocation31_spill] sm:$0xff] }
 0x809   : > { %3411 = vperm.xlu1 %5684, %v8879_v38   ;;  %10573 = vst [vmem:[#allocation75_spill] sm:$0xff] %v8899_v21  ;;  %v8901_v29 = vpop.eup %6059 }
 0x80a   : > { %v2662_v15 = vmul.f32 1.442695, %v2418_v3  ;;  %v2664_v61 = vmul.f32 1.442695, %v2419_v49  ;;  %2899 = vadd.xlane.f32.xlu0 %v8457_v39  ;;  %v1962_v39 = vmul.f32 1.442695, %v1844_v53  ;;  %v8903_v62 = vpop.eup %6061  ;;  %v1848_v49 = vsub.f32 %v10574_v11, %v8260_v42 }
 0x80b   : > { %v1966_v3 = vmul.f32 1.442695, %v1846_v1 }
 0x80c   : > { %6063 = vpow2.f32 %v2662_v15 }
 0x80d   : > { %6065 = vpow2.f32 %v2664_v61  ;;  %3421 = vperm.xlu1 %5684, %v8887_v63   ;;  %v1970_v61 = vmul.f32 1.442695, %v1848_v49  ;;  %v3170_v63 = vld [vmem:[#allocation4 + $0x118] sm:$0xff] }
 0x80e   : > { %6067 = vpow2.f32 %v1954_v57 }
 0x80f   : > { %6069 = vpow2.f32 %v1958_v13 }
 0x810   : > { %6071 = vpow2.f32 %v1976_v48 }
 0x811   : > { %3431 = vperm.xlu1 %5684, %v8894_v40   ;;  %6073 = vpow2.f32 %v1962_v39  ;;  %v2290_v39 = vpop.permute.xlu0 %2289 }
 0x812   : > { %6075 = vpow2.f32 %v1966_v3 }
 0x813   : > { %6077 = vpow2.f32 %v1970_v61 }
 0x815   : > { %3441 = vperm.xlu1 %5684, %v8899_v21   ;;  %v10586_v21 = vld [vmem:[#allocation176_spill] sm:$0xff] }
 0x816   : > { %v6064_v28 = vpop.eup %6063  ;;  %v2425_v61 = vsub.f32 %v10586_v21, %v2290_v39  ;;  %v10588_v21 = vld [vmem:[#allocation20_spill] sm:$0xff] }
 0x817   : > { %v6066_v57 = vpop.eup %6065  ;;  %v3641_v6 = vpack.c.bf16 %v8901_v29, %v6064_v28 }
 0x818   : > { %v8909_v55 = vpop.eup %6067  ;;  %v3642_v7 = vpack.c.bf16 %v8903_v62, %v6066_v57  ;;  %v8912_v15 = vadd.f32 %v6066_v57, %v6064_v28  ;;  %v10580_v28 = vld [vmem:[#allocation111_spill] sm:$0xff] }
 0x819   : > { %10575 = vst [vmem:[#allocation135_spill] sm:$0xff] %v8909_v55  ;;  %3451 = vperm.xlu1 %5684, %v8909_v55   ;;  %v8917_v13 = vpop.eup %6069  ;;  %v2776_v3 = vmul.f32 %v10580_v28, %v2712_v41  ;;  %v3168_v41 = vld [vmem:[#allocation4 + $0x108] sm:$0xff]  ;;  %v2709_v28 = vld [vmem:[#allocation3 + $0xb8] sm:$0xff] }
 0x81a   : > { %v8915_v34 = vpop.f32.mrb[100].mxu1  ;;  %4007 = vmatprep.mubr.bf16.mxu1 %v3642_v7  ;;  %10576 = vst [vmem:[#allocation76_spill] sm:$0xff] %v8917_v13  ;;  %v8922_v53 = vpop.eup %6071  ;;  %v10582_v7 = vld [vmem:[#allocation27_spill] sm:$0xff] }
 0x81b   : > { %v3979_v32 = vpop.f32.mrb[101].mxu1  ;;  %4008 = vmatmul.mubr.bf16.gmra.mrb[116].mxu1 %v3641_v6  ;;  %10577 = vst [vmem:[#allocation17_spill] sm:$0xff] %v8922_v53  ;;  %v8924_v48 = vpop.eup %6073 }
 0x81c   : > { %v8919_v42 = vpop.f32.mrb[102].mxu1  ;;  %10578 = vst [vmem:[#allocation73_spill] sm:$0xff] %v8924_v48  ;;  %v8928_v1 = vpop.eup %6075  ;;  %v10583_v32 = vld [vmem:[#allocation28_spill] sm:$0xff] }
 0x81d   : > { %v3982_v50 = vpop.f32.mrb[103].mxu1  ;;  %3461 = vperm.xlu1 %5684, %v8917_v13   ;;  %10579 = vst [vmem:[#allocation74_spill] sm:$0xff] %v8928_v1  ;;  %v8932_v57 = vpop.eup %6077  ;;  %v10585_v13 = vld [vmem:[#allocation95_spill] sm:$0xff] }
 0x81e   : > { %10581 = vst [vmem:[#allocation166_spill] sm:$0xff] %v8932_v57  ;;  %v2773_v55 = vmul.f32 %v10585_v13, %v2709_v28  ;;  %v10587_v13 = vld [vmem:[#allocation19_spill] sm:$0xff] }
 0x820   : > { %3506 = vperm.xlu0 %5683, %v8922_v53   ;;  %v3166_v53 = vld [vmem:[#allocation4 + $0xf8] sm:$0xff] }
 0x821   : > { %3471 = vperm.xlu1 %5684, %v8924_v48   ;;  %v10584_v48 = vld [vmem:[#allocation175_spill] sm:$0xff] }
 0x825   : > { %3481 = vperm.xlu1 %5684, %v8928_v1  }
 0x826   : > { %v2894_v11 = vpop.xlane.xlu0 %2893 }
 0x827   : > { %v3032_v49 = vadd.f32 %v2894_v11, %v2776_v3 }
 0x829   : > { %3097 = vst.msk [vmem:[#allocation3 + $0xd0] sm:$0xff] %vm3070_vm3, %v3032_v49  ;;  %3491 = vperm.xlu1 %5684, %v8932_v57   ;;  %v2424_v49 = vsub.f32 %v10584_v48, %v2290_v39  ;;  %v2676_v48 = vmul.f32 1.442695, %v2425_v61  ;;  %v3176_v61 = vld [vmem:[#allocation4 + $0x148] sm:$0xff] }
 0x82e   : > { %v8936_v6 = vpop.permute.xlu0 %2299 }
 0x832   : > { %v3357_v10 = vpop.permute.xlu0 %3356 }
 0x833   : > { %v3550_v1 = vmul.f32 %v3357_v10, %v3166_v53  ;;  %v2674_v53 = vmul.f32 1.442695, %v2424_v49 }
 0x835   : > { %v4063_v3 = vadd.f32 %v8595_v20, %v3550_v1  ;;  %6079 = vpow2.f32 %v2674_v53 }
 0x836   : > { %v3367_v11 = vpop.permute.xlu0 %3366  ;;  %6081 = vpow2.f32 %v2676_v48 }
 0x837   : > { %4127 = vst.msk [vmem:[#allocation4 + $0xf8] sm:$0xff] %vm972_vm2, %v4063_v3  ;;  %v3552_v57 = vmul.f32 %v3367_v11, %v3168_v41  ;;  %v3172_v3 = vld [vmem:[#allocation4 + $0x128] sm:$0xff] }
 0x838   : > { %v2885_v40 = vpop.xlane.xlu1 %2884 }
 0x839   : > { %v4065_v50 = vadd.f32 %v8600_v36, %v3552_v57  ;;  %v3029_v38 = vadd.f32 %v2885_v40, %v2773_v55 }
 0x83a   : > { %v3377_v10 = vpop.permute.xlu0 %3376 }
 0x83b   : > { %4129 = vst.msk [vmem:[#allocation4 + $0x108] sm:$0xff] %vm972_vm2, %v4065_v50  ;;  %v3554_v20 = vmul.f32 %v3377_v10, %v3170_v63 }
 0x83c   : > { %3094 = vst.msk [vmem:[#allocation3 + $0xb8] sm:$0xff] %vm3070_vm3, %v3029_v38  ;;  %v2285_v1 = vpop.permute.xlu1 %2284  ;;  %v3174_v38 = vld [vmem:[#allocation4 + $0x138] sm:$0xff] }
 0x83d   : > { %v4067_v41 = vadd.f32 %v8613_v27, %v3554_v20  ;;  %v2422_v28 = vsub.f32 %v10587_v13, %v2285_v1  ;;  %v2423_v39 = vsub.f32 %v10588_v21, %v2285_v1  ;;  %v3180_v13 = vld [vmem:[#allocation4 + $0x168] sm:$0xff]  ;;  %v10590_v21 = vld [vmem:[#allocation113_spill] sm:$0xff] }
 0x83e   : > { %v3387_v11 = vpop.permute.xlu0 %3386 }
 0x83f   : > { %4131 = vst.msk [vmem:[#allocation4 + $0x118] sm:$0xff] %vm972_vm2, %v4067_v41  ;;  %v2670_v36 = vmul.f32 1.442695, %v2422_v28  ;;  %v2672_v40 = vmul.f32 1.442695, %v2423_v39  ;;  %v3556_v55 = vmul.f32 %v3387_v11, %v3172_v3  ;;  %2905 = vadd.xlane.f32.xlu0 %v8476_v56  ;;  %v3178_v56 = vld [vmem:[#allocation4 + $0x158] sm:$0xff]  ;;  %v8961_v53 = vpop.eup %6079 }
 0x840   : > { %v8964_v20 = vpop.eup %6081 }
 0x841   : > { %6083 = vpow2.f32 %v2670_v36  ;;  %v4069_v63 = vadd.f32 %v8618_v8, %v3556_v55  ;;  %v3182_v55 = vld [vmem:[#allocation4 + $0x178] sm:$0xff] }
 0x842   : > { %6085 = vpow2.f32 %v2672_v40  ;;  %v3397_v27 = vpop.permute.xlu0 %3396 }
 0x843   : > { %4133 = vst.msk [vmem:[#allocation4 + $0x128] sm:$0xff] %vm972_vm2, %v4069_v63  ;;  %v3558_v57 = vmul.f32 %v3397_v27, %v3174_v38  ;;  %2911 = vadd.xlane.f32.xlu0 %v8488_v4  ;;  %v10589_v4 = vld [vmem:[#allocation100_spill] sm:$0xff] }
 0x844   : > { %v1850_v3 = vsub.f32 %v10589_v4, %v10519_v52  ;;  %v10591_v4 = vld [vmem:[#allocation64_spill] sm:$0xff] }
 0x845   : > { %v4071_v50 = vadd.f32 %v8642_v12, %v3558_v57 }
 0x846   : > { %v3407_v49 = vpop.permute.xlu0 %3406  ;;  %v1974_v36 = vmul.f32 1.442695, %v1850_v3  ;;  %v10592_v3 = vld [vmem:[#allocation62_spill] sm:$0xff] }
 0x847   : > { %4135 = vst.msk [vmem:[#allocation4 + $0x138] sm:$0xff] %vm972_vm2, %v4071_v50  ;;  %v3560_v10 = vmul.f32 %v3407_v49, %v3176_v61  ;;  %2917 = vadd.xlane.f32.xlu0 %v8496_v26  ;;  %v3184_v61 = vld [vmem:[#allocation4 + $0x188] sm:$0xff] }
 0x848   : > { %6087 = vpow2.f32 %v1974_v36 }
 0x849   : > { %v4073_v8 = vadd.f32 %v8666_v59, %v3560_v10  ;;  %v3186_v10 = vld [vmem:[#allocation4 + $0x198] sm:$0xff] }
 0x84a   : > { %v3417_v48 = vpop.permute.xlu0 %3416 }
 0x84b   : > { %v6084_v1 = vpop.eup %6083  ;;  %4137 = vst.msk [vmem:[#allocation4 + $0x148] sm:$0xff] %vm972_vm2, %v4073_v8  ;;  %v3562_v12 = vmul.f32 %v3417_v48, %v3178_v56  ;;  %2923 = vadd.xlane.f32.xlu0 %v8502_v17  ;;  %v3188_v48 = vld [vmem:[#allocation4 + $0x1a8] sm:$0xff] }
 0x84c   : > { %v6086_v41 = vpop.eup %6085  ;;  %v3643_v26 = vpack.c.bf16 %v8961_v53, %v6084_v1 }
 0x84d   : > { %v4075_v28 = vadd.f32 %v8690_v19, %v3562_v12  ;;  %2896 = vadd.xlane.f32.xlu1 %v10590_v21  ;;  %v3644_v59 = vpack.c.bf16 %v8964_v20, %v6086_v41  ;;  %v8974_v39 = vadd.f32 %v6086_v41, %v6084_v1  ;;  %v10593_v12 = vld [vmem:[#allocation32_spill] sm:$0xff] }
 0x84e   : > { %v3427_v11 = vpop.permute.xlu0 %3426 }
 0x84f   : > { %4139 = vst.msk [vmem:[#allocation4 + $0x158] sm:$0xff] %vm972_vm2, %v4075_v28  ;;  %v3564_v52 = vmul.f32 %v3427_v11, %v3180_v13  ;;  %v8977_v40 = vpop.f32.mrb[104].mxu1  ;;  %4015 = vmatprep.mubr.bf16.mxu1 %v3644_v59  ;;  %2929 = vadd.xlane.f32.xlu0 %v8529_v60  ;;  %v10595_v28 = vsub.f32 %v10583_v32, %v8936_v6  ;;  %v10596_v11 = vld [vmem:[#allocation23_spill] sm:$0xff]  ;;  %v10598_v32 = vld [vmem:[#allocation52_spill] sm:$0xff] }
 0x850   : > { %v3987_v17 = vpop.f32.mrb[105].mxu1  ;;  %4016 = vmatmul.mubr.bf16.gmra.mrb[120].mxu1 %v3643_v26  ;;  %v10594_v26 = vsub.f32 %v10582_v7, %v8936_v6  ;;  %v3169_v6 = vld [vmem:[#allocation4 + $0x110] sm:$0xff] }
 0x851   : > { %v4077_v19 = vadd.f32 %v8714_v51, %v3564_v52  ;;  %v3988_v38 = vpop.f32.mrb[106].mxu1  ;;  %v2684_v21 = vmul.f32 1.442695, %v10595_v28  ;;  %v3167_v17 = vld [vmem:[#allocation4 + $0x100] sm:$0xff]  ;;  %v10604_v28 = vld [vmem:[#allocation116_spill] sm:$0xff] }
 0x852   : > { %v3990_v63 = vpop.f32.mrb[107].mxu1  ;;  %v3437_v27 = vpop.permute.xlu0 %3436 }
 0x853   : > { %4141 = vst.msk [vmem:[#allocation4 + $0x168] sm:$0xff] %vm972_vm2, %v4077_v19  ;;  %v3566_v57 = vmul.f32 %v3437_v27, %v3182_v55  ;;  %2935 = vadd.xlane.f32.xlu0 %v8553_v35  ;;  %v8989_v35 = vpop.eup %6087 }
 0x855   : > { %v4079_v50 = vadd.f32 %v8750_v5, %v3566_v57  ;;  %v10599_v57 = vld [vmem:[#allocation50_spill] sm:$0xff] }
 0x856   : > { %v3447_v49 = vpop.permute.xlu0 %3446 }
 0x857   : > { %4143 = vst.msk [vmem:[#allocation4 + $0x178] sm:$0xff] %vm972_vm2, %v4079_v50  ;;  %v3568_v60 = vmul.f32 %v3447_v49, %v3184_v61  ;;  %2941 = vadd.xlane.f32.xlu0 %v8577_v9 }
 0x859   : > { %v4081_v51 = vadd.f32 %v8835_v14, %v3568_v60 }
 0x85a   : > { %v3457_v56 = vpop.permute.xlu0 %3456 }
 0x85b   : > { %4145 = vst.msk [vmem:[#allocation4 + $0x188] sm:$0xff] %vm972_vm2, %v4081_v51  ;;  %v3570_v8 = vmul.f32 %v3457_v56, %v3186_v10  ;;  %2947 = vadd.xlane.f32.xlu0 %v8611_v44  ;;  %v2711_v44 = vld [vmem:[#allocation3 + $0xc8] sm:$0xff]  ;;  %v10600_v56 = vld [vmem:[#allocation55_spill] sm:$0xff] }
 0x85d   : > { %v4083_v5 = vadd.f32 %v8919_v42, %v3570_v8  ;;  %v2775_v42 = vmul.f32 %v10593_v12, %v2711_v44 }
 0x85e   : > { %v3467_v1 = vpop.permute.xlu0 %3466  ;;  %3501 = vperm.xlu1 %5684, %v8989_v35  }
 0x85f   : > { %4147 = vst.msk [vmem:[#allocation4 + $0x198] sm:$0xff] %vm972_vm2, %v4083_v5  ;;  %v3572_v9 = vmul.f32 %v3467_v1, %v3188_v48  ;;  %2953 = vadd.xlane.f32.xlu0 %v8637_v18  ;;  %v2682_v18 = vmul.f32 1.442695, %v10594_v26  ;;  %v10601_v48 = vld [vmem:[#allocation39_spill] sm:$0xff]  ;;  %v10602_v5 = vld [vmem:[#allocation40_spill] sm:$0xff] }
 0x860   : > { %v2901_v1 = vadd.f32 %v10602_v5, %v10601_v48 }
 0x861   : > { %v4085_v14 = vadd.f32 %v3988_v38, %v3572_v9  ;;  %6089 = vpow2.f32 %v2682_v18 }
 0x862   : > { %6091 = vpow2.f32 %v2684_v21  ;;  %v10605_v21 = vld [vmem:[#allocation114_spill] sm:$0xff] }
 0x863   : > { %4149 = vst.msk [vmem:[#allocation4 + $0x1a8] sm:$0xff] %vm972_vm2, %v4085_v14  ;;  %2959 = vadd.xlane.f32.xlu0 %v10591_v4  ;;  %v3190_v4 = vld [vmem:[#allocation4 + $0x1b8] sm:$0xff] }
 0x867   : > { %2965 = vadd.xlane.f32.xlu0 %v10592_v3  ;;  %v3477_v3 = vpop.permute.xlu0 %3476 }
 0x86b   : > { %2971 = vadd.xlane.f32.xlu0 %v8709_v43  ;;  %v10597_v43 = vld [vmem:[#allocation24_spill] sm:$0xff]  ;;  %v9016_v49 = vpop.eup %6089  ;;  %v9043_v48 = vpop.permute.xlu0 %3486 }
 0x86c   : > { %v9019_v10 = vpop.eup %6091 }
 0x86d   : > { %v2891_v41 = vpop.xlane.xlu1 %2890 }
 0x86e   : > { %v3031_v13 = vadd.f32 %v2891_v41, %v2775_v42  ;;  %v3175_v41 = vld [vmem:[#allocation4 + $0x140] sm:$0xff] }
 0x86f   : > { %2977 = vadd.xlane.f32.xlu0 %v8741_v22 }
 0x870   : > { %3096 = vst.msk [vmem:[#allocation3 + $0xc8] sm:$0xff] %vm3070_vm3, %v3031_v13  ;;  %v10603_v13 = vld [vmem:[#allocation54_spill] sm:$0xff] }
 0x871   : > { %v2295_v59 = vpop.permute.xlu1 %2294 }
 0x872   : > { %v2426_v36 = vsub.f32 %v10596_v11, %v2295_v59  ;;  %v2427_v52 = vsub.f32 %v10597_v43, %v2295_v59  ;;  %v2907_v59 = vadd.f32 %v10605_v21, %v10604_v28  ;;  %v3574_v11 = vmul.f32 %v3477_v3, %v3190_v4  ;;  %v10614_v4 = vld [vmem:[#allocation42_spill] sm:$0xff]  ;;  %v10615_v28 = vld [vmem:[#allocation47_spill] sm:$0xff]  ;;  %v10616_v21 = vld [vmem:[#allocation48_spill] sm:$0xff] }
 0x873   : > { %2983 = vadd.xlane.f32.xlu0 %v8827_v16  ;;  %v3171_v16 = vld [vmem:[#allocation4 + $0x120] sm:$0xff] }
 0x874   : > { %v2678_v22 = vmul.f32 1.442695, %v2426_v36  ;;  %v2680_v55 = vmul.f32 1.442695, %v2427_v52 }
 0x875   : > { %v3362_v7 = vpop.permute.xlu1 %3361 }
 0x876   : > { %6093 = vpow2.f32 %v2678_v22  ;;  %v3551_v19 = vmul.f32 %v3362_v7, %v3167_v17  ;;  %v10606_v22 = vld [vmem:[#allocation112_spill] sm:$0xff] }
 0x877   : > { %6095 = vpow2.f32 %v2680_v55  ;;  %2989 = vadd.xlane.f32.xlu0 %v8912_v15  ;;  %v3173_v15 = vld [vmem:[#allocation4 + $0x130] sm:$0xff]  ;;  %v1853_v55 = vsub.f32 %v10606_v22, %v8415_v31 }
 0x878   : > { %v4064_v38 = vadd.f32 %v10598_v32, %v3551_v19  ;;  %v10607_v32 = vld [vmem:[#allocation57_spill] sm:$0xff]  ;;  %v10611_v31 = vld [vmem:[#allocation43_spill] sm:$0xff] }
 0x879   : > { %v3372_v63 = vpop.permute.xlu1 %3371 }
 0x87a   : > { %4128 = vst.msk [vmem:[#allocation4 + $0x100] sm:$0xff] %vm972_vm2, %v4064_v38  ;;  %v3553_v27 = vmul.f32 %v3372_v63, %v3169_v6  ;;  %v3177_v6 = vld [vmem:[#allocation4 + $0x150] sm:$0xff]  ;;  %v10608_v63 = vld [vmem:[#allocation37_spill] sm:$0xff] }
 0x87b   : > { %2995 = vadd.xlane.f32.xlu0 %v8974_v39 }
 0x87c   : > { %v4066_v61 = vadd.f32 %v10599_v57, %v3553_v27  ;;  %v10609_v27 = vld [vmem:[#allocation38_spill] sm:$0xff] }
 0x87d   : > { %v3382_v50 = vpop.permute.xlu1 %3381 }
 0x87e   : > { %4130 = vst.msk [vmem:[#allocation4 + $0x110] sm:$0xff] %vm972_vm2, %v4066_v61  ;;  %v3555_v60 = vmul.f32 %v3382_v50, %v3171_v16  ;;  %v2913_v16 = vadd.f32 %v10609_v27, %v10608_v63  ;;  %v1980_v50 = vmul.f32 1.442695, %v1853_v55  ;;  %v3187_v63 = vld [vmem:[#allocation4 + $0x1a0] sm:$0xff] }
 0x880   : > { %v6094_v51 = vpop.eup %6093  ;;  %v4068_v8 = vadd.f32 %v10600_v56, %v3555_v60  ;;  %v3179_v60 = vld [vmem:[#allocation4 + $0x160] sm:$0xff]  ;;  %v10612_v56 = vld [vmem:[#allocation44_spill] sm:$0xff]  ;;  %6097 = vpow2.f32 %v1980_v50 }
 0x881   : > { %v6096_v9 = vpop.eup %6095  ;;  %v3392_v39 = vpop.permute.xlu1 %3391  ;;  %v3645_v14 = vpack.c.bf16 %v9016_v49, %v6094_v51 }
 0x882   : > { %4132 = vst.msk [vmem:[#allocation4 + $0x120] sm:$0xff] %vm972_vm2, %v4068_v8  ;;  %v3557_v44 = vmul.f32 %v3392_v39, %v3173_v15  ;;  %2902 = vadd.xlane.f32.xlu1 %v2901_v1  ;;  %v3646_v12 = vpack.c.bf16 %v9019_v10, %v6096_v9  ;;  %v3000_v42 = vadd.f32 %v6096_v9, %v6094_v51  ;;  %v10610_v15 = vld [vmem:[#allocation63_spill] sm:$0xff] }
 0x883   : > { %v2919_v8 = vadd.f32 %v10612_v56, %v10611_v31  ;;  %v3181_v9 = vld [vmem:[#allocation4 + $0x170] sm:$0xff]  ;;  %v10623_v31 = vld [vmem:[#allocation49_spill] sm:$0xff] }
 0x884   : > { %v4070_v26 = vadd.f32 %v10603_v13, %v3557_v44  ;;  %v9028_v18 = vpop.f32.mrb[108].mxu1  ;;  %4023 = vmatprep.mubr.bf16.mxu1 %v3646_v12  ;;  %3001 = vadd.xlane.f32.xlu0 %v3000_v42  ;;  %v9050_v42 = vpop.permute.xlu0 %3496  ;;  %v2714_v13 = vld [vmem:[#allocation3 + $0xe0] sm:$0xff] }
 0x885   : > { %v3995_v36 = vpop.f32.mrb[109].mxu1  ;;  %4024 = vmatmul.mubr.bf16.gmra.mrb[124].mxu1 %v3645_v14  ;;  %v3402_v43 = vpop.permute.xlu1 %3401  ;;  %v10613_v14 = vld [vmem:[#allocation41_spill] sm:$0xff] }
 0x886   : > { %4134 = vst.msk [vmem:[#allocation4 + $0x130] sm:$0xff] %vm972_vm2, %v4070_v26  ;;  %v3996_v52 = vpop.f32.mrb[110].mxu1  ;;  %v3559_v17 = vmul.f32 %v3402_v43, %v3175_v41  ;;  %2908 = vadd.xlane.f32.xlu1 %v2907_v59  ;;  %v2925_v3 = vadd.f32 %v10614_v4, %v10613_v14  ;;  %v3183_v41 = vld [vmem:[#allocation4 + $0x180] sm:$0xff]  ;;  %v2931_v59 = vadd.f32 %v10616_v21, %v10615_v28  ;;  %v10626_v14 = vld [vmem:[#allocation59_spill] sm:$0xff]  ;;  %v10627_v4 = vld [vmem:[#allocation60_spill] sm:$0xff] }
 0x887   : > { %v4087_v7 = vadd.f32 %v3996_v52, %v3574_v11  ;;  %v3998_v19 = vpop.f32.mrb[111].mxu1  ;;  %v10617_v36 = vld [vmem:[#allocation125_spill] sm:$0xff] }
 0x888   : > { %v4072_v38 = vadd.f32 %v10607_v32, %v3559_v17  ;;  %v2778_v43 = vmul.f32 %v10617_v36, %v2714_v13  ;;  %v3185_v17 = vld [vmem:[#allocation4 + $0x190] sm:$0xff]  ;;  %v10619_v19 = vld [vmem:[#allocation46_spill] sm:$0xff]  ;;  %v3191_v28 = vld [vmem:[#allocation4 + $0x1c0] sm:$0xff] }
 0x889   : > { %4151 = vst.msk [vmem:[#allocation4 + $0x1b8] sm:$0xff] %vm972_vm2, %v4087_v7  ;;  %v3412_v57 = vpop.permute.xlu1 %3411  ;;  %v10618_v7 = vld [vmem:[#allocation45_spill] sm:$0xff]  ;;  %v10631_v13 = vld [vmem:[#allocation94_spill] sm:$0xff] }
 0x88a   : > { %4136 = vst.msk [vmem:[#allocation4 + $0x140] sm:$0xff] %vm972_vm2, %v4072_v38  ;;  %v3561_v61 = vmul.f32 %v3412_v57, %v3177_v6  ;;  %2914 = vadd.xlane.f32.xlu1 %v2913_v16  ;;  %v2937_v6 = vadd.f32 %v10619_v19, %v10618_v7  ;;  %v9060_v32 = vpop.eup %6097  ;;  %v10620_v16 = vld [vmem:[#allocation99_spill] sm:$0xff] }
 0x88c   : > { %v4074_v51 = vadd.f32 %v10610_v15, %v3561_v61 }
 0x88d   : > { %v3422_v5 = vpop.permute.xlu1 %3421 }
 0x88e   : > { %4138 = vst.msk [vmem:[#allocation4 + $0x150] sm:$0xff] %vm972_vm2, %v4074_v51  ;;  %v3563_v1 = vmul.f32 %v3422_v5, %v3179_v60  ;;  %2920 = vadd.xlane.f32.xlu1 %v2919_v8  ;;  %v3189_v60 = vld [vmem:[#allocation4 + $0x1b0] sm:$0xff] }
 0x88f   : > { %v10622_v51 = vld [vmem:[#allocation127_spill] sm:$0xff] }
 0x890   : > { %v4076_v39 = vadd.f32 %v8712_v54, %v3563_v1  ;;  %v2949_v56 = vadd.f32 %v10623_v31, %v10622_v51  ;;  %v10624_v1 = vld [vmem:[#allocation56_spill] sm:$0xff]  ;;  %v2724_v51 = vld [vmem:[#allocation3 + $0x130] sm:$0xff] }
 0x891   : > { %v3432_v44 = vpop.permute.xlu1 %3431 }
 0x892   : > { %4140 = vst.msk [vmem:[#allocation4 + $0x160] sm:$0xff] %vm972_vm2, %v4076_v39  ;;  %v3565_v12 = vmul.f32 %v3432_v44, %v3181_v9  ;;  %2926 = vadd.xlane.f32.xlu1 %v2925_v3  ;;  %v10625_v9 = vld [vmem:[#allocation53_spill] sm:$0xff]  ;;  %v2961_v3 = vadd.f32 %v10627_v4, %v10626_v14  ;;  %v2728_v4 = vld [vmem:[#allocation3 + $0x150] sm:$0xff] }
 0x893   : > { %v2955_v39 = vadd.f32 %v10625_v9, %v10624_v1  ;;  %v10629_v44 = vld [vmem:[#allocation61_spill] sm:$0xff] }
 0x894   : > { %v4078_v26 = vadd.f32 %v8746_v25, %v3565_v12  ;;  %v2726_v9 = vld [vmem:[#allocation3 + $0x140] sm:$0xff] }
 0x895   : > { %v3442_v11 = vpop.permute.xlu1 %3441 }
 0x896   : > { %4142 = vst.msk [vmem:[#allocation4 + $0x170] sm:$0xff] %vm972_vm2, %v4078_v26  ;;  %v3567_v54 = vmul.f32 %v3442_v11, %v3183_v41  ;;  %2932 = vadd.xlane.f32.xlu1 %v2931_v59  ;;  %v10630_v41 = vld [vmem:[#allocation67_spill] sm:$0xff]  ;;  %v3192_v59 = vld [vmem:[#allocation4 + $0x1c8] sm:$0xff] }
 0x897   : > { %v2900_v52 = vpop.xlane.xlu0 %2899  ;;  %v2973_v26 = vadd.f32 %v10631_v13, %v10630_v41  ;;  %v2730_v41 = vld [vmem:[#allocation3 + $0x160] sm:$0xff] }
 0x898   : > { %v4080_v22 = vadd.f32 %v8829_v0, %v3567_v54  ;;  %v3034_v55 = vadd.f32 %v2900_v52, %v2778_v43  ;;  %v10621_v0 = vld [vmem:[#allocation51_spill] sm:$0xff]  ;;  %v2985_v54 = vadd.f32 %v8819_v37, %v8816_v30  ;;  %v3576_v43 = vmul.f32 %v9043_v48, %v3192_v59 }
 0x899   : > { %v3452_v25 = vpop.permute.xlu1 %3451  ;;  %v2943_v57 = vadd.f32 %v10621_v0, %v10620_v16  ;;  %v10632_v30 = vld [vmem:[#allocation131_spill] sm:$0xff]  ;;  %v3003_v48 = vadd.f32 %v9019_v10, %v9016_v49  ;;  %v2722_v0 = vld [vmem:[#allocation3 + $0x120] sm:$0xff] }
 0x89a   : > { %4144 = vst.msk [vmem:[#allocation4 + $0x180] sm:$0xff] %vm972_vm2, %v4080_v22  ;;  %3516 = vperm.xlu0 %5683, %v9060_v32   ;;  %v3569_v38 = vmul.f32 %v3452_v25, %v3185_v17  ;;  %2938 = vadd.xlane.f32.xlu1 %v2937_v6  ;;  %v1852_v37 = vsub.f32 %v10632_v30, %v10554_v47  ;;  %v2716_v25 = vld [vmem:[#allocation3 + $0xf0] sm:$0xff] }
 0x89b   : > { %3099 = vst.msk [vmem:[#allocation3 + $0xe0] sm:$0xff] %vm3070_vm3, %v3034_v55  ;;  %v2720_v47 = vld [vmem:[#allocation3 + $0x110] sm:$0xff] }
 0x89c   : > { %v4082_v27 = vadd.f32 %v8915_v34, %v3569_v38  ;;  %v1978_v19 = vmul.f32 1.442695, %v1852_v37  ;;  %v10633_v38 = vld [vmem:[#allocation34_spill] sm:$0xff]  ;;  %v2784_v49 = vmul.f32 %v8855_v46, %v2720_v47  ;;  %v3193_v59 = vld [vmem:[#allocation4 + $0x1d0] sm:$0xff] }
 0x89d   : > { %v3462_v61 = vpop.permute.xlu1 %3461 }
 0x89e   : > { %4146 = vst.msk [vmem:[#allocation4 + $0x190] sm:$0xff] %vm972_vm2, %v4082_v27  ;;  %v3571_v50 = vmul.f32 %v3462_v61, %v3187_v63  ;;  %2944 = vadd.xlane.f32.xlu1 %v2943_v57  ;;  %6099 = vpow2.f32 %v1978_v19  ;;  %v2718_v63 = vld [vmem:[#allocation3 + $0x100] sm:$0xff]  ;;  %v2736_v19 = vld [vmem:[#allocation3 + $0x190] sm:$0xff] }
 0x89f   : > { %v9098_v6 = vpop.permute.xlu0 %3506 }
 0x8a0   : > { %v4084_v15 = vadd.f32 %v8977_v40, %v3571_v50  ;;  %v10628_v40 = vld [vmem:[#allocation58_spill] sm:$0xff] }
 0x8a1   : > { %v3472_v8 = vpop.permute.xlu1 %3471  ;;  %v2967_v12 = vadd.f32 %v10629_v44, %v10628_v40  ;;  %v10635_v40 = vld [vmem:[#allocation173_spill] sm:$0xff] }
 0x8a2   : > { %4148 = vst.msk [vmem:[#allocation4 + $0x1a0] sm:$0xff] %vm972_vm2, %v4084_v15  ;;  %v3573_v5 = vmul.f32 %v3472_v8, %v3189_v60  ;;  %2950 = vadd.xlane.f32.xlu1 %v2949_v56  ;;  %v2713_v60 = vld [vmem:[#allocation3 + $0xd8] sm:$0xff]  ;;  %v10634_v56 = vld [vmem:[#allocation29_spill] sm:$0xff]  ;;  %v2792_v44 = vmul.f32 %v10635_v40, %v2728_v4  ;;  %v2748_v40 = vld [vmem:[#allocation3 + $0x1f0] sm:$0xff] }
 0x8a3   : > { %v2777_v8 = vmul.f32 %v10634_v56, %v2713_v60  ;;  %v2742_v60 = vld [vmem:[#allocation3 + $0x1c0] sm:$0xff]  ;;  %v2744_v56 = vld [vmem:[#allocation3 + $0x1d0] sm:$0xff] }
 0x8a4   : > { %v4086_v34 = vadd.f32 %v9028_v18, %v3573_v5  ;;  %v2979_v18 = vadd.f32 %v8734_v45, %v8732_v58  ;;  %v2991_v58 = vadd.f32 %v8903_v62, %v8901_v29  ;;  %v2997_v45 = vadd.f32 %v8964_v20, %v8961_v53 }
 0x8a5   : > { %v3482_v21 = vpop.permute.xlu1 %3481  ;;  %v2780_v29 = vmul.f32 %v10633_v38, %v2716_v25  ;;  %v2782_v53 = vmul.f32 %v8849_v2, %v2718_v63  ;;  %v2786_v2 = vmul.f32 %v8860_v23, %v2722_v0  ;;  %v2790_v23 = vmul.f32 %v8873_v24, %v2726_v9  ;;  %v10637_v24 = vld [vmem:[#allocation79_spill] sm:$0xff]  ;;  %v10641_v0 = vld [vmem:[#allocation73_spill] sm:$0xff] }
 0x8a6   : > { %4150 = vst.msk [vmem:[#allocation4 + $0x1b0] sm:$0xff] %vm972_vm2, %v4086_v34  ;;  %2956 = vadd.xlane.f32.xlu1 %v2955_v39  ;;  %v3575_v11 = vmul.f32 %v3482_v21, %v3191_v28  ;;  %v2788_v34 = vmul.f32 %v8865_v33, %v2724_v51  ;;  %v10636_v33 = vld [vmem:[#allocation157_spill] sm:$0xff]  ;;  %v2732_v28 = vld [vmem:[#allocation3 + $0x170] sm:$0xff] }
 0x8a8   : > { %v9105_v61 = vpop.eup %6099 }
 0x8a9   : > { %v3492_v50 = vpop.permute.xlu1 %3491 }
 0x8aa   : > { %2962 = vadd.xlane.f32.xlu1 %v2961_v3 }
 0x8ae   : > { %2968 = vadd.xlane.f32.xlu1 %v2967_v12 }
 0x8b2   : > { %2974 = vadd.xlane.f32.xlu1 %v2973_v26  ;;  %v2794_v26 = vmul.f32 %v10636_v33, %v2730_v41 }
 0x8b6   : > { %2980 = vadd.xlane.f32.xlu1 %v2979_v18 }
 0x8b9   : > { %v4001_v36 = vpop.f32.mrb[112].mxu1 }
 0x8ba   : > { %v4088_v52 = vadd.f32 %v4001_v36, %v3575_v11  ;;  %v4003_v17 = vpop.f32.mrb[113].mxu1  ;;  %2986 = vadd.xlane.f32.xlu1 %v2985_v54  ;;  %v2796_v11 = vmul.f32 %v10637_v24, %v2732_v28  ;;  %v3194_v54 = vld [vmem:[#allocation4 + $0x1d8] sm:$0xff]  ;;  %v2719_v24 = vld [vmem:[#allocation3 + $0x108] sm:$0xff] }
 0x8bb   : > { %v4004_v22 = vpop.f32.mrb[114].mxu1 }
 0x8bc   : > { %4152 = vst.msk [vmem:[#allocation4 + $0x1c0] sm:$0xff] %vm972_vm2, %v4088_v52  ;;  %v4089_v55 = vadd.f32 %v4004_v22, %v3576_v43  ;;  %v4006_v7 = vpop.f32.mrb[115].mxu1  ;;  %v2734_v43 = vld [vmem:[#allocation3 + $0x180] sm:$0xff]  ;;  %v3577_v52 = vmul.f32 %v3492_v50, %v3193_v59 }
 0x8be   : > { %4153 = vst.msk [vmem:[#allocation4 + $0x1c8] sm:$0xff] %vm972_vm2, %v4089_v55  ;;  %2992 = vadd.xlane.f32.xlu1 %v2991_v58  ;;  %v3578_v55 = vmul.f32 %v9050_v42, %v3194_v54  ;;  %v10646_v54 = vld [vmem:[#allocation9_spill] sm:$0xff] }
 0x8c2   : > { %2998 = vadd.xlane.f32.xlu1 %v2997_v45  ;;  %v10638_v45 = vld [vmem:[#allocation75_spill] sm:$0xff] }
 0x8c3   : > { %v2798_v30 = vmul.f32 %v10638_v45, %v2734_v43  ;;  %v10648_v45 = vld [vmem:[#allocation66_spill] sm:$0xff] }
 0x8c6   : > { %3004 = vadd.xlane.f32.xlu1 %v3003_v48 }
 0x8cc   : > { %v2906_v62 = vpop.xlane.xlu0 %2905 }
 0x8cd   : > { %v3036_v27 = vadd.f32 %v2906_v62, %v2780_v29  ;;  %v10639_v62 = vld [vmem:[#allocation135_spill] sm:$0xff] }
 0x8ce   : > { %v2800_v42 = vmul.f32 %v10639_v62, %v2736_v19  ;;  %v2725_v19 = vld [vmem:[#allocation3 + $0x138] sm:$0xff]  ;;  %v10649_v62 = vld [vmem:[#allocation6_spill] sm:$0xff] }
 0x8cf   : > { %3101 = vst.msk [vmem:[#allocation3 + $0xf0] sm:$0xff] %vm3070_vm3, %v3036_v27  ;;  %v2738_v27 = vld [vmem:[#allocation3 + $0x1a0] sm:$0xff] }
 0x8d0   : > { %v2912_v20 = vpop.xlane.xlu0 %2911 }
 0x8d1   : > { %v3038_v16 = vadd.f32 %v2912_v20, %v2782_v53  ;;  %v10640_v20 = vld [vmem:[#allocation76_spill] sm:$0xff] }
 0x8d2   : > { %v2802_v47 = vmul.f32 %v10640_v20, %v2738_v27 }
 0x8d3   : > { %3103 = vst.msk [vmem:[#allocation3 + $0x100] sm:$0xff] %vm3070_vm3, %v3038_v16 }
 0x8d4   : > { %v2918_v10 = vpop.xlane.xlu0 %2917 }
 0x8d5   : > { %v3040_v57 = vadd.f32 %v2918_v10, %v2784_v49  ;;  %v2740_v49 = vld [vmem:[#allocation3 + $0x1b0] sm:$0xff] }
 0x8d7   : > { %3105 = vst.msk [vmem:[#allocation3 + $0x110] sm:$0xff] %vm3070_vm3, %v3040_v57  ;;  %3511 = vperm.xlu1 %5684, %v9105_v61   ;;  %v2804_v57 = vmul.f32 %v10641_v0, %v2740_v49 }
 0x8d8   : > { %v2924_v15 = vpop.xlane.xlu0 %2923 }
 0x8d9   : > { %v3042_v31 = vadd.f32 %v2924_v15, %v2786_v2  ;;  %v10642_v15 = vld [vmem:[#allocation74_spill] sm:$0xff] }
 0x8da   : > { %v2897_v5 = vpop.xlane.xlu1 %2896  ;;  %v2806_v51 = vmul.f32 %v10642_v15, %v2742_v60  ;;  %v2729_v15 = vld [vmem:[#allocation3 + $0x158] sm:$0xff] }
 0x8db   : > { %3107 = vst.msk [vmem:[#allocation3 + $0x120] sm:$0xff] %vm3070_vm3, %v3042_v31  ;;  %v3033_v46 = vadd.f32 %v2897_v5, %v2777_v8  ;;  %v10643_v5 = vld [vmem:[#allocation166_spill] sm:$0xff] }
 0x8dc   : > { %v2930_v1 = vpop.xlane.xlu0 %2929 }
 0x8dd   : > { %3098 = vst.msk [vmem:[#allocation3 + $0xd8] sm:$0xff] %vm3070_vm3, %v3033_v46  ;;  %v3044_v39 = vadd.f32 %v2930_v1, %v2788_v34  ;;  %v2808_v46 = vmul.f32 %v10643_v5, %v2744_v56  ;;  %v2746_v1 = vld [vmem:[#allocation3 + $0x1e0] sm:$0xff] }
 0x8de   : > { %v3502_v4 = vpop.permute.xlu1 %3501 }
 0x8df   : > { %3109 = vst.msk [vmem:[#allocation3 + $0x130] sm:$0xff] %vm3070_vm3, %v3044_v39  ;;  %v2810_v39 = vmul.f32 %v8989_v35, %v2746_v1 }
 0x8e0   : > { %v2936_v14 = vpop.xlane.xlu0 %2935 }
 0x8e1   : > { %v3046_v3 = vadd.f32 %v2936_v14, %v2790_v23 }
 0x8e3   : > { %3111 = vst.msk [vmem:[#allocation3 + $0x140] sm:$0xff] %vm3070_vm3, %v3046_v3  ;;  %v2715_v3 = vld [vmem:[#allocation3 + $0xe8] sm:$0xff] }
 0x8e4   : > { %v2942_v12 = vpop.xlane.xlu0 %2941 }
 0x8e5   : > { %v3048_v13 = vadd.f32 %v2942_v12, %v2792_v44  ;;  %v10644_v44 = vld [vmem:[#allocation101_spill] sm:$0xff] }
 0x8e6   : > { %v2779_v12 = vmul.f32 %v10644_v44, %v2715_v3  ;;  %v2735_v3 = vld [vmem:[#allocation3 + $0x188] sm:$0xff]  ;;  %v10654_v44 = vld [vmem:[#allocation121_spill] sm:$0xff] }
 0x8e7   : > { %3113 = vst.msk [vmem:[#allocation3 + $0x150] sm:$0xff] %vm3070_vm3, %v3048_v13  ;;  %v2717_v13 = vld [vmem:[#allocation3 + $0xf8] sm:$0xff] }
 0x8e8   : > { %v2948_v18 = vpop.xlane.xlu0 %2947 }
 0x8e9   : > { %v3050_v21 = vadd.f32 %v2948_v18, %v2794_v26  ;;  %v2812_v26 = vmul.f32 %v9105_v61, %v2748_v40  ;;  %v10647_v61 = vld [vmem:[#allocation65_spill] sm:$0xff] }
 0x8eb   : > { %3115 = vst.msk [vmem:[#allocation3 + $0x160] sm:$0xff] %vm3070_vm3, %v3050_v21  ;;  %v10645_v21 = vld [vmem:[#allocation68_spill] sm:$0xff] }
 0x8ec   : > { %v2954_v36 = vpop.xlane.xlu0 %2953  ;;  %v2781_v35 = vmul.f32 %v10645_v21, %v2717_v13  ;;  %v2737_v13 = vld [vmem:[#allocation3 + $0x198] sm:$0xff]  ;;  %v2739_v21 = vld [vmem:[#allocation3 + $0x1a8] sm:$0xff] }
 0x8ed   : > { %v3052_v17 = vadd.f32 %v2954_v36, %v2796_v11  ;;  %v2783_v36 = vmul.f32 %v10646_v54, %v2719_v24  ;;  %v2741_v54 = vld [vmem:[#allocation3 + $0x1b8] sm:$0xff] }
 0x8ee   : > { %v4009_v22 = vpop.f32.mrb[116].mxu1 }
 0x8ef   : > { %3117 = vst.msk [vmem:[#allocation3 + $0x170] sm:$0xff] %vm3070_vm3, %v3052_v17  ;;  %v4090_v7 = vadd.f32 %v4009_v22, %v3577_v52  ;;  %v4011_v58 = vpop.f32.mrb[117].mxu1  ;;  %v2721_v52 = vld [vmem:[#allocation3 + $0x118] sm:$0xff] }
 0x8f0   : > { %v4012_v37 = vpop.f32.mrb[118].mxu1  ;;  %v2960_v48 = vpop.xlane.xlu0 %2959  ;;  %v2785_v22 = vmul.f32 %v10647_v61, %v2721_v52  ;;  %v2743_v61 = vld [vmem:[#allocation3 + $0x1c8] sm:$0xff] }
 0x8f1   : > { %4154 = vst.msk [vmem:[#allocation4 + $0x1d0] sm:$0xff] %vm972_vm2, %v4090_v7  ;;  %v4091_v25 = vadd.f32 %v4012_v37, %v3578_v55  ;;  %v3054_v38 = vadd.f32 %v2960_v48, %v2798_v30  ;;  %v4014_v29 = vpop.f32.mrb[119].mxu1  ;;  %v2723_v7 = vld [vmem:[#allocation3 + $0x128] sm:$0xff]  ;;  %v3195_v37 = vld [vmem:[#allocation4 + $0x1e0] sm:$0xff] }
 0x8f2   : > { %v2787_v30 = vmul.f32 %v10648_v45, %v2723_v7  ;;  %v3579_v29 = vmul.f32 %v3502_v4, %v3195_v37  ;;  %v2745_v45 = vld [vmem:[#allocation3 + $0x1d8] sm:$0xff]  ;;  %v10659_v37 = vld [vmem:[#allocation5_spill] sm:$0xff] }
 0x8f3   : > { %4155 = vst.msk [vmem:[#allocation4 + $0x1d8] sm:$0xff] %vm972_vm2, %v4091_v25 }
 0x8f4   : > { %3119 = vst.msk [vmem:[#allocation3 + $0x180] sm:$0xff] %vm3070_vm3, %v3054_v38  ;;  %v2966_v63 = vpop.xlane.xlu0 %2965  ;;  %v3196_v38 = vld [vmem:[#allocation4 + $0x1e8] sm:$0xff] }
 0x8f5   : > { %v3056_v53 = vadd.f32 %v2966_v63, %v2800_v42  ;;  %v2789_v42 = vmul.f32 %v10649_v62, %v2725_v19  ;;  %v3580_v20 = vmul.f32 %v9098_v6, %v3196_v38  ;;  %v10651_v6 = vld [vmem:[#allocation147_spill] sm:$0xff] }
 0x8f7   : > { %3121 = vst.msk [vmem:[#allocation3 + $0x190] sm:$0xff] %vm3070_vm3, %v3056_v53  ;;  %v2727_v53 = vld [vmem:[#allocation3 + $0x148] sm:$0xff] }
 0x8f8   : > { %v2972_v16 = vpop.xlane.xlu0 %2971 }
 0x8f9   : > { %v3058_v10 = vadd.f32 %v2972_v16, %v2802_v47 }
 0x8fb   : > { %3123 = vst.msk [vmem:[#allocation3 + $0x1a0] sm:$0xff] %vm3070_vm3, %v3058_v10 }
 0x8fc   : > { %v2978_v50 = vpop.xlane.xlu0 %2977 }
 0x8fd   : > { %v3060_v2 = vadd.f32 %v2978_v50, %v2804_v57  ;;  %v10650_v50 = vld [vmem:[#allocation169_spill] sm:$0xff] }
 0x8fe   : > { %v2791_v60 = vmul.f32 %v10650_v50, %v2727_v53 }
 0x8ff   : > { %3125 = vst.msk [vmem:[#allocation3 + $0x1b0] sm:$0xff] %vm3070_vm3, %v3060_v2 }
 0x900   : > { %v2984_v31 = vpop.xlane.xlu0 %2983 }
 0x901   : > { %v3062_v8 = vadd.f32 %v2984_v31, %v2806_v51  ;;  %v2793_v31 = vmul.f32 %v10651_v6, %v2729_v15 }
 0x903   : > { %3127 = vst.msk [vmem:[#allocation3 + $0x1c0] sm:$0xff] %vm3070_vm3, %v3062_v8  ;;  %v2731_v8 = vld [vmem:[#allocation3 + $0x168] sm:$0xff] }
 0x904   : > { %v2990_v34 = vpop.xlane.xlu0 %2989 }
 0x905   : > { %v3064_v9 = vadd.f32 %v2990_v34, %v2808_v46  ;;  %v10652_v46 = vld [vmem:[#allocation156_spill] sm:$0xff] }
 0x906   : > { %v2795_v34 = vmul.f32 %v10652_v46, %v2731_v8 }
 0x907   : > { %3129 = vst.msk [vmem:[#allocation3 + $0x1d0] sm:$0xff] %vm3070_vm3, %v3064_v9  ;;  %v2733_v9 = vld [vmem:[#allocation3 + $0x178] sm:$0xff] }
 0x908   : > { %v2996_v23 = vpop.xlane.xlu0 %2995 }
 0x909   : > { %v3066_v14 = vadd.f32 %v2996_v23, %v2810_v39  ;;  %v10653_v23 = vld [vmem:[#allocation71_spill] sm:$0xff] }
 0x90b   : > { %3131 = vst.msk [vmem:[#allocation3 + $0x1e0] sm:$0xff] %vm3070_vm3, %v3066_v14  ;;  %v2797_v14 = vmul.f32 %v10653_v23, %v2733_v9 }
 0x90f   : > { %v2903_v41 = vpop.xlane.xlu1 %2902 }
 0x910   : > { %v3035_v33 = vadd.f32 %v2903_v41, %v2779_v12  ;;  %v2799_v12 = vmul.f32 %v10654_v44, %v2735_v3 }
 0x911   : > { %v3002_v18 = vpop.xlane.xlu0 %3001 }
 0x912   : > { %3100 = vst.msk [vmem:[#allocation3 + $0xe8] sm:$0xff] %vm3070_vm3, %v3035_v33  ;;  %v3068_v28 = vadd.f32 %v3002_v18, %v2812_v26  ;;  %v10655_v26 = vld [vmem:[#allocation72_spill] sm:$0xff] }
 0x913   : > { %v2909_v59 = vpop.xlane.xlu1 %2908  ;;  %v2801_v18 = vmul.f32 %v10655_v26, %v2737_v13 }
 0x914   : > { %3133 = vst.msk [vmem:[#allocation3 + $0x1f0] sm:$0xff] %vm3070_vm3, %v3068_v28  ;;  %v3037_v11 = vadd.f32 %v2909_v59, %v2781_v35  ;;  %v10656_v59 = vld [vmem:[#allocation13_spill] sm:$0xff] }
 0x915   : > { %v2803_v24 = vmul.f32 %v10656_v59, %v2739_v21 }
 0x916   : > { %3102 = vst.msk [vmem:[#allocation3 + $0xf8] sm:$0xff] %vm3070_vm3, %v3037_v11 }
 0x917   : > { %v2915_v43 = vpop.xlane.xlu1 %2914 }
 0x918   : > { %v3039_v17 = vadd.f32 %v2915_v43, %v2783_v36  ;;  %v10657_v43 = vld [vmem:[#allocation69_spill] sm:$0xff] }
 0x919   : > { %v2805_v52 = vmul.f32 %v10657_v43, %v2741_v54 }
 0x91a   : > { %3104 = vst.msk [vmem:[#allocation3 + $0x108] sm:$0xff] %vm3070_vm3, %v3039_v17 }
 0x91b   : > { %v2921_v55 = vpop.xlane.xlu1 %2920 }
 0x91c   : > { %v3041_v58 = vadd.f32 %v2921_v55, %v2785_v22  ;;  %v10658_v55 = vld [vmem:[#allocation70_spill] sm:$0xff] }
 0x91d   : > { %v2807_v7 = vmul.f32 %v10658_v55, %v2743_v61 }
 0x91e   : > { %3106 = vst.msk [vmem:[#allocation3 + $0x118] sm:$0xff] %vm3070_vm3, %v3041_v58 }
 0x91f   : > { %v2927_v48 = vpop.xlane.xlu1 %2926 }
 0x920   : > { %v3043_v25 = vadd.f32 %v2927_v48, %v2787_v30  ;;  %v2809_v48 = vmul.f32 %v10659_v37, %v2745_v45 }
 0x922   : > { %3108 = vst.msk [vmem:[#allocation3 + $0x128] sm:$0xff] %vm3070_vm3, %v3043_v25  ;;  %v2747_v25 = vld [vmem:[#allocation3 + $0x1e8] sm:$0xff] }
 0x923   : > { %v4017_v63 = vpop.f32.mrb[120].mxu1  ;;  %v2933_v27 = vpop.xlane.xlu1 %2932 }
 0x924   : > { %v4092_v47 = vadd.f32 %v4017_v63, %v3579_v29  ;;  %v4019_v16 = vpop.f32.mrb[121].mxu1  ;;  %v3045_v49 = vadd.f32 %v2933_v27, %v2789_v42  ;;  %v10660_v29 = vld [vmem:[#allocation17_spill] sm:$0xff]  ;;  %v2749_v63 = vld [vmem:[#allocation3 + $0x1f8] sm:$0xff] }
 0x925   : > { %v4020_v10 = vpop.f32.mrb[122].mxu1  ;;  %v2811_v62 = vmul.f32 %v10660_v29, %v2747_v25  ;;  %v2813_v53 = vmul.f32 %v9060_v32, %v2749_v63  ;;  %v3197_v16 = vld [vmem:[#allocation4 + $0x1f0] sm:$0xff] }
 0x926   : > { %4156 = vst.msk [vmem:[#allocation4 + $0x1e0] sm:$0xff] %vm972_vm2, %v4092_v47  ;;  %v4093_v0 = vadd.f32 %v4020_v10, %v3580_v20  ;;  %v4022_v57 = vpop.f32.mrb[123].mxu1  ;;  %v3517_v10 = vpop.permute.xlu0 %3516 }
 0x927   : > { %3110 = vst.msk [vmem:[#allocation3 + $0x138] sm:$0xff] %vm3070_vm3, %v3045_v49  ;;  %v2939_v2 = vpop.xlane.xlu1 %2938  ;;  %v3198_v49 = vld [vmem:[#allocation4 + $0x1f8] sm:$0xff] }
 0x928   : > { %4157 = vst.msk [vmem:[#allocation4 + $0x1e8] sm:$0xff] %vm972_vm2, %v4093_v0  ;;  %v3047_v51 = vadd.f32 %v2939_v2, %v2791_v60  ;;  %v3582_v60 = vmul.f32 %v3517_v10, %v3198_v49 }
 0x92a   : > { %3112 = vst.msk [vmem:[#allocation3 + $0x148] sm:$0xff] %vm3070_vm3, %v3047_v51 }
 0x92b   : > { %v2945_v56 = vpop.xlane.xlu1 %2944 }
 0x92c   : > { %v3049_v5 = vadd.f32 %v2945_v56, %v2793_v31 }
 0x92e   : > { %3114 = vst.msk [vmem:[#allocation3 + $0x158] sm:$0xff] %vm3070_vm3, %v3049_v5 }
 0x92f   : > { %v2951_v1 = vpop.xlane.xlu1 %2950 }
 0x930   : > { %v3051_v39 = vadd.f32 %v2951_v1, %v2795_v34 }
 0x932   : > { %3116 = vst.msk [vmem:[#allocation3 + $0x168] sm:$0xff] %vm3070_vm3, %v3051_v39 }
 0x933   : > { %v2957_v4 = vpop.xlane.xlu1 %2956 }
 0x934   : > { %v3053_v40 = vadd.f32 %v2957_v4, %v2797_v14 }
 0x936   : > { %3118 = vst.msk [vmem:[#allocation3 + $0x178] sm:$0xff] %vm3070_vm3, %v3053_v40 }
 0x937   : > { %v2963_v41 = vpop.xlane.xlu1 %2962 }
 0x938   : > { %v3055_v33 = vadd.f32 %v2963_v41, %v2799_v12 }
 0x93a   : > { %3120 = vst.msk [vmem:[#allocation3 + $0x188] sm:$0xff] %vm3070_vm3, %v3055_v33 }
 0x93b   : > { %v2969_v28 = vpop.xlane.xlu1 %2968 }
 0x93c   : > { %v3057_v35 = vadd.f32 %v2969_v28, %v2801_v18 }
 0x93e   : > { %3122 = vst.msk [vmem:[#allocation3 + $0x198] sm:$0xff] %vm3070_vm3, %v3057_v35 }
 0x93f   : > { %v2975_v11 = vpop.xlane.xlu1 %2974 }
 0x940   : > { %v3059_v36 = vadd.f32 %v2975_v11, %v2803_v24 }
 0x942   : > { %3124 = vst.msk [vmem:[#allocation3 + $0x1a8] sm:$0xff] %vm3070_vm3, %v3059_v36 }
 0x943   : > { %v2981_v17 = vpop.xlane.xlu1 %2980 }
 0x944   : > { %v3061_v22 = vadd.f32 %v2981_v17, %v2805_v52 }
 0x946   : > { %3126 = vst.msk [vmem:[#allocation3 + $0x1b8] sm:$0xff] %vm3070_vm3, %v3061_v22 }
 0x947   : > { %v2987_v58 = vpop.xlane.xlu1 %2986 }
 0x948   : > { %v3063_v30 = vadd.f32 %v2987_v58, %v2807_v7 }
 0x94a   : > { %3128 = vst.msk [vmem:[#allocation3 + $0x1c8] sm:$0xff] %vm3070_vm3, %v3063_v30 }
 0x94b   : > { %v2993_v19 = vpop.xlane.xlu1 %2992 }
 0x94c   : > { %v3065_v38 = vadd.f32 %v2993_v19, %v2809_v48 }
 0x94e   : > { %3130 = vst.msk [vmem:[#allocation3 + $0x1d8] sm:$0xff] %vm3070_vm3, %v3065_v38 }
 0x94f   : > { %v2999_v42 = vpop.xlane.xlu1 %2998 }
 0x950   : > { %v3067_v27 = vadd.f32 %v2999_v42, %v2811_v62 }
 0x952   : > { %3132 = vst.msk [vmem:[#allocation3 + $0x1e8] sm:$0xff] %vm3070_vm3, %v3067_v27 }
 0x953   : > { %v3005_v20 = vpop.xlane.xlu1 %3004 }
 0x954   : > { %v3069_v47 = vadd.f32 %v3005_v20, %v2813_v53 }
 0x956   : > { %3134 = vst.msk [vmem:[#allocation3 + $0x1f8] sm:$0xff] %vm3070_vm3, %v3069_v47 }
 0x957   : > { %v3512_v0 = vpop.permute.xlu1 %3511  ;;  %4227 = sbr.rel (%p5545_p8) target bundleno = 2666 (0xa6a), region = 40 }
 0x958   : > { %v4025_v57 = vpop.f32.mrb[124].mxu1  ;;  %v3581_v50 = vmul.f32 %v3512_v0, %v3197_v16 }
 0x959   : > { %v4027_v2 = vpop.f32.mrb[125].mxu1 }
 0x95a   : > { %v4094_v15 = vadd.f32 %v4025_v57, %v3581_v50  ;;  %v4028_v51 = vpop.f32.mrb[126].mxu1 }
 0x95b   : > { %v4095_v6 = vadd.f32 %v4028_v51, %v3582_v60  ;;  %v4030_v31 = vpop.f32.mrb[127].mxu1 }
 0x95c   : > { %4158 = vst.msk [vmem:[#allocation4 + $0x1f0] sm:$0xff] %vm972_vm2, %v4094_v15 }
 0x95d   : > { %4159 = vst.msk [vmem:[#allocation4 + $0x1f8] sm:$0xff] %vm972_vm2, %v4095_v6 }
 0x95e   : > { %v4230_v32 = vld [vmem:[#allocation3 + $0x10] sm:$0xff]  ;;  %v9184_v56 = vld [vmem:[#allocation3] sm:$0xff]  ;;  %v9186_v8 = vld [vmem:[#allocation3 + $0x18] sm:$0xff]  ;;  %v6402_v5 = vmov 0  }
 0x95f   : > { %6102 = vset.pattern.permute.xlu1 %v6402_v5  ;;  %6101 = vset.pattern.permute.xlu0 %v6402_v5  ;;  %6103 = vrcp.f32 %v4230_v32  ;;  %v9188_v46 = vld [vmem:[#allocation3 + $0x8] sm:$0xff]  ;;  %v9195_v1 = vld [vmem:[#allocation3 + $0x20] sm:$0xff]  ;;  %v9199_v9 = vld [vmem:[#allocation3 + $0x38] sm:$0xff] }
 0x960   : > { %6105 = vrcp.f32 %v9184_v56  ;;  %v9193_v34 = vld [vmem:[#allocation3 + $0x28] sm:$0xff]  ;;  %v9201_v39 = vld [vmem:[#allocation3 + $0x30] sm:$0xff]  ;;  %v9207_v40 = vld [vmem:[#allocation3 + $0x40] sm:$0xff] }
 0x961   : > { %6107 = vrcp.f32 %v9186_v8  ;;  %v9205_v4 = vld [vmem:[#allocation3 + $0x48] sm:$0xff]  ;;  %v9211_v12 = vld [vmem:[#allocation3 + $0x58] sm:$0xff]  ;;  %v9213_v13 = vld [vmem:[#allocation3 + $0x50] sm:$0xff] }
 0x962   : > { %6109 = vrcp.f32 %v9188_v46  ;;  %v9217_v26 = vld [vmem:[#allocation3 + $0x68] sm:$0xff]  ;;  %v9219_v28 = vld [vmem:[#allocation3 + $0x60] sm:$0xff]  ;;  %v9223_v35 = vld [vmem:[#allocation3 + $0x78] sm:$0xff] }
 0x963   : > { %6111 = vrcp.f32 %v9193_v34  ;;  %v9225_v24 = vld [vmem:[#allocation3 + $0x70] sm:$0xff]  ;;  %v9229_v54 = vld [vmem:[#allocation3 + $0x88] sm:$0xff]  ;;  %v9231_v43 = vld [vmem:[#allocation3 + $0x80] sm:$0xff] }
 0x964   : > { %6113 = vrcp.f32 %v9195_v1  ;;  %v9235_v17 = vld [vmem:[#allocation3 + $0x98] sm:$0xff]  ;;  %v9237_v22 = vld [vmem:[#allocation3 + $0x90] sm:$0xff]  ;;  %v9241_v7 = vld [vmem:[#allocation3 + $0xa8] sm:$0xff] }
 0x965   : > { %6115 = vrcp.f32 %v9199_v9  ;;  %v9243_v45 = vld [vmem:[#allocation3 + $0xa0] sm:$0xff]  ;;  %v9247_v37 = vld [vmem:[#allocation3 + $0xb8] sm:$0xff]  ;;  %v9249_v19 = vld [vmem:[#allocation3 + $0xb0] sm:$0xff] }
 0x966   : > { %6117 = vrcp.f32 %v9201_v39  ;;  %v9253_v38 = vld [vmem:[#allocation3 + $0xc8] sm:$0xff]  ;;  %v9255_v62 = vld [vmem:[#allocation3 + $0xc0] sm:$0xff]  ;;  %v9259_v63 = vld [vmem:[#allocation3 + $0xd8] sm:$0xff] }
 0x967   : > { %6119 = vrcp.f32 %v9205_v4  ;;  %v9261_v53 = vld [vmem:[#allocation3 + $0xd0] sm:$0xff]  ;;  %v9265_v47 = vld [vmem:[#allocation3 + $0xe8] sm:$0xff]  ;;  %v9267_v49 = vld [vmem:[#allocation3 + $0xe0] sm:$0xff] }
 0x968   : > { %6121 = vrcp.f32 %v9207_v40  ;;  %v9271_v0 = vld [vmem:[#allocation3 + $0xf8] sm:$0xff]  ;;  %v9273_v50 = vld [vmem:[#allocation3 + $0xf0] sm:$0xff]  ;;  %v9277_v2 = vld [vmem:[#allocation3 + $0x108] sm:$0xff] }
 0x969   : > { %v6104_v23 = vpop.eup %6103  ;;  %6123 = vrcp.f32 %v9211_v12  ;;  %v9279_v51 = vld [vmem:[#allocation3 + $0x100] sm:$0xff]  ;;  %v9283_v31 = vld [vmem:[#allocation3 + $0x118] sm:$0xff]  ;;  %v9285_v5 = vld [vmem:[#allocation3 + $0x110] sm:$0xff] }
 0x96a   : > { %v6106_v14 = vpop.eup %6105  ;;  %4432 = vperm.xlu1 %6102, %v6104_v23   ;;  %6125 = vrcp.f32 %v9213_v13 }
 0x96b   : > { %v6108_v3 = vpop.eup %6107  ;;  %4422 = vperm.xlu0 %6101, %v6106_v14   ;;  %6127 = vrcp.f32 %v9217_v26  ;;  %v9289_v14 = vld [vmem:[#allocation3 + $0x128] sm:$0xff] }
 0x96c   : > { %v6110_v44 = vpop.eup %6109  ;;  %6129 = vrcp.f32 %v9219_v28 }
 0x96d   : > { %v6112_v41 = vpop.eup %6111  ;;  %6131 = vrcp.f32 %v9223_v35 }
 0x96e   : > { %4437 = vperm.xlu1 %6102, %v6108_v3   ;;  %v6114_v33 = vpop.eup %6113  ;;  %6133 = vrcp.f32 %v9225_v24 }
 0x96f   : > { %4427 = vperm.xlu0 %6101, %v6110_v44   ;;  %v6116_v18 = vpop.eup %6115  ;;  %6135 = vrcp.f32 %v9229_v54  ;;  %v9291_v44 = vld [vmem:[#allocation3 + $0x120] sm:$0xff] }
 0x970   : > { %v6118_v21 = vpop.eup %6117  ;;  %6137 = vrcp.f32 %v9231_v43 }
 0x971   : > { %v6120_v59 = vpop.eup %6119  ;;  %6139 = vrcp.f32 %v9235_v17 }
 0x972   : > { %4447 = vperm.xlu1 %6102, %v6112_v41   ;;  %v6122_v11 = vpop.eup %6121  ;;  %6141 = vrcp.f32 %v9237_v22 }
 0x973   : > { %4442 = vperm.xlu0 %6101, %v6114_v33   ;;  %v6124_v36 = vpop.eup %6123  ;;  %6143 = vrcp.f32 %v9241_v7  ;;  %v9295_v33 = vld [vmem:[#allocation3 + $0x138] sm:$0xff] }
 0x974   : > { %v6126_v52 = vpop.eup %6125  ;;  %6145 = vrcp.f32 %v9243_v45 }
 0x975   : > { %v6128_v61 = vpop.eup %6127  ;;  %6147 = vrcp.f32 %v9247_v37 }
 0x976   : > { %4457 = vperm.xlu1 %6102, %v6116_v18   ;;  %v6130_v55 = vpop.eup %6129  ;;  %6149 = vrcp.f32 %v9249_v19 }
 0x977   : > { %4452 = vperm.xlu0 %6101, %v6118_v21   ;;  %v6132_v58 = vpop.eup %6131  ;;  %6151 = vrcp.f32 %v9253_v38  ;;  %v9297_v21 = vld [vmem:[#allocation3 + $0x130] sm:$0xff] }
 0x978   : > { %v6134_v30 = vpop.eup %6133  ;;  %6153 = vrcp.f32 %v9255_v62 }
 0x979   : > { %v6136_v48 = vpop.eup %6135  ;;  %6155 = vrcp.f32 %v9259_v63 }
 0x97a   : > { %4467 = vperm.xlu1 %6102, %v6120_v59   ;;  %v6138_v25 = vpop.eup %6137  ;;  %6157 = vrcp.f32 %v9261_v53 }
 0x97b   : > { %4462 = vperm.xlu0 %6101, %v6122_v11   ;;  %v6140_v29 = vpop.eup %6139  ;;  %6159 = vrcp.f32 %v9265_v47  ;;  %v9301_v11 = vld [vmem:[#allocation3 + $0x148] sm:$0xff] }
 0x97c   : > { %v6142_v42 = vpop.eup %6141  ;;  %6161 = vrcp.f32 %v9267_v49 }
 0x97d   : > { %v6144_v27 = vpop.eup %6143  ;;  %6163 = vrcp.f32 %v9271_v0 }
 0x97e   : > { %4477 = vperm.xlu1 %6102, %v6124_v36   ;;  %v6146_v20 = vpop.eup %6145  ;;  %6165 = vrcp.f32 %v9273_v50 }
 0x97f   : > { %4472 = vperm.xlu0 %6101, %v6126_v52   ;;  %v6148_v16 = vpop.eup %6147  ;;  %6167 = vrcp.f32 %v9277_v2  ;;  %v9303_v52 = vld [vmem:[#allocation3 + $0x140] sm:$0xff] }
 0x980   : > { %v6150_v10 = vpop.eup %6149  ;;  %6169 = vrcp.f32 %v9279_v51 }
 0x981   : > { %v6152_v57 = vpop.eup %6151  ;;  %6171 = vrcp.f32 %v9283_v31 }
 0x982   : > { %4487 = vperm.xlu1 %6102, %v6128_v61   ;;  %v6154_v60 = vpop.eup %6153  ;;  %6173 = vrcp.f32 %v9285_v5 }
 0x983   : > { %4482 = vperm.xlu0 %6101, %v6130_v55   ;;  %v6156_v15 = vpop.eup %6155  ;;  %6175 = vrcp.f32 %v9289_v14  ;;  %v9307_v55 = vld [vmem:[#allocation3 + $0x158] sm:$0xff] }
 0x984   : > { %v6158_v6 = vpop.eup %6157  ;;  %6177 = vrcp.f32 %v9291_v44 }
 0x985   : > { %v6160_v32 = vpop.eup %6159  ;;  %6179 = vrcp.f32 %v9295_v33 }
 0x986   : > { %4497 = vperm.xlu1 %6102, %v6132_v58   ;;  %v6162_v23 = vpop.eup %6161  ;;  %6181 = vrcp.f32 %v9297_v21 }
 0x987   : > { %4492 = vperm.xlu0 %6101, %v6134_v30   ;;  %v6164_v3 = vpop.eup %6163  ;;  %6183 = vrcp.f32 %v9301_v11  ;;  %v9309_v30 = vld [vmem:[#allocation3 + $0x150] sm:$0xff] }
 0x988   : > { %v6166_v41 = vpop.eup %6165  ;;  %6185 = vrcp.f32 %v9303_v52 }
 0x989   : > { %v6168_v18 = vpop.eup %6167  ;;  %6187 = vrcp.f32 %v9307_v55 }
 0x98a   : > { %4507 = vperm.xlu1 %6102, %v6136_v48   ;;  %v6170_v59 = vpop.eup %6169  ;;  %6189 = vrcp.f32 %v9309_v30 }
 0x98b   : > { %4502 = vperm.xlu0 %6101, %v6138_v25   ;;  %v6172_v36 = vpop.eup %6171  ;;  %v9313_v25 = vld [vmem:[#allocation3 + $0x168] sm:$0xff] }
 0x98c   : > { %v6174_v61 = vpop.eup %6173  ;;  %6191 = vrcp.f32 %v9313_v25 }
 0x98d   : > { %v6176_v58 = vpop.eup %6175 }
 0x98e   : > { %4517 = vperm.xlu1 %6102, %v6140_v29   ;;  %v6178_v48 = vpop.eup %6177 }
 0x98f   : > { %4512 = vperm.xlu0 %6101, %v6142_v42   ;;  %v6180_v29 = vpop.eup %6179  ;;  %v9315_v42 = vld [vmem:[#allocation3 + $0x160] sm:$0xff] }
 0x990   : > { %6193 = vrcp.f32 %v9315_v42 }
 0x992   : > { %4527 = vperm.xlu1 %6102, %v6144_v27   ;;  %v6182_v27 = vpop.eup %6181 }
 0x993   : > { %4522 = vperm.xlu0 %6101, %v6146_v20   ;;  %v9319_v20 = vld [vmem:[#allocation3 + $0x178] sm:$0xff] }
 0x994   : > { %6195 = vrcp.f32 %v9319_v20 }
 0x996   : > { %4537 = vperm.xlu1 %6102, %v6148_v16   ;;  %v6184_v16 = vpop.eup %6183 }
 0x997   : > { %4532 = vperm.xlu0 %6101, %v6150_v10   ;;  %v9321_v10 = vld [vmem:[#allocation3 + $0x170] sm:$0xff] }
 0x998   : > { %6197 = vrcp.f32 %v9321_v10 }
 0x99a   : > { %4547 = vperm.xlu1 %6102, %v6152_v57   ;;  %v6186_v57 = vpop.eup %6185 }
 0x99b   : > { %4542 = vperm.xlu0 %6101, %v6154_v60   ;;  %v9325_v60 = vld [vmem:[#allocation3 + $0x188] sm:$0xff] }
 0x99c   : > { %6199 = vrcp.f32 %v9325_v60 }
 0x99e   : > { %4557 = vperm.xlu1 %6102, %v6156_v15   ;;  %v6188_v15 = vpop.eup %6187 }
 0x99f   : > { %4552 = vperm.xlu0 %6101, %v6158_v6   ;;  %v9327_v6 = vld [vmem:[#allocation3 + $0x180] sm:$0xff] }
 0x9a0   : > { %6201 = vrcp.f32 %v9327_v6 }
 0x9a2   : > { %4567 = vperm.xlu1 %6102, %v6160_v32   ;;  %v6190_v32 = vpop.eup %6189 }
 0x9a3   : > { %4562 = vperm.xlu0 %6101, %v6162_v23   ;;  %v9331_v23 = vld [vmem:[#allocation3 + $0x198] sm:$0xff] }
 0x9a4   : > { %6203 = vrcp.f32 %v9331_v23 }
 0x9a6   : > { %4577 = vperm.xlu1 %6102, %v6164_v3   ;;  %v6192_v3 = vpop.eup %6191 }
 0x9a7   : > { %4572 = vperm.xlu0 %6101, %v6166_v41   ;;  %v9333_v41 = vld [vmem:[#allocation3 + $0x190] sm:$0xff] }
 0x9a8   : > { %6205 = vrcp.f32 %v9333_v41 }
 0x9aa   : > { %4587 = vperm.xlu1 %6102, %v6168_v18   ;;  %v6194_v18 = vpop.eup %6193 }
 0x9ab   : > { %4582 = vperm.xlu0 %6101, %v6170_v59   ;;  %v9337_v59 = vld [vmem:[#allocation3 + $0x1a8] sm:$0xff] }
 0x9ac   : > { %6207 = vrcp.f32 %v9337_v59 }
 0x9ae   : > { %4597 = vperm.xlu1 %6102, %v6172_v36   ;;  %v6196_v36 = vpop.eup %6195 }
 0x9af   : > { %4592 = vperm.xlu0 %6101, %v6174_v61   ;;  %v9339_v61 = vld [vmem:[#allocation3 + $0x1a0] sm:$0xff] }
 0x9b0   : > { %6209 = vrcp.f32 %v9339_v61 }
 0x9b2   : > { %4607 = vperm.xlu1 %6102, %v6176_v58   ;;  %v6198_v58 = vpop.eup %6197 }
 0x9b3   : > { %4602 = vperm.xlu0 %6101, %v6178_v48   ;;  %v9343_v48 = vld [vmem:[#allocation3 + $0x1b8] sm:$0xff] }
 0x9b4   : > { %10661 = vst [vmem:[#allocation179_spill] sm:$0xff] %v9343_v48  ;;  %6211 = vrcp.f32 %v9343_v48 }
 0x9b6   : > { %4617 = vperm.xlu1 %6102, %v6180_v29   ;;  %v6200_v29 = vpop.eup %6199 }
 0x9b7   : > { %4612 = vperm.xlu0 %6101, %v6182_v27   ;;  %v9345_v27 = vld [vmem:[#allocation3 + $0x1b0] sm:$0xff] }
 0x9b8   : > { %6213 = vrcp.f32 %v9345_v27 }
 0x9ba   : > { %4627 = vperm.xlu1 %6102, %v6184_v16   ;;  %v6202_v16 = vpop.eup %6201 }
 0x9bb   : > { %4622 = vperm.xlu0 %6101, %v6186_v57   ;;  %v9349_v57 = vld [vmem:[#allocation3 + $0x1c8] sm:$0xff] }
 0x9bc   : > { %10662 = vst [vmem:[#allocation180_spill] sm:$0xff] %v9349_v57  ;;  %6215 = vrcp.f32 %v9349_v57  ;;  %v9363_v57 = vld [vmem:[#allocation3 + $0x1e0] sm:$0xff] }
 0x9be   : > { %4637 = vperm.xlu1 %6102, %v6188_v15   ;;  %v6204_v15 = vpop.eup %6203 }
 0x9bf   : > { %4632 = vperm.xlu0 %6101, %v6190_v32   ;;  %v9351_v32 = vld [vmem:[#allocation3 + $0x1c0] sm:$0xff] }
 0x9c0   : > { %10663 = vst [vmem:[#allocation181_spill] sm:$0xff] %v9351_v32  ;;  %6217 = vrcp.f32 %v9351_v32  ;;  %v9366_v32 = vld [vmem:[#allocation3 + $0x1f8] sm:$0xff] }
 0x9c1   : > { %10667 = vst [vmem:[#allocation185_spill] sm:$0xff] %v9366_v32 }
 0x9c2   : > { %4647 = vperm.xlu1 %6102, %v6192_v3   ;;  %v6206_v3 = vpop.eup %6205 }
 0x9c3   : > { %4642 = vperm.xlu0 %6101, %v6194_v18   ;;  %v9355_v18 = vld [vmem:[#allocation3 + $0x1d8] sm:$0xff] }
 0x9c4   : > { %10664 = vst [vmem:[#allocation182_spill] sm:$0xff] %v9355_v18  ;;  %6219 = vrcp.f32 %v9355_v18 }
 0x9c6   : > { %4657 = vperm.xlu1 %6102, %v6196_v36   ;;  %v6208_v36 = vpop.eup %6207 }
 0x9c7   : > { %4652 = vperm.xlu0 %6101, %v6198_v58   ;;  %v9357_v58 = vld [vmem:[#allocation3 + $0x1d0] sm:$0xff] }
 0x9c8   : > { %10665 = vst [vmem:[#allocation183_spill] sm:$0xff] %v9357_v58  ;;  %6221 = vrcp.f32 %v9357_v58 }
 0x9ca   : > { %4667 = vperm.xlu1 %6102, %v6200_v29   ;;  %v6210_v29 = vpop.eup %6209 }
 0x9cb   : > { %4662 = vperm.xlu0 %6101, %v6202_v16   ;;  %v9361_v16 = vld [vmem:[#allocation3 + $0x1e8] sm:$0xff]  ;;  %v6212_v48 = vpop.eup %6211 }
 0x9cc   : > { %10666 = vst [vmem:[#allocation184_spill] sm:$0xff] %v9361_v16  ;;  %6223 = vrcp.f32 %v9361_v16 }
 0x9cd   : > { %6225 = vrcp.f32 %v9363_v57 }
 0x9ce   : > { %4677 = vperm.xlu1 %6102, %v6204_v15   ;;  %v6214_v15 = vpop.eup %6213  ;;  %6227 = vrcp.f32 %v9366_v32 }
 0x9cf   : > { %4672 = vperm.xlu0 %6101, %v6206_v3   ;;  %v9369_v3 = vld [vmem:[#allocation3 + $0x1f0] sm:$0xff]  ;;  %v6216_v18 = vpop.eup %6215 }
 0x9d0   : > { %10668 = vst [vmem:[#allocation186_spill] sm:$0xff] %v9369_v3  ;;  %6229 = vrcp.f32 %v9369_v3  ;;  %v4873_v3 = vld [vmem:[#allocation2 + $0x28] sm:$0xff] }
 0x9d1   : > { %6231 = vlog2.f32 %v9184_v56 }
 0x9d2   : > { %4687 = vperm.xlu1 %6102, %v6208_v36   ;;  %v6218_v36 = vpop.eup %6217  ;;  %6233 = vlog2.f32 %v9188_v46 }
 0x9d3   : > { %4682 = vperm.xlu0 %6101, %v6210_v29   ;;  %v4934_v29 = vld [vmem:[#allocation3 + $0x10] sm:$0xff]  ;;  %v6220_v58 = vpop.eup %6219 }
 0x9d4   : > { %6235 = vlog2.f32 %v4934_v29  ;;  %v4871_v29 = vld [vmem:[#allocation2 + $0x18] sm:$0xff] }
 0x9d5   : > { %6237 = vlog2.f32 %v9186_v8 }
 0x9d6   : > { %4697 = vperm.xlu1 %6102, %v6212_v48   ;;  %v6222_v48 = vpop.eup %6221  ;;  %6239 = vlog2.f32 %v9195_v1 }
 0x9d7   : > { %4692 = vperm.xlu0 %6101, %v6214_v15   ;;  %v6224_v15 = vpop.eup %6223  ;;  %6241 = vlog2.f32 %v9193_v34 }
 0x9d8   : > { %v6226_v32 = vpop.eup %6225  ;;  %6243 = vlog2.f32 %v9201_v39  ;;  %v4868_v39 = vld [vmem:[#allocation2] sm:$0xff] }
 0x9d9   : > { %6245 = vlog2.f32 %v9199_v9  ;;  %v6228_v56 = vpop.eup %6227 }
 0x9da   : > { %4707 = vperm.xlu1 %6102, %v6216_v18   ;;  %6247 = vlog2.f32 %v9207_v40  ;;  %v6230_v46 = vpop.eup %6229  ;;  %v4358_v40 = vld [vmem:[#allocation4 + $0x10] sm:$0xff] }
 0x9db   : > { %4702 = vperm.xlu0 %6101, %v6218_v36   ;;  %6249 = vlog2.f32 %v9205_v4  ;;  %v6232_v8 = vpop.eup %6231 }
 0x9dc   : > { %6251 = vlog2.f32 %v9213_v13  ;;  %v6234_v1 = vpop.eup %6233  ;;  %v4997_v18 = vmul.f32 0.6931472, %v6232_v8 }
 0x9dd   : > { %6253 = vlog2.f32 %v9211_v12  ;;  %v4999_v9 = vmul.f32 0.6931472, %v6234_v1  ;;  %v4872_v12 = vld [vmem:[#allocation2 + $0x20] sm:$0xff] }
 0x9de   : > { %4717 = vperm.xlu1 %6102, %v6220_v58   ;;  %v6236_v34 = vpop.eup %6235  ;;  %v4869_v58 = vld [vmem:[#allocation2 + $0x8] sm:$0xff]  ;;  %6255 = vlog2.f32 %v9219_v28  ;;  %v5124_v13 = vadd.f32 %v4997_v18, %v4868_v39  ;;  %v4874_v39 = vld [vmem:[#allocation2 + $0x30] sm:$0xff] }
 0x9df   : > { %4712 = vperm.xlu0 %6101, %v6222_v48   ;;  %v6238_v36 = vpop.eup %6237  ;;  %v5001_v4 = vmul.f32 0.6931472, %v6236_v34  ;;  %6257 = vlog2.f32 %v9217_v26 }
 0x9e0   : > { %v6240_v48 = vpop.eup %6239  ;;  %v5003_v8 = vmul.f32 0.6931472, %v6238_v36  ;;  %6259 = vlog2.f32 %v9225_v24  ;;  %5188 = vst.msk [vmem:[%s6484_s22] sm:$0xff] %vm3070_vm3, %v5124_v13 }
 0x9e1   : > { %v6242_v1 = vpop.eup %6241  ;;  %6261 = vlog2.f32 %v9223_v35  ;;  %v4359_v35 = vld [vmem:[#allocation4 + $0x18] sm:$0xff] }
 0x9e2   : > { %4727 = vperm.xlu1 %6102, %v6224_v15   ;;  %v4356_v15 = vld [vmem:[#allocation4] sm:$0xff]  ;;  %v6244_v26 = vpop.eup %6243  ;;  %v5007_v36 = vmul.f32 0.6931472, %v6242_v1  ;;  %6263 = vlog2.f32 %v9231_v43  ;;  %v5127_v24 = vadd.f32 %v5003_v8, %v4871_v29  ;;  %v4357_v43 = vld [vmem:[#allocation4 + $0x8] sm:$0xff] }
 0x9e3   : > { %4722 = vperm.xlu0 %6101, %v6226_v32   ;;  %v4870_v32 = vld [vmem:[#allocation2 + $0x10] sm:$0xff]  ;;  %6265 = vlog2.f32 %v9229_v54  ;;  %v4876_v29 = vld [vmem:[#allocation2 + $0x40] sm:$0xff] }
 0x9e4   : > { %v5126_v16 = vadd.f32 %v5001_v4, %v4870_v32  ;;  %v4875_v32 = vld [vmem:[#allocation2 + $0x38] sm:$0xff]  ;;  %v5009_v4 = vmul.f32 0.6931472, %v6244_v26  ;;  %6267 = vlog2.f32 %v9237_v22  ;;  %v5129_v8 = vadd.f32 %v5007_v36, %v4873_v3  ;;  %5191 = vst.msk [vmem:[%s6484_s22 + $0x18] sm:$0xff] %vm3070_vm3, %v5127_v24  ;;  %v4878_v3 = vld [vmem:[#allocation2 + $0x50] sm:$0xff] }
 0x9e5   : > { %6269 = vlog2.f32 %v9235_v17  ;;  %v4361_v17 = vld [vmem:[#allocation4 + $0x28] sm:$0xff] }
 0x9e6   : > { %4737 = vperm.xlu1 %6102, %v6228_v56   ;;  %v5125_v56 = vadd.f32 %v4999_v9, %v4869_v58  ;;  %v6246_v58 = vpop.eup %6245  ;;  %5190 = vst.msk [vmem:[%s6484_s22 + $0x10] sm:$0xff] %vm3070_vm3, %v5126_v16  ;;  %v5130_v16 = vadd.f32 %v5009_v4, %v4874_v39  ;;  %6271 = vlog2.f32 %v9243_v45  ;;  %5193 = vst.msk [vmem:[%s6484_s22 + $0x28] sm:$0xff] %vm3070_vm3, %v5129_v8  ;;  %v4879_v39 = vld [vmem:[#allocation2 + $0x58] sm:$0xff]  ;;  %v4360_v45 = vld [vmem:[#allocation4 + $0x20] sm:$0xff] }
 0x9e7   : > { %4732 = vperm.xlu0 %6101, %v6230_v46   ;;  %v5005_v46 = vmul.f32 0.6931472, %v6240_v48  ;;  %v5011_v48 = vmul.f32 0.6931472, %v6246_v58  ;;  %6273 = vlog2.f32 %v9241_v7  ;;  %v4882_v8 = vld [vmem:[#allocation2 + $0x70] sm:$0xff] }
 0x9e8   : > { %5189 = vst.msk [vmem:[%s6484_s22 + $0x8] sm:$0xff] %vm3070_vm3, %v5125_v56  ;;  %5194 = vst.msk [vmem:[%s6484_s22 + $0x30] sm:$0xff] %vm3070_vm3, %v5130_v16  ;;  %6275 = vlog2.f32 %v9249_v19  ;;  %v4883_v16 = vld [vmem:[#allocation2 + $0x78] sm:$0xff] }
 0x9e9   : > { %v4433_v28 = vpop.permute.xlu1 %4432  ;;  %v5128_v13 = vadd.f32 %v5005_v46, %v4872_v12  ;;  %v4877_v12 = vld [vmem:[#allocation2 + $0x48] sm:$0xff]  ;;  %v5131_v26 = vadd.f32 %v5011_v48, %v4875_v32  ;;  %6277 = vlog2.f32 %v9247_v37  ;;  %v4363_v37 = vld [vmem:[#allocation4 + $0x38] sm:$0xff] }
 0x9ea   : > { %v4742_v18 = vmul.f32 %v4433_v28, %v4358_v40  ;;  %v4423_v34 = vpop.permute.xlu0 %4422  ;;  %v6248_v40 = vpop.eup %6247  ;;  %6279 = vlog2.f32 %v9255_v62  ;;  %v4362_v62 = vld [vmem:[#allocation4 + $0x30] sm:$0xff] }
 0x9eb   : > { %v4740_v9 = vmul.f32 %v4423_v34, %v4356_v15  ;;  %v6250_v15 = vpop.eup %6249  ;;  %v5013_v56 = vmul.f32 0.6931472, %v6248_v40  ;;  %5192 = vst.msk [vmem:[%s6484_s22 + $0x20] sm:$0xff] %vm3070_vm3, %v5128_v13  ;;  %5195 = vst.msk [vmem:[%s6484_s22 + $0x38] sm:$0xff] %vm3070_vm3, %v5131_v26  ;;  %v4881_v13 = vld [vmem:[#allocation2 + $0x68] sm:$0xff]  ;;  %6281 = vlog2.f32 %v9253_v38 }
 0x9ec   : > { %4806 = vst.msk [vmem:[%s6479_s13 + $0x10] sm:$0xff] %vm972_vm2, %v4742_v18  ;;  %v6252_v1 = vpop.eup %6251  ;;  %v5015_v46 = vmul.f32 0.6931472, %v6250_v15  ;;  %6283 = vlog2.f32 %v9261_v53 }
 0x9ed   : > { %4804 = vst.msk [vmem:[%s6479_s13] sm:$0xff] %vm972_vm2, %v4740_v9  ;;  %v4438_v54 = vpop.permute.xlu1 %4437  ;;  %v6254_v18 = vpop.eup %6253  ;;  %v5017_v36 = vmul.f32 0.6931472, %v6252_v1  ;;  %v5132_v24 = vadd.f32 %v5013_v56, %v4876_v29  ;;  %v4880_v9 = vld [vmem:[#allocation2 + $0x60] sm:$0xff]  ;;  %6285 = vlog2.f32 %v9259_v63  ;;  %v4365_v63 = vld [vmem:[#allocation4 + $0x48] sm:$0xff] }
 0x9ee   : > { %v4743_v28 = vmul.f32 %v4438_v54, %v4359_v35  ;;  %v4428_v22 = vpop.permute.xlu0 %4427  ;;  %v6256_v58 = vpop.eup %6255  ;;  %v5019_v35 = vmul.f32 0.6931472, %v6254_v18  ;;  %v5133_v32 = vadd.f32 %v5015_v46, %v4877_v12  ;;  %6287 = vlog2.f32 %v9267_v49  ;;  %v4364_v49 = vld [vmem:[#allocation4 + $0x40] sm:$0xff] }
 0x9ef   : > { %v4741_v34 = vmul.f32 %v4428_v22, %v4357_v43  ;;  %v6258_v4 = vpop.eup %6257  ;;  %v5021_v40 = vmul.f32 0.6931472, %v6256_v58  ;;  %v5134_v43 = vadd.f32 %v5017_v36, %v4878_v3  ;;  %5196 = vst.msk [vmem:[%s6484_s22 + $0x40] sm:$0xff] %vm3070_vm3, %v5132_v24  ;;  %v4884_v3 = vld [vmem:[#allocation2 + $0x80] sm:$0xff]  ;;  %v4886_v58 = vld [vmem:[#allocation2 + $0x90] sm:$0xff]  ;;  %6289 = vlog2.f32 %v9265_v47 }
 0x9f0   : > { %4807 = vst.msk [vmem:[%s6479_s13 + $0x18] sm:$0xff] %vm972_vm2, %v4743_v28  ;;  %v6260_v29 = vpop.eup %6259  ;;  %v5023_v15 = vmul.f32 0.6931472, %v6258_v4  ;;  %v5135_v54 = vadd.f32 %v5019_v35, %v4879_v39  ;;  %v4887_v4 = vld [vmem:[#allocation2 + $0x98] sm:$0xff]  ;;  %6291 = vlog2.f32 %v9273_v50 }
 0x9f1   : > { %4805 = vst.msk [vmem:[%s6479_s13 + $0x8] sm:$0xff] %vm972_vm2, %v4741_v34  ;;  %v4448_v7 = vpop.permute.xlu1 %4447  ;;  %v6262_v12 = vpop.eup %6261  ;;  %v5025_v1 = vmul.f32 0.6931472, %v6260_v29  ;;  %v5136_v28 = vadd.f32 %v5021_v40, %v4880_v9  ;;  %v4885_v34 = vld [vmem:[#allocation2 + $0x88] sm:$0xff]  ;;  %6293 = vlog2.f32 %v9271_v0  ;;  %v4367_v0 = vld [vmem:[#allocation4 + $0x58] sm:$0xff] }
 0x9f2   : > { %v4745_v48 = vmul.f32 %v4448_v7, %v4361_v17  ;;  %v4443_v19 = vpop.permute.xlu0 %4442  ;;  %5197 = vst.msk [vmem:[%s6484_s22 + $0x48] sm:$0xff] %vm3070_vm3, %v5133_v32  ;;  %5198 = vst.msk [vmem:[%s6484_s22 + $0x50] sm:$0xff] %vm3070_vm3, %v5134_v43  ;;  %v6264_v22 = vpop.eup %6263  ;;  %v5027_v46 = vmul.f32 0.6931472, %v6262_v12  ;;  %v5137_v26 = vadd.f32 %v5023_v15, %v4881_v13  ;;  %v4888_v43 = vld [vmem:[#allocation2 + $0xa0] sm:$0xff]  ;;  %6295 = vlog2.f32 %v9279_v51  ;;  %v4366_v51 = vld [vmem:[#allocation4 + $0x50] sm:$0xff] }
 0x9f3   : > { %v4744_v56 = vmul.f32 %v4443_v19, %v4360_v45  ;;  %5199 = vst.msk [vmem:[%s6484_s22 + $0x58] sm:$0xff] %vm3070_vm3, %v5135_v54  ;;  %v6266_v18 = vpop.eup %6265  ;;  %v5029_v17 = vmul.f32 0.6931472, %v6264_v22  ;;  %v5138_v39 = vadd.f32 %v5025_v1, %v4882_v8  ;;  %5200 = vst.msk [vmem:[%s6484_s22 + $0x60] sm:$0xff] %vm3070_vm3, %v5136_v28  ;;  %v4889_v8 = vld [vmem:[#allocation2 + $0xa8] sm:$0xff]  ;;  %6297 = vlog2.f32 %v9277_v2 }
 0x9f4   : > { %4809 = vst.msk [vmem:[%s6479_s13 + $0x28] sm:$0xff] %vm972_vm2, %v4745_v48  ;;  %v6268_v36 = vpop.eup %6267  ;;  %v5031_v45 = vmul.f32 0.6931472, %v6266_v18  ;;  %v5139_v9 = vadd.f32 %v5027_v46, %v4883_v16  ;;  %v4892_v18 = vld [vmem:[#allocation2 + $0xc0] sm:$0xff]  ;;  %6299 = vlog2.f32 %v9285_v5 }
 0x9f5   : > { %4808 = vst.msk [vmem:[%s6479_s13 + $0x20] sm:$0xff] %vm972_vm2, %v4744_v56  ;;  %v4458_v38 = vpop.permute.xlu1 %4457  ;;  %v6270_v35 = vpop.eup %6269  ;;  %v5033_v7 = vmul.f32 0.6931472, %v6268_v36  ;;  %v5140_v13 = vadd.f32 %v5029_v17, %v4884_v3  ;;  %6301 = vlog2.f32 %v9283_v31  ;;  %v4369_v31 = vld [vmem:[#allocation4 + $0x68] sm:$0xff] }
 0x9f6   : > { %v4747_v24 = vmul.f32 %v4458_v38, %v4363_v37  ;;  %v4453_v53 = vpop.permute.xlu0 %4452  ;;  %5201 = vst.msk [vmem:[%s6484_s22 + $0x68] sm:$0xff] %vm3070_vm3, %v5137_v26  ;;  %5202 = vst.msk [vmem:[%s6484_s22 + $0x70] sm:$0xff] %vm3070_vm3, %v5138_v39  ;;  %v6272_v40 = vpop.eup %6271  ;;  %v5035_v29 = vmul.f32 0.6931472, %v6270_v35  ;;  %v5141_v48 = vadd.f32 %v5031_v45, %v4885_v34  ;;  %v4890_v37 = vld [vmem:[#allocation2 + $0xb0] sm:$0xff]  ;;  %v4893_v39 = vld [vmem:[#allocation2 + $0xc8] sm:$0xff]  ;;  %6303 = vlog2.f32 %v9291_v44 }
 0x9f7   : > { %v4746_v32 = vmul.f32 %v4453_v53, %v4362_v62  ;;  %5203 = vst.msk [vmem:[%s6484_s22 + $0x78] sm:$0xff] %vm3070_vm3, %v5139_v9  ;;  %v6274_v19 = vpop.eup %6273  ;;  %v5037_v15 = vmul.f32 0.6931472, %v6272_v40  ;;  %v5142_v54 = vadd.f32 %v5033_v7, %v4886_v58  ;;  %5204 = vst.msk [vmem:[%s6484_s22 + $0x80] sm:$0xff] %vm3070_vm3, %v5140_v13  ;;  %v4891_v62 = vld [vmem:[#allocation2 + $0xb8] sm:$0xff]  ;;  %v4894_v45 = vld [vmem:[#allocation2 + $0xd0] sm:$0xff]  ;;  %6305 = vlog2.f32 %v9289_v14 }
 0x9f8   : > { %4811 = vst.msk [vmem:[%s6479_s13 + $0x38] sm:$0xff] %vm972_vm2, %v4747_v24  ;;  %v6276_v12 = vpop.eup %6275  ;;  %v5039_v16 = vmul.f32 0.6931472, %v6274_v19  ;;  %v5143_v1 = vadd.f32 %v5035_v29, %v4887_v4  ;;  %v4895_v4 = vld [vmem:[#allocation2 + $0xd8] sm:$0xff]  ;;  %v4368_v44 = vld [vmem:[#allocation4 + $0x60] sm:$0xff]  ;;  %6307 = vlog2.f32 %v9297_v21  ;;  %v4897_v19 = vld [vmem:[#allocation2 + $0xe8] sm:$0xff] }
 0x9f9   : > { %4810 = vst.msk [vmem:[%s6479_s13 + $0x30] sm:$0xff] %vm972_vm2, %v4746_v32  ;;  %v4468_v47 = vpop.permute.xlu1 %4467  ;;  %v6278_v28 = vpop.eup %6277  ;;  %v5041_v3 = vmul.f32 0.6931472, %v6276_v12  ;;  %v5144_v46 = vadd.f32 %v5037_v15, %v4888_v43  ;;  %6309 = vlog2.f32 %v9295_v33  ;;  %v4898_v12 = vld [vmem:[#allocation2 + $0xf0] sm:$0xff]  ;;  %v4371_v33 = vld [vmem:[#allocation4 + $0x78] sm:$0xff] }
 0x9fa   : > { %v4749_v56 = vmul.f32 %v4468_v47, %v4365_v63  ;;  %v4463_v50 = vpop.permute.xlu0 %4462  ;;  %5205 = vst.msk [vmem:[%s6484_s22 + $0x88] sm:$0xff] %vm3070_vm3, %v5141_v48  ;;  %5206 = vst.msk [vmem:[%s6484_s22 + $0x90] sm:$0xff] %vm3070_vm3, %v5142_v54  ;;  %v6280_v26 = vpop.eup %6279  ;;  %v5043_v38 = vmul.f32 0.6931472, %v6278_v28  ;;  %v5145_v34 = vadd.f32 %v5039_v16, %v4889_v8  ;;  %6311 = vlog2.f32 %v9303_v52  ;;  %v4370_v52 = vld [vmem:[#allocation4 + $0x70] sm:$0xff] }
 0x9fb   : > { %v4748_v22 = vmul.f32 %v4463_v50, %v4364_v49  ;;  %5207 = vst.msk [vmem:[%s6484_s22 + $0x98] sm:$0xff] %vm3070_vm3, %v5143_v1  ;;  %v6282_v17 = vpop.eup %6281  ;;  %v5045_v36 = vmul.f32 0.6931472, %v6280_v26  ;;  %v5146_v24 = vadd.f32 %v5041_v3, %v4890_v37  ;;  %5208 = vst.msk [vmem:[%s6484_s22 + $0xa0] sm:$0xff] %vm3070_vm3, %v5144_v46  ;;  %v4896_v49 = vld [vmem:[#allocation2 + $0xe0] sm:$0xff]  ;;  %v4899_v1 = vld [vmem:[#allocation2 + $0xf8] sm:$0xff]  ;;  %6313 = vlog2.f32 %v9301_v11 }
 0x9fc   : > { %4813 = vst.msk [vmem:[%s6479_s13 + $0x48] sm:$0xff] %vm972_vm2, %v4749_v56  ;;  %v6284_v53 = vpop.eup %6283  ;;  %v5047_v9 = vmul.f32 0.6931472, %v6282_v17  ;;  %v5147_v35 = vadd.f32 %v5043_v38, %v4891_v62  ;;  %v4900_v62 = vld [vmem:[#allocation2 + $0x100] sm:$0xff]  ;;  %6315 = vlog2.f32 %v9309_v30 }
 0x9fd   : > { %4812 = vst.msk [vmem:[%s6479_s13 + $0x40] sm:$0xff] %vm972_vm2, %v4748_v22  ;;  %v4478_v2 = vpop.permute.xlu1 %4477  ;;  %v6286_v32 = vpop.eup %6285  ;;  %v5049_v7 = vmul.f32 0.6931472, %v6284_v53  ;;  %v5148_v13 = vadd.f32 %v5045_v36, %v4892_v18  ;;  %6317 = vlog2.f32 %v9307_v55  ;;  %v4373_v55 = vld [vmem:[#allocation4 + $0x88] sm:$0xff] }
 0x9fe   : > { %v4751_v58 = vmul.f32 %v4478_v2, %v4367_v0  ;;  %v4473_v5 = vpop.permute.xlu0 %4472  ;;  %5209 = vst.msk [vmem:[%s6484_s22 + $0xa8] sm:$0xff] %vm3070_vm3, %v5145_v34  ;;  %5210 = vst.msk [vmem:[%s6484_s22 + $0xb0] sm:$0xff] %vm3070_vm3, %v5146_v24  ;;  %v6288_v40 = vpop.eup %6287  ;;  %v5051_v43 = vmul.f32 0.6931472, %v6286_v32  ;;  %v5149_v29 = vadd.f32 %v5047_v9, %v4893_v39  ;;  %v4902_v2 = vld [vmem:[#allocation2 + $0x110] sm:$0xff]  ;;  %6319 = vlog2.f32 %v9315_v42  ;;  %v4372_v42 = vld [vmem:[#allocation4 + $0x80] sm:$0xff] }
 0x9ff   : > { %v4750_v63 = vmul.f32 %v4473_v5, %v4366_v51  ;;  %5211 = vst.msk [vmem:[%s6484_s22 + $0xb8] sm:$0xff] %vm3070_vm3, %v5147_v35  ;;  %v6290_v48 = vpop.eup %6289  ;;  %v5053_v47 = vmul.f32 0.6931472, %v6288_v40  ;;  %v5150_v8 = vadd.f32 %v5049_v7, %v4894_v45  ;;  %5212 = vst.msk [vmem:[%s6484_s22 + $0xc0] sm:$0xff] %vm3070_vm3, %v5148_v13  ;;  %v4901_v51 = vld [vmem:[#allocation2 + $0x108] sm:$0xff]  ;;  %6321 = vlog2.f32 %v9313_v25  ;;  %v4904_v35 = vld [vmem:[#allocation2 + $0x120] sm:$0xff] }
 0xa00   : > { %4815 = vst.msk [vmem:[%s6479_s13 + $0x58] sm:$0xff] %vm972_vm2, %v4751_v58  ;;  %v6292_v15 = vpop.eup %6291  ;;  %v5055_v56 = vmul.f32 0.6931472, %v6290_v48  ;;  %v5151_v50 = vadd.f32 %v5051_v43, %v4895_v4  ;;  %v4903_v58 = vld [vmem:[#allocation2 + $0x118] sm:$0xff]  ;;  %6323 = vlog2.f32 %v9321_v10  ;;  %v4905_v4 = vld [vmem:[#allocation2 + $0x128] sm:$0xff] }
 0xa01   : > { %4814 = vst.msk [vmem:[%s6479_s13 + $0x50] sm:$0xff] %vm972_vm2, %v4750_v63  ;;  %v4488_v14 = vpop.permute.xlu1 %4487  ;;  %v6294_v37 = vpop.eup %6293  ;;  %v5057_v28 = vmul.f32 0.6931472, %v6292_v15  ;;  %v5152_v22 = vadd.f32 %v5053_v47, %v4896_v49  ;;  %6325 = vlog2.f32 %v9319_v20  ;;  %v4906_v49 = vld [vmem:[#allocation2 + $0x130] sm:$0xff]  ;;  %v4375_v20 = vld [vmem:[#allocation4 + $0x98] sm:$0xff] }
 0xa02   : > { %v4753_v54 = vmul.f32 %v4488_v14, %v4369_v31  ;;  %v4483_v21 = vpop.permute.xlu0 %4482  ;;  %5213 = vst.msk [vmem:[%s6484_s22 + $0xc8] sm:$0xff] %vm3070_vm3, %v5149_v29  ;;  %5214 = vst.msk [vmem:[%s6484_s22 + $0xd0] sm:$0xff] %vm3070_vm3, %v5150_v8  ;;  %v6296_v0 = vpop.eup %6295  ;;  %v5059_v3 = vmul.f32 0.6931472, %v6294_v37  ;;  %v5153_v46 = vadd.f32 %v5055_v56, %v4897_v19  ;;  %6327 = vlog2.f32 %v9327_v6  ;;  %v4907_v19 = vld [vmem:[#allocation2 + $0x138] sm:$0xff]  ;;  %v4374_v6 = vld [vmem:[#allocation4 + $0x90] sm:$0xff] }
 0xa03   : > { %v4752_v16 = vmul.f32 %v4483_v21, %v4368_v44  ;;  %5215 = vst.msk [vmem:[%s6484_s22 + $0xd8] sm:$0xff] %vm3070_vm3, %v5151_v50  ;;  %v6298_v26 = vpop.eup %6297  ;;  %v5061_v18 = vmul.f32 0.6931472, %v6296_v0  ;;  %v5154_v38 = vadd.f32 %v5057_v28, %v4898_v12  ;;  %5216 = vst.msk [vmem:[%s6484_s22 + $0xe0] sm:$0xff] %vm3070_vm3, %v5152_v22  ;;  %6329 = vlog2.f32 %v9325_v60  ;;  %v4909_v50 = vld [vmem:[#allocation2 + $0x148] sm:$0xff]  ;;  %v4910_v28 = vld [vmem:[#allocation2 + $0x150] sm:$0xff] }
 0xa04   : > { %4817 = vst.msk [vmem:[%s6479_s13 + $0x68] sm:$0xff] %vm972_vm2, %v4753_v54  ;;  %v6300_v34 = vpop.eup %6299  ;;  %v5063_v39 = vmul.f32 0.6931472, %v6298_v26  ;;  %v5155_v36 = vadd.f32 %v5059_v3, %v4899_v1  ;;  %v4908_v54 = vld [vmem:[#allocation2 + $0x140] sm:$0xff]  ;;  %6331 = vlog2.f32 %v9333_v41  ;;  %v4911_v3 = vld [vmem:[#allocation2 + $0x158] sm:$0xff] }
 0xa05   : > { %4816 = vst.msk [vmem:[%s6479_s13 + $0x60] sm:$0xff] %vm972_vm2, %v4752_v16  ;;  %v4498_v11 = vpop.permute.xlu1 %4497  ;;  %v6302_v24 = vpop.eup %6301  ;;  %v5065_v5 = vmul.f32 0.6931472, %v6300_v34  ;;  %v5156_v45 = vadd.f32 %v5061_v18, %v4900_v62  ;;  %6333 = vlog2.f32 %v9331_v23  ;;  %v4377_v23 = vld [vmem:[#allocation4 + $0xa8] sm:$0xff] }
 0xa06   : > { %v4755_v17 = vmul.f32 %v4498_v11, %v4371_v33  ;;  %v4493_v30 = vpop.permute.xlu0 %4492  ;;  %5217 = vst.msk [vmem:[%s6484_s22 + $0xe8] sm:$0xff] %vm3070_vm3, %v5153_v46  ;;  %5218 = vst.msk [vmem:[%s6484_s22 + $0xf0] sm:$0xff] %vm3070_vm3, %v5154_v38  ;;  %v6304_v9 = vpop.eup %6303  ;;  %v5067_v32 = vmul.f32 0.6931472, %v6302_v24  ;;  %v5157_v63 = vadd.f32 %v5063_v39, %v4901_v51  ;;  %6335 = vlog2.f32 %v9339_v61  ;;  %v4376_v61 = vld [vmem:[#allocation4 + $0xa0] sm:$0xff] }
 0xa07   : > { %v4754_v53 = vmul.f32 %v4493_v30, %v4370_v52  ;;  %5219 = vst.msk [vmem:[%s6484_s22 + $0xf8] sm:$0xff] %vm3070_vm3, %v5155_v36  ;;  %v6306_v31 = vpop.eup %6305  ;;  %v5069_v7 = vmul.f32 0.6931472, %v6304_v9  ;;  %v5158_v13 = vadd.f32 %v5065_v5, %v4902_v2  ;;  %5220 = vst.msk [vmem:[%s6484_s22 + $0x100] sm:$0xff] %vm3070_vm3, %v5156_v45  ;;  %6337 = vlog2.f32 %v9337_v59  ;;  %v4912_v51 = vld [vmem:[#allocation2 + $0x160] sm:$0xff]  ;;  %v10669_v2 = vld [vmem:[#allocation179_spill] sm:$0xff] }
 0xa08   : > { %4819 = vst.msk [vmem:[%s6479_s13 + $0x78] sm:$0xff] %vm972_vm2, %v4755_v17  ;;  %v6308_v40 = vpop.eup %6307  ;;  %v5071_v43 = vmul.f32 0.6931472, %v6306_v31  ;;  %v5159_v29 = vadd.f32 %v5067_v32, %v4903_v58  ;;  %6339 = vlog2.f32 %v9345_v27  ;;  %v4913_v17 = vld [vmem:[#allocation2 + $0x168] sm:$0xff]  ;;  %v10670_v58 = vld [vmem:[#allocation181_spill] sm:$0xff] }
 0xa09   : > { %4818 = vst.msk [vmem:[%s6479_s13 + $0x70] sm:$0xff] %vm972_vm2, %v4754_v53  ;;  %v4508_v25 = vpop.permute.xlu1 %4507  ;;  %v6310_v48 = vpop.eup %6309  ;;  %v5073_v47 = vmul.f32 0.6931472, %v6308_v40  ;;  %v5160_v8 = vadd.f32 %v5069_v7, %v4904_v35  ;;  %6341 = vlog2.f32 %v10669_v2  ;;  %v4914_v53 = vld [vmem:[#allocation2 + $0x170] sm:$0xff]  ;;  %v4915_v35 = vld [vmem:[#allocation2 + $0x178] sm:$0xff]  ;;  %v4916_v7 = vld [vmem:[#allocation2 + $0x180] sm:$0xff] }
 0xa0a   : > { %v4757_v44 = vmul.f32 %v4508_v25, %v4373_v55  ;;  %v4503_v10 = vpop.permute.xlu0 %4502  ;;  %5221 = vst.msk [vmem:[%s6484_s22 + $0x108] sm:$0xff] %vm3070_vm3, %v5157_v63  ;;  %5222 = vst.msk [vmem:[%s6484_s22 + $0x110] sm:$0xff] %vm3070_vm3, %v5158_v13  ;;  %v6312_v15 = vpop.eup %6311  ;;  %v5075_v21 = vmul.f32 0.6931472, %v6310_v48  ;;  %v5161_v12 = vadd.f32 %v5071_v43, %v4905_v4  ;;  %6343 = vlog2.f32 %v10670_v58  ;;  %v10671_v63 = vld [vmem:[#allocation180_spill] sm:$0xff]  ;;  %v4378_v4 = vld [vmem:[#allocation4 + $0xb0] sm:$0xff] }
 0xa0b   : > { %v4756_v14 = vmul.f32 %v4503_v10, %v4372_v42  ;;  %5223 = vst.msk [vmem:[%s6484_s22 + $0x118] sm:$0xff] %vm3070_vm3, %v5159_v29  ;;  %v6314_v56 = vpop.eup %6313  ;;  %v5077_v37 = vmul.f32 0.6931472, %v6312_v15  ;;  %v5162_v16 = vadd.f32 %v5073_v47, %v4906_v49  ;;  %5224 = vst.msk [vmem:[%s6484_s22 + $0x120] sm:$0xff] %vm3070_vm3, %v5160_v8  ;;  %v4379_v42 = vld [vmem:[#allocation4 + $0xb8] sm:$0xff]  ;;  %6345 = vlog2.f32 %v10671_v63  ;;  %v10672_v40 = vld [vmem:[#allocation183_spill] sm:$0xff] }
 0xa0c   : > { %4821 = vst.msk [vmem:[%s6479_s13 + $0x88] sm:$0xff] %vm972_vm2, %v4757_v44  ;;  %v6316_v33 = vpop.eup %6315  ;;  %v5079_v22 = vmul.f32 0.6931472, %v6314_v56  ;;  %v5163_v0 = vadd.f32 %v5075_v21, %v4907_v19  ;;  %6347 = vlog2.f32 %v10672_v40  ;;  %v4917_v43 = vld [vmem:[#allocation2 + $0x188] sm:$0xff]  ;;  %v4918_v8 = vld [vmem:[#allocation2 + $0x190] sm:$0xff]  ;;  %v4919_v56 = vld [vmem:[#allocation2 + $0x198] sm:$0xff] }
 0xa0d   : > { %4820 = vst.msk [vmem:[%s6479_s13 + $0x80] sm:$0xff] %vm972_vm2, %v4756_v14  ;;  %v4518_v60 = vpop.permute.xlu1 %4517  ;;  %v6318_v52 = vpop.eup %6317  ;;  %v5081_v46 = vmul.f32 0.6931472, %v6316_v33  ;;  %v5164_v26 = vadd.f32 %v5077_v37, %v4908_v54  ;;  %v10673_v48 = vld [vmem:[#allocation182_spill] sm:$0xff]  ;;  %v4920_v33 = vld [vmem:[#allocation2 + $0x1a0] sm:$0xff]  ;;  %v4926_v63 = vld [vmem:[#allocation2 + $0x1d0] sm:$0xff] }
 0xa0e   : > { %v4759_v1 = vmul.f32 %v4518_v60, %v4375_v20  ;;  %v4513_v41 = vpop.permute.xlu0 %4512  ;;  %5225 = vst.msk [vmem:[%s6484_s22 + $0x128] sm:$0xff] %vm3070_vm3, %v5161_v12  ;;  %5226 = vst.msk [vmem:[%s6484_s22 + $0x130] sm:$0xff] %vm3070_vm3, %v5162_v16  ;;  %v6320_v11 = vpop.eup %6319  ;;  %v5083_v18 = vmul.f32 0.6931472, %v6318_v52  ;;  %v5165_v38 = vadd.f32 %v5079_v22, %v4909_v50  ;;  %6349 = vlog2.f32 %v10673_v48  ;;  %v4381_v12 = vld [vmem:[#allocation4 + $0xc8] sm:$0xff]  ;;  %v10674_v50 = vld [vmem:[#allocation184_spill] sm:$0xff] }
 0xa0f   : > { %v4758_v62 = vmul.f32 %v4513_v41, %v4374_v6  ;;  %5227 = vst.msk [vmem:[%s6484_s22 + $0x138] sm:$0xff] %vm3070_vm3, %v5163_v0  ;;  %v6322_v34 = vpop.eup %6321  ;;  %v5085_v30 = vmul.f32 0.6931472, %v6320_v11  ;;  %v5166_v39 = vadd.f32 %v5081_v46, %v4910_v28  ;;  %5228 = vst.msk [vmem:[%s6484_s22 + $0x140] sm:$0xff] %vm3070_vm3, %v5164_v26  ;;  %6351 = vlog2.f32 %v9363_v57  ;;  %v4380_v57 = vld [vmem:[#allocation4 + $0xc0] sm:$0xff]  ;;  %v10675_v41 = vld [vmem:[#allocation186_spill] sm:$0xff] }
 0xa10   : > { %4823 = vst.msk [vmem:[%s6479_s13 + $0x98] sm:$0xff] %vm972_vm2, %v4759_v1  ;;  %v6324_v36 = vpop.eup %6323  ;;  %v5087_v55 = vmul.f32 0.6931472, %v6322_v34  ;;  %v5167_v5 = vadd.f32 %v5083_v18, %v4911_v3  ;;  %6353 = vlog2.f32 %v10674_v50  ;;  %v4921_v52 = vld [vmem:[#allocation2 + $0x1a8] sm:$0xff]  ;;  %v4927_v40 = vld [vmem:[#allocation2 + $0x1d8] sm:$0xff] }
 0xa11   : > { %4822 = vst.msk [vmem:[%s6479_s13 + $0x90] sm:$0xff] %vm972_vm2, %v4758_v62  ;;  %v4528_v59 = vpop.permute.xlu1 %4527  ;;  %v6326_v45 = vpop.eup %6325  ;;  %v5089_v32 = vmul.f32 0.6931472, %v6324_v36  ;;  %v5168_v31 = vadd.f32 %v5085_v30, %v4912_v51  ;;  %6355 = vlog2.f32 %v10675_v41  ;;  %v4382_v36 = vld [vmem:[#allocation4 + $0xd0] sm:$0xff] }
 0xa12   : > { %v4761_v24 = vmul.f32 %v4528_v59, %v4377_v23  ;;  %v4523_v27 = vpop.permute.xlu0 %4522  ;;  %5229 = vst.msk [vmem:[%s6484_s22 + $0x148] sm:$0xff] %vm3070_vm3, %v5165_v38  ;;  %5230 = vst.msk [vmem:[%s6484_s22 + $0x150] sm:$0xff] %vm3070_vm3, %v5166_v39  ;;  %v6328_v25 = vpop.eup %6327  ;;  %v5091_v13 = vmul.f32 0.6931472, %v6326_v45  ;;  %v5169_v44 = vadd.f32 %v5087_v55, %v4913_v17  ;;  %v10676_v23 = vld [vmem:[#allocation185_spill] sm:$0xff]  ;;  %v4383_v59 = vld [vmem:[#allocation4 + $0xd8] sm:$0xff] }
 0xa13   : > { %v4760_v9 = vmul.f32 %v4523_v27, %v4376_v61  ;;  %5231 = vst.msk [vmem:[%s6484_s22 + $0x158] sm:$0xff] %vm3070_vm3, %v5167_v5  ;;  %v6330_v10 = vpop.eup %6329  ;;  %v5093_v29 = vmul.f32 0.6931472, %v6328_v25  ;;  %v5170_v14 = vadd.f32 %v5089_v32, %v4914_v53  ;;  %5232 = vst.msk [vmem:[%s6484_s22 + $0x160] sm:$0xff] %vm3070_vm3, %v5168_v31  ;;  %6357 = vlog2.f32 %v10676_v23  ;;  %v4922_v61 = vld [vmem:[#allocation2 + $0x1b0] sm:$0xff]  ;;  %v4923_v17 = vld [vmem:[#allocation2 + $0x1b8] sm:$0xff] }
 0xa14   : > { %4825 = vst.msk [vmem:[%s6479_s13 + $0xa8] sm:$0xff] %vm972_vm2, %v4761_v24  ;;  %v6332_v20 = vpop.eup %6331  ;;  %v5095_v15 = vmul.f32 0.6931472, %v6330_v10  ;;  %v5171_v6 = vadd.f32 %v5091_v13, %v4915_v35  ;;  %v4924_v24 = vld [vmem:[#allocation2 + $0x1c0] sm:$0xff]  ;;  %v4925_v5 = vld [vmem:[#allocation2 + $0x1c8] sm:$0xff]  ;;  %v4386_v41 = vld [vmem:[#allocation4 + $0xf0] sm:$0xff] }
 0xa15   : > { %4824 = vst.msk [vmem:[%s6479_s13 + $0xa0] sm:$0xff] %vm972_vm2, %v4760_v9  ;;  %v4538_v49 = vpop.permute.xlu1 %4537  ;;  %v6334_v54 = vpop.eup %6333  ;;  %v5097_v60 = vmul.f32 0.6931472, %v6332_v20  ;;  %v5172_v37 = vadd.f32 %v5093_v29, %v4916_v7  ;;  %v4385_v13 = vld [vmem:[#allocation4 + $0xe8] sm:$0xff]  ;;  %v4928_v29 = vld [vmem:[#allocation2 + $0x1e0] sm:$0xff] }
 0xa16   : > { %v4763_v19 = vmul.f32 %v4538_v49, %v4379_v42  ;;  %v4533_v47 = vpop.permute.xlu0 %4532  ;;  %5233 = vst.msk [vmem:[%s6484_s22 + $0x168] sm:$0xff] %vm3070_vm3, %v5169_v44  ;;  %5234 = vst.msk [vmem:[%s6484_s22 + $0x170] sm:$0xff] %vm3070_vm3, %v5170_v14  ;;  %v6336_v16 = vpop.eup %6335  ;;  %v5099_v1 = vmul.f32 0.6931472, %v6334_v54  ;;  %v5173_v28 = vadd.f32 %v5095_v15, %v4917_v43  ;;  %v4384_v43 = vld [vmem:[#allocation4 + $0xe0] sm:$0xff] }
 0xa17   : > { %v4762_v21 = vmul.f32 %v4533_v47, %v4378_v4  ;;  %5235 = vst.msk [vmem:[%s6484_s22 + $0x178] sm:$0xff] %vm3070_vm3, %v5171_v6  ;;  %v6338_v22 = vpop.eup %6337  ;;  %v5101_v62 = vmul.f32 0.6931472, %v6336_v16  ;;  %v5174_v3 = vadd.f32 %v5097_v60, %v4918_v8  ;;  %5236 = vst.msk [vmem:[%s6484_s22 + $0x180] sm:$0xff] %vm3070_vm3, %v5172_v37  ;;  %v4929_v47 = vld [vmem:[#allocation2 + $0x1e8] sm:$0xff]  ;;  %v4387_v16 = vld [vmem:[#allocation4 + $0xf8] sm:$0xff] }
 0xa18   : > { %4827 = vst.msk [vmem:[%s6479_s13 + $0xb8] sm:$0xff] %vm972_vm2, %v4763_v19  ;;  %v6340_v46 = vpop.eup %6339  ;;  %v5103_v51 = vmul.f32 0.6931472, %v6338_v22  ;;  %v5175_v18 = vadd.f32 %v5099_v1, %v4919_v56 }
 0xa19   : > { %4826 = vst.msk [vmem:[%s6479_s13 + $0xb0] sm:$0xff] %vm972_vm2, %v4762_v21  ;;  %v4548_v0 = vpop.permute.xlu1 %4547  ;;  %v6342_v38 = vpop.eup %6341  ;;  %v5105_v30 = vmul.f32 0.6931472, %v6340_v46  ;;  %v5176_v2 = vadd.f32 %v5101_v62, %v4920_v33 }
 0xa1a   : > { %v4765_v26 = vmul.f32 %v4548_v0, %v4381_v12  ;;  %v4543_v11 = vpop.permute.xlu0 %4542  ;;  %5237 = vst.msk [vmem:[%s6484_s22 + $0x188] sm:$0xff] %vm3070_vm3, %v5173_v28  ;;  %5238 = vst.msk [vmem:[%s6484_s22 + $0x190] sm:$0xff] %vm3070_vm3, %v5174_v3  ;;  %v6344_v39 = vpop.eup %6343  ;;  %v5107_v27 = vmul.f32 0.6931472, %v6342_v38  ;;  %v5177_v53 = vadd.f32 %v5103_v51, %v4921_v52  ;;  %v4930_v12 = vld [vmem:[#allocation2 + $0x1f0] sm:$0xff] }
 0xa1b   : > { %v4764_v34 = vmul.f32 %v4543_v11, %v4380_v57  ;;  %5239 = vst.msk [vmem:[%s6484_s22 + $0x198] sm:$0xff] %vm3070_vm3, %v5175_v18  ;;  %v6346_v55 = vpop.eup %6345  ;;  %v5109_v45 = vmul.f32 0.6931472, %v6344_v39  ;;  %v5178_v9 = vadd.f32 %v5105_v30, %v4922_v61  ;;  %5240 = vst.msk [vmem:[%s6484_s22 + $0x1a0] sm:$0xff] %vm3070_vm3, %v5176_v2  ;;  %v4931_v57 = vld [vmem:[#allocation2 + $0x1f8] sm:$0xff]  ;;  %v4388_v11 = vld [vmem:[#allocation4 + $0x100] sm:$0xff] }
 0xa1c   : > { %4829 = vst.msk [vmem:[%s6479_s13 + $0xc8] sm:$0xff] %vm972_vm2, %v4765_v26  ;;  %v6348_v42 = vpop.eup %6347  ;;  %v5111_v31 = vmul.f32 0.6931472, %v6346_v55  ;;  %v5179_v25 = vadd.f32 %v5107_v27, %v4923_v17  ;;  %v4389_v26 = vld [vmem:[#allocation4 + $0x108] sm:$0xff] }
 0xa1d   : > { %4828 = vst.msk [vmem:[%s6479_s13 + $0xc0] sm:$0xff] %vm972_vm2, %v4764_v34  ;;  %v4558_v58 = vpop.permute.xlu1 %4557  ;;  %v6350_v4 = vpop.eup %6349  ;;  %v5113_v44 = vmul.f32 0.6931472, %v6348_v42  ;;  %v5180_v10 = vadd.f32 %v5109_v45, %v4924_v24  ;;  %v4391_v34 = vld [vmem:[#allocation4 + $0x118] sm:$0xff]  ;;  %v4392_v24 = vld [vmem:[#allocation4 + $0x120] sm:$0xff]  ;;  %v4394_v45 = vld [vmem:[#allocation4 + $0x130] sm:$0xff] }
 0xa1e   : > { %v4767_v35 = vmul.f32 %v4558_v58, %v4383_v59  ;;  %v4553_v32 = vpop.permute.xlu0 %4552  ;;  %5241 = vst.msk [vmem:[%s6484_s22 + $0x1a8] sm:$0xff] %vm3070_vm3, %v5177_v53  ;;  %5242 = vst.msk [vmem:[%s6484_s22 + $0x1b0] sm:$0xff] %vm3070_vm3, %v5178_v9  ;;  %v6352_v49 = vpop.eup %6351  ;;  %v5115_v48 = vmul.f32 0.6931472, %v6350_v4  ;;  %v5181_v14 = vadd.f32 %v5111_v31, %v4925_v5  ;;  %v4390_v59 = vld [vmem:[#allocation4 + $0x110] sm:$0xff]  ;;  %v4395_v5 = vld [vmem:[#allocation4 + $0x138] sm:$0xff] }
 0xa1f   : > { %v4766_v7 = vmul.f32 %v4553_v32, %v4382_v36  ;;  %5243 = vst.msk [vmem:[%s6484_s22 + $0x1b8] sm:$0xff] %vm3070_vm3, %v5179_v25  ;;  %v6354_v20 = vpop.eup %6353  ;;  %v5117_v8 = vmul.f32 0.6931472, %v6352_v49  ;;  %v5182_v15 = vadd.f32 %v5113_v44, %v4926_v63  ;;  %5244 = vst.msk [vmem:[%s6484_s22 + $0x1c0] sm:$0xff] %vm3070_vm3, %v5180_v10  ;;  %v4393_v36 = vld [vmem:[#allocation4 + $0x128] sm:$0xff]  ;;  %v4396_v31 = vld [vmem:[#allocation4 + $0x140] sm:$0xff] }
 0xa20   : > { %4831 = vst.msk [vmem:[%s6479_s13 + $0xd8] sm:$0xff] %vm972_vm2, %v4767_v35  ;;  %v6356_v6 = vpop.eup %6355  ;;  %v5119_v56 = vmul.f32 0.6931472, %v6354_v20  ;;  %v5183_v60 = vadd.f32 %v5115_v48, %v4927_v40  ;;  %v4397_v63 = vld [vmem:[#allocation4 + $0x148] sm:$0xff]  ;;  %v4399_v40 = vld [vmem:[#allocation4 + $0x158] sm:$0xff]  ;;  %v4398_v44 = vld [vmem:[#allocation4 + $0x150] sm:$0xff] }
 0xa21   : > { %4830 = vst.msk [vmem:[%s6479_s13 + $0xd0] sm:$0xff] %vm972_vm2, %v4766_v7  ;;  %v4568_v19 = vpop.permute.xlu1 %4567  ;;  %v6358_v50 = vpop.eup %6357  ;;  %v5121_v33 = vmul.f32 0.6931472, %v6356_v6  ;;  %v5184_v1 = vadd.f32 %v5117_v8, %v4928_v29  ;;  %v4401_v48 = vld [vmem:[#allocation4 + $0x168] sm:$0xff]  ;;  %v4402_v6 = vld [vmem:[#allocation4 + $0x170] sm:$0xff] }
 0xa22   : > { %v4769_v54 = vmul.f32 %v4568_v19, %v4385_v13  ;;  %v4563_v21 = vpop.permute.xlu0 %4562  ;;  %5245 = vst.msk [vmem:[%s6484_s22 + $0x1c8] sm:$0xff] %vm3070_vm3, %v5181_v14  ;;  %5246 = vst.msk [vmem:[%s6484_s22 + $0x1d0] sm:$0xff] %vm3070_vm3, %v5182_v15  ;;  %v5123_v28 = vmul.f32 0.6931472, %v6358_v50  ;;  %v5185_v22 = vadd.f32 %v5119_v56, %v4929_v47  ;;  %v4400_v14 = vld [vmem:[#allocation4 + $0x160] sm:$0xff]  ;;  %v4403_v15 = vld [vmem:[#allocation4 + $0x178] sm:$0xff] }
 0xa23   : > { %v4768_v37 = vmul.f32 %v4563_v21, %v4384_v43  ;;  %5247 = vst.msk [vmem:[%s6484_s22 + $0x1d8] sm:$0xff] %vm3070_vm3, %v5183_v60  ;;  %v5186_v52 = vadd.f32 %v5121_v33, %v4930_v12  ;;  %5248 = vst.msk [vmem:[%s6484_s22 + $0x1e0] sm:$0xff] %vm3070_vm3, %v5184_v1  ;;  %v4405_v60 = vld [vmem:[#allocation4 + $0x188] sm:$0xff]  ;;  %v4404_v50 = vld [vmem:[#allocation4 + $0x180] sm:$0xff] }
 0xa24   : > { %4833 = vst.msk [vmem:[%s6479_s13 + $0xe8] sm:$0xff] %vm972_vm2, %v4769_v54  ;;  %v5187_v3 = vadd.f32 %v5123_v28, %v4931_v57  ;;  %v4407_v1 = vld [vmem:[#allocation4 + $0x198] sm:$0xff] }
 0xa25   : > { %4832 = vst.msk [vmem:[%s6479_s13 + $0xe0] sm:$0xff] %vm972_vm2, %v4768_v37  ;;  %v4578_v0 = vpop.permute.xlu1 %4577 }
 0xa26   : > { %v4771_v62 = vmul.f32 %v4578_v0, %v4387_v16  ;;  %v4573_v23 = vpop.permute.xlu0 %4572  ;;  %5249 = vst.msk [vmem:[%s6484_s22 + $0x1e8] sm:$0xff] %vm3070_vm3, %v5185_v22  ;;  %5250 = vst.msk [vmem:[%s6484_s22 + $0x1f0] sm:$0xff] %vm3070_vm3, %v5186_v52 }
 0xa27   : > { %v4770_v46 = vmul.f32 %v4573_v23, %v4386_v41  ;;  %5251 = vst.msk [vmem:[%s6484_s22 + $0x1f8] sm:$0xff] %vm3070_vm3, %v5187_v3  ;;  %v4406_v41 = vld [vmem:[#allocation4 + $0x190] sm:$0xff]  ;;  %v4408_v23 = vld [vmem:[#allocation4 + $0x1a0] sm:$0xff] }
 0xa28   : > { %4835 = vst.msk [vmem:[%s6479_s13 + $0xf8] sm:$0xff] %vm972_vm2, %v4771_v62  ;;  %v4409_v62 = vld [vmem:[#allocation4 + $0x1a8] sm:$0xff] }
 0xa29   : > { %4834 = vst.msk [vmem:[%s6479_s13 + $0xf0] sm:$0xff] %vm972_vm2, %v4770_v46  ;;  %v4588_v61 = vpop.permute.xlu1 %4587 }
 0xa2a   : > { %v4773_v51 = vmul.f32 %v4588_v61, %v4389_v26  ;;  %v4583_v18 = vpop.permute.xlu0 %4582  ;;  %v4411_v61 = vld [vmem:[#allocation4 + $0x1b8] sm:$0xff] }
 0xa2b   : > { %v4772_v38 = vmul.f32 %v4583_v18, %v4388_v11 }
 0xa2c   : > { %4837 = vst.msk [vmem:[%s6479_s13 + $0x108] sm:$0xff] %vm972_vm2, %v4773_v51  ;;  %v4410_v51 = vld [vmem:[#allocation4 + $0x1b0] sm:$0xff] }
 0xa2d   : > { %4836 = vst.msk [vmem:[%s6479_s13 + $0x100] sm:$0xff] %vm972_vm2, %v4772_v38  ;;  %v4598_v17 = vpop.permute.xlu1 %4597 }
 0xa2e   : > { %v4775_v30 = vmul.f32 %v4598_v17, %v4391_v34  ;;  %v4593_v2 = vpop.permute.xlu0 %4592  ;;  %v4413_v17 = vld [vmem:[#allocation4 + $0x1c8] sm:$0xff] }
 0xa2f   : > { %v4774_v39 = vmul.f32 %v4593_v2, %v4390_v59 }
 0xa30   : > { %4839 = vst.msk [vmem:[%s6479_s13 + $0x118] sm:$0xff] %vm972_vm2, %v4775_v30  ;;  %v4412_v30 = vld [vmem:[#allocation4 + $0x1c0] sm:$0xff] }
 0xa31   : > { %4838 = vst.msk [vmem:[%s6479_s13 + $0x110] sm:$0xff] %vm972_vm2, %v4774_v39  ;;  %v4608_v27 = vpop.permute.xlu1 %4607 }
 0xa32   : > { %v4777_v53 = vmul.f32 %v4608_v27, %v4393_v36  ;;  %v4603_v55 = vpop.permute.xlu0 %4602  ;;  %v4415_v27 = vld [vmem:[#allocation4 + $0x1d8] sm:$0xff] }
 0xa33   : > { %v4776_v58 = vmul.f32 %v4603_v55, %v4392_v24 }
 0xa34   : > { %4841 = vst.msk [vmem:[%s6479_s13 + $0x128] sm:$0xff] %vm972_vm2, %v4777_v53  ;;  %v4414_v53 = vld [vmem:[#allocation4 + $0x1d0] sm:$0xff] }
 0xa35   : > { %4840 = vst.msk [vmem:[%s6479_s13 + $0x120] sm:$0xff] %vm972_vm2, %v4776_v58  ;;  %v4618_v9 = vpop.permute.xlu1 %4617 }
 0xa36   : > { %v4779_v42 = vmul.f32 %v4618_v9, %v4395_v5  ;;  %v4613_v35 = vpop.permute.xlu0 %4612  ;;  %v4417_v9 = vld [vmem:[#allocation4 + $0x1e8] sm:$0xff] }
 0xa37   : > { %v4778_v32 = vmul.f32 %v4613_v35, %v4394_v45 }
 0xa38   : > { %4843 = vst.msk [vmem:[%s6479_s13 + $0x138] sm:$0xff] %vm972_vm2, %v4779_v42  ;;  %v4416_v42 = vld [vmem:[#allocation4 + $0x1e0] sm:$0xff] }
 0xa39   : > { %4842 = vst.msk [vmem:[%s6479_s13 + $0x130] sm:$0xff] %vm972_vm2, %v4778_v32  ;;  %v4628_v25 = vpop.permute.xlu1 %4627 }
 0xa3a   : > { %v4781_v4 = vmul.f32 %v4628_v25, %v4397_v63  ;;  %v4623_v7 = vpop.permute.xlu0 %4622  ;;  %v4419_v25 = vld [vmem:[#allocation4 + $0x1f8] sm:$0xff] }
 0xa3b   : > { %v4780_v13 = vmul.f32 %v4623_v7, %v4396_v31 }
 0xa3c   : > { %4845 = vst.msk [vmem:[%s6479_s13 + $0x148] sm:$0xff] %vm972_vm2, %v4781_v4  ;;  %v4418_v4 = vld [vmem:[#allocation4 + $0x1f0] sm:$0xff] }
 0xa3d   : > { %4844 = vst.msk [vmem:[%s6479_s13 + $0x140] sm:$0xff] %vm972_vm2, %v4780_v13  ;;  %v4638_v10 = vpop.permute.xlu1 %4637 }
 0xa3e   : > { %v4783_v49 = vmul.f32 %v4638_v10, %v4399_v40  ;;  %v4633_v43 = vpop.permute.xlu0 %4632 }
 0xa3f   : > { %v4782_v29 = vmul.f32 %v4633_v43, %v4398_v44 }
 0xa40   : > { %4847 = vst.msk [vmem:[%s6479_s13 + $0x158] sm:$0xff] %vm972_vm2, %v4783_v49 }
 0xa41   : > { %4846 = vst.msk [vmem:[%s6479_s13 + $0x150] sm:$0xff] %vm972_vm2, %v4782_v29  ;;  %v4648_v20 = vpop.permute.xlu1 %4647 }
 0xa42   : > { %v4785_v19 = vmul.f32 %v4648_v20, %v4401_v48  ;;  %v4643_v47 = vpop.permute.xlu0 %4642 }
 0xa43   : > { %v4784_v8 = vmul.f32 %v4643_v47, %v4400_v14 }
 0xa44   : > { %4849 = vst.msk [vmem:[%s6479_s13 + $0x168] sm:$0xff] %vm972_vm2, %v4785_v19 }
 0xa45   : > { %4848 = vst.msk [vmem:[%s6479_s13 + $0x160] sm:$0xff] %vm972_vm2, %v4784_v8  ;;  %v4658_v54 = vpop.permute.xlu1 %4657 }
 0xa46   : > { %v4787_v21 = vmul.f32 %v4658_v54, %v4403_v15  ;;  %v4653_v12 = vpop.permute.xlu0 %4652 }
 0xa47   : > { %v4786_v56 = vmul.f32 %v4653_v12, %v4402_v6 }
 0xa48   : > { %4851 = vst.msk [vmem:[%s6479_s13 + $0x178] sm:$0xff] %vm972_vm2, %v4787_v21 }
 0xa49   : > { %4850 = vst.msk [vmem:[%s6479_s13 + $0x170] sm:$0xff] %vm972_vm2, %v4786_v56  ;;  %v4668_v37 = vpop.permute.xlu1 %4667 }
 0xa4a   : > { %v4789_v16 = vmul.f32 %v4668_v37, %v4405_v60  ;;  %v4663_v57 = vpop.permute.xlu0 %4662 }
 0xa4b   : > { %v4788_v33 = vmul.f32 %v4663_v57, %v4404_v50 }
 0xa4c   : > { %4853 = vst.msk [vmem:[%s6479_s13 + $0x188] sm:$0xff] %vm972_vm2, %v4789_v16 }
 0xa4d   : > { %4852 = vst.msk [vmem:[%s6479_s13 + $0x180] sm:$0xff] %vm972_vm2, %v4788_v33  ;;  %v4678_v28 = vpop.permute.xlu1 %4677 }
 0xa4e   : > { %v4791_v22 = vmul.f32 %v4678_v28, %v4407_v1  ;;  %v4673_v0 = vpop.permute.xlu0 %4672 }
 0xa4f   : > { %v4790_v52 = vmul.f32 %v4673_v0, %v4406_v41 }
 0xa50   : > { %4855 = vst.msk [vmem:[%s6479_s13 + $0x198] sm:$0xff] %vm972_vm2, %v4791_v22 }
 0xa51   : > { %4854 = vst.msk [vmem:[%s6479_s13 + $0x190] sm:$0xff] %vm972_vm2, %v4790_v52  ;;  %v4688_v3 = vpop.permute.xlu1 %4687 }
 0xa52   : > { %v4793_v46 = vmul.f32 %v4688_v3, %v4409_v62  ;;  %v4683_v26 = vpop.permute.xlu0 %4682 }
 0xa53   : > { %v4792_v11 = vmul.f32 %v4683_v26, %v4408_v23 }
 0xa54   : > { %4857 = vst.msk [vmem:[%s6479_s13 + $0x1a8] sm:$0xff] %vm972_vm2, %v4793_v46 }
 0xa55   : > { %4856 = vst.msk [vmem:[%s6479_s13 + $0x1a0] sm:$0xff] %vm972_vm2, %v4792_v11  ;;  %v4698_v18 = vpop.permute.xlu1 %4697 }
 0xa56   : > { %v4795_v38 = vmul.f32 %v4698_v18, %v4411_v61  ;;  %v4693_v34 = vpop.permute.xlu0 %4692 }
 0xa57   : > { %v4794_v59 = vmul.f32 %v4693_v34, %v4410_v51 }
 0xa58   : > { %4859 = vst.msk [vmem:[%s6479_s13 + $0x1b8] sm:$0xff] %vm972_vm2, %v4795_v38 }
 0xa59   : > { %4858 = vst.msk [vmem:[%s6479_s13 + $0x1b0] sm:$0xff] %vm972_vm2, %v4794_v59  ;;  %v4708_v2 = vpop.permute.xlu1 %4707 }
 0xa5a   : > { %v4797_v39 = vmul.f32 %v4708_v2, %v4413_v17  ;;  %v4703_v36 = vpop.permute.xlu0 %4702 }
 0xa5b   : > { %v4796_v24 = vmul.f32 %v4703_v36, %v4412_v30 }
 0xa5c   : > { %4861 = vst.msk [vmem:[%s6479_s13 + $0x1c8] sm:$0xff] %vm972_vm2, %v4797_v39 }
 0xa5d   : > { %4860 = vst.msk [vmem:[%s6479_s13 + $0x1c0] sm:$0xff] %vm972_vm2, %v4796_v24  ;;  %v4718_v55 = vpop.permute.xlu1 %4717 }
 0xa5e   : > { %v4799_v58 = vmul.f32 %v4718_v55, %v4415_v27  ;;  %v4713_v5 = vpop.permute.xlu0 %4712 }
 0xa5f   : > { %v4798_v45 = vmul.f32 %v4713_v5, %v4414_v53 }
 0xa60   : > { %4863 = vst.msk [vmem:[%s6479_s13 + $0x1d8] sm:$0xff] %vm972_vm2, %v4799_v58 }
 0xa61   : > { %4862 = vst.msk [vmem:[%s6479_s13 + $0x1d0] sm:$0xff] %vm972_vm2, %v4798_v45  ;;  %v4728_v35 = vpop.permute.xlu1 %4727 }
 0xa62   : > { %v4801_v32 = vmul.f32 %v4728_v35, %v4417_v9  ;;  %v4723_v63 = vpop.permute.xlu0 %4722 }
 0xa63   : > { %v4800_v31 = vmul.f32 %v4723_v63, %v4416_v42 }
 0xa64   : > { %4865 = vst.msk [vmem:[%s6479_s13 + $0x1e8] sm:$0xff] %vm972_vm2, %v4801_v32 }
 0xa65   : > { %4864 = vst.msk [vmem:[%s6479_s13 + $0x1e0] sm:$0xff] %vm972_vm2, %v4800_v31  ;;  %v4738_v7 = vpop.permute.xlu1 %4737 }
 0xa66   : > { %v4803_v13 = vmul.f32 %v4738_v7, %v4419_v25  ;;  %v4733_v40 = vpop.permute.xlu0 %4732 }
 0xa67   : > { %v4802_v44 = vmul.f32 %v4733_v40, %v4418_v4 }
 0xa68   : > { %4867 = vst.msk [vmem:[%s6479_s13 + $0x1f8] sm:$0xff] %vm972_vm2, %v4803_v13 }
 0xa69   : > { %4866 = vst.msk [vmem:[%s6479_s13 + $0x1f0] sm:$0xff] %vm972_vm2, %v4802_v44 }
 0xa6a PF: > { %s15_s19 = sadd.s32 1, %s6397_s19   ;;  %s10677_s15 = smov %s6389_s17 }
 0xa6b   : > { %p12_p9 = scmp.ge.s32.totalorder %s15_s19, 10   ;;  %s10678_s16 = smov %s6393_s18 }
 0xa6c   : > { %s10679_s17 = smov %s10682_s20  ;;  %s10680_s18 = smov %s10686_s21 }
 0xa6d   :  { %14 = sbr.rel (!%p12_p9) target bundleno = 3 (0x3), region = 88 }

</bundles_post_ra>
